<compile_context>
chip_gen: v7x
topology: tpu7x:2x2x1
jax: 0.10.0
libtpu: 0.0.40
codegen_flags: <defaults>
</compile_context>

<pallas_src>
import jax
import jax.numpy as jnp
from jax import lax
from jax.experimental import pallas as pl
from jax.experimental.pallas import tpu as pltpu

EPS = 1e-5
_VMEM_LIMIT = 40 * 1024 * 1024     # leave headroom under v7x's 64 MiB physical VMEM
_BLOCK_BUDGET = 20 * 1024 * 1024   # per-grid-step working-set target


# ---------------------------------------------------------------------------
# Fused conv kernel (B_blk flat images per grid step):
#   res  = [ReLU]( conv3x3_pad1( x*scale + shift ) + bias )   -- one MXU matmul
#   o    = res cast to out dtype (bf16 for inter-stage activations)
#   mean / m2 = per-image BatchNorm partials (Welford-combinable)
# ---------------------------------------------------------------------------
def _make_conv3x3_kernel(bblk, hw, img_w, cin, cout, nrows, relu):
    p0 = img_w + 1          # lead pad rows (covers the dy=-1, dx=-1 tap of pixel 0)
    stride = hw + img_w     # rows per image incl. the inter-image zero gap

    def kernel(x_ref, scale_ref, shift_ref, w_ref, b_ref,
               o_ref, mean_ref, m2_ref, apad_ref, col_ref):
        # ---- refresh zero pad/gap rows (cheap; image rows are overwritten below) ----
        apad_ref[pl.ds(0, p0), :] = jnp.zeros((p0, cin), jnp.float32)

        # ---- fused input affine (identity for conv1; BN fold (+time) otherwise) ----
        for b in range(bblk):
            s_b = p0 + b * stride
            hn_b = x_ref[b].astype(jnp.float32) * scale_ref[...] + shift_ref[b]
            apad_ref[pl.ds(s_b, hw), :] = hn_b
            gap = img_w if b + 1 < bblk else nrows - (s_b + hw)
            apad_ref[pl.ds(s_b + hw, gap), :] = jnp.zeros((gap, cin), jnp.float32)

        # ---- in-kernel edge masks (left/right column wrap of the flat layout) ----
        colid = lax.broadcasted_iota(jnp.int32, (hw, 1), 0) % img_w
        ml = colid != 0              # dx=-1 tap invalid in column 0
        mr = colid != (img_w - 1)    # dx=+1 tap invalid in column W-1

        # ---- implicit im2col: 9 shifted slices -> (B_blk*HW, 9*Cin) bf16 buffer ----
        for b in range(bblk):
            s_b = p0 + b * stride
            for dy in range(3):
                for dx in range(3):
                    start = s_b + (dy - 1) * img_w + (dx - 1)       # static offset
                    tap = apad_ref[pl.ds(start, hw), :]             # (HW, Cin) f32
                    if dx == 0:
                        tap = jnp.where(ml, tap, 0.0)
                    elif dx == 2:
                        tap = jnp.where(mr, tap, 0.0)
                    col_ref[pl.ds(b * hw, hw),
                            pl.ds((dy * 3 + dx) * cin, cin)] = tap.astype(jnp.bfloat16)

        # ---- single MXU matmul over K = 9*Cin, f32 accumulation ----
        res = jnp.dot(col_ref[...], w_ref[...],
                      preferred_element_type=jnp.float32) + b_ref[...]
        if relu:
            res = jnp.maximum(res, 0.0)

        # ---- store activations + per-image BN partials (from f32, pre-downcast) ----
        for b in range(bblk):
            rb = res[b * hw:(b + 1) * hw]                           # (HW, Cout) f32
            o_ref[b] = rb.astype(o_ref.dtype)
            mb = jnp.mean(rb, axis=0, keepdims=True)                # (1, Cout)
            mean_ref[b] = mb
            m2_ref[b] = jnp.sum((rb - mb) ** 2, axis=0, keepdims=True)

    return kernel


def _pick_bblk(n, hw, img_w, cin, cout):
    """Largest batch block that fits the per-step VMEM budget and (if possible)
    still leaves >= 2 grid blocks so a 2-TC chip (v7x) has work on both cores."""
    lane = lambda c: -(-c // 128) * 128

    def fits(b):
        nrows = -(-(b * (hw + img_w) + img_w + 2) // 8) * 8
        apad = nrows * lane(cin) * 4                       # f32 padded scratch
        col = b * hw * lane(9 * cin) * 2                   # bf16 im2col scratch
        io = 2 * b * hw * lane(cin) * 2 + 2 * b * hw * lane(cout) * 4  # dbl-buffered I/O
        return apad + col + io <= _BLOCK_BUDGET

    divs = [b for b in range(1, n + 1) if n % b == 0 and fits(b)]
    if not divs:
        return 1
    multi = [b for b in divs if n // b >= 2]
    return max(multi) if multi else max(divs)


def _conv3x3_pallas(x, scale, shift, w9, bias, *, img_w, relu, out_dtype, bblk):
    n, hw, cin = x.shape
    cout = w9.shape[-1]
    nblocks = n // bblk
    nrows = -(-(bblk * (hw + img_w) + img_w + 2) // 8) * 8

    kernel = _make_conv3x3_kernel(bblk, hw, img_w, cin, cout, nrows, relu)

    out_shape = (
        jax.ShapeDtypeStruct((n, hw, cout), out_dtype),    # activation
        jax.ShapeDtypeStruct((n, 1, cout), jnp.float32),   # per-image mean
        jax.ShapeDtypeStruct((n, 1, cout), jnp.float32),   # per-image centered sumsq
    )
    return pl.pallas_call(
        kernel,
        grid=(nblocks,),
        in_specs=[
            pl.BlockSpec((bblk, hw, cin), lambda i: (i, 0, 0)),     # B_blk images / step
            pl.BlockSpec((1, cin), lambda i: (0, 0)),               # shared scale
            pl.BlockSpec((bblk, 1, cin), lambda i: (i, 0, 0)),      # per-image shift
            pl.BlockSpec((9 * cin, cout), lambda i: (0, 0)),        # im2col weights
            pl.BlockSpec((1, cout), lambda i: (0, 0)),              # bias
        ],
        out_specs=(
            pl.BlockSpec((bblk, hw, cout), lambda i: (i, 0, 0)),
            pl.BlockSpec((bblk, 1, cout), lambda i: (i, 0, 0)),
            pl.BlockSpec((bblk, 1, cout), lambda i: (i, 0, 0)),
        ),
        out_shape=out_shape,
        scratch_shapes=[
            pltpu.VMEM((nrows, cin), jnp.float32),                  # padded flat image(s)
            pltpu.VMEM((bblk * hw, 9 * cin), jnp.bfloat16),         # im2col buffer
        ],
        compiler_params=pltpu.CompilerParams(
            dimension_semantics=("parallel",),                      # batch-block axis
            vmem_limit_bytes=_VMEM_LIMIT,
        ),
    )(x, scale, shift, w9, bias)


# ---------------------------------------------------------------------------
# Small host-side helpers (per-channel math / weight layout only)
# ---------------------------------------------------------------------------
def _bn_scale_shift(mean_i, m2_i, hw, gamma, beta):
    # mean_i, m2_i: (N, 1, C) per-image partials. Welford-style combine.
    n = mean_i.shape[0]
    mean = jnp.mean(mean_i, axis=0)                                   # (1, C)
    m2 = jnp.sum(m2_i, axis=0) + hw * jnp.sum((mean_i - mean) ** 2, axis=0)
    var = m2 / (n * hw)                                               # biased (training) var
    inv = lax.rsqrt(var + EPS)
    scale = gamma * inv
    shift = beta - mean * scale
    return scale, shift                                               # each (1, C)


def _space_to_depth_weights(w4):
    # 4x4 / stride-2 / pad-1 conv  ==  3x3 / stride-1 / pad-1 conv over the
    # space-to-depth(2) input with these rearranged (zero-filled) weights.
    _, _, cin, cout = w4.shape
    wp = jnp.zeros((3, 3, 4 * cin, cout), w4.dtype)
    for a in range(-1, 2):
        for b in range(-1, 2):
            for r in range(2):
                for s in range(2):
                    dy = 2 * a + r + 1
                    dx = 2 * b + s + 1
                    if 0 <= dy < 4 and 0 <= dx < 4:
                        ph = (2 * r + s) * cin
                        wp = wp.at[a + 1, b + 1, ph:ph + cin, :].set(w4[dy, dx])
    return wp


# ---------------------------------------------------------------------------
# Parameters (deterministic synthetic init; shapes from Block.__init__, up=False)
# ---------------------------------------------------------------------------
def init_block_params(key, in_ch, out_ch, time_emb_dim):
    ks = jax.random.split(key, 10)

    def w(k, shape, fan_in):
        return jax.random.normal(k, shape, jnp.float32) / jnp.sqrt(float(fan_in))

    return dict(
        conv1_w=w(ks[0], (3, 3, in_ch, out_ch), 9 * in_ch),       # HWIO
        conv1_b=w(ks[1], (1, out_ch), in_ch),
        conv2_w=w(ks[2], (3, 3, out_ch, out_ch), 9 * out_ch),
        conv2_b=w(ks[3], (1, out_ch), out_ch),
        time_w=w(ks[4], (time_emb_dim, out_ch), time_emb_dim),
        time_b=w(ks[5], (1, out_ch), time_emb_dim),
        trans_w=w(ks[6], (4, 4, out_ch, out_ch), 16 * out_ch),    # HWIO, stride-2 conv
        trans_b=w(ks[7], (1, out_ch), out_ch),
        bn1_g=1.0 + 0.1 * jax.random.normal(ks[8], (1, out_ch), jnp.float32),
        bn1_b=jnp.zeros((1, out_ch), jnp.float32),
        bn2_g=1.0 + 0.1 * jax.random.normal(ks[9], (1, out_ch), jnp.float32),
        bn2_b=jnp.zeros((1, out_ch), jnp.float32),
    )


# ---------------------------------------------------------------------------
# Forward (Pallas)
# ---------------------------------------------------------------------------
def block_forward_pallas(params, x_nchw, t):
    x_nchw = x_nchw.astype(jnp.float32)
    t = t.astype(jnp.float32)
    n, cin, h, w = x_nchw.shape
    cout = params["conv1_b"].shape[-1]
    assert h % 2 == 0 and w % 2 == 0
    hw = h * w

    # NCHW -> flat NHWC (channel on the lane axis); bf16 matmul operands.
    x_flat = jnp.transpose(x_nchw, (0, 2, 3, 1)).reshape(n, hw, cin).astype(jnp.bfloat16)

    # Host-side weight relayout for the single-matmul im2col (K = 9*Cin).
    w9_1 = params["conv1_w"].reshape(9 * cin, cout).astype(jnp.bfloat16)
    w9_2 = params["conv2_w"].reshape(9 * cout, cout).astype(jnp.bfloat16)
    w9_3 = _space_to_depth_weights(params["trans_w"]).reshape(
        9 * 4 * cout, cout).astype(jnp.bfloat16)

    # ---- stage 1: conv1(3x3, pad 1) + ReLU; emits BN1 partial stats ----
    one_in = jnp.ones((1, cin), jnp.float32)
    zero_in = jnp.zeros((n, 1, cin), jnp.float32)
    b1 = _pick_bblk(n, hw, w, cin, cout)
    r1, mu1, m21 = _conv3x3_pallas(
        x_flat, one_in, zero_in, w9_1, params["conv1_b"],
        img_w=w, relu=True, out_dtype=jnp.bfloat16, bblk=b1)

    # Time embedding: tiny (N, T) x (T, C) matmul in plain XLA, folded into BN1 shift.
    te = jnp.maximum(jnp.dot(t, params["time_w"]) + params["time_b"], 0.0)   # (N, C)
    scale1, shift1 = _bn_scale_shift(mu1, m21, hw, params["bn1_g"], params["bn1_b"])
    shift1_n = (shift1 + te).reshape(n, 1, cout)                             # per-image

    # ---- stage 2: BN1-apply + time-add + conv2(3x3) + ReLU; BN2 partial stats ----
    b2 = _pick_bblk(n, hw, w, cout, cout)
    r2, mu2, m22 = _conv3x3_pallas(
        r1, scale1, shift1_n, w9_2, params["conv2_b"],
        img_w=w, relu=True, out_dtype=jnp.bfloat16, bblk=b2)
    scale2, shift2 = _bn_scale_shift(mu2, m22, hw, params["bn2_g"], params["bn2_b"])

    # ---- stage 3: BN2-apply + Conv2d(4x4, stride 2, pad 1) via space-to-depth ----
    ho, wo = h // 2, w // 2
    # TODO(synk): fold this bf16 relayout into stage-2's output store.
    r2_s2d = jnp.transpose(r2.reshape(n, ho, 2, wo, 2, cout),
                           (0, 1, 3, 2, 4, 5)).reshape(n, ho * wo, 4 * cout)
    scale2_s2d = jnp.tile(scale2, (1, 4))
    shift2_s2d = jnp.broadcast_to(jnp.tile(shift2, (1, 4)),
                                  (n, 4 * cout)).reshape(n, 1, 4 * cout)
    b3 = _pick_bblk(n, ho * wo, wo, 4 * cout, cout)
    y_flat, _, _ = _conv3x3_pallas(
        r2_s2d, scale2_s2d, shift2_s2d, w9_3, params["trans_b"],
        img_w=wo, relu=False, out_dtype=jnp.float32, bblk=b3)

    y = y_flat.reshape(n, ho, wo, cout)
    return jnp.transpose(y, (0, 3, 1, 2))                                    # NHWC -> NCHW


# ---------------------------------------------------------------------------
# Pure-JAX reference (mirrors the bf16-operand convs and bf16 inter-stage acts)
# ---------------------------------------------------------------------------
def reference_forward(params, x_nchw, t):
    x = jnp.transpose(x_nchw, (0, 2, 3, 1)).astype(jnp.float32)

    def conv(hh, wgt, strides):
        dn = lax.conv_dimension_numbers(hh.shape, wgt.shape, ("NHWC", "HWIO", "NHWC"))
        return lax.conv_general_dilated(
            hh.astype(jnp.bfloat16), wgt.astype(jnp.bfloat16), strides,
            ((1, 1), (1, 1)), dimension_numbers=dn,
            preferred_element_type=jnp.float32)

    def bn_fold(hh, g, b):
        mean = jnp.mean(hh, axis=(0, 1, 2))
        var = jnp.mean((hh - mean) ** 2, axis=(0, 1, 2))
        inv = lax.rsqrt(var + EPS)
        scale = g.reshape(-1) * inv
        shift = b.reshape(-1) - mean * scale
        return scale, shift

    t = t.astype(jnp.float32)
    r1 = jnp.maximum(conv(x, params["conv1_w"], (1, 1))
                     + params["conv1_b"].reshape(1, 1, 1, -1), 0.0)
    sc1, sh1 = bn_fold(r1, params["bn1_g"], params["bn1_b"])
    te = jnp.maximum(jnp.dot(t, params["time_w"]) + params["time_b"], 0.0)
    r1_q = r1.astype(jnp.bfloat16).astype(jnp.float32)   # mirror bf16 inter-stage act
    h = r1_q * sc1 + (sh1 + te[:, None, None, :])
    r2 = jnp.maximum(conv(h, params["conv2_w"], (1, 1))
                     + params["conv2_b"].reshape(1, 1, 1, -1), 0.0)
    sc2, sh2 = bn_fold(r2, params["bn2_g"], params["bn2_b"])
    r2_q = r2.astype(jnp.bfloat16).astype(jnp.float32)
    h2 = r2_q * sc2 + sh2
    y = conv(h2, params["trans_w"], (2, 2)) + params["trans_b"].reshape(1, 1, 1, -1)
    return jnp.transpose(y, (0, 3, 1, 2))


if __name__ == "__main__":
    key = jax.random.PRNGKey(0)
    k_p, k_x, k_t = jax.random.split(key, 3)

    in_ch, out_ch, time_emb_dim = 4, 8, 32
    N, H, W = 2, 16, 16

    params = init_block_params(k_p, in_ch, out_ch, time_emb_dim)
    x = jax.random.normal(k_x, (N, in_ch, H, W), jnp.float32)
    t = jax.random.normal(k_t, (N, time_emb_dim), jnp.float32)

    y = jax.jit(block_forward_pallas)(params, x, t)
    y = jax.block_until_ready(y)
    assert y.shape == (N, out_ch, H // 2, W // 2), y.shape

    y_ref = reference_forward(params, x, t)
    max_err = float(jnp.max(jnp.abs(y - y_ref)))
    assert jnp.allclose(y, y_ref, atol=5e-3, rtol=5e-3), max_err

    print("KERNEL_OK")
</pallas_src>

<mosaic_0001>
module attributes {stable_mosaic.version = 11 : i64} {
  func.func @kernel(%arg0: i32, %arg1: memref<1x256x8xbf16, #tpu.memory_space<vmem>>, %arg2: memref<1x8xf32, #tpu.memory_space<vmem>>, %arg3: memref<1x1x8xf32, #tpu.memory_space<vmem>>, %arg4: memref<72x8xbf16, #tpu.memory_space<vmem>>, %arg5: memref<1x8xf32, #tpu.memory_space<vmem>>, %arg6: memref<1x256x8xbf16, #tpu.memory_space<vmem>>, %arg7: memref<1x1x8xf32, #tpu.memory_space<vmem>>, %arg8: memref<1x1x8xf32, #tpu.memory_space<vmem>>, %arg9: memref<296x8xf32, #tpu.memory_space<vmem>>, %arg10: memref<256x72xbf16, #tpu.memory_space<vmem>>) attributes {dimension_semantics = [#tpu.dimension_semantics<parallel>], iteration_bounds = array<i64: 2>, scalar_prefetch = 0 : i64, scratch_operands = 2 : i64, tpu.core_type = #tpu.core_type<tc>, window_params = [{transform_indices = @transform_0, window_bounds = array<i64: 1, 256, 8>}, {pipeline_mode = #tpu.pipeline_mode<synchronous>, transform_indices = @transform_1, window_bounds = array<i64: 1, 8>}, {transform_indices = @transform_2, window_bounds = array<i64: 1, 1, 8>}, {pipeline_mode = #tpu.pipeline_mode<synchronous>, transform_indices = @transform_3, window_bounds = array<i64: 72, 8>}, {pipeline_mode = #tpu.pipeline_mode<synchronous>, transform_indices = @transform_4, window_bounds = array<i64: 1, 8>}, {transform_indices = @transform_5, window_bounds = array<i64: 1, 256, 8>}, {transform_indices = @transform_6, window_bounds = array<i64: 1, 1, 8>}, {transform_indices = @transform_7, window_bounds = array<i64: 1, 1, 8>}]} {
    %cst = arith.constant 0.000000e+00 : f32
    %0 = vector.broadcast %cst : f32 to vector<17x8xf32>
    %c0 = arith.constant 0 : index
    %c0_0 = arith.constant 0 : index
    %1 = vector.load %arg9[%c0, %c0_0] : memref<296x8xf32, #tpu.memory_space<vmem>>, vector<17x8xf32>
    tpu.vector_store %arg9[%c0, %c0_0], %0 {strides = array<i32>} : memref<296x8xf32, #tpu.memory_space<vmem>>, vector<17x8xf32>,
    %c0_1 = arith.constant 0 : index
    %c0_2 = arith.constant 0 : index
    %c0_3 = arith.constant 0 : index
    %2 = vector.load %arg1[%c0_1, %c0_2, %c0_3] : memref<1x256x8xbf16, #tpu.memory_space<vmem>>, vector<1x256x8xbf16>
    %3 = vector.shape_cast %2 : vector<1x256x8xbf16> to vector<256x8xbf16>
    %4 = arith.extf %3 : vector<256x8xbf16> to vector<256x8xf32>
    %c0_4 = arith.constant 0 : index
    %c0_5 = arith.constant 0 : index
    %5 = vector.load %arg2[%c0_4, %c0_5] : memref<1x8xf32, #tpu.memory_space<vmem>>, vector<1x8xf32>
    %6 = vector.broadcast %5 : vector<1x8xf32> to vector<256x8xf32>
    %7 = arith.mulf %4, %6 : vector<256x8xf32>
    %c0_6 = arith.constant 0 : index
    %c0_7 = arith.constant 0 : index
    %c0_8 = arith.constant 0 : index
    %8 = vector.load %arg3[%c0_6, %c0_7, %c0_8] : memref<1x1x8xf32, #tpu.memory_space<vmem>>, vector<1x1x8xf32>
    %9 = vector.shape_cast %8 : vector<1x1x8xf32> to vector<1x8xf32>
    %10 = vector.broadcast %9 : vector<1x8xf32> to vector<256x8xf32>
    %11 = arith.addf %7, %10 : vector<256x8xf32>
    %c17 = arith.constant 17 : index
    %c0_9 = arith.constant 0 : index
    %12 = vector.load %arg9[%c17, %c0_9] : memref<296x8xf32, #tpu.memory_space<vmem>>, vector<256x8xf32>
    tpu.vector_store %arg9[%c17, %c0_9], %11 {strides = array<i32>} : memref<296x8xf32, #tpu.memory_space<vmem>>, vector<256x8xf32>,
    %cst_10 = arith.constant 0.000000e+00 : f32
    %13 = vector.broadcast %cst_10 : f32 to vector<23x8xf32>
    %c273 = arith.constant 273 : index
    %c0_11 = arith.constant 0 : index
    %14 = vector.load %arg9[%c273, %c0_11] : memref<296x8xf32, #tpu.memory_space<vmem>>, vector<23x8xf32>
    tpu.vector_store %arg9[%c273, %c0_11], %13 {strides = array<i32>} : memref<296x8xf32, #tpu.memory_space<vmem>>, vector<23x8xf32>,
    %15 = tpu.iota {dimensions = array<i32: 0>} : vector<256x1xi32>
    %c16_i32 = arith.constant 16 : i32
    %c0_i32 = arith.constant 0 : i32
    %16 = arith.cmpi eq, %c16_i32, %c0_i32 : i32
    %c1_i32 = arith.constant 1 : i32
    %17 = arith.select %16, %c1_i32, %c16_i32 : i32
    %18 = vector.broadcast %17 : i32 to vector<256x1xi32>
    %19 = arith.remsi %15, %18 : vector<256x1xi32>
    %c0_i32_12 = arith.constant 0 : i32
    %20 = vector.broadcast %c0_i32_12 : i32 to vector<256x1xi32>
    %21 = arith.cmpi ne, %19, %20 : vector<256x1xi32>
    %c0_i32_13 = arith.constant 0 : i32
    %22 = vector.broadcast %c0_i32_13 : i32 to vector<256x1xi32>
    %23 = arith.cmpi slt, %19, %22 : vector<256x1xi32>
    %c0_i32_14 = arith.constant 0 : i32
    %24 = arith.cmpi slt, %17, %c0_i32_14 : i32
    %25 = vector.broadcast %24 : i1 to vector<256x1xi1>
    %26 = vector.broadcast %25 : vector<256x1xi1> to vector<256x1xi1>
    %27 = arith.xori %23, %26 : vector<256x1xi1>
    %28 = arith.andi %27, %21 : vector<256x1xi1>
    %29 = vector.broadcast %17 : i32 to vector<256x1xi32>
    %30 = arith.addi %19, %29 : vector<256x1xi32>
    %31 = arith.select %28, %30, %19 : vector<256x1xi1>, vector<256x1xi32>
    %c0_i32_15 = arith.constant 0 : i32
    %32 = vector.broadcast %c0_i32_15 : i32 to vector<256x1xi32>
    %33 = arith.cmpi ne, %31, %32 : vector<256x1xi32>
    %c15_i32 = arith.constant 15 : i32
    %34 = vector.broadcast %c15_i32 : i32 to vector<256x1xi32>
    %35 = arith.cmpi ne, %31, %34 : vector<256x1xi32>
    %c0_16 = arith.constant 0 : index
    %c0_17 = arith.constant 0 : index
    %36 = vector.load %arg9[%c0_16, %c0_17] : memref<296x8xf32, #tpu.memory_space<vmem>>, vector<256x8xf32>
    %cst_18 = arith.constant 0.000000e+00 : f32
    %37 = vector.shape_cast %33 : vector<256x1xi1> to vector<256x1xi1>
    %38 = vector.broadcast %37 : vector<256x1xi1> to vector<256x8xi1>
    %39 = vector.broadcast %cst_18 : f32 to vector<256x8xf32>
    %40 = arith.select %38, %36, %39 : vector<256x8xi1>, vector<256x8xf32>
    %41 = arith.truncf %40 : vector<256x8xf32> to vector<256x8xbf16>
    %c0_19 = arith.constant 0 : index
    %c0_20 = arith.constant 0 : index
    %42 = vector.load %arg10[%c0_19, %c0_20] : memref<256x72xbf16, #tpu.memory_space<vmem>>, vector<256x8xbf16>
    tpu.vector_store %arg10[%c0_19, %c0_20], %41 {strides = array<i32>} : memref<256x72xbf16, #tpu.memory_space<vmem>>, vector<256x8xbf16>,
    %c1 = arith.constant 1 : index
    %c0_21 = arith.constant 0 : index
    %43 = vector.load %arg9[%c1, %c0_21] : memref<296x8xf32, #tpu.memory_space<vmem>>, vector<256x8xf32>
    %44 = arith.truncf %43 : vector<256x8xf32> to vector<256x8xbf16>
    %c0_22 = arith.constant 0 : index
    %c8 = arith.constant 8 : index
    %45 = vector.load %arg10[%c0_22, %c8] : memref<256x72xbf16, #tpu.memory_space<vmem>>, vector<256x8xbf16>
    tpu.vector_store %arg10[%c0_22, %c8], %44 {strides = array<i32>} : memref<256x72xbf16, #tpu.memory_space<vmem>>, vector<256x8xbf16>,
    %c2 = arith.constant 2 : index
    %c0_23 = arith.constant 0 : index
    %46 = vector.load %arg9[%c2, %c0_23] : memref<296x8xf32, #tpu.memory_space<vmem>>, vector<256x8xf32>
    %cst_24 = arith.constant 0.000000e+00 : f32
    %47 = vector.shape_cast %35 : vector<256x1xi1> to vector<256x1xi1>
    %48 = vector.broadcast %47 : vector<256x1xi1> to vector<256x8xi1>
    %49 = vector.broadcast %cst_24 : f32 to vector<256x8xf32>
    %50 = arith.select %48, %46, %49 : vector<256x8xi1>, vector<256x8xf32>
    %51 = arith.truncf %50 : vector<256x8xf32> to vector<256x8xbf16>
    %c0_25 = arith.constant 0 : index
    %c16 = arith.constant 16 : index
    %52 = vector.load %arg10[%c0_25, %c16] : memref<256x72xbf16, #tpu.memory_space<vmem>>, vector<256x8xbf16>
    tpu.vector_store %arg10[%c0_25, %c16], %51 {strides = array<i32>} : memref<256x72xbf16, #tpu.memory_space<vmem>>, vector<256x8xbf16>,
    %c16_26 = arith.constant 16 : index
    %c0_27 = arith.constant 0 : index
    %53 = vector.load %arg9[%c16_26, %c0_27] : memref<296x8xf32, #tpu.memory_space<vmem>>, vector<256x8xf32>
    %cst_28 = arith.constant 0.000000e+00 : f32
    %54 = vector.shape_cast %33 : vector<256x1xi1> to vector<256x1xi1>
    %55 = vector.broadcast %54 : vector<256x1xi1> to vector<256x8xi1>
    %56 = vector.broadcast %cst_28 : f32 to vector<256x8xf32>
    %57 = arith.select %55, %53, %56 : vector<256x8xi1>, vector<256x8xf32>
    %58 = arith.truncf %57 : vector<256x8xf32> to vector<256x8xbf16>
    %c0_29 = arith.constant 0 : index
    %c24 = arith.constant 24 : index
    %59 = vector.load %arg10[%c0_29, %c24] : memref<256x72xbf16, #tpu.memory_space<vmem>>, vector<256x8xbf16>
    tpu.vector_store %arg10[%c0_29, %c24], %58 {strides = array<i32>} : memref<256x72xbf16, #tpu.memory_space<vmem>>, vector<256x8xbf16>,
    %c17_30 = arith.constant 17 : index
    %c0_31 = arith.constant 0 : index
    %60 = vector.load %arg9[%c17_30, %c0_31] : memref<296x8xf32, #tpu.memory_space<vmem>>, vector<256x8xf32>
    %61 = arith.truncf %60 : vector<256x8xf32> to vector<256x8xbf16>
    %c0_32 = arith.constant 0 : index
    %c32 = arith.constant 32 : index
    %62 = vector.load %arg10[%c0_32, %c32] : memref<256x72xbf16, #tpu.memory_space<vmem>>, vector<256x8xbf16>
    tpu.vector_store %arg10[%c0_32, %c32], %61 {strides = array<i32>} : memref<256x72xbf16, #tpu.memory_space<vmem>>, vector<256x8xbf16>,
    %c18 = arith.constant 18 : index
    %c0_33 = arith.constant 0 : index
    %63 = vector.load %arg9[%c18, %c0_33] : memref<296x8xf32, #tpu.memory_space<vmem>>, vector<256x8xf32>
    %cst_34 = arith.constant 0.000000e+00 : f32
    %64 = vector.shape_cast %35 : vector<256x1xi1> to vector<256x1xi1>
    %65 = vector.broadcast %64 : vector<256x1xi1> to vector<256x8xi1>
    %66 = vector.broadcast %cst_34 : f32 to vector<256x8xf32>
    %67 = arith.select %65, %63, %66 : vector<256x8xi1>, vector<256x8xf32>
    %68 = arith.truncf %67 : vector<256x8xf32> to vector<256x8xbf16>
    %c0_35 = arith.constant 0 : index
    %c40 = arith.constant 40 : index
    %69 = vector.load %arg10[%c0_35, %c40] : memref<256x72xbf16, #tpu.memory_space<vmem>>, vector<256x8xbf16>
    tpu.vector_store %arg10[%c0_35, %c40], %68 {strides = array<i32>} : memref<256x72xbf16, #tpu.memory_space<vmem>>, vector<256x8xbf16>,
    %c32_36 = arith.constant 32 : index
    %c0_37 = arith.constant 0 : index
    %70 = vector.load %arg9[%c32_36, %c0_37] : memref<296x8xf32, #tpu.memory_space<vmem>>, vector<256x8xf32>
    %cst_38 = arith.constant 0.000000e+00 : f32
    %71 = vector.shape_cast %33 : vector<256x1xi1> to vector<256x1xi1>
    %72 = vector.broadcast %71 : vector<256x1xi1> to vector<256x8xi1>
    %73 = vector.broadcast %cst_38 : f32 to vector<256x8xf32>
    %74 = arith.select %72, %70, %73 : vector<256x8xi1>, vector<256x8xf32>
    %75 = arith.truncf %74 : vector<256x8xf32> to vector<256x8xbf16>
    %c0_39 = arith.constant 0 : index
    %c48 = arith.constant 48 : index
    %76 = vector.load %arg10[%c0_39, %c48] : memref<256x72xbf16, #tpu.memory_space<vmem>>, vector<256x8xbf16>
    tpu.vector_store %arg10[%c0_39, %c48], %75 {strides = array<i32>} : memref<256x72xbf16, #tpu.memory_space<vmem>>, vector<256x8xbf16>,
    %c33 = arith.constant 33 : index
    %c0_40 = arith.constant 0 : index
    %77 = vector.load %arg9[%c33, %c0_40] : memref<296x8xf32, #tpu.memory_space<vmem>>, vector<256x8xf32>
    %78 = arith.truncf %77 : vector<256x8xf32> to vector<256x8xbf16>
    %c0_41 = arith.constant 0 : index
    %c56 = arith.constant 56 : index
    %79 = vector.load %arg10[%c0_41, %c56] : memref<256x72xbf16, #tpu.memory_space<vmem>>, vector<256x8xbf16>
    tpu.vector_store %arg10[%c0_41, %c56], %78 {strides = array<i32>} : memref<256x72xbf16, #tpu.memory_space<vmem>>, vector<256x8xbf16>,
    %c34 = arith.constant 34 : index
    %c0_42 = arith.constant 0 : index
    %80 = vector.load %arg9[%c34, %c0_42] : memref<296x8xf32, #tpu.memory_space<vmem>>, vector<256x8xf32>
    %cst_43 = arith.constant 0.000000e+00 : f32
    %81 = vector.shape_cast %35 : vector<256x1xi1> to vector<256x1xi1>
    %82 = vector.broadcast %81 : vector<256x1xi1> to vector<256x8xi1>
    %83 = vector.broadcast %cst_43 : f32 to vector<256x8xf32>
    %84 = arith.select %82, %80, %83 : vector<256x8xi1>, vector<256x8xf32>
    %85 = arith.truncf %84 : vector<256x8xf32> to vector<256x8xbf16>
    %c0_44 = arith.constant 0 : index
    %c64 = arith.constant 64 : index
    %86 = vector.load %arg10[%c0_44, %c64] : memref<256x72xbf16, #tpu.memory_space<vmem>>, vector<256x8xbf16>
    tpu.vector_store %arg10[%c0_44, %c64], %85 {strides = array<i32>} : memref<256x72xbf16, #tpu.memory_space<vmem>>, vector<256x8xbf16>,
    %c0_45 = arith.constant 0 : index
    %c0_46 = arith.constant 0 : index
    %87 = vector.load %arg10[%c0_45, %c0_46] : memref<256x72xbf16, #tpu.memory_space<vmem>>, vector<256x72xbf16>
    %c0_47 = arith.constant 0 : index
    %c0_48 = arith.constant 0 : index
    %88 = vector.load %arg4[%c0_47, %c0_48] : memref<72x8xbf16, #tpu.memory_space<vmem>>, vector<72x8xbf16>
    %cst_49 = arith.constant dense<0.000000e+00> : vector<256x8xf32>
    %89 = tpu.matmul %87, %88, %cst_49 {dimension_numbers = #tpu.dot_dimension_numbers<[1], [0], [0], [1], [0, 0, 1, 1], [], []>} : vector<256x72xbf16>, vector<72x8xbf16>, vector<256x8xf32> -> vector<256x8xf32>
    %c0_50 = arith.constant 0 : index
    %c0_51 = arith.constant 0 : index
    %90 = vector.load %arg5[%c0_50, %c0_51] : memref<1x8xf32, #tpu.memory_space<vmem>>, vector<1x8xf32>
    %91 = vector.broadcast %90 : vector<1x8xf32> to vector<256x8xf32>
    %92 = arith.addf %89, %91 : vector<256x8xf32>
    %cst_52 = arith.constant 0.000000e+00 : f32
    %93 = vector.broadcast %cst_52 : f32 to vector<256x8xf32>
    %94 = arith.maximumf %92, %93 : vector<256x8xf32>
    %95 = arith.truncf %94 : vector<256x8xf32> to vector<256x8xbf16>
    %c0_53 = arith.constant 0 : index
    %c0_54 = arith.constant 0 : index
    %c0_55 = arith.constant 0 : index
    %96 = vector.load %arg6[%c0_53, %c0_54, %c0_55] : memref<1x256x8xbf16, #tpu.memory_space<vmem>>, vector<1x256x8xbf16>
    %97 = vector.shape_cast %96 : vector<1x256x8xbf16> to vector<256x8xbf16>
    %98 = vector.shape_cast %95 : vector<256x8xbf16> to vector<1x256x8xbf16>
    tpu.vector_store %arg6[%c0_53, %c0_54, %c0_55], %98 {strides = array<i32>} : memref<1x256x8xbf16, #tpu.memory_space<vmem>>, vector<1x256x8xbf16>,
    %cst_56 = arith.constant dense<0.000000e+00> : vector<8xf32>
    %99 = vector.multi_reduction <add>, %94, %cst_56 [0] : vector<256x8xf32> to vector<8xf32>
    %100 = vector.shape_cast %99 : vector<8xf32> to vector<1x8xf32>
    %cst_57 = arith.constant 2.560000e+02 : f32
    %101 = vector.broadcast %cst_57 : f32 to vector<1x8xf32>
    %102 = arith.divf %100, %101 : vector<1x8xf32>
    %c0_58 = arith.constant 0 : index
    %c0_59 = arith.constant 0 : index
    %c0_60 = arith.constant 0 : index
    %103 = vector.load %arg7[%c0_58, %c0_59, %c0_60] : memref<1x1x8xf32, #tpu.memory_space<vmem>>, vector<1x1x8xf32>
    %104 = vector.shape_cast %103 : vector<1x1x8xf32> to vector<1x8xf32>
    %105 = vector.shape_cast %102 : vector<1x8xf32> to vector<1x1x8xf32>
    tpu.vector_store %arg7[%c0_58, %c0_59, %c0_60], %105 {strides = array<i32>} : memref<1x1x8xf32, #tpu.memory_space<vmem>>, vector<1x1x8xf32>,
    %106 = vector.broadcast %102 : vector<1x8xf32> to vector<256x8xf32>
    %107 = arith.subf %94, %106 : vector<256x8xf32>
    %108 = arith.mulf %107, %107 : vector<256x8xf32>
    %cst_61 = arith.constant dense<0.000000e+00> : vector<8xf32>
    %109 = vector.multi_reduction <add>, %108, %cst_61 [0] : vector<256x8xf32> to vector<8xf32>
    %110 = vector.shape_cast %109 : vector<8xf32> to vector<1x8xf32>
    %c0_62 = arith.constant 0 : index
    %c0_63 = arith.constant 0 : index
    %c0_64 = arith.constant 0 : index
    %111 = vector.load %arg8[%c0_62, %c0_63, %c0_64] : memref<1x1x8xf32, #tpu.memory_space<vmem>>, vector<1x1x8xf32>
    %112 = vector.shape_cast %111 : vector<1x1x8xf32> to vector<1x8xf32>
    %113 = vector.shape_cast %110 : vector<1x8xf32> to vector<1x1x8xf32>
    tpu.vector_store %arg8[%c0_62, %c0_63, %c0_64], %113 {strides = array<i32>} : memref<1x1x8xf32, #tpu.memory_space<vmem>>, vector<1x1x8xf32>,
    return
  }
  func.func @transform_0(%arg0: i32) -> (i32, i32, i32) {
    %c0_i32 = arith.constant 0 : i32
    %c0_i32_0 = arith.constant 0 : i32
    %c0_i32_1 = arith.constant 0 : i32
    return %arg0, %c0_i32, %c0_i32_0 : i32, i32, i32
  }
  func.func @transform_1(%arg0: i32) -> (i32, i32) {
    %c0_i32 = arith.constant 0 : i32
    %c0_i32_0 = arith.constant 0 : i32
    %c0_i32_1 = arith.constant 0 : i32
    return %c0_i32, %c0_i32_0 : i32, i32
  }
  func.func @transform_2(%arg0: i32) -> (i32, i32, i32) {
    %c0_i32 = arith.constant 0 : i32
    %c0_i32_0 = arith.constant 0 : i32
    %c0_i32_1 = arith.constant 0 : i32
    return %arg0, %c0_i32, %c0_i32_0 : i32, i32, i32
  }
  func.func @transform_3(%arg0: i32) -> (i32, i32) {
    %c0_i32 = arith.constant 0 : i32
    %c0_i32_0 = arith.constant 0 : i32
    %c0_i32_1 = arith.constant 0 : i32
    return %c0_i32, %c0_i32_0 : i32, i32
  }
  func.func @transform_4(%arg0: i32) -> (i32, i32) {
    %c0_i32 = arith.constant 0 : i32
    %c0_i32_0 = arith.constant 0 : i32
    %c0_i32_1 = arith.constant 0 : i32
    return %c0_i32, %c0_i32_0 : i32, i32
  }
  func.func @transform_5(%arg0: i32) -> (i32, i32, i32) {
    %c0_i32 = arith.constant 0 : i32
    %c0_i32_0 = arith.constant 0 : i32
    %c0_i32_1 = arith.constant 0 : i32
    return %arg0, %c0_i32, %c0_i32_0 : i32, i32, i32
  }
  func.func @transform_6(%arg0: i32) -> (i32, i32, i32) {
    %c0_i32 = arith.constant 0 : i32
    %c0_i32_0 = arith.constant 0 : i32
    %c0_i32_1 = arith.constant 0 : i32
    return %arg0, %c0_i32, %c0_i32_0 : i32, i32, i32
  }
  func.func @transform_7(%arg0: i32) -> (i32, i32, i32) {
    %c0_i32 = arith.constant 0 : i32
    %c0_i32_0 = arith.constant 0 : i32
    %c0_i32_1 = arith.constant 0 : i32
    return %arg0, %c0_i32, %c0_i32_0 : i32, i32, i32
  }
}

module attributes {stable_mosaic.version = 11 : i64} {
  func.func @kernel(%arg0: i32, %arg1: memref<1x256x4xbf16, #tpu.memory_space<vmem>>, %arg2: memref<1x4xf32, #tpu.memory_space<vmem>>, %arg3: memref<1x1x4xf32, #tpu.memory_space<vmem>>, %arg4: memref<36x8xbf16, #tpu.memory_space<vmem>>, %arg5: memref<1x8xf32, #tpu.memory_space<vmem>>, %arg6: memref<1x256x8xbf16, #tpu.memory_space<vmem>>, %arg7: memref<1x1x8xf32, #tpu.memory_space<vmem>>, %arg8: memref<1x1x8xf32, #tpu.memory_space<vmem>>, %arg9: memref<296x4xf32, #tpu.memory_space<vmem>>, %arg10: memref<256x36xbf16, #tpu.memory_space<vmem>>) attributes {dimension_semantics = [#tpu.dimension_semantics<parallel>], iteration_bounds = array<i64: 2>, scalar_prefetch = 0 : i64, scratch_operands = 2 : i64, tpu.core_type = #tpu.core_type<tc>, window_params = [{transform_indices = @transform_0, window_bounds = array<i64: 1, 256, 4>}, {pipeline_mode = #tpu.pipeline_mode<synchronous>, transform_indices = @transform_1, window_bounds = array<i64: 1, 4>}, {transform_indices = @transform_2, window_bounds = array<i64: 1, 1, 4>}, {pipeline_mode = #tpu.pipeline_mode<synchronous>, transform_indices = @transform_3, window_bounds = array<i64: 36, 8>}, {pipeline_mode = #tpu.pipeline_mode<synchronous>, transform_indices = @transform_4, window_bounds = array<i64: 1, 8>}, {transform_indices = @transform_5, window_bounds = array<i64: 1, 256, 8>}, {transform_indices = @transform_6, window_bounds = array<i64: 1, 1, 8>}, {transform_indices = @transform_7, window_bounds = array<i64: 1, 1, 8>}]} {
    %cst = arith.constant 0.000000e+00 : f32
    %0 = vector.broadcast %cst : f32 to vector<17x4xf32>
    %c0 = arith.constant 0 : index
    %c0_0 = arith.constant 0 : index
    %1 = vector.load %arg9[%c0, %c0_0] : memref<296x4xf32, #tpu.memory_space<vmem>>, vector<17x4xf32>
    tpu.vector_store %arg9[%c0, %c0_0], %0 {strides = array<i32>} : memref<296x4xf32, #tpu.memory_space<vmem>>, vector<17x4xf32>,
    %c0_1 = arith.constant 0 : index
    %c0_2 = arith.constant 0 : index
    %c0_3 = arith.constant 0 : index
    %2 = vector.load %arg1[%c0_1, %c0_2, %c0_3] : memref<1x256x4xbf16, #tpu.memory_space<vmem>>, vector<1x256x4xbf16>
    %3 = vector.shape_cast %2 : vector<1x256x4xbf16> to vector<256x4xbf16>
    %4 = arith.extf %3 : vector<256x4xbf16> to vector<256x4xf32>
    %c0_4 = arith.constant 0 : index
    %c0_5 = arith.constant 0 : index
    %5 = vector.load %arg2[%c0_4, %c0_5] : memref<1x4xf32, #tpu.memory_space<vmem>>, vector<1x4xf32>
    %6 = vector.broadcast %5 : vector<1x4xf32> to vector<256x4xf32>
    %7 = arith.mulf %4, %6 : vector<256x4xf32>
    %c0_6 = arith.constant 0 : index
    %c0_7 = arith.constant 0 : index
    %c0_8 = arith.constant 0 : index
    %8 = vector.load %arg3[%c0_6, %c0_7, %c0_8] : memref<1x1x4xf32, #tpu.memory_space<vmem>>, vector<1x1x4xf32>
    %9 = vector.shape_cast %8 : vector<1x1x4xf32> to vector<1x4xf32>
    %10 = vector.broadcast %9 : vector<1x4xf32> to vector<256x4xf32>
    %11 = arith.addf %7, %10 : vector<256x4xf32>
    %c17 = arith.constant 17 : index
    %c0_9 = arith.constant 0 : index
    %12 = vector.load %arg9[%c17, %c0_9] : memref<296x4xf32, #tpu.memory_space<vmem>>, vector<256x4xf32>
    tpu.vector_store %arg9[%c17, %c0_9], %11 {strides = array<i32>} : memref<296x4xf32, #tpu.memory_space<vmem>>, vector<256x4xf32>,
    %cst_10 = arith.constant 0.000000e+00 : f32
    %13 = vector.broadcast %cst_10 : f32 to vector<23x4xf32>
    %c273 = arith.constant 273 : index
    %c0_11 = arith.constant 0 : index
    %14 = vector.load %arg9[%c273, %c0_11] : memref<296x4xf32, #tpu.memory_space<vmem>>, vector<23x4xf32>
    tpu.vector_store %arg9[%c273, %c0_11], %13 {strides = array<i32>} : memref<296x4xf32, #tpu.memory_space<vmem>>, vector<23x4xf32>,
    %15 = tpu.iota {dimensions = array<i32: 0>} : vector<256x1xi32>
    %c16_i32 = arith.constant 16 : i32
    %c0_i32 = arith.constant 0 : i32
    %16 = arith.cmpi eq, %c16_i32, %c0_i32 : i32
    %c1_i32 = arith.constant 1 : i32
    %17 = arith.select %16, %c1_i32, %c16_i32 : i32
    %18 = vector.broadcast %17 : i32 to vector<256x1xi32>
    %19 = arith.remsi %15, %18 : vector<256x1xi32>
    %c0_i32_12 = arith.constant 0 : i32
    %20 = vector.broadcast %c0_i32_12 : i32 to vector<256x1xi32>
    %21 = arith.cmpi ne, %19, %20 : vector<256x1xi32>
    %c0_i32_13 = arith.constant 0 : i32
    %22 = vector.broadcast %c0_i32_13 : i32 to vector<256x1xi32>
    %23 = arith.cmpi slt, %19, %22 : vector<256x1xi32>
    %c0_i32_14 = arith.constant 0 : i32
    %24 = arith.cmpi slt, %17, %c0_i32_14 : i32
    %25 = vector.broadcast %24 : i1 to vector<256x1xi1>
    %26 = vector.broadcast %25 : vector<256x1xi1> to vector<256x1xi1>
    %27 = arith.xori %23, %26 : vector<256x1xi1>
    %28 = arith.andi %27, %21 : vector<256x1xi1>
    %29 = vector.broadcast %17 : i32 to vector<256x1xi32>
    %30 = arith.addi %19, %29 : vector<256x1xi32>
    %31 = arith.select %28, %30, %19 : vector<256x1xi1>, vector<256x1xi32>
    %c0_i32_15 = arith.constant 0 : i32
    %32 = vector.broadcast %c0_i32_15 : i32 to vector<256x1xi32>
    %33 = arith.cmpi ne, %31, %32 : vector<256x1xi32>
    %c15_i32 = arith.constant 15 : i32
    %34 = vector.broadcast %c15_i32 : i32 to vector<256x1xi32>
    %35 = arith.cmpi ne, %31, %34 : vector<256x1xi32>
    %c0_16 = arith.constant 0 : index
    %c0_17 = arith.constant 0 : index
    %36 = vector.load %arg9[%c0_16, %c0_17] : memref<296x4xf32, #tpu.memory_space<vmem>>, vector<256x4xf32>
    %cst_18 = arith.constant 0.000000e+00 : f32
    %37 = vector.shape_cast %33 : vector<256x1xi1> to vector<256x1xi1>
    %38 = vector.broadcast %37 : vector<256x1xi1> to vector<256x4xi1>
    %39 = vector.broadcast %cst_18 : f32 to vector<256x4xf32>
    %40 = arith.select %38, %36, %39 : vector<256x4xi1>, vector<256x4xf32>
    %41 = arith.truncf %40 : vector<256x4xf32> to vector<256x4xbf16>
    %c0_19 = arith.constant 0 : index
    %c0_20 = arith.constant 0 : index
    %42 = vector.load %arg10[%c0_19, %c0_20] : memref<256x36xbf16, #tpu.memory_space<vmem>>, vector<256x4xbf16>
    tpu.vector_store %arg10[%c0_19, %c0_20], %41 {strides = array<i32>} : memref<256x36xbf16, #tpu.memory_space<vmem>>, vector<256x4xbf16>,
    %c1 = arith.constant 1 : index
    %c0_21 = arith.constant 0 : index
    %43 = vector.load %arg9[%c1, %c0_21] : memref<296x4xf32, #tpu.memory_space<vmem>>, vector<256x4xf32>
    %44 = arith.truncf %43 : vector<256x4xf32> to vector<256x4xbf16>
    %c0_22 = arith.constant 0 : index
    %c4 = arith.constant 4 : index
    %45 = vector.load %arg10[%c0_22, %c4] : memref<256x36xbf16, #tpu.memory_space<vmem>>, vector<256x4xbf16>
    tpu.vector_store %arg10[%c0_22, %c4], %44 {strides = array<i32>} : memref<256x36xbf16, #tpu.memory_space<vmem>>, vector<256x4xbf16>,
    %c2 = arith.constant 2 : index
    %c0_23 = arith.constant 0 : index
    %46 = vector.load %arg9[%c2, %c0_23] : memref<296x4xf32, #tpu.memory_space<vmem>>, vector<256x4xf32>
    %cst_24 = arith.constant 0.000000e+00 : f32
    %47 = vector.shape_cast %35 : vector<256x1xi1> to vector<256x1xi1>
    %48 = vector.broadcast %47 : vector<256x1xi1> to vector<256x4xi1>
    %49 = vector.broadcast %cst_24 : f32 to vector<256x4xf32>
    %50 = arith.select %48, %46, %49 : vector<256x4xi1>, vector<256x4xf32>
    %51 = arith.truncf %50 : vector<256x4xf32> to vector<256x4xbf16>
    %c0_25 = arith.constant 0 : index
    %c8 = arith.constant 8 : index
    %52 = vector.load %arg10[%c0_25, %c8] : memref<256x36xbf16, #tpu.memory_space<vmem>>, vector<256x4xbf16>
    tpu.vector_store %arg10[%c0_25, %c8], %51 {strides = array<i32>} : memref<256x36xbf16, #tpu.memory_space<vmem>>, vector<256x4xbf16>,
    %c16 = arith.constant 16 : index
    %c0_26 = arith.constant 0 : index
    %53 = vector.load %arg9[%c16, %c0_26] : memref<296x4xf32, #tpu.memory_space<vmem>>, vector<256x4xf32>
    %cst_27 = arith.constant 0.000000e+00 : f32
    %54 = vector.shape_cast %33 : vector<256x1xi1> to vector<256x1xi1>
    %55 = vector.broadcast %54 : vector<256x1xi1> to vector<256x4xi1>
    %56 = vector.broadcast %cst_27 : f32 to vector<256x4xf32>
    %57 = arith.select %55, %53, %56 : vector<256x4xi1>, vector<256x4xf32>
    %58 = arith.truncf %57 : vector<256x4xf32> to vector<256x4xbf16>
    %c0_28 = arith.constant 0 : index
    %c12 = arith.constant 12 : index
    %59 = vector.load %arg10[%c0_28, %c12] : memref<256x36xbf16, #tpu.memory_space<vmem>>, vector<256x4xbf16>
    tpu.vector_store %arg10[%c0_28, %c12], %58 {strides = array<i32>} : memref<256x36xbf16, #tpu.memory_space<vmem>>, vector<256x4xbf16>,
    %c17_29 = arith.constant 17 : index
    %c0_30 = arith.constant 0 : index
    %60 = vector.load %arg9[%c17_29, %c0_30] : memref<296x4xf32, #tpu.memory_space<vmem>>, vector<256x4xf32>
    %61 = arith.truncf %60 : vector<256x4xf32> to vector<256x4xbf16>
    %c0_31 = arith.constant 0 : index
    %c16_32 = arith.constant 16 : index
    %62 = vector.load %arg10[%c0_31, %c16_32] : memref<256x36xbf16, #tpu.memory_space<vmem>>, vector<256x4xbf16>
    tpu.vector_store %arg10[%c0_31, %c16_32], %61 {strides = array<i32>} : memref<256x36xbf16, #tpu.memory_space<vmem>>, vector<256x4xbf16>,
    %c18 = arith.constant 18 : index
    %c0_33 = arith.constant 0 : index
    %63 = vector.load %arg9[%c18, %c0_33] : memref<296x4xf32, #tpu.memory_space<vmem>>, vector<256x4xf32>
    %cst_34 = arith.constant 0.000000e+00 : f32
    %64 = vector.shape_cast %35 : vector<256x1xi1> to vector<256x1xi1>
    %65 = vector.broadcast %64 : vector<256x1xi1> to vector<256x4xi1>
    %66 = vector.broadcast %cst_34 : f32 to vector<256x4xf32>
    %67 = arith.select %65, %63, %66 : vector<256x4xi1>, vector<256x4xf32>
    %68 = arith.truncf %67 : vector<256x4xf32> to vector<256x4xbf16>
    %c0_35 = arith.constant 0 : index
    %c20 = arith.constant 20 : index
    %69 = vector.load %arg10[%c0_35, %c20] : memref<256x36xbf16, #tpu.memory_space<vmem>>, vector<256x4xbf16>
    tpu.vector_store %arg10[%c0_35, %c20], %68 {strides = array<i32>} : memref<256x36xbf16, #tpu.memory_space<vmem>>, vector<256x4xbf16>,
    %c32 = arith.constant 32 : index
    %c0_36 = arith.constant 0 : index
    %70 = vector.load %arg9[%c32, %c0_36] : memref<296x4xf32, #tpu.memory_space<vmem>>, vector<256x4xf32>
    %cst_37 = arith.constant 0.000000e+00 : f32
    %71 = vector.shape_cast %33 : vector<256x1xi1> to vector<256x1xi1>
    %72 = vector.broadcast %71 : vector<256x1xi1> to vector<256x4xi1>
    %73 = vector.broadcast %cst_37 : f32 to vector<256x4xf32>
    %74 = arith.select %72, %70, %73 : vector<256x4xi1>, vector<256x4xf32>
    %75 = arith.truncf %74 : vector<256x4xf32> to vector<256x4xbf16>
    %c0_38 = arith.constant 0 : index
    %c24 = arith.constant 24 : index
    %76 = vector.load %arg10[%c0_38, %c24] : memref<256x36xbf16, #tpu.memory_space<vmem>>, vector<256x4xbf16>
    tpu.vector_store %arg10[%c0_38, %c24], %75 {strides = array<i32>} : memref<256x36xbf16, #tpu.memory_space<vmem>>, vector<256x4xbf16>,
    %c33 = arith.constant 33 : index
    %c0_39 = arith.constant 0 : index
    %77 = vector.load %arg9[%c33, %c0_39] : memref<296x4xf32, #tpu.memory_space<vmem>>, vector<256x4xf32>
    %78 = arith.truncf %77 : vector<256x4xf32> to vector<256x4xbf16>
    %c0_40 = arith.constant 0 : index
    %c28 = arith.constant 28 : index
    %79 = vector.load %arg10[%c0_40, %c28] : memref<256x36xbf16, #tpu.memory_space<vmem>>, vector<256x4xbf16>
    tpu.vector_store %arg10[%c0_40, %c28], %78 {strides = array<i32>} : memref<256x36xbf16, #tpu.memory_space<vmem>>, vector<256x4xbf16>,
    %c34 = arith.constant 34 : index
    %c0_41 = arith.constant 0 : index
    %80 = vector.load %arg9[%c34, %c0_41] : memref<296x4xf32, #tpu.memory_space<vmem>>, vector<256x4xf32>
    %cst_42 = arith.constant 0.000000e+00 : f32
    %81 = vector.shape_cast %35 : vector<256x1xi1> to vector<256x1xi1>
    %82 = vector.broadcast %81 : vector<256x1xi1> to vector<256x4xi1>
    %83 = vector.broadcast %cst_42 : f32 to vector<256x4xf32>
    %84 = arith.select %82, %80, %83 : vector<256x4xi1>, vector<256x4xf32>
    %85 = arith.truncf %84 : vector<256x4xf32> to vector<256x4xbf16>
    %c0_43 = arith.constant 0 : index
    %c32_44 = arith.constant 32 : index
    %86 = vector.load %arg10[%c0_43, %c32_44] : memref<256x36xbf16, #tpu.memory_space<vmem>>, vector<256x4xbf16>
    tpu.vector_store %arg10[%c0_43, %c32_44], %85 {strides = array<i32>} : memref<256x36xbf16, #tpu.memory_space<vmem>>, vector<256x4xbf16>,
    %c0_45 = arith.constant 0 : index
    %c0_46 = arith.constant 0 : index
    %87 = vector.load %arg10[%c0_45, %c0_46] : memref<256x36xbf16, #tpu.memory_space<vmem>>, vector<256x36xbf16>
    %c0_47 = arith.constant 0 : index
    %c0_48 = arith.constant 0 : index
    %88 = vector.load %arg4[%c0_47, %c0_48] : memref<36x8xbf16, #tpu.memory_space<vmem>>, vector<36x8xbf16>
    %cst_49 = arith.constant dense<0.000000e+00> : vector<256x8xf32>
    %89 = tpu.matmul %87, %88, %cst_49 {dimension_numbers = #tpu.dot_dimension_numbers<[1], [0], [0], [1], [0, 0, 1, 1], [], []>} : vector<256x36xbf16>, vector<36x8xbf16>, vector<256x8xf32> -> vector<256x8xf32>
    %c0_50 = arith.constant 0 : index
    %c0_51 = arith.constant 0 : index
    %90 = vector.load %arg5[%c0_50, %c0_51] : memref<1x8xf32, #tpu.memory_space<vmem>>, vector<1x8xf32>
    %91 = vector.broadcast %90 : vector<1x8xf32> to vector<256x8xf32>
    %92 = arith.addf %89, %91 : vector<256x8xf32>
    %cst_52 = arith.constant 0.000000e+00 : f32
    %93 = vector.broadcast %cst_52 : f32 to vector<256x8xf32>
    %94 = arith.maximumf %92, %93 : vector<256x8xf32>
    %95 = arith.truncf %94 : vector<256x8xf32> to vector<256x8xbf16>
    %c0_53 = arith.constant 0 : index
    %c0_54 = arith.constant 0 : index
    %c0_55 = arith.constant 0 : index
    %96 = vector.load %arg6[%c0_53, %c0_54, %c0_55] : memref<1x256x8xbf16, #tpu.memory_space<vmem>>, vector<1x256x8xbf16>
    %97 = vector.shape_cast %96 : vector<1x256x8xbf16> to vector<256x8xbf16>
    %98 = vector.shape_cast %95 : vector<256x8xbf16> to vector<1x256x8xbf16>
    tpu.vector_store %arg6[%c0_53, %c0_54, %c0_55], %98 {strides = array<i32>} : memref<1x256x8xbf16, #tpu.memory_space<vmem>>, vector<1x256x8xbf16>,
    %cst_56 = arith.constant dense<0.000000e+00> : vector<8xf32>
    %99 = vector.multi_reduction <add>, %94, %cst_56 [0] : vector<256x8xf32> to vector<8xf32>
    %100 = vector.shape_cast %99 : vector<8xf32> to vector<1x8xf32>
    %cst_57 = arith.constant 2.560000e+02 : f32
    %101 = vector.broadcast %cst_57 : f32 to vector<1x8xf32>
    %102 = arith.divf %100, %101 : vector<1x8xf32>
    %c0_58 = arith.constant 0 : index
    %c0_59 = arith.constant 0 : index
    %c0_60 = arith.constant 0 : index
    %103 = vector.load %arg7[%c0_58, %c0_59, %c0_60] : memref<1x1x8xf32, #tpu.memory_space<vmem>>, vector<1x1x8xf32>
    %104 = vector.shape_cast %103 : vector<1x1x8xf32> to vector<1x8xf32>
    %105 = vector.shape_cast %102 : vector<1x8xf32> to vector<1x1x8xf32>
    tpu.vector_store %arg7[%c0_58, %c0_59, %c0_60], %105 {strides = array<i32>} : memref<1x1x8xf32, #tpu.memory_space<vmem>>, vector<1x1x8xf32>,
    %106 = vector.broadcast %102 : vector<1x8xf32> to vector<256x8xf32>
    %107 = arith.subf %94, %106 : vector<256x8xf32>
    %108 = arith.mulf %107, %107 : vector<256x8xf32>
    %cst_61 = arith.constant dense<0.000000e+00> : vector<8xf32>
    %109 = vector.multi_reduction <add>, %108, %cst_61 [0] : vector<256x8xf32> to vector<8xf32>
    %110 = vector.shape_cast %109 : vector<8xf32> to vector<1x8xf32>
    %c0_62 = arith.constant 0 : index
    %c0_63 = arith.constant 0 : index
    %c0_64 = arith.constant 0 : index
    %111 = vector.load %arg8[%c0_62, %c0_63, %c0_64] : memref<1x1x8xf32, #tpu.memory_space<vmem>>, vector<1x1x8xf32>
    %112 = vector.shape_cast %111 : vector<1x1x8xf32> to vector<1x8xf32>
    %113 = vector.shape_cast %110 : vector<1x8xf32> to vector<1x1x8xf32>
    tpu.vector_store %arg8[%c0_62, %c0_63, %c0_64], %113 {strides = array<i32>} : memref<1x1x8xf32, #tpu.memory_space<vmem>>, vector<1x1x8xf32>,
    return
  }
  func.func @transform_0(%arg0: i32) -> (i32, i32, i32) {
    %c0_i32 = arith.constant 0 : i32
    %c0_i32_0 = arith.constant 0 : i32
    %c0_i32_1 = arith.constant 0 : i32
    return %arg0, %c0_i32, %c0_i32_0 : i32, i32, i32
  }
  func.func @transform_1(%arg0: i32) -> (i32, i32) {
    %c0_i32 = arith.constant 0 : i32
    %c0_i32_0 = arith.constant 0 : i32
    %c0_i32_1 = arith.constant 0 : i32
    return %c0_i32, %c0_i32_0 : i32, i32
  }
  func.func @transform_2(%arg0: i32) -> (i32, i32, i32) {
    %c0_i32 = arith.constant 0 : i32
    %c0_i32_0 = arith.constant 0 : i32
    %c0_i32_1 = arith.constant 0 : i32
    return %arg0, %c0_i32, %c0_i32_0 : i32, i32, i32
  }
  func.func @transform_3(%arg0: i32) -> (i32, i32) {
    %c0_i32 = arith.constant 0 : i32
    %c0_i32_0 = arith.constant 0 : i32
    %c0_i32_1 = arith.constant 0 : i32
    return %c0_i32, %c0_i32_0 : i32, i32
  }
  func.func @transform_4(%arg0: i32) -> (i32, i32) {
    %c0_i32 = arith.constant 0 : i32
    %c0_i32_0 = arith.constant 0 : i32
    %c0_i32_1 = arith.constant 0 : i32
    return %c0_i32, %c0_i32_0 : i32, i32
  }
  func.func @transform_5(%arg0: i32) -> (i32, i32, i32) {
    %c0_i32 = arith.constant 0 : i32
    %c0_i32_0 = arith.constant 0 : i32
    %c0_i32_1 = arith.constant 0 : i32
    return %arg0, %c0_i32, %c0_i32_0 : i32, i32, i32
  }
  func.func @transform_6(%arg0: i32) -> (i32, i32, i32) {
    %c0_i32 = arith.constant 0 : i32
    %c0_i32_0 = arith.constant 0 : i32
    %c0_i32_1 = arith.constant 0 : i32
    return %arg0, %c0_i32, %c0_i32_0 : i32, i32, i32
  }
  func.func @transform_7(%arg0: i32) -> (i32, i32, i32) {
    %c0_i32 = arith.constant 0 : i32
    %c0_i32_0 = arith.constant 0 : i32
    %c0_i32_1 = arith.constant 0 : i32
    return %arg0, %c0_i32, %c0_i32_0 : i32, i32, i32
  }
}

module attributes {stable_mosaic.version = 11 : i64} {
  func.func @kernel(%arg0: i32, %arg1: memref<1x64x32xbf16, #tpu.memory_space<vmem>>, %arg2: memref<1x32xf32, #tpu.memory_space<vmem>>, %arg3: memref<1x1x32xf32, #tpu.memory_space<vmem>>, %arg4: memref<288x8xbf16, #tpu.memory_space<vmem>>, %arg5: memref<1x8xf32, #tpu.memory_space<vmem>>, %arg6: memref<1x64x8xf32, #tpu.memory_space<vmem>>, %arg7: memref<1x1x8xf32, #tpu.memory_space<vmem>>, %arg8: memref<1x1x8xf32, #tpu.memory_space<vmem>>, %arg9: memref<88x32xf32, #tpu.memory_space<vmem>>, %arg10: memref<64x288xbf16, #tpu.memory_space<vmem>>) attributes {dimension_semantics = [#tpu.dimension_semantics<parallel>], iteration_bounds = array<i64: 2>, scalar_prefetch = 0 : i64, scratch_operands = 2 : i64, tpu.core_type = #tpu.core_type<tc>, window_params = [{transform_indices = @transform_0, window_bounds = array<i64: 1, 64, 32>}, {pipeline_mode = #tpu.pipeline_mode<synchronous>, transform_indices = @transform_1, window_bounds = array<i64: 1, 32>}, {transform_indices = @transform_2, window_bounds = array<i64: 1, 1, 32>}, {pipeline_mode = #tpu.pipeline_mode<synchronous>, transform_indices = @transform_3, window_bounds = array<i64: 288, 8>}, {pipeline_mode = #tpu.pipeline_mode<synchronous>, transform_indices = @transform_4, window_bounds = array<i64: 1, 8>}, {transform_indices = @transform_5, window_bounds = array<i64: 1, 64, 8>}, {transform_indices = @transform_6, window_bounds = array<i64: 1, 1, 8>}, {transform_indices = @transform_7, window_bounds = array<i64: 1, 1, 8>}]} {
    %cst = arith.constant 0.000000e+00 : f32
    %0 = vector.broadcast %cst : f32 to vector<9x32xf32>
    %c0 = arith.constant 0 : index
    %c0_0 = arith.constant 0 : index
    %1 = vector.load %arg9[%c0, %c0_0] : memref<88x32xf32, #tpu.memory_space<vmem>>, vector<9x32xf32>
    tpu.vector_store %arg9[%c0, %c0_0], %0 {strides = array<i32>} : memref<88x32xf32, #tpu.memory_space<vmem>>, vector<9x32xf32>,
    %c0_1 = arith.constant 0 : index
    %c0_2 = arith.constant 0 : index
    %c0_3 = arith.constant 0 : index
    %2 = vector.load %arg1[%c0_1, %c0_2, %c0_3] : memref<1x64x32xbf16, #tpu.memory_space<vmem>>, vector<1x64x32xbf16>
    %3 = vector.shape_cast %2 : vector<1x64x32xbf16> to vector<64x32xbf16>
    %4 = arith.extf %3 : vector<64x32xbf16> to vector<64x32xf32>
    %c0_4 = arith.constant 0 : index
    %c0_5 = arith.constant 0 : index
    %5 = vector.load %arg2[%c0_4, %c0_5] : memref<1x32xf32, #tpu.memory_space<vmem>>, vector<1x32xf32>
    %6 = vector.broadcast %5 : vector<1x32xf32> to vector<64x32xf32>
    %7 = arith.mulf %4, %6 : vector<64x32xf32>
    %c0_6 = arith.constant 0 : index
    %c0_7 = arith.constant 0 : index
    %c0_8 = arith.constant 0 : index
    %8 = vector.load %arg3[%c0_6, %c0_7, %c0_8] : memref<1x1x32xf32, #tpu.memory_space<vmem>>, vector<1x1x32xf32>
    %9 = vector.shape_cast %8 : vector<1x1x32xf32> to vector<1x32xf32>
    %10 = vector.broadcast %9 : vector<1x32xf32> to vector<64x32xf32>
    %11 = arith.addf %7, %10 : vector<64x32xf32>
    %c9 = arith.constant 9 : index
    %c0_9 = arith.constant 0 : index
    %12 = vector.load %arg9[%c9, %c0_9] : memref<88x32xf32, #tpu.memory_space<vmem>>, vector<64x32xf32>
    tpu.vector_store %arg9[%c9, %c0_9], %11 {strides = array<i32>} : memref<88x32xf32, #tpu.memory_space<vmem>>, vector<64x32xf32>,
    %cst_10 = arith.constant 0.000000e+00 : f32
    %13 = vector.broadcast %cst_10 : f32 to vector<15x32xf32>
    %c73 = arith.constant 73 : index
    %c0_11 = arith.constant 0 : index
    %14 = vector.load %arg9[%c73, %c0_11] : memref<88x32xf32, #tpu.memory_space<vmem>>, vector<15x32xf32>
    tpu.vector_store %arg9[%c73, %c0_11], %13 {strides = array<i32>} : memref<88x32xf32, #tpu.memory_space<vmem>>, vector<15x32xf32>,
    %15 = tpu.iota {dimensions = array<i32: 0>} : vector<64x1xi32>
    %c8_i32 = arith.constant 8 : i32
    %c0_i32 = arith.constant 0 : i32
    %16 = arith.cmpi eq, %c8_i32, %c0_i32 : i32
    %c1_i32 = arith.constant 1 : i32
    %17 = arith.select %16, %c1_i32, %c8_i32 : i32
    %18 = vector.broadcast %17 : i32 to vector<64x1xi32>
    %19 = arith.remsi %15, %18 : vector<64x1xi32>
    %c0_i32_12 = arith.constant 0 : i32
    %20 = vector.broadcast %c0_i32_12 : i32 to vector<64x1xi32>
    %21 = arith.cmpi ne, %19, %20 : vector<64x1xi32>
    %c0_i32_13 = arith.constant 0 : i32
    %22 = vector.broadcast %c0_i32_13 : i32 to vector<64x1xi32>
    %23 = arith.cmpi slt, %19, %22 : vector<64x1xi32>
    %c0_i32_14 = arith.constant 0 : i32
    %24 = arith.cmpi slt, %17, %c0_i32_14 : i32
    %25 = vector.broadcast %24 : i1 to vector<64x1xi1>
    %26 = vector.broadcast %25 : vector<64x1xi1> to vector<64x1xi1>
    %27 = arith.xori %23, %26 : vector<64x1xi1>
    %28 = arith.andi %27, %21 : vector<64x1xi1>
    %29 = vector.broadcast %17 : i32 to vector<64x1xi32>
    %30 = arith.addi %19, %29 : vector<64x1xi32>
    %31 = arith.select %28, %30, %19 : vector<64x1xi1>, vector<64x1xi32>
    %c0_i32_15 = arith.constant 0 : i32
    %32 = vector.broadcast %c0_i32_15 : i32 to vector<64x1xi32>
    %33 = arith.cmpi ne, %31, %32 : vector<64x1xi32>
    %c7_i32 = arith.constant 7 : i32
    %34 = vector.broadcast %c7_i32 : i32 to vector<64x1xi32>
    %35 = arith.cmpi ne, %31, %34 : vector<64x1xi32>
    %c0_16 = arith.constant 0 : index
    %c0_17 = arith.constant 0 : index
    %36 = vector.load %arg9[%c0_16, %c0_17] : memref<88x32xf32, #tpu.memory_space<vmem>>, vector<64x32xf32>
    %cst_18 = arith.constant 0.000000e+00 : f32
    %37 = vector.shape_cast %33 : vector<64x1xi1> to vector<64x1xi1>
    %38 = vector.broadcast %37 : vector<64x1xi1> to vector<64x32xi1>
    %39 = vector.broadcast %cst_18 : f32 to vector<64x32xf32>
    %40 = arith.select %38, %36, %39 : vector<64x32xi1>, vector<64x32xf32>
    %41 = arith.truncf %40 : vector<64x32xf32> to vector<64x32xbf16>
    %c0_19 = arith.constant 0 : index
    %c0_20 = arith.constant 0 : index
    %42 = vector.load %arg10[%c0_19, %c0_20] : memref<64x288xbf16, #tpu.memory_space<vmem>>, vector<64x32xbf16>
    tpu.vector_store %arg10[%c0_19, %c0_20], %41 {strides = array<i32>} : memref<64x288xbf16, #tpu.memory_space<vmem>>, vector<64x32xbf16>,
    %c1 = arith.constant 1 : index
    %c0_21 = arith.constant 0 : index
    %43 = vector.load %arg9[%c1, %c0_21] : memref<88x32xf32, #tpu.memory_space<vmem>>, vector<64x32xf32>
    %44 = arith.truncf %43 : vector<64x32xf32> to vector<64x32xbf16>
    %c0_22 = arith.constant 0 : index
    %c32 = arith.constant 32 : index
    %45 = vector.load %arg10[%c0_22, %c32] : memref<64x288xbf16, #tpu.memory_space<vmem>>, vector<64x32xbf16>
    tpu.vector_store %arg10[%c0_22, %c32], %44 {strides = array<i32>} : memref<64x288xbf16, #tpu.memory_space<vmem>>, vector<64x32xbf16>,
    %c2 = arith.constant 2 : index
    %c0_23 = arith.constant 0 : index
    %46 = vector.load %arg9[%c2, %c0_23] : memref<88x32xf32, #tpu.memory_space<vmem>>, vector<64x32xf32>
    %cst_24 = arith.constant 0.000000e+00 : f32
    %47 = vector.shape_cast %35 : vector<64x1xi1> to vector<64x1xi1>
    %48 = vector.broadcast %47 : vector<64x1xi1> to vector<64x32xi1>
    %49 = vector.broadcast %cst_24 : f32 to vector<64x32xf32>
    %50 = arith.select %48, %46, %49 : vector<64x32xi1>, vector<64x32xf32>
    %51 = arith.truncf %50 : vector<64x32xf32> to vector<64x32xbf16>
    %c0_25 = arith.constant 0 : index
    %c64 = arith.constant 64 : index
    %52 = vector.load %arg10[%c0_25, %c64] : memref<64x288xbf16, #tpu.memory_space<vmem>>, vector<64x32xbf16>
    tpu.vector_store %arg10[%c0_25, %c64], %51 {strides = array<i32>} : memref<64x288xbf16, #tpu.memory_space<vmem>>, vector<64x32xbf16>,
    %c8 = arith.constant 8 : index
    %c0_26 = arith.constant 0 : index
    %53 = vector.load %arg9[%c8, %c0_26] : memref<88x32xf32, #tpu.memory_space<vmem>>, vector<64x32xf32>
    %cst_27 = arith.constant 0.000000e+00 : f32
    %54 = vector.shape_cast %33 : vector<64x1xi1> to vector<64x1xi1>
    %55 = vector.broadcast %54 : vector<64x1xi1> to vector<64x32xi1>
    %56 = vector.broadcast %cst_27 : f32 to vector<64x32xf32>
    %57 = arith.select %55, %53, %56 : vector<64x32xi1>, vector<64x32xf32>
    %58 = arith.truncf %57 : vector<64x32xf32> to vector<64x32xbf16>
    %c0_28 = arith.constant 0 : index
    %c96 = arith.constant 96 : index
    %59 = vector.load %arg10[%c0_28, %c96] : memref<64x288xbf16, #tpu.memory_space<vmem>>, vector<64x32xbf16>
    tpu.vector_store %arg10[%c0_28, %c96], %58 {strides = array<i32>} : memref<64x288xbf16, #tpu.memory_space<vmem>>, vector<64x32xbf16>,
    %c9_29 = arith.constant 9 : index
    %c0_30 = arith.constant 0 : index
    %60 = vector.load %arg9[%c9_29, %c0_30] : memref<88x32xf32, #tpu.memory_space<vmem>>, vector<64x32xf32>
    %61 = arith.truncf %60 : vector<64x32xf32> to vector<64x32xbf16>
    %c0_31 = arith.constant 0 : index
    %c128 = arith.constant 128 : index
    %62 = vector.load %arg10[%c0_31, %c128] : memref<64x288xbf16, #tpu.memory_space<vmem>>, vector<64x32xbf16>
    tpu.vector_store %arg10[%c0_31, %c128], %61 {strides = array<i32>} : memref<64x288xbf16, #tpu.memory_space<vmem>>, vector<64x32xbf16>,
    %c10 = arith.constant 10 : index
    %c0_32 = arith.constant 0 : index
    %63 = vector.load %arg9[%c10, %c0_32] : memref<88x32xf32, #tpu.memory_space<vmem>>, vector<64x32xf32>
    %cst_33 = arith.constant 0.000000e+00 : f32
    %64 = vector.shape_cast %35 : vector<64x1xi1> to vector<64x1xi1>
    %65 = vector.broadcast %64 : vector<64x1xi1> to vector<64x32xi1>
    %66 = vector.broadcast %cst_33 : f32 to vector<64x32xf32>
    %67 = arith.select %65, %63, %66 : vector<64x32xi1>, vector<64x32xf32>
    %68 = arith.truncf %67 : vector<64x32xf32> to vector<64x32xbf16>
    %c0_34 = arith.constant 0 : index
    %c160 = arith.constant 160 : index
    %69 = vector.load %arg10[%c0_34, %c160] : memref<64x288xbf16, #tpu.memory_space<vmem>>, vector<64x32xbf16>
    tpu.vector_store %arg10[%c0_34, %c160], %68 {strides = array<i32>} : memref<64x288xbf16, #tpu.memory_space<vmem>>, vector<64x32xbf16>,
    %c16 = arith.constant 16 : index
    %c0_35 = arith.constant 0 : index
    %70 = vector.load %arg9[%c16, %c0_35] : memref<88x32xf32, #tpu.memory_space<vmem>>, vector<64x32xf32>
    %cst_36 = arith.constant 0.000000e+00 : f32
    %71 = vector.shape_cast %33 : vector<64x1xi1> to vector<64x1xi1>
    %72 = vector.broadcast %71 : vector<64x1xi1> to vector<64x32xi1>
    %73 = vector.broadcast %cst_36 : f32 to vector<64x32xf32>
    %74 = arith.select %72, %70, %73 : vector<64x32xi1>, vector<64x32xf32>
    %75 = arith.truncf %74 : vector<64x32xf32> to vector<64x32xbf16>
    %c0_37 = arith.constant 0 : index
    %c192 = arith.constant 192 : index
    %76 = vector.load %arg10[%c0_37, %c192] : memref<64x288xbf16, #tpu.memory_space<vmem>>, vector<64x32xbf16>
    tpu.vector_store %arg10[%c0_37, %c192], %75 {strides = array<i32>} : memref<64x288xbf16, #tpu.memory_space<vmem>>, vector<64x32xbf16>,
    %c17 = arith.constant 17 : index
    %c0_38 = arith.constant 0 : index
    %77 = vector.load %arg9[%c17, %c0_38] : memref<88x32xf32, #tpu.memory_space<vmem>>, vector<64x32xf32>
    %78 = arith.truncf %77 : vector<64x32xf32> to vector<64x32xbf16>
    %c0_39 = arith.constant 0 : index
    %c224 = arith.constant 224 : index
    %79 = vector.load %arg10[%c0_39, %c224] : memref<64x288xbf16, #tpu.memory_space<vmem>>, vector<64x32xbf16>
    tpu.vector_store %arg10[%c0_39, %c224], %78 {strides = array<i32>} : memref<64x288xbf16, #tpu.memory_space<vmem>>, vector<64x32xbf16>,
    %c18 = arith.constant 18 : index
    %c0_40 = arith.constant 0 : index
    %80 = vector.load %arg9[%c18, %c0_40] : memref<88x32xf32, #tpu.memory_space<vmem>>, vector<64x32xf32>
    %cst_41 = arith.constant 0.000000e+00 : f32
    %81 = vector.shape_cast %35 : vector<64x1xi1> to vector<64x1xi1>
    %82 = vector.broadcast %81 : vector<64x1xi1> to vector<64x32xi1>
    %83 = vector.broadcast %cst_41 : f32 to vector<64x32xf32>
    %84 = arith.select %82, %80, %83 : vector<64x32xi1>, vector<64x32xf32>
    %85 = arith.truncf %84 : vector<64x32xf32> to vector<64x32xbf16>
    %c0_42 = arith.constant 0 : index
    %c256 = arith.constant 256 : index
    %86 = vector.load %arg10[%c0_42, %c256] : memref<64x288xbf16, #tpu.memory_space<vmem>>, vector<64x32xbf16>
    tpu.vector_store %arg10[%c0_42, %c256], %85 {strides = array<i32>} : memref<64x288xbf16, #tpu.memory_space<vmem>>, vector<64x32xbf16>,
    %c0_43 = arith.constant 0 : index
    %c0_44 = arith.constant 0 : index
    %87 = vector.load %arg10[%c0_43, %c0_44] : memref<64x288xbf16, #tpu.memory_space<vmem>>, vector<64x288xbf16>
    %c0_45 = arith.constant 0 : index
    %c0_46 = arith.constant 0 : index
    %88 = vector.load %arg4[%c0_45, %c0_46] : memref<288x8xbf16, #tpu.memory_space<vmem>>, vector<288x8xbf16>
    %cst_47 = arith.constant dense<0.000000e+00> : vector<64x8xf32>
    %89 = tpu.matmul %87, %88, %cst_47 {dimension_numbers = #tpu.dot_dimension_numbers<[1], [0], [0], [1], [0, 0, 1, 1], [], []>} : vector<64x288xbf16>, vector<288x8xbf16>, vector<64x8xf32> -> vector<64x8xf32>
    %c0_48 = arith.constant 0 : index
    %c0_49 = arith.constant 0 : index
    %90 = vector.load %arg5[%c0_48, %c0_49] : memref<1x8xf32, #tpu.memory_space<vmem>>, vector<1x8xf32>
    %91 = vector.broadcast %90 : vector<1x8xf32> to vector<64x8xf32>
    %92 = arith.addf %89, %91 : vector<64x8xf32>
    %c0_50 = arith.constant 0 : index
    %c0_51 = arith.constant 0 : index
    %c0_52 = arith.constant 0 : index
    %93 = vector.load %arg6[%c0_50, %c0_51, %c0_52] : memref<1x64x8xf32, #tpu.memory_space<vmem>>, vector<1x64x8xf32>
    %94 = vector.shape_cast %93 : vector<1x64x8xf32> to vector<64x8xf32>
    %95 = vector.shape_cast %92 : vector<64x8xf32> to vector<1x64x8xf32>
    tpu.vector_store %arg6[%c0_50, %c0_51, %c0_52], %95 {strides = array<i32>} : memref<1x64x8xf32, #tpu.memory_space<vmem>>, vector<1x64x8xf32>,
    %cst_53 = arith.constant dense<0.000000e+00> : vector<8xf32>
    %96 = vector.multi_reduction <add>, %92, %cst_53 [0] : vector<64x8xf32> to vector<8xf32>
    %97 = vector.shape_cast %96 : vector<8xf32> to vector<1x8xf32>
    %cst_54 = arith.constant 6.400000e+01 : f32
    %98 = vector.broadcast %cst_54 : f32 to vector<1x8xf32>
    %99 = arith.divf %97, %98 : vector<1x8xf32>
    %c0_55 = arith.constant 0 : index
    %c0_56 = arith.constant 0 : index
    %c0_57 = arith.constant 0 : index
    %100 = vector.load %arg7[%c0_55, %c0_56, %c0_57] : memref<1x1x8xf32, #tpu.memory_space<vmem>>, vector<1x1x8xf32>
    %101 = vector.shape_cast %100 : vector<1x1x8xf32> to vector<1x8xf32>
    %102 = vector.shape_cast %99 : vector<1x8xf32> to vector<1x1x8xf32>
    tpu.vector_store %arg7[%c0_55, %c0_56, %c0_57], %102 {strides = array<i32>} : memref<1x1x8xf32, #tpu.memory_space<vmem>>, vector<1x1x8xf32>,
    %103 = vector.broadcast %99 : vector<1x8xf32> to vector<64x8xf32>
    %104 = arith.subf %92, %103 : vector<64x8xf32>
    %105 = arith.mulf %104, %104 : vector<64x8xf32>
    %cst_58 = arith.constant dense<0.000000e+00> : vector<8xf32>
    %106 = vector.multi_reduction <add>, %105, %cst_58 [0] : vector<64x8xf32> to vector<8xf32>
    %107 = vector.shape_cast %106 : vector<8xf32> to vector<1x8xf32>
    %c0_59 = arith.constant 0 : index
    %c0_60 = arith.constant 0 : index
    %c0_61 = arith.constant 0 : index
    %108 = vector.load %arg8[%c0_59, %c0_60, %c0_61] : memref<1x1x8xf32, #tpu.memory_space<vmem>>, vector<1x1x8xf32>
    %109 = vector.shape_cast %108 : vector<1x1x8xf32> to vector<1x8xf32>
    %110 = vector.shape_cast %107 : vector<1x8xf32> to vector<1x1x8xf32>
    tpu.vector_store %arg8[%c0_59, %c0_60, %c0_61], %110 {strides = array<i32>} : memref<1x1x8xf32, #tpu.memory_space<vmem>>, vector<1x1x8xf32>,
    return
  }
  func.func @transform_0(%arg0: i32) -> (i32, i32, i32) {
    %c0_i32 = arith.constant 0 : i32
    %c0_i32_0 = arith.constant 0 : i32
    %c0_i32_1 = arith.constant 0 : i32
    return %arg0, %c0_i32, %c0_i32_0 : i32, i32, i32
  }
  func.func @transform_1(%arg0: i32) -> (i32, i32) {
    %c0_i32 = arith.constant 0 : i32
    %c0_i32_0 = arith.constant 0 : i32
    %c0_i32_1 = arith.constant 0 : i32
    return %c0_i32, %c0_i32_0 : i32, i32
  }
  func.func @transform_2(%arg0: i32) -> (i32, i32, i32) {
    %c0_i32 = arith.constant 0 : i32
    %c0_i32_0 = arith.constant 0 : i32
    %c0_i32_1 = arith.constant 0 : i32
    return %arg0, %c0_i32, %c0_i32_0 : i32, i32, i32
  }
  func.func @transform_3(%arg0: i32) -> (i32, i32) {
    %c0_i32 = arith.constant 0 : i32
    %c0_i32_0 = arith.constant 0 : i32
    %c0_i32_1 = arith.constant 0 : i32
    return %c0_i32, %c0_i32_0 : i32, i32
  }
  func.func @transform_4(%arg0: i32) -> (i32, i32) {
    %c0_i32 = arith.constant 0 : i32
    %c0_i32_0 = arith.constant 0 : i32
    %c0_i32_1 = arith.constant 0 : i32
    return %c0_i32, %c0_i32_0 : i32, i32
  }
  func.func @transform_5(%arg0: i32) -> (i32, i32, i32) {
    %c0_i32 = arith.constant 0 : i32
    %c0_i32_0 = arith.constant 0 : i32
    %c0_i32_1 = arith.constant 0 : i32
    return %arg0, %c0_i32, %c0_i32_0 : i32, i32, i32
  }
  func.func @transform_6(%arg0: i32) -> (i32, i32, i32) {
    %c0_i32 = arith.constant 0 : i32
    %c0_i32_0 = arith.constant 0 : i32
    %c0_i32_1 = arith.constant 0 : i32
    return %arg0, %c0_i32, %c0_i32_0 : i32, i32, i32
  }
  func.func @transform_7(%arg0: i32) -> (i32, i32, i32) {
    %c0_i32 = arith.constant 0 : i32
    %c0_i32_0 = arith.constant 0 : i32
    %c0_i32_1 = arith.constant 0 : i32
    return %arg0, %c0_i32, %c0_i32_0 : i32, i32, i32
  }
}

</mosaic_0001>

<bundles_post_ra>
// kernel: block_forward_pallas.5
= control target key start
LH: loop header
LB: loop body
LE: loop exit
PB: predicated region body
PF: predicated region fallthrough
CT: control target
= control target key end

     0   :  { %13 = vsyncpa [#allocation5], 0  ;;  %s2293_s0 = inlined_call_operand.vmem [shape: bf16[2,64,32], index: 0, kind: input, shape index: {}]   ;;  %s2294_s1 = inlined_call_operand.vmem [shape: f32[1,32], index: 1, kind: input, shape index: {}]   ;;  %s2295_s2 = inlined_call_operand.vmem [shape: f32[2,1,32], index: 2, kind: input, shape index: {}]   ;;  %s2296_s3 = inlined_call_operand.vmem [shape: bf16[288,8], index: 3, kind: input, shape index: {}]   ;;  %s2297_s4 = inlined_call_operand.vmem [shape: f32[1,8], index: 4, kind: input, shape index: {}]   ;;  %s2298_s5 = inlined_call_operand.vmem [shape: f32[2,64,8], index: 5, kind: output, shape index: {0}]   ;;  %s2299_s6 = inlined_call_operand.hbm [shape: f32[2,1,8], index: 6, kind: output, shape index: {1}]   ;;  %s2300_s7 = inlined_call_operand.hbm [shape: f32[2,1,8], index: 7, kind: output, shape index: {2}]  }
   0x1   :  { %15 = vsyncpa [#allocation5 + $0x1], 0 }
   0x2   :  { %16 = vsyncpa [#allocation7], 0 }
   0x3   :  { %18 = vsyncpa [#allocation7 + $0x1], 0  ;;  %s1690_s24 = smov 0   ;;  %s1692_s25 = smov 0  }
   0x4   :  { %s1694_s26 = smov 0   ;;  %s1696_s27 = smov 0  }
   0x5 LB: > { %s1711_s28 = sadd.s32 4294967295, %s1642_s27   ;;  %s1350_s29 = sadd.s32 4294967294, %s1642_s27   ;;  %s1642_s27 = sphi %s1696_s27, %s2338_s27   ;;  %s1638_s26 = sphi %s1694_s26, %s2337_s26   ;;  %s1634_s25 = sphi %s1692_s25, %s2336_s25   ;;  %s1630_s24 = sphi %s1690_s24, %s2335_s24  }
   0x6   : > { %s1715_s30 = sadd.s32 1, %s1642_s27   ;;  %s172_s8 = sadd.s32 1, %s1638_s26 }
   0x7   : > { %s169_s9 = ssub.s32 %s1642_s27, %s1715_s30  ;;  %p182_p0 = scmp.ne.s32.totalorder %s1638_s26, %s1634_s25 }
   0x8   : > { %p170_p1 = scmp.eq.s32.totalorder %s169_s9, 0  ;;  %p183_p2 = scmp.eq.s32.totalorder %s1711_s28, 1 }
   0x9   : > { %p188_p3 = scmp.ne.s32.totalorder %s1634_s25, %s1630_s24  ;;  %p189_p4 = scmp.eq.s32.totalorder %s1350_s29, 1 }
   0xa   : > { %s1726_s10 = scalar_select %p170_p1, %s1638_s26, %s172_s8  }
   0xb   : > { %p1728_p5 = por %p183_p2, %p182_p0  ;;  %p1732_p6 = por %p189_p4, %p188_p3 }
   0xc   : > { %p1353_p7 = scmp.ge.s32.totalorder %s1642_s27, 1  ;;  %p256_p8 = scmp.lt.s32.totalorder %s1642_s27, 3 }
   0xe   : > { %p257_p9 = pnand %p1353_p7, %p256_p8 }
   0xf   : > { %p299_p10 = scmp.lt.s32.totalorder (!%p257_p9), %s1711_s28, 1  ;;  %vm313_vm0 = vcmask (!%p257_p9), 261120   ;;  %v1644_v0 = vmov (!%p257_p9), 0.0   ;;  %vm315_vm1 = vcmask (!%p257_p9), 253952   ;;  %vm372_vm2 = vcmask (!%p257_p9), 260096   ;;  %v1530_v1 = vld [vmem:[%s2296_s3 + $0x40] sm:$0xff] (!%p257_p9)  }
  0x10   : > { %260 = sbr.rel (%p257_p9) target bundleno = 512 (0x200), region = 40  ;;  %314 = vst.msk [vmem:[#allocation2] sm:$0xff] (!%p257_p9), %vm313_vm0, %v1644_v0  ;;  %371 = vst.msk [vmem:[#allocation2 + $0x49] sm:$0xff] (!%p257_p9), %vm313_vm0, %v1644_v0  ;;  %v1531_v2 = vld [vmem:[%s2296_s3] sm:$0xff] (!%p257_p9)   ;;  %v374_v3 = vlaneseq (!%p257_p9)  ;;  %1408 = vmatprep.subr.bf16.mxu0 (!%p257_p9), %v1530_v1  ;;  %v1532_v4 = vld [vmem:[%s2296_s3 + $0x48] sm:$0xff] (!%p257_p9)   ;;  %1466 = vmatprep.subr.bf16.mxu1 (!%p257_p9), %v1530_v1  ;;  %s1645_s17 = smov (!%p257_p9), 32  }
  0x11   : > { %316 = vst.msk [vmem:[#allocation2 + $0x8] sm:$0x1] (!%p257_p9), %vm315_vm1, %v1644_v0  ;;  %v1358_v5 = vld [vmem:[%s2294_s1] ss:$0 sm:$0xff] (!%p257_p9)  ;;  %1409 = vmatpush3.bf16.msra.mxu0 (!%p257_p9), %v1531_v2  ;;  %1474 = vmatpush3.bf16.msra.mxu1 (!%p257_p9), %v1531_v2  ;;  %v1533_v19 = vld [vmem:[%s2296_s3 + $0x8] sm:$0xff] (!%p257_p9)   ;;  %v1534_v27 = vld [vmem:[%s2296_s3 + $0x50] sm:$0xff] (!%p257_p9)  }
  0x12   : > { %373 = vst.msk [vmem:[#allocation2 + $0x51] sm:$0x7f] (!%p257_p9), %vm372_vm2, %v1644_v0  ;;  %1410 = vmatprep.subr.bf16.mxu0 (!%p257_p9), %v1532_v4  ;;  %1467 = vmatprep.subr.bf16.mxu1 (!%p257_p9), %v1532_v4  ;;  %v1764_v13 = vshrl.u32 (!%p257_p9), %v374_v3, 7  ;;  %v1535_v32 = vld [vmem:[%s2296_s3 + $0x10] sm:$0xff] (!%p257_p9)   ;;  %v1536_v39 = vld [vmem:[%s2296_s3 + $0x58] sm:$0xff] (!%p257_p9)   ;;  %v1538_v46 = vld [vmem:[%s2296_s3 + $0x60] sm:$0xff] (!%p257_p9)  }
  0x13   : > { %v1537_v42 = vld [vmem:[%s2296_s3 + $0x18] sm:$0xff] (!%p257_p9)   ;;  %v1539_v47 = vld [vmem:[%s2296_s3 + $0x20] sm:$0xff] (!%p257_p9)   ;;  %s1647_s8 = smov (!%p257_p9), 64   ;;  %s1383_s16 = sshll.u32 (!%p257_p9), %s1711_s28, 4 }
  0x14   : > { %v376_v36 = vadd.s32 (!%p257_p9), 8, %v1764_v13  ;;  %v382_v40 = vadd.s32 (!%p257_p9), 56, %v1764_v13  ;;  %v387_v43 = vand.u32 (!%p257_p9), 7, %v1764_v13  ;;  %v381_v45 = vadd.s32 (!%p257_p9), 48, %v1764_v13  ;;  %s1648_s29 = smov (!%p257_p9), [#allocation4]  }
  0x15   : > { %1411 = vmatpush3.bf16.msra.mxu0 (!%p257_p9), %v1533_v19  ;;  %1475 = vmatpush3.bf16.msra.mxu1 (!%p257_p9), %v1533_v19  ;;  %v1800_v50 = vadd.s32 (!%p257_p9), 16, %v1764_v13  ;;  %v1803_v51 = vadd.s32 (!%p257_p9), 24, %v1764_v13  ;;  %v1810_v54 = vadd.s32 (!%p257_p9), 32, %v1764_v13  ;;  %v1813_v55 = vadd.s32 (!%p257_p9), 40, %v1764_v13 }
  0x16   : > { %1412 = vmatprep.subr.bf16.mxu0 (!%p257_p9), %v1534_v27  ;;  %1468 = vmatprep.subr.bf16.mxu1 (!%p257_p9), %v1534_v27  ;;  %v394_v44 = vand.u32 (!%p257_p9), 7, %v376_v36  ;;  %v436_v49 = vand.u32 (!%p257_p9), 7, %v382_v40  ;;  %vm1821_vm3 = vcmp.ne.s32.totalorder (!%p257_p9), %v387_v43, 0  ;;  %v429_v62 = vand.u32 (!%p257_p9), 7, %v381_v45  ;;  %v1540_v45 = vld [vmem:[%s2296_s3 + $0x68] sm:$0xff] (!%p257_p9)  }
  0x17   : > { %s1742_s13 = scalar_select %p299_p10, %s1711_s28, 1  ;;  %vm1833_vm5 = vcmp.ne.s32.totalorder %v387_v43, 7  ;;  %v769_v19 = vld [vmem:[#allocation2 + $0x49] sm:$0xff]  ;;  %v422_v27 = vand.u32 7, %v1813_v55  ;;  %v495_v3 = vld [vmem:[#allocation2] sm:$0xff] }
  0x18   : > { %v535_v48 = vld [vmem:[#allocation2 + $0x1] sm:$0xff]  ;;  %vm1825_vm4 = vcmp.ne.s32.totalorder %v394_v44, 0  ;;  %vm1837_vm6 = vcmp.ne.s32.totalorder %v394_v44, 7  ;;  %vm1848_vm7 = vcmp.ne.s32.totalorder %v436_v49, 7  ;;  %vm1870_vm8 = vcmp.ne.s32.totalorder %v429_v62, 7 }
  0x19   : > { %s1387_s18 = sshll.u32 %s1742_s13, 5  ;;  %s306_s9 = scalar_lea.vmem %s2295_s2, %s1742_s13  ;;  %1413 = vmatpush3.bf16.msra.mxu0 %v1535_v32  ;;  %1476 = vmatpush3.bf16.msra.mxu1 %v1535_v32  ;;  %v801_v4 = vld [vmem:[#allocation2 + $0x4a] sm:$0xff]  ;;  %vm1878_vm9 = vcmp.ne.s32.totalorder %v429_v62, 0  ;;  %vm1882_vm10 = vcmp.ne.s32.totalorder %v436_v49, 0  ;;  %vm1938_vm14 = vcmp.ne.s32.totalorder %v422_v27, 7 }
  0x1a   : > { %s303_s23 = scalar_lea.vmem %s2293_s0, %s1387_s18  ;;  %v1359_v14 = vld [vmem:[%s306_s9] ss:$0 sm:$0xff]  ;;  %1414 = vmatprep.subr.bf16.mxu0 %v1536_v39  ;;  %1469 = vmatprep.subr.bf16.mxu1 %v1536_v39  ;;  %s1646_s18 = smov 96   ;;  %v1541_v49 = vld [vmem:[%s2296_s3 + $0x28] sm:$0xff]  }
  0x1b   : > { %v1406_v6 = vld [vmem:[%s303_s23 + $0x10] sm:$0xff]   ;;  %v1407_v7 = vld [vmem:[%s303_s23 + $0x18] sm:$0xff]   ;;  %v1390_v8 = vld [vmem:[%s303_s23] sm:$0xff]  }
  0x1c   : > { %v1400_v9 = vunpack.c.h.bf16 %v1406_v6  ;;  %v1403_v10 = vunpack.c.l.bf16 %v1407_v7  ;;  %v1404_v11 = vunpack.c.h.bf16 %v1407_v7  ;;  %v1405_v12 = vld [vmem:[%s303_s23 + $0x8] sm:$0xff]   ;;  %v1399_v15 = vunpack.c.l.bf16 %v1406_v6 }
  0x1d   : > { %v1391_v16 = vunpack.c.l.bf16 %v1390_v8  ;;  %v1392_v17 = vunpack.c.h.bf16 %v1390_v8  ;;  %v1395_v18 = vunpack.c.l.bf16 %v1405_v12  ;;  %v1396_v23 = vunpack.c.h.bf16 %v1405_v12  ;;  %1415 = vmatpush3.bf16.msra.mxu0 %v1537_v42  ;;  %1477 = vmatpush3.bf16.msra.mxu1 %v1537_v42 }
  0x1e   : > { %v345_v20 = vmul.f32 %v1400_v9, %v1358_v5  ;;  %v346_v21 = vmul.f32 %v1403_v10, %v1358_v5  ;;  %v347_v22 = vmul.f32 %v1404_v11, %v1358_v5  ;;  %v344_v38 = vmul.f32 %v1399_v15, %v1358_v5  ;;  %1416 = vmatprep.subr.bf16.mxu0 %v1538_v46 }
  0x1f   : > { %v340_v24 = vmul.f32 %v1391_v16, %v1358_v5  ;;  %v341_v25 = vmul.f32 %v1392_v17, %v1358_v5  ;;  %v342_v26 = vmul.f32 %v1395_v18, %v1358_v5  ;;  %v343_v31 = vmul.f32 %v1396_v23, %v1358_v5  ;;  %1470 = vmatprep.subr.bf16.mxu1 %v1538_v46 }
  0x20   : > { %v360_v28 = vadd.f32 %v1359_v14, %v345_v20  ;;  %v361_v29 = vadd.f32 %v1359_v14, %v346_v21  ;;  %v362_v30 = vadd.f32 %v1359_v14, %v347_v22  ;;  %v359_v41 = vadd.f32 %v1359_v14, %v344_v38 }
  0x21   : > { %v355_v33 = vadd.f32 %v1359_v14, %v340_v24  ;;  %v356_v34 = vadd.f32 %v1359_v14, %v341_v25  ;;  %v357_v35 = vadd.f32 %v1359_v14, %v342_v26  ;;  %v358_v37 = vadd.f32 %v1359_v14, %v343_v31  ;;  %1417 = vmatpush3.bf16.msra.mxu0 %v1539_v47 }
  0x22   : > { %368 = vst.msk [vmem:[#allocation2 + $0x31] sm:$0xff] %vm313_vm0, %v360_v28  ;;  %369 = vst.msk [vmem:[#allocation2 + $0x39] sm:$0xff] %vm313_vm0, %v361_v29  ;;  %1478 = vmatpush3.bf16.msra.mxu1 %v1539_v47  ;;  %v401_v10 = vand.u32 7, %v1800_v50  ;;  %v408_v11 = vand.u32 7, %v1803_v51  ;;  %v809_v22 = vsel %vm1848_vm7, %v801_v4, 0.0  ;;  %v415_v26 = vand.u32 7, %v1810_v54  ;;  %1418 = vmatprep.subr.bf16.mxu0 %v1540_v45 }
  0x23   : > { %370 = vst.msk [vmem:[#allocation2 + $0x41] sm:$0xff] %vm313_vm0, %v362_v30  ;;  %363 = vst.msk [vmem:[#allocation2 + $0x9] sm:$0xff] %vm313_vm0, %v355_v33  ;;  %1471 = vmatprep.subr.bf16.mxu1 %v1540_v45  ;;  %v519_v50 = vsel %vm1821_vm3, %v495_v3, 0.0 }
  0x24   : > { %364 = vst.msk [vmem:[#allocation2 + $0x11] sm:$0xff] %vm313_vm0, %v356_v34  ;;  %365 = vst.msk [vmem:[#allocation2 + $0x19] sm:$0xff] %vm313_vm0, %v357_v35  ;;  %vm1905_vm11 = vcmp.ne.s32.totalorder %v401_v10, 7  ;;  %vm1911_vm12 = vcmp.ne.s32.totalorder %v408_v11, 7  ;;  %vm1932_vm13 = vcmp.ne.s32.totalorder %v415_v26, 7  ;;  %vm1992_vm15 = vcmp.ne.s32.totalorder %v401_v10, 0 }
  0x25   : > { %366 = vst.msk [vmem:[#allocation2 + $0x21] sm:$0xff] %vm313_vm0, %v358_v37  ;;  %367 = vst.msk [vmem:[#allocation2 + $0x29] sm:$0xff] %vm313_vm0, %v359_v41  ;;  %1419 = vmatpush3.bf16.msra.mxu0 %v1541_v49  ;;  %vm2001_vm1 = vcmp.ne.s32.totalorder %v408_v11, 0  ;;  %v1545_v10 = vld [vmem:[%s2296_s3 + $0x38] sm:$0xff]   ;;  %vm2054_vm2 = vcmp.ne.s32.totalorder %v415_v26, 0 }
  0x26   : > { %1479 = vmatpush3.bf16.msra.mxu1 %v1541_v49 }
  0x29   : > { %v1805_v52 = vld [vmem:[#allocation2 + $0x31] sm:$0xff]  ;;  %v1807_v53 = vld [vmem:[#allocation2 + $0x39] sm:$0xff] }
  0x2a   : > { %v1817_v56 = vpack.c.bf16 %v1807_v53, %v1805_v52  ;;  %v536_v57 = vld [vmem:[#allocation2 + $0x9] sm:$0xff]  ;;  %v1868_v18 = vld [vmem:[#allocation2 + $0x41] sm:$0xff]  ;;  %v1901_v36 = vld [vmem:[#allocation2 + $0x32] sm:$0xff] }
  0x2b   : > { %v537_v58 = vld [vmem:[#allocation2 + $0x11] sm:$0xff]  ;;  %v1819_v59 = vld [vmem:[#allocation2 + $0x19] sm:$0xff]  ;;  %v543_v63 = vpack.c.bf16 %v536_v57, %v535_v48  ;;  %v568_v14 = vld [vmem:[#allocation2 + $0x2] sm:$0xff]  ;;  %v773_v34 = vpack.c.bf16 %v769_v19, %v1868_v18  ;;  %v806_v21 = vsel %vm1932_vm13, %v1901_v36, 0.0 }
  0x2c   : > { %v1829_v0 = vld [vmem:[#allocation2 + $0x10] sm:$0xff]  ;;  %v1831_v1 = vld [vmem:[#allocation2 + $0x18] sm:$0xff]  ;;  %v674_v5 = vpack.c.bf16 %v537_v58, %v536_v57  ;;  %557 = vrot.lane.b32.xlu1 %v1817_v56, %s1645_s17  ;;  %v544_v6 = vpack.c.bf16 %v1819_v59, %v537_v58  ;;  %v1876_v23 = vld [vmem:[#allocation2 + $0x42] sm:$0xff]  ;;  %v592_v29 = vsel %vm1833_vm5, %v568_v14, 0.0 }
  0x2d   : > { %v1844_v7 = vld [vmem:[#allocation2 + $0x12] sm:$0xff]  ;;  %v1846_v8 = vld [vmem:[#allocation2 + $0x1a] sm:$0xff]  ;;  %551 = vrot.lane.b32.xlu0 %v543_v63, %s1645_s17  ;;  %v730_v12 = vsel %vm1821_vm3, %v1829_v0, 0.0  ;;  %v731_v13 = vsel %vm1825_vm4, %v1831_v1, 0.0  ;;  %v569_v15 = vld [vmem:[#allocation2 + $0xa] sm:$0xff]  ;;  %v808_v33 = vsel %vm1870_vm8, %v1876_v23, 0.0 }
  0x2e   : > { %v802_v16 = vsel %vm1833_vm5, %v1844_v7, 0.0  ;;  %v803_v17 = vsel %vm1837_vm6, %v1846_v8, 0.0  ;;  %678 = vst.msk [vmem:[#allocation3 + $0x8] sm:$0xff] %vm313_vm0, %v674_v5  ;;  %v738_v28 = vpack.c.bf16 %v731_v13, %v730_v12  ;;  %v593_v30 = vsel %vm1837_vm6, %v569_v15, 0.0  ;;  %v1894_v31 = vld [vmem:[#allocation2 + $0x8] sm:$0xff]  ;;  %v688_v32 = vld [vmem:[#allocation2 + $0x3a] sm:$0xff] }
  0x2f   : > { %v810_v20 = vpack.c.bf16 %v803_v17, %v802_v16  ;;  %v813_v35 = vpack.c.bf16 %v809_v22, %v808_v33  ;;  %v1915_v39 = vld [vmem:[#allocation2 + $0x22] sm:$0xff]  ;;  %v690_v40 = vsel %vm1833_vm5, %v569_v15, 0.0  ;;  %v691_v41 = vsel %vm1837_vm6, %v1844_v7, 0.0  ;;  %v1924_v44 = vld [vmem:[#allocation2 + $0x2a] sm:$0xff]  ;;  %v1967_v12 = vld [vmem:[#allocation2 + $0x38] sm:$0xff] }
  0x30   : > { %553 = vrot.lane.b32.xlu1 %v544_v6, %s1645_s17  ;;  %v1922_v42 = vld [vmem:[#allocation2 + $0x40] sm:$0xff]  ;;  %v729_v43 = vld [vmem:[#allocation2 + $0x48] sm:$0xff]  ;;  %v600_v46 = vpack.c.bf16 %v593_v30, %v592_v29  ;;  %v1542_v57 = vld [vmem:[%s2296_s3 + $0x70] sm:$0xff]   ;;  %v633_v58 = vsel %vm1821_vm3, %v1894_v31, 0.0  ;;  %v634_v62 = vsel %vm1825_vm4, %v1829_v0, 0.0  ;;  %v804_v63 = vsel %vm1905_vm11, %v1915_v39, 0.0 }
  0x31   : > { %814 = vst.msk [vmem:[#allocation3 + $0x10] sm:$0xff] %vm313_vm0, %v810_v20  ;;  %778 = vrot.lane.b32.xlu0 %v544_v6, %s1646_s18  ;;  %817 = vst.msk [vmem:[#allocation3 + $0x58] sm:$0xff] %vm313_vm0, %v813_v35  ;;  %v805_v2 = vsel %vm1911_vm12, %v1924_v44, 0.0  ;;  %v698_v4 = vpack.c.bf16 %v691_v41, %v690_v40  ;;  %v696_v5 = vsel %vm1870_vm8, %v688_v32, 0.0  ;;  %v697_v6 = vsel %vm1848_vm7, %v1876_v23, 0.0  ;;  %v1543_v14 = vld [vmem:[%s2296_s3 + $0x30] sm:$0xff]   ;;  %1420 = vmatprep.subr.bf16.mxu0 %v1542_v57 }
  0x32   : > { %v811_v13 = vpack.c.bf16 %v805_v2, %v804_v63  ;;  %v598_v15 = vsel %vm1870_vm8, %v1901_v36, 0.0  ;;  %v1544_v16 = vld [vmem:[%s2296_s3 + $0x78] sm:$0xff]   ;;  %v599_v17 = vsel %vm1848_vm7, %v688_v32, 0.0  ;;  %v736_v19 = vsel %vm1878_vm9, %v1922_v42, 0.0  ;;  %1472 = vmatprep.subr.bf16.mxu1 %v1542_v57  ;;  %v2005_v33 = vld [vmem:[#allocation2 + $0x30] sm:$0xff]  ;;  %1421 = vmatpush3.bf16.msra.mxu0 %v1543_v14  ;;  %v724_v57 = vld [vmem:[#allocation2 + $0x20] sm:$0xff] }
  0x33   : > { %v737_v20 = vsel %vm1882_vm10, %v729_v43, 0.0  ;;  %v641_v22 = vpack.c.bf16 %v634_v62, %v633_v58  ;;  %v807_v23 = vsel %vm1938_vm14, %v688_v32, 0.0  ;;  %v603_v32 = vpack.c.bf16 %v599_v17, %v598_v15  ;;  %1422 = vmatprep.subr.bf16.mxu0 %v1544_v16  ;;  %1480 = vmatpush3.bf16.msra.mxu1 %v1543_v14  ;;  %v725_v58 = vld [vmem:[#allocation2 + $0x28] sm:$0xff] }
  0x34   : > { %746 = vrot.lane.b32.xlu1 %v738_v28, %s1647_s8  ;;  %815 = vst.msk [vmem:[#allocation3 + $0x28] sm:$0xff] %vm313_vm0, %v811_v13  ;;  %v701_v28 = vpack.c.bf16 %v697_v6, %v696_v5  ;;  %v812_v30 = vpack.c.bf16 %v807_v23, %v806_v21  ;;  %v639_v51 = vsel %vm1878_vm9, %v1967_v12, 0.0  ;;  %v640_v11 = vsel %vm1882_vm10, %v1922_v42, 0.0  ;;  %v764_v42 = vld [vmem:[#allocation2 + $0x21] sm:$0xff]  ;;  %1473 = vmatprep.subr.bf16.mxu1 %v1544_v16  ;;  %v765_v62 = vld [vmem:[#allocation2 + $0x29] sm:$0xff] }
  0x35   : > { %784 = vrot.lane.b32.xlu0 %v773_v34, %s1646_s18  ;;  %v741_v34 = vpack.c.bf16 %v737_v20, %v736_v19  ;;  %v692_v60 = vsel %vm1905_vm11, %v1846_v8, 0.0  ;;  %v525_v35 = vsel %vm1878_vm9, %v2005_v33, 0.0  ;;  %v526_v40 = vsel %vm1882_vm10, %v1967_v12, 0.0 }
  0x36   : > { %816 = vst.msk [vmem:[#allocation3 + $0x40] sm:$0xff] %vm313_vm0, %v812_v30  ;;  %v520_v41 = vsel %vm1825_vm4, %v1894_v31, 0.0  ;;  %v530_v43 = vpack.c.bf16 %v526_v40, %v525_v35  ;;  %v522_v24 = vsel %vm2001_vm1, %v1831_v1, 0.0  ;;  %v693_v61 = vsel %vm1911_vm12, %v1915_v39, 0.0  ;;  %1423 = vmatpush3.bf16.msra.mxu0 %v1545_v10  ;;  %v1547_v40 = vld [vmem:[%s2296_s3 + $0x88] sm:$0xff]  }
  0x37   : > { %v527_v45 = vpack.c.bf16 %v520_v41, %v519_v50  ;;  %v677_v31 = vpack.c.bf16 %v1868_v18, %v1807_v53  ;;  %v675_v49 = vpack.c.bf16 %v764_v42, %v1819_v59  ;;  %1481 = vmatpush3.bf16.msra.mxu1 %v1545_v10  ;;  %v644_v53 = vpack.c.bf16 %v640_v11, %v639_v51 }
  0x38   : > { %608 = vrot.lane.b32.xlu1 %v600_v46, %s1647_s8  ;;  %v521_v46 = vsel %vm1992_vm15, %v1829_v0, 0.0  ;;  %534 = vst.msk [vmem:[#allocation3 + $0x48] sm:$0xff] %vm313_vm0, %v530_v43  ;;  %v2050_v0 = vld [vmem:[%s2296_s3 + $0x80] sm:$0xff]   ;;  %v699_v59 = vpack.c.bf16 %v693_v61, %v692_v60  ;;  %vm2064_vm3 = vcmp.ne.s32.totalorder %v422_v27, 0  ;;  %v676_v54 = vpack.c.bf16 %v1805_v52, %v765_v62  ;;  %v820_v41 = vld [vmem:[#allocation3 + $0x10] sm:$0xff]  ;;  %v829_v63 = vld [vmem:[#allocation3 + $0x58] sm:$0xff] }
  0x39   : > { %706 = vrot.lane.b32.xlu0 %v698_v4, %s1645_s17  ;;  %v528_v25 = vpack.c.bf16 %v522_v24, %v521_v46  ;;  %531 = vst.msk [vmem:[#allocation3] sm:$0xff] %vm313_vm0, %v527_v45  ;;  %681 = vst.msk [vmem:[#allocation3 + $0x50] sm:$0xff] %vm313_vm0, %v677_v31  ;;  %1454 = vmatprep.subr.bf16.mxu1 %v2050_v0  ;;  %v594_v26 = vsel %vm1905_vm11, %v1844_v7, 0.0  ;;  %v595_v2 = vsel %vm1911_vm12, %v1846_v8, 0.0  ;;  %v523_v55 = vsel %vm2054_vm2, %v724_v57, 0.0 }
  0x3a   : > { %679 = vst.msk [vmem:[#allocation3 + $0x20] sm:$0xff] %vm313_vm0, %v675_v49  ;;  %v524_v27 = vsel %vm2064_vm3, %v725_v58, 0.0  ;;  %v732_v3 = vsel %vm1992_vm15, %v724_v57, 0.0  ;;  %v733_v52 = vsel %vm2001_vm1, %v725_v58, 0.0  ;;  %680 = vst.msk [vmem:[#allocation3 + $0x38] sm:$0xff] %vm313_vm0, %v676_v54  ;;  %v601_v7 = vpack.c.bf16 %v595_v2, %v594_v26 }
  0x3b   : > { %532 = vst.msk [vmem:[#allocation3 + $0x18] sm:$0xff] %vm313_vm0, %v528_v25  ;;  %v529_v37 = vpack.c.bf16 %v524_v27, %v523_v55  ;;  %v739_v8 = vpack.c.bf16 %v733_v52, %v732_v3  ;;  %v635_v38 = vsel %vm1992_vm15, %v1831_v1, 0.0  ;;  %v636_v4 = vsel %vm2001_vm1, %v724_v57, 0.0  ;;  %v823_v61 = vld [vmem:[#allocation3 + $0x28] sm:$0xff] }
  0x3c   : > { %649 = vrot.lane.b32.xlu1 %v641_v22, %s1646_s18  ;;  %v642_v5 = vpack.c.bf16 %v636_v4, %v635_v38  ;;  %v771_v6 = vpack.c.bf16 %v765_v62, %v764_v42  ;;  %v694_v13 = vsel %vm1932_vm13, %v1924_v44, 0.0  ;;  %v695_v14 = vsel %vm1938_vm14, %v1901_v36, 0.0  ;;  %v1360_v4 = vld [vmem:[%s2297_s4] ss:$0 sm:$0xff] }
  0x3d   : > { %712 = vrot.lane.b32.xlu0 %v701_v28, %s1645_s17  ;;  %533 = vst.msk [vmem:[#allocation3 + $0x30] sm:$0xff] %vm313_vm0, %v529_v37  ;;  %v700_v1 = vpack.c.bf16 %v695_v14, %v694_v13  ;;  %v596_v15 = vsel %vm1932_vm13, %v1915_v39, 0.0  ;;  %v597_v16 = vsel %vm1938_vm14, %v1924_v44, 0.0  ;;  %v734_v17 = vsel %vm2054_vm2, %v2005_v33, 0.0  ;;  %v826_v25 = vld [vmem:[#allocation3 + $0x40] sm:$0xff] }
  0x3e   : > { %v735_v36 = vsel %vm2064_vm3, %v1967_v12, 0.0  ;;  %v602_v19 = vpack.c.bf16 %v597_v16, %v596_v15  ;;  %v637_v39 = vsel %vm2054_vm2, %v725_v58, 0.0  ;;  %v638_v44 = vsel %vm2064_vm3, %v2005_v33, 0.0 }
  0x3f   : > { %v740_v20 = vpack.c.bf16 %v735_v36, %v734_v17  ;;  %v643_v47 = vpack.c.bf16 %v638_v44, %v637_v39  ;;  %vm563_vm4 = vcmask 523520   ;;  %vm620_vm5 = vcmask 785920  }
  0x40   : > { %614 = vrot.lane.b32.xlu1 %v603_v32, %s1647_s8  ;;  %vm661_vm6 = vcmask 1048320   ;;  %vm1155_vm7 = vcmask 57344  }
  0x41   : > { %752 = vrot.lane.b32.xlu0 %v741_v34, %s1647_s8 }
  0x44   : > { %655 = vrot.lane.b32.xlu1 %v644_v53, %s1646_s18 }
  0x45   : > { %708 = vrot.lane.b32.xlu0 %v699_v59, %s1645_s17 }
  0x48   : > { %610 = vrot.lane.b32.xlu1 %v601_v7, %s1647_s8 }
  0x49   : > { %748 = vrot.lane.b32.xlu0 %v739_v8, %s1647_s8 }
  0x4c   : > { %651 = vrot.lane.b32.xlu1 %v642_v5, %s1646_s18 }
  0x4d   : > { %780 = vrot.lane.b32.xlu0 %v771_v6, %s1646_s18 }
  0x50   : > { %555 = vrot.lane.b32.xlu1 %v771_v6, %s1645_s17 }
  0x51   : > { %710 = vrot.lane.b32.xlu0 %v700_v1, %s1645_s17  ;;  %s2207_s17 = scalar_lea.hbm %s2299_s6, %s1383_s16 }
  0x54   : > { %612 = vrot.lane.b32.xlu1 %v602_v19, %s1647_s8 }
  0x55   : > { %750 = vrot.lane.b32.xlu0 %v740_v20, %s1647_s8  ;;  %s1388_s8 = sshll.u32 %s1742_s13, 6  ;;  %s2198_s13 = sand.u32 1, %s1634_s25  }
  0x56   : > { %s2167_s15 = scalar_lea.vmem %s2298_s5, %s1388_s8  ;;  %s292_s19 = scalar_lea.vmem [#allocation4], %s2198_s13 }
  0x57   : > { %s1220_s20 = sshll.u32 %s292_s19, 4  ;;  %s1552_s8 = sshll.u32 %s1648_s29, 4  ;;  %s2209_s20 = int_to_ptr.vmem [resolvable:$true] %s1220_s20  ;;  %s1553_s8 = int_to_ptr.vmem [resolvable:$false] %s1552_s8 }
  0x58   : > { %653 = vrot.lane.b32.xlu1 %v643_v47, %s1646_s18  ;;  %s1548_s23 = scalar_lea.vmem %s2209_s20, 16  ;;  %s1554_s9 = scalar_lea.vmem %s1553_s8, 32 }
  0x59   : > { %782 = vrot.lane.b32.xlu0 %v1817_v56, %s1646_s18  ;;  %s1201_s18 = scalar_lea.sflag [#allocation5], %s2198_s13  ;;  %p1549_p11 = scmp.ne.s32.totalorder %s2209_s20, %s1548_s23 }
  0x5a   : > { %p1555_p0 = scmp.lt.s32.totalorder %s2209_s20, %s1553_s8  ;;  %p1556_p1 = scmp.lt.s32.totalorder %s1554_s9, %s1548_s23 }
  0x5b   : > { %p1550_p12 = pnand %p1549_p11, %p1728_p5 }
  0x5c   : > { %p1557_p2 = por %p1556_p1, %p1555_p0 }
  0x5d   : > { %p1551_p13 = pneg %p1550_p12 }
  0x5f   : > { %p1558_p3 = pnand %p1557_p2, %p1551_p13 }
  0x9e   : > { %v558_v48 = vpop.permute.xlu1 %557 }
  0x9f   : > { %567 = vst.msk [vmem:[#allocation3 + $0x48] sm:$0xff] %vm563_vm4, %v558_v48  ;;  %v552_v12 = vpop.permute.xlu0 %551 }
  0xa0   : > { %564 = vst.msk [vmem:[#allocation3] sm:$0xff] %vm563_vm4, %v552_v12 }
  0xa2   : > { %v554_v21 = vpop.permute.xlu1 %553 }
  0xa3   : > { %565 = vst.msk [vmem:[#allocation3 + $0x18] sm:$0xff] %vm563_vm4, %v554_v21  ;;  %v779_v22 = vpop.permute.xlu0 %778 }
  0xa6   : > { %v747_v9 = vpop.permute.xlu1 %746 }
  0xa7   : > { %v785_v23 = vpop.permute.xlu0 %784 }
  0xaa   : > { %v609_v28 = vpop.permute.xlu1 %608 }
  0xab   : > { %621 = vst.msk [vmem:[#allocation3] sm:$0xff] %vm620_vm5, %v609_v28  ;;  %v707_v29 = vpop.permute.xlu0 %706 }
  0xac   : > { %718 = vst.msk [vmem:[#allocation3 + $0x8] sm:$0xff] %vm563_vm4, %v707_v29 }
  0xad   : > { %758 = vst.msk [vmem:[#allocation3 + $0x8] sm:$0xff] %vm620_vm5, %v747_v9 }
  0xae   : > { %790 = vst.msk [vmem:[#allocation3 + $0x8] sm:$0xff] %vm661_vm6, %v779_v22  ;;  %v650_v56 = vpop.permute.xlu1 %649 }
  0xaf   : > { %662 = vst.msk [vmem:[#allocation3] sm:$0xff] %vm661_vm6, %v650_v56  ;;  %v713_v30 = vpop.permute.xlu0 %712 }
  0xb0   : > { %721 = vst.msk [vmem:[#allocation3 + $0x50] sm:$0xff] %vm563_vm4, %v713_v30 }
  0xb2   : > { %v615_v33 = vpop.permute.xlu1 %614 }
  0xb3   : > { %624 = vst.msk [vmem:[#allocation3 + $0x48] sm:$0xff] %vm620_vm5, %v615_v33  ;;  %v753_v50 = vpop.permute.xlu0 %752 }
  0xb4   : > { %761 = vst.msk [vmem:[#allocation3 + $0x50] sm:$0xff] %vm620_vm5, %v753_v50 }
  0xb5   : > { %793 = vst.msk [vmem:[#allocation3 + $0x50] sm:$0xff] %vm661_vm6, %v785_v23  ;;  %v819_v10 = vld [vmem:[#allocation3 + $0x8] sm:$0xff] }
  0xb6   : > { %1025 = vmatprep.mubr.bf16.mxu0 %v819_v10  ;;  %v656_v32 = vpop.permute.xlu1 %655  ;;  %v818_v34 = vld [vmem:[#allocation3] sm:$0xff] }
  0xb7   : > { %665 = vst.msk [vmem:[#allocation3 + $0x48] sm:$0xff] %vm661_vm6, %v656_v32  ;;  %v709_v51 = vpop.permute.xlu0 %708  ;;  %1026 = vmatmul.mubr.bf16.vlgmr.msra.gmra.mrb[0].mxu0 %v818_v34 }
  0xb8   : > { %719 = vst.msk [vmem:[#allocation3 + $0x20] sm:$0xff] %vm563_vm4, %v709_v51 }
  0xba   : > { %v611_v11 = vpop.permute.xlu1 %610 }
  0xbb   : > { %v749_v60 = vpop.permute.xlu0 %748  ;;  %622 = vst.msk [vmem:[#allocation3 + $0x18] sm:$0xff] %vm620_vm5, %v611_v11 }
  0xbc   : > { %759 = vst.msk [vmem:[#allocation3 + $0x20] sm:$0xff] %vm620_vm5, %v749_v60  ;;  %v828_v35 = vld [vmem:[#allocation3 + $0x50] sm:$0xff] }
  0xbd   : > { %1049 = vmatprep.mubr.bf16.mxu1 %v828_v35 }
  0xbe   : > { %v652_v42 = vpop.permute.xlu1 %651  ;;  %v827_v43 = vld [vmem:[#allocation3 + $0x48] sm:$0xff] }
  0xbf   : > { %v781_v45 = vpop.permute.xlu0 %780  ;;  %663 = vst.msk [vmem:[#allocation3 + $0x18] sm:$0xff] %vm661_vm6, %v652_v42  ;;  %1050 = vmatmul.mubr.bf16.vlgmr.msra.gmra.mrb[0].mxu1 %v827_v43 }
  0xc0   : > { %791 = vst.msk [vmem:[#allocation3 + $0x20] sm:$0xff] %vm661_vm6, %v781_v45  ;;  %1455 = vmatpush3.bf16.msra.mxu1 %v2050_v0  ;;  %1458 = vmatprep.mubr.msk.bf16.mxu1 %vm313_vm0, %v820_v41 }
  0xc1   : > { %1456 = vmatprep.subr.bf16.mxu1 %v1547_v40 }
  0xc2   : > { %v556_v46 = vpop.permute.xlu1 %555 }
  0xc3   : > { %v711_v24 = vpop.permute.xlu0 %710  ;;  %566 = vst.msk [vmem:[#allocation3 + $0x30] sm:$0xff] %vm563_vm4, %v556_v46 }
  0xc4   : > { %720 = vst.msk [vmem:[#allocation3 + $0x38] sm:$0xff] %vm563_vm4, %v711_v24  ;;  %1457 = vmatpush3.bf16.msra.mxu1 %v1547_v40 }
  0xc6   : > { %v613_v31 = vpop.permute.xlu1 %612  ;;  %v821_v49 = vld [vmem:[#allocation3 + $0x18] sm:$0xff] }
  0xc7   : > { %v751_v57 = vpop.permute.xlu0 %750  ;;  %623 = vst.msk [vmem:[#allocation3 + $0x30] sm:$0xff] %vm620_vm5, %v613_v31  ;;  %v822_v58 = vld [vmem:[#allocation3 + $0x20] sm:$0xff]  ;;  %1459 = vmatmul.mubr.msk.bf16.vlgmr.msra.gmra.mrb[4].mxu1 %vm313_vm0, %v823_v61 }
  0xc8   : > { %760 = vst.msk [vmem:[#allocation3 + $0x38] sm:$0xff] %vm620_vm5, %v751_v57  ;;  %1033 = vmatprep.mubr.bf16.mxu0 %v822_v58  ;;  %1462 = vmatprep.mubr.msk.bf16.mxu1 %vm313_vm0, %v826_v25 }
  0xc9   : > { %1034 = vmatmul.mubr.bf16.gmra.mrb[4].mxu0 %v821_v49 }
  0xca   : > { %v654_v0 = vpop.permute.xlu1 %653 }
  0xcb   : > { %v783_v62 = vpop.permute.xlu0 %782  ;;  %664 = vst.msk [vmem:[#allocation3 + $0x30] sm:$0xff] %vm661_vm6, %v654_v0 }
  0xcc   : > { %792 = vst.msk [vmem:[#allocation3 + $0x38] sm:$0xff] %vm661_vm6, %v783_v62 }
  0xcf   : > { %1463 = vmatmul.mubr.msk.bf16.gmra.mrb[8].mxu1 %vm313_vm0, %v829_v63  ;;  %vm1123_vm0 = vcmask 64512  }
  0xd2   : > { %v824_v53 = vld [vmem:[#allocation3 + $0x30] sm:$0xff] }
  0xd3   : > { %v825_v59 = vld [vmem:[#allocation3 + $0x38] sm:$0xff] }
  0xd4   : > { %1041 = vmatprep.mubr.bf16.mxu0 %v825_v59 }
  0xd5   : > { %1042 = vmatmul.mubr.bf16.gmra.mrb[8].mxu0 %v824_v53 }
 0x18a   : > { %v1424_v18 = vpop.f32.mrb[0].mxu0 }
 0x18b   : > { %v1425_v54 = vpop.f32.mrb[1].mxu0 }
 0x18c   : > { %v1426_v26 = vadd.f32 %v1425_v54, %v1424_v18  ;;  %v1427_v2 = vpop.f32.mrb[2].mxu0 }
 0x18d   : > { %v1428_v55 = vpop.f32.mrb[3].mxu0 }
 0x18e   : > { %v1429_v27 = vadd.f32 %v1428_v55, %v1427_v2  ;;  %v1028_v6 = vadd.f32 %v1426_v26, %v1360_v4 }
 0x190   : > { %v1031_v16 = vadd.f32 %v1429_v27, %v1360_v4 }
 0x192   : > { %v1442_v3 = vpop.f32.mrb[0].mxu1 }
 0x193   : > { %v1443_v52 = vpop.f32.mrb[1].mxu1 }
 0x194   : > { %v1444_v37 = vadd.f32 %v1443_v52, %v1442_v3  ;;  %v1445_v7 = vpop.f32.mrb[2].mxu1 }
 0x195   : > { %v1446_v8 = vpop.f32.mrb[3].mxu1 }
 0x196   : > { %v1447_v38 = vadd.f32 %v1446_v8, %v1445_v7  ;;  %v1052_v9 = vadd.f32 %v1444_v37, %v1360_v4 }
 0x198   : > { %v1055_v33 = vadd.f32 %v1447_v38, %v1360_v4 }
 0x19a   : > { %v1460_v5 = vpop.f32.mrb[4].mxu1 }
 0x19b   : > { %v1092_v13 = vpop.f32.mrb[5].mxu1 }
 0x19c   : > { %v1430_v14 = vpop.f32.mrb[4].mxu0  ;;  %v2169_v1 = vadd.f32 %v1092_v13, %v1028_v6  ;;  %v1461_v15 = vpop.f32.mrb[6].mxu1 }
 0x19d   : > { %v1431_v17 = vpop.f32.mrb[5].mxu0  ;;  %v1095_v36 = vpop.f32.mrb[7].mxu1 }
 0x19e   : > { %1124 = vst.msk [vmem:[%s2167_s15] sm:$0xff] %vm1123_vm0, %v2169_v1  ;;  %v1432_v19 = vadd.f32 %v1431_v17, %v1430_v14  ;;  %v1433_v20 = vpop.f32.mrb[6].mxu0  ;;  %v1096_v39 = vadd.f32 %v1095_v36, %v1031_v16  ;;  %v1132_v47 = vsel %vm1123_vm0, %v2169_v1, 0.0 }
 0x19f   : > { %v1434_v44 = vpop.f32.mrb[7].mxu0 }
 0x1a0   : > { %v1036_v48 = vadd.f32 %v1432_v19, %v1360_v4  ;;  %1125 = vst.msk [vmem:[%s2167_s15 + $0x8] sm:$0xff] %vm1123_vm0, %v1096_v39  ;;  %v1133_v12 = vsel %vm1123_vm0, %v1096_v39, 0.0  ;;  %v1435_v21 = vadd.f32 %v1434_v44, %v1433_v20 }
 0x1a1   : > { %v1134_v22 = vadd.f32 %v1133_v12, %v1132_v47 }
 0x1a2   : > { %v1101_v23 = vadd.f32 %v1460_v5, %v1036_v48  ;;  %v1039_v28 = vadd.f32 %v1435_v21, %v1360_v4  ;;  %v1464_v29 = vpop.f32.mrb[8].mxu1 }
 0x1a3   : > { %v1117_v56 = vadd.f32 %v1464_v29, %v1052_v9  ;;  %v1108_v30 = vpop.f32.mrb[9].mxu1 }
 0x1a4   : > { %1126 = vst.msk [vmem:[%s2167_s15 + $0x10] sm:$0xff] %vm1123_vm0, %v1101_v23  ;;  %v1135_v50 = vsel %vm1123_vm0, %v1101_v23, 0.0  ;;  %v1104_v10 = vadd.f32 %v1461_v15, %v1039_v28  ;;  %v1465_v32 = vpop.f32.mrb[10].mxu1 }
 0x1a5   : > { %v1136_v34 = vadd.f32 %v1135_v50, %v1134_v22  ;;  %1130 = vst.msk [vmem:[%s2167_s15 + $0x30] sm:$0xff] %vm1123_vm0, %v1117_v56  ;;  %v1120_v51 = vadd.f32 %v1465_v32, %v1055_v33  ;;  %v1111_v11 = vpop.f32.mrb[11].mxu1  ;;  %v1143_v62 = vsel %vm1123_vm0, %v1117_v56, 0.0 }
 0x1a6   : > { %1127 = vst.msk [vmem:[%s2167_s15 + $0x18] sm:$0xff] %vm1123_vm0, %v1104_v10  ;;  %v1137_v60 = vsel %vm1123_vm0, %v1104_v10, 0.0 }
 0x1a7   : > { %1131 = vst.msk [vmem:[%s2167_s15 + $0x38] sm:$0xff] %vm1123_vm0, %v1120_v51  ;;  %v1138_v35 = vadd.f32 %v1137_v60, %v1136_v34  ;;  %v1145_v53 = vsel %vm1123_vm0, %v1120_v51, 0.0 }
 0x1a8   : > { %v1436_v40 = vpop.f32.mrb[8].mxu0 }
 0x1a9   : > { %v1437_v41 = vpop.f32.mrb[9].mxu0 }
 0x1aa   : > { %v1438_v42 = vadd.f32 %v1437_v41, %v1436_v40  ;;  %v1439_v43 = vpop.f32.mrb[10].mxu0 }
 0x1ab   : > { %v1440_v45 = vpop.f32.mrb[11].mxu0 }
 0x1ac   : > { %v1044_v46 = vadd.f32 %v1438_v42, %v1360_v4  ;;  %v1441_v24 = vadd.f32 %v1440_v45, %v1439_v43 }
 0x1ae   : > { %v1109_v61 = vadd.f32 %v1108_v30, %v1044_v46  ;;  %v1047_v25 = vadd.f32 %v1441_v24, %v1360_v4 }
 0x1b0   : > { %1128 = vst.msk [vmem:[%s2167_s15 + $0x20] sm:$0xff] %vm1123_vm0, %v1109_v61  ;;  %v1112_v31 = vadd.f32 %v1111_v11, %v1047_v25  ;;  %v1139_v49 = vsel %vm1123_vm0, %v1109_v61, 0.0 }
 0x1b1   : > { %v1140_v57 = vadd.f32 %v1139_v49, %v1138_v35 }
 0x1b2   : > { %1129 = vst.msk [vmem:[%s2167_s15 + $0x28] sm:$0xff] %vm1123_vm0, %v1112_v31  ;;  %v1141_v58 = vsel %vm1123_vm0, %v1112_v31, 0.0 }
 0x1b3   : > { %v1142_v0 = vadd.f32 %v1141_v58, %v1140_v57 }
 0x1b5   : > { %v1144_v63 = vadd.f32 %v1143_v62, %v1142_v0 }
 0x1b7   : > { %v1146_v59 = vadd.f32 %v1145_v53, %v1144_v63 }
 0x1b9   : > { %v1147_v18 = vrot.slane %v1146_v59, 4 }
 0x1bb   : > { %v1148_v54 = vadd.f32 %v1147_v18, %v1146_v59 }
 0x1bd   : > { %v1149_v26 = vrot.slane %v1148_v54, 2 }
 0x1bf   : > { %v1150_v2 = vadd.f32 %v1149_v26, %v1148_v54 }
 0x1c1   : > { %v1151_v55 = vrot.slane %v1150_v2, 1 }
 0x1c3   : > { %v1152_v27 = vadd.f32 %v1151_v55, %v1150_v2 }
 0x1c5   : > { %v1154_v3 = vmul.f32 0.015625, %v1152_v27 }
 0x1c7   : > { %v1157_v52 = vsub.f32 %v2169_v1, %v1154_v3  ;;  %v1158_v37 = vsub.f32 %v1096_v39, %v1154_v3  ;;  %v1159_v7 = vsub.f32 %v1101_v23, %v1154_v3  ;;  %v1160_v8 = vsub.f32 %v1104_v10, %v1154_v3  ;;  %1156 = vst.msk [vmem:[%s292_s19] sm:$0x1] %vm1155_vm7, %v1154_v3 }
 0x1c8   : > { %v1161_v38 = vsub.f32 %v1109_v61, %v1154_v3  ;;  %v1162_v4 = vsub.f32 %v1112_v31, %v1154_v3  ;;  %v1163_v5 = vsub.f32 %v1117_v56, %v1154_v3  ;;  %v1164_v6 = vsub.f32 %v1120_v51, %v1154_v3 }
 0x1c9   : > { %1561 = shalt.err (!%p1558_p3)
}
 0x1ca   : > { %s1562_s14 = scalar_lea.hbm %s2207_s17, 16  ;;  %s1566_s21 = scalar_lea.hbm %s2299_s6, 32 }
 0x1cb   : > { %p1563_p4 = scmp.ne.s32.totalorder %s2207_s17, %s1562_s14  ;;  %p1567_p9 = scmp.lt.u32.totalorder %s2207_s17, %s2299_s6 }
 0x1cc   : > { %p1568_p10 = scmp.lt.u32.totalorder %s1566_s21, %s1562_s14  ;;  %p1570_p12 = scmp.lt.u32.totalorder %s1562_s14, %s2207_s17 }
 0x1cd   : > { %p1564_p7 = pnand %p1563_p4, %p1728_p5 }
 0x1ce   : > { %p1569_p11 = por %p1568_p10, %p1567_p9 }
 0x1cf   : > { %p1565_p8 = pneg %p1564_p7 }
 0x1d0   : > { %p1571_p13 = por %p1570_p12, %p1569_p11 }
 0x1d2   : > { %p1572_p0 = pnand %p1571_p13, %p1565_p8 }
 0x1d4   : > { %1575 = shalt.err (!%p1572_p0)
}
 0x1d5   : > { %1482 = dma.vmem_to_hbm [thread:$0]  (%p1728_p5), %s2209_s20, 16, %s2207_s17, %s1201_s18   ;;  %v1165_v13 = vmul.f32 %v1157_v52, %v1157_v52  ;;  %v1166_v14 = vmul.f32 %v1158_v37, %v1158_v37  ;;  %v1167_v1 = vmul.f32 %v1159_v7, %v1159_v7  ;;  %v1168_v15 = vmul.f32 %v1160_v8, %v1160_v8 }
 0x1d6   : > { %v1169_v19 = vmul.f32 %v1161_v38, %v1161_v38  ;;  %v1170_v44 = vmul.f32 %v1162_v4, %v1162_v4  ;;  %v1171_v12 = vmul.f32 %v1163_v5, %v1163_v5  ;;  %v1172_v9 = vmul.f32 %v1164_v6, %v1164_v6  ;;  %s298_s20 = scalar_lea.vmem [#allocation6], %s2198_s13  ;;  %s2249_s8 = scalar_lea.hbm %s2300_s7, %s1383_s16 }
 0x1d7   : > { %v1173_v16 = vsel %vm1123_vm0, %v1165_v13, 0.0  ;;  %v1174_v17 = vsel %vm1123_vm0, %v1166_v14, 0.0  ;;  %v1176_v20 = vsel %vm1123_vm0, %v1167_v1, 0.0  ;;  %v1178_v47 = vsel %vm1123_vm0, %v1168_v15, 0.0  ;;  %s1233_s17 = sshll.u32 %s298_s20, 4  ;;  %s1205_s9 = scalar_lea.sflag [#allocation7], %s2198_s13  ;;  %s2251_s17 = int_to_ptr.vmem [resolvable:$true] %s1233_s17 }
 0x1d8   : > { %v1175_v36 = vadd.f32 %v1174_v17, %v1173_v16  ;;  %v1180_v21 = vsel %vm1123_vm0, %v1169_v19, 0.0  ;;  %v1182_v23 = vsel %vm1123_vm0, %v1170_v44, 0.0  ;;  %v1184_v29 = vsel %vm1123_vm0, %v1171_v12, 0.0  ;;  %s1576_s14 = scalar_lea.vmem %s2251_s17, 16  ;;  %s1649_s15 = smov [#allocation6]  }
 0x1d9   : > { %v1186_v30 = vsel %vm1123_vm0, %v1172_v9, 0.0  ;;  %p1577_p1 = scmp.ne.s32.totalorder %s2251_s17, %s1576_s14  ;;  %s1580_s28 = sshll.u32 %s1649_s15, 4  ;;  %s1581_s28 = int_to_ptr.vmem [resolvable:$false] %s1580_s28 }
 0x1da   : > { %v1177_v39 = vadd.f32 %v1176_v20, %v1175_v36  ;;  %s1582_s19 = scalar_lea.vmem %s1581_s28, 32  ;;  %p1583_p4 = scmp.lt.s32.totalorder %s2251_s17, %s1581_s28 }
 0x1db   : > { %p1578_p2 = pnand %p1577_p1, %p1728_p5  ;;  %p1584_p7 = scmp.lt.s32.totalorder %s1582_s19, %s1576_s14 }
 0x1dc   : > { %v1179_v48 = vadd.f32 %v1178_v47, %v1177_v39 }
 0x1dd   : > { %p1579_p3 = pneg %p1578_p2  ;;  %p1585_p8 = por %p1584_p7, %p1583_p4 }
 0x1de   : > { %v1181_v22 = vadd.f32 %v1180_v21, %v1179_v48 }
 0x1df   : > { %p1586_p9 = pnand %p1585_p8, %p1579_p3 }
 0x1e0   : > { %v1183_v28 = vadd.f32 %v1182_v23, %v1181_v22 }
 0x1e2   : > { %v1185_v56 = vadd.f32 %v1184_v29, %v1183_v28 }
 0x1e4   : > { %v1187_v33 = vadd.f32 %v1186_v30, %v1185_v56 }
 0x1e6   : > { %v1188_v50 = vrot.slane %v1187_v33, 4 }
 0x1e8   : > { %v1189_v10 = vadd.f32 %v1188_v50, %v1187_v33 }
 0x1ea   : > { %v1190_v32 = vrot.slane %v1189_v10, 2 }
 0x1ec   : > { %v1191_v34 = vadd.f32 %v1190_v32, %v1189_v10 }
 0x1ee   : > { %v1192_v51 = vrot.slane %v1191_v34, 1 }
 0x1f0   : > { %v1193_v11 = vadd.f32 %v1192_v51, %v1191_v34 }
 0x1f2   : > { %1194 = vst.msk [vmem:[%s298_s20] sm:$0x1] %vm1155_vm7, %v1193_v11 }
 0x1f3   : > { %1589 = shalt.err (!%p1586_p9)
}
 0x1f4   : > { %s1590_s13 = scalar_lea.hbm %s2249_s8, 16  ;;  %s1594_s22 = scalar_lea.hbm %s2300_s7, 32 }
 0x1f5   : > { %p1591_p10 = scmp.ne.s32.totalorder %s2249_s8, %s1590_s13  ;;  %p1595_p13 = scmp.lt.u32.totalorder %s2249_s8, %s2300_s7 }
 0x1f6   : > { %p1596_p0 = scmp.lt.u32.totalorder %s1594_s22, %s1590_s13  ;;  %p1598_p2 = scmp.lt.u32.totalorder %s1590_s13, %s2249_s8 }
 0x1f7   : > { %p1592_p11 = pnand %p1591_p10, %p1728_p5 }
 0x1f8   : > { %p1597_p1 = por %p1596_p0, %p1595_p13 }
 0x1f9   : > { %p1593_p12 = pneg %p1592_p11 }
 0x1fa   : > { %p1599_p3 = por %p1598_p2, %p1597_p1 }
 0x1fc   : > { %p1600_p4 = pnand %p1599_p3, %p1593_p12 }
 0x1fe   : > { %1603 = shalt.err (!%p1600_p4)
}
 0x1ff   : > { %1483 = dma.vmem_to_hbm [thread:$0]  (%p1728_p5), %s2251_s17, 16, %s2249_s8, %s1205_s9  }
 0x200 PF: > { %p1493_p7 = scmp.ge.s32.totalorder %s1642_s27, 2  ;;  %s1253_s18 = sand.u32 1, %s1630_s24  }
 0x201   : > { %s1254_s23 = scalar_lea.sflag [#allocation5], %s1253_s18 }
 0x202   : > { %p1487_p8 = pnand %p1493_p7, %p1732_p6 }
 0x204   : > { %1621 = dma.done.wait (!%p1487_p8), %s1254_s23, 16  }
 0x205   : > { %1623 = vsyncadd (!%p1487_p8), %s1254_s23, 4294967280  ;;  %s1262_s14 = scalar_lea.sflag [#allocation7], %s1253_s18 }
 0x206   : > { %1625 = dma.done.wait (!%p1487_p8), %s1262_s14, 16  }
 0x207   : > { %1627 = vsyncadd (!%p1487_p8), %s1262_s14, 4294967280  ;;  %p21_p5 = scmp.ge.s32.totalorder %s1715_s30, 4   ;;  %s2335_s24 = smov %s1634_s25 }
 0x208   : > { %s2336_s25 = smov %s1638_s26  ;;  %s2337_s26 = smov %s1726_s10 }
 0x209   : > { %s2338_s27 = smov %s1715_s30  ;;  %23 = sbr.rel (!%p21_p5) target bundleno = 5 (0x5), region = 107 }
 0x210   :  { %1266 = vsyncpa [#allocation5], 1 }
 0x211   :  { %1268 = vsyncpa [#allocation5 + $0x1], 1 }
 0x212   :  { %1269 = vsyncpa [#allocation7], 1 }
 0x213   :  { %1271 = vsyncpa [#allocation7 + $0x1], 1 }

// kernel: block_forward_pallas.3
= control target key start
LH: loop header
LB: loop body
LE: loop exit
PB: predicated region body
PF: predicated region fallthrough
CT: control target
= control target key end

     0   :  { %s3483_s24 = smov 0   ;;  %s4889_s0 = inlined_call_operand.vmem [shape: bf16[2,256,4], index: 0, kind: input, shape index: {}]   ;;  %s4890_s1 = inlined_call_operand.vmem [shape: f32[1,4], index: 1, kind: input, shape index: {}]   ;;  %s4891_s2 = inlined_call_operand.vmem [shape: f32[2,1,4], index: 2, kind: input, shape index: {}]   ;;  %s4892_s3 = inlined_call_operand.vmem [shape: bf16[36,8], index: 3, kind: input, shape index: {}]   ;;  %s4893_s4 = inlined_call_operand.vmem [shape: f32[1,8], index: 4, kind: input, shape index: {}]   ;;  %s4894_s5 = inlined_call_operand.vmem [shape: bf16[2,256,8], index: 5, kind: output, shape index: {0}]   ;;  %s4895_s6 = inlined_call_operand.vmem [shape: f32[2,1,8], index: 6, kind: output, shape index: {1}]   ;;  %s4896_s7 = inlined_call_operand.vmem [shape: f32[2,1,8], index: 7, kind: output, shape index: {2}]  }
   0x1 LB: > { %s3163_s25 = sadd.s32 4294967295, %s3432_s24   ;;  %p3167_p0 = scmp.ge.s32.totalorder %s3432_s24, 1  ;;  %s3432_s24 = sphi %s3483_s24, %s18_s24  }
   0x2   : > { %p250_p1 = scmp.lt.s32.totalorder %s3432_s24, 3 }
   0x4   : > { %p251_p2 = pnand %p3167_p0, %p250_p1 }
   0x5   : > { %vm311_vm0 = vcmask (!%p251_p2), 31744   ;;  %vm314_vm1 = vcmask (!%p251_p2), 24576   ;;  %p291_p3 = scmp.lt.s32.totalorder (!%p251_p2), %s3163_s25, 1  ;;  %v3434_v0 = vmov (!%p251_p2), 0.0   ;;  %v494_v1 = vlaneseq (!%p251_p2)  ;;  %v3517_v2 = vld [vmem:[%s4890_s1] ss:$0 sm:$0xff] (!%p251_p2) }
   0x6   : > { %254 = sbr.rel (%p251_p2) target bundleno = 730 (0x2da), region = 40  ;;  %312 = vst.msk [vmem:[#allocation2] sm:$0xff] (!%p251_p2), %vm311_vm0, %v3434_v0  ;;  %313 = vst.msk [vmem:[#allocation2 + $0x8] sm:$0xff] (!%p251_p2), %vm311_vm0, %v3434_v0  ;;  %s3435_s12 = smov (!%p251_p2), 4   ;;  %vm2483_vm10 = vcmask (!%p251_p2), 1041408  }
   0x7   : > { %315 = vst.msk [vmem:[#allocation2 + $0x10] sm:$0x1] (!%p251_p2), %vm314_vm1, %v3434_v0  ;;  %v3524_v15 = vshrl.u32 (!%p251_p2), %v494_v1, 7  ;;  %s3436_s13 = smov (!%p251_p2), 16   ;;  %s3437_s14 = smov (!%p251_p2), 28  }
   0x8   : > { %490 = vst.msk [vmem:[#allocation2 + $0x111] sm:$0xff] (!%p251_p2), %vm311_vm0, %v3434_v0  ;;  %491 = vst.msk [vmem:[#allocation2 + $0x119] sm:$0xff] (!%p251_p2), %vm311_vm0, %v3434_v0  ;;  %s3438_s15 = smov (!%p251_p2), 8   ;;  %s3439_s18 = smov (!%p251_p2), 12  }
   0x9   : > { %v496_v32 = vadd.s32 (!%p251_p2), 8, %v3524_v15  ;;  %v498_v43 = vadd.s32 (!%p251_p2), 24, %v3524_v15  ;;  %v497_v53 = vadd.s32 (!%p251_p2), 16, %v3524_v15  ;;  %v531_v1 = vand.u32 (!%p251_p2), 15, %v3524_v15  ;;  %s3440_s21 = smov (!%p251_p2), 20   ;;  %s3441_s22 = smov (!%p251_p2), 24  }
   0xa   : > { %s3442_s23 = smov (!%p251_p2), 32  }
   0xb   : > { %v538_v42 = vand.u32 (!%p251_p2), 15, %v496_v32  ;;  %v552_v60 = vand.u32 (!%p251_p2), 15, %v498_v43  ;;  %vm3588_vm4 = vcmp.ne.s32.totalorder (!%p251_p2), %v531_v1, 0  ;;  %v500_v43 = vadd.s32 (!%p251_p2), 40, %v3524_v15 }
   0xc   : > { %v499_v1 = vadd.s32 (!%p251_p2), 32, %v3524_v15 }
   0xd   : > { %s4962_s25 = smov (!%p291_p3, %s3163_s25), 1  ;;  %v1135_v11 = vld [vmem:[#allocation2 + $0x1] sm:$0xff]  ;;  %vm3567_vm2 = vcmp.ne.s32.totalorder %v538_v42, 15  ;;  %vm3583_vm3 = vcmp.ne.s32.totalorder %v552_v60, 15 }
   0xe   : > { %s3228_s26 = sshll.u32 %s4962_s25, 7  ;;  %s298_s29 = scalar_lea.vmem %s4891_s2, %s4962_s25  ;;  %v1136_v12 = vld [vmem:[#allocation2 + $0x9] sm:$0xff] }
   0xf   : > { %s3512_s9 = scalar_lea.vmem %s4889_s0, %s3228_s26  ;;  %v3522_v8 = vld [vmem:[%s298_s29] ss:$0 sm:$0xff]  ;;  %v1167_v17 = vpack.c.bf16 %v1136_v12, %v1135_v11  ;;  %v3424_v42 = vld [vmem:[%s4892_s3 + $0x8] sm:$0xff]   ;;  %s4499_s10 = scalar_lea.vmem %s4894_s5, %s3228_s26 }
  0x10   : > { %v3326_v3 = vld [vmem:[%s3512_s9 + $0x8] sm:$0xff]   ;;  %v3263_v4 = vld [vmem:[%s3512_s9] sm:$0xff]   ;;  %v3327_v5 = vld [vmem:[%s3512_s9 + $0x10] sm:$0xff]  }
  0x11   : > { %v3268_v6 = vunpack.c.l.bf16 %v3326_v3  ;;  %v3269_v7 = vunpack.c.h.bf16 %v3326_v3  ;;  %v3264_v9 = vunpack.c.l.bf16 %v3263_v4  ;;  %v3265_v10 = vunpack.c.h.bf16 %v3263_v4  ;;  %v3328_v16 = vld [vmem:[%s3512_s9 + $0x18] sm:$0xff]   ;;  %1199 = vrot.lane.b32.xlu0 %v1167_v17, %s3435_s12  ;;  %v3329_v28 = vld [vmem:[%s3512_s9 + $0x20] sm:$0xff]   ;;  %v3330_v37 = vld [vmem:[%s3512_s9 + $0x28] sm:$0xff]  }
  0x12   : > { %v3272_v13 = vunpack.c.l.bf16 %v3327_v5  ;;  %v3273_v14 = vunpack.c.h.bf16 %v3327_v5  ;;  %v3276_v27 = vunpack.c.l.bf16 %v3328_v16  ;;  %v3277_v34 = vunpack.c.h.bf16 %v3328_v16  ;;  %v1264_v5 = vld [vmem:[#allocation2 + $0x2] sm:$0xff]  ;;  %v3331_v11 = vld [vmem:[%s3512_s9 + $0x30] sm:$0xff]   ;;  %v3332_v32 = vld [vmem:[%s3512_s9 + $0x38] sm:$0xff]  }
  0x13   : > { %v389_v18 = vmul.f32 %v3268_v6, %v3517_v2  ;;  %v390_v19 = vmul.f32 %v3269_v7, %v3517_v2  ;;  %v387_v20 = vmul.f32 %v3264_v9, %v3517_v2  ;;  %v388_v21 = vmul.f32 %v3265_v10, %v3517_v2 }
  0x14   : > { %v391_v22 = vmul.f32 %v3272_v13, %v3517_v2  ;;  %v392_v23 = vmul.f32 %v3273_v14, %v3517_v2  ;;  %v393_v33 = vmul.f32 %v3276_v27, %v3517_v2  ;;  %v3280_v35 = vunpack.c.l.bf16 %v3329_v28 }
  0x15   : > { %v428_v24 = vadd.f32 %v3522_v8, %v389_v18  ;;  %v429_v25 = vadd.f32 %v3522_v8, %v390_v19  ;;  %v426_v26 = vadd.f32 %v3522_v8, %v387_v20  ;;  %v427_v29 = vadd.f32 %v3522_v8, %v388_v21 }
  0x16   : > { %v430_v30 = vadd.f32 %v3522_v8, %v391_v22  ;;  %v431_v31 = vadd.f32 %v3522_v8, %v392_v23  ;;  %v3281_v36 = vunpack.c.h.bf16 %v3329_v28  ;;  %v432_v38 = vadd.f32 %v3522_v8, %v393_v33 }
  0x17   : > { %460 = vst.msk [vmem:[#allocation2 + $0x21] sm:$0xff] %vm311_vm0, %v428_v24  ;;  %461 = vst.msk [vmem:[#allocation2 + $0x29] sm:$0xff] %vm311_vm0, %v429_v25  ;;  %v394_v39 = vmul.f32 %v3277_v34, %v3517_v2  ;;  %v395_v40 = vmul.f32 %v3280_v35, %v3517_v2  ;;  %v3284_v44 = vunpack.c.l.bf16 %v3330_v37  ;;  %v3285_v48 = vunpack.c.h.bf16 %v3330_v37 }
  0x18   : > { %458 = vst.msk [vmem:[#allocation2 + $0x11] sm:$0xff] %vm311_vm0, %v426_v26  ;;  %459 = vst.msk [vmem:[#allocation2 + $0x19] sm:$0xff] %vm311_vm0, %v427_v29  ;;  %v396_v41 = vmul.f32 %v3281_v36, %v3517_v2  ;;  %v545_v10 = vand.u32 15, %v497_v53  ;;  %v3288_v18 = vunpack.c.l.bf16 %v3331_v11  ;;  %v3289_v28 = vunpack.c.h.bf16 %v3331_v11 }
  0x19   : > { %462 = vst.msk [vmem:[#allocation2 + $0x31] sm:$0xff] %vm311_vm0, %v430_v30  ;;  %463 = vst.msk [vmem:[#allocation2 + $0x39] sm:$0xff] %vm311_vm0, %v431_v31  ;;  %v433_v45 = vadd.f32 %v3522_v8, %v394_v39  ;;  %v434_v46 = vadd.f32 %v3522_v8, %v395_v40  ;;  %v397_v49 = vmul.f32 %v3284_v44, %v3517_v2  ;;  %v3423_v31 = vld [vmem:[%s4892_s3] sm:$0xff]   ;;  %v502_v53 = vadd.s32 56, %v3524_v15 }
  0x1a   : > { %464 = vst.msk [vmem:[#allocation2 + $0x41] sm:$0xff] %vm311_vm0, %v432_v38  ;;  %v435_v47 = vadd.f32 %v3522_v8, %v396_v41  ;;  %v398_v54 = vmul.f32 %v3285_v48, %v3517_v2  ;;  %vm3604_vm5 = vcmp.ne.s32.totalorder %v545_v10, 0  ;;  %v399_v27 = vmul.f32 %v3288_v18, %v3517_v2  ;;  %3360 = vmatprep.subr.bf16.mxu0 %v3423_v31 }
  0x1b   : > { %465 = vst.msk [vmem:[#allocation2 + $0x49] sm:$0xff] %vm311_vm0, %v433_v45  ;;  %466 = vst.msk [vmem:[#allocation2 + $0x51] sm:$0xff] %vm311_vm0, %v434_v46  ;;  %v436_v61 = vadd.f32 %v3522_v8, %v397_v49  ;;  %v400_v39 = vmul.f32 %v3289_v28, %v3517_v2  ;;  %3361 = vmatpush3.bf16.msra.mxu0 %v3423_v31  ;;  %v3292_v41 = vunpack.c.l.bf16 %v3332_v32  ;;  %3398 = vmatprep.subr.bf16.mxu1 %v3423_v31  ;;  %v975_v45 = vld [vmem:[#allocation2] sm:$0xff] }
  0x1c   : > { %467 = vst.msk [vmem:[#allocation2 + $0x59] sm:$0xff] %vm311_vm0, %v435_v47  ;;  %v437_v3 = vadd.f32 %v3522_v8, %v398_v54  ;;  %v438_v38 = vadd.f32 %v3522_v8, %v399_v27  ;;  %3401 = vmatpush3.bf16.msra.mxu1 %v3423_v31  ;;  %3362 = vmatprep.subr.bf16.mxu0 %v3424_v42  ;;  %v3333_v54 = vld [vmem:[%s3512_s9 + $0x40] sm:$0xff]   ;;  %v1071_v60 = vsel %vm3588_vm4, %v975_v45, 0.0  ;;  %v580_v12 = vand.u32 15, %v502_v53 }
  0x1d   : > { %468 = vst.msk [vmem:[#allocation2 + $0x61] sm:$0xff] %vm311_vm0, %v436_v61  ;;  %v439_v44 = vadd.f32 %v3522_v8, %v400_v39  ;;  %v401_v49 = vmul.f32 %v3292_v41, %v3517_v2  ;;  %3399 = vmatprep.subr.bf16.mxu1 %v3424_v42  ;;  %v3297_v10 = vunpack.c.h.bf16 %v3333_v54 }
  0x1e   : > { %v1652_v50 = vld [vmem:[#allocation2 + $0x21] sm:$0xff]  ;;  %v1653_v51 = vld [vmem:[#allocation2 + $0x29] sm:$0xff]  ;;  %469 = vst.msk [vmem:[#allocation2 + $0x69] sm:$0xff] %vm311_vm0, %v437_v3  ;;  %470 = vst.msk [vmem:[#allocation2 + $0x71] sm:$0xff] %vm311_vm0, %v438_v38  ;;  %vm3705_vm7 = vcmp.ne.s32.totalorder %v580_v12, 15 }
  0x1f   : > { %v1137_v52 = vld [vmem:[#allocation2 + $0x11] sm:$0xff]  ;;  %v3565_v55 = vpack.c.bf16 %v1653_v51, %v1652_v50  ;;  %v1138_v56 = vld [vmem:[#allocation2 + $0x19] sm:$0xff]  ;;  %v3614_v25 = vld [vmem:[#allocation2 + $0x28] sm:$0xff]  ;;  %v3293_v50 = vunpack.c.h.bf16 %v3332_v32  ;;  %471 = vst.msk [vmem:[#allocation2 + $0x79] sm:$0xff] %vm311_vm0, %v439_v44  ;;  %3363 = vmatpush3.bf16.msra.mxu0 %v3424_v42 }
  0x20   : > { %v2103_v57 = vld [vmem:[#allocation2 + $0x31] sm:$0xff]  ;;  %v2104_v58 = vld [vmem:[#allocation2 + $0x39] sm:$0xff]  ;;  %v1168_v62 = vpack.c.bf16 %v1138_v56, %v1137_v52  ;;  %v3631_v35 = vld [vmem:[#allocation2 + $0x22] sm:$0xff]  ;;  %3402 = vmatpush3.bf16.msra.mxu1 %v3424_v42 }
  0x21   : > { %v1265_v63 = vld [vmem:[#allocation2 + $0xa] sm:$0xff]  ;;  %1716 = vrot.lane.b32.xlu1 %v3565_v55, %s3436_s13  ;;  %v3576_v4 = vpack.c.bf16 %v2104_v58, %v2103_v57  ;;  %v1267_v9 = vld [vmem:[#allocation2 + $0x1a] sm:$0xff]  ;;  %v1266_v16 = vld [vmem:[#allocation2 + $0x12] sm:$0xff]  ;;  %v440_v57 = vadd.f32 %v3522_v8, %v401_v49  ;;  %v402_v58 = vmul.f32 %v3293_v50, %v3517_v2 }
  0x22   : > { %1201 = vrot.lane.b32.xlu0 %v1168_v62, %s3435_s12  ;;  %v1361_v6 = vsel %vm3567_vm2, %v1265_v63, 0.0  ;;  %v3592_v13 = vld [vmem:[#allocation2 + $0x10] sm:$0xff]  ;;  %v1363_v17 = vsel %vm3583_vm3, %v1267_v9, 0.0  ;;  %v3599_v19 = vld [vmem:[#allocation2 + $0x18] sm:$0xff]  ;;  %v3608_v22 = vld [vmem:[#allocation2 + $0x20] sm:$0xff]  ;;  %v1812_v29 = vsel %vm3567_vm2, %v1267_v9, 0.0 }
  0x23   : > { %v1392_v14 = vpack.c.bf16 %v1361_v6, %v1264_v5  ;;  %v1521_v20 = vsel %vm3588_vm4, %v3592_v13, 0.0  ;;  %v1393_v23 = vpack.c.bf16 %v1363_v17, %v1266_v16  ;;  %v1523_v26 = vsel %vm3604_vm5, %v3608_v22, 0.0  ;;  %v3622_v30 = vld [vmem:[#allocation2 + $0x2a] sm:$0xff]  ;;  %v3651_v47 = vld [vmem:[#allocation2 + $0x38] sm:$0xff]  ;;  %472 = vst.msk [vmem:[#allocation2 + $0x81] sm:$0xff] %vm311_vm0, %v440_v57 }
  0x24   : > { %v1553_v24 = vpack.c.bf16 %v3599_v19, %v1521_v20  ;;  %v1554_v33 = vpack.c.bf16 %v3614_v25, %v1523_v26  ;;  %v1843_v34 = vpack.c.bf16 %v1812_v29, %v1266_v16  ;;  %v1814_v36 = vsel %vm3583_vm3, %v3622_v30, 0.0  ;;  %v3636_v37 = vld [vmem:[#allocation2 + $0x30] sm:$0xff]  ;;  %v976_v51 = vld [vmem:[#allocation2 + $0x8] sm:$0xff] }
  0x25   : > { %2167 = vrot.lane.b32.xlu1 %v3576_v4, %s3437_s14  ;;  %v1972_v40 = vsel %vm3588_vm4, %v3608_v22, 0.0  ;;  %v1844_v46 = vpack.c.bf16 %v1814_v36, %v3631_v35  ;;  %v1974_v48 = vsel %vm3604_vm5, %v3636_v37, 0.0  ;;  %v2263_v56 = vsel %vm3567_vm2, %v3622_v30, 0.0  ;;  %v3334_v5 = vld [vmem:[%s3512_s9 + $0x48] sm:$0xff]   ;;  %v3685_v17 = vld [vmem:[#allocation2 + $0x32] sm:$0xff] }
  0x26   : > { %1714 = vrot.lane.b32.xlu0 %v1168_v62, %s3436_s13  ;;  %v2004_v52 = vpack.c.bf16 %v3614_v25, %v1972_v40  ;;  %v2005_v61 = vpack.c.bf16 %v3651_v47, %v1974_v48  ;;  %v3670_v62 = vld [vmem:[#allocation2 + $0x3a] sm:$0xff]  ;;  %v566_v63 = vand.u32 15, %v500_v43  ;;  %v1103_v3 = vpack.c.bf16 %v976_v51, %v1071_v60  ;;  %v3335_v40 = vld [vmem:[%s3512_s9 + $0x50] sm:$0xff]   ;;  %v1496_v43 = vld [vmem:[#allocation2 + $0x48] sm:$0xff] }
  0x27   : > { %v441_v59 = vadd.f32 %v3522_v8, %v402_v58  ;;  %v3296_v6 = vunpack.c.l.bf16 %v3333_v54  ;;  %v1073_v9 = vsel %vm3604_vm5, %v3592_v13, 0.0  ;;  %v2294_v11 = vpack.c.bf16 %v2263_v56, %v3631_v35  ;;  %v1657_v54 = vld [vmem:[#allocation2 + $0x49] sm:$0xff] }
  0x28   : > { %1119 = vst.msk [vmem:[#allocation3] sm:$0xff] %vm311_vm0, %v1103_v3  ;;  %v1104_v16 = vpack.c.bf16 %v3599_v19, %v1073_v9  ;;  %v2265_v18 = vsel %vm3583_vm3, %v3670_v62, 0.0  ;;  %v404_v20 = vmul.f32 %v3297_v10, %v3517_v2  ;;  %v3300_v21 = vunpack.c.l.bf16 %v3334_v5  ;;  %v3763_v57 = vld [vmem:[#allocation2 + $0x4a] sm:$0xff] }
  0x29   : > { %1424 = vrot.lane.b32.xlu1 %v1392_v14, %s3438_s15  ;;  %v501_v14 = vadd.s32 48, %v3524_v15  ;;  %473 = vst.msk [vmem:[#allocation2 + $0x89] sm:$0xff] %vm311_vm0, %v441_v59  ;;  %v403_v13 = vmul.f32 %v3296_v6, %v3517_v2  ;;  %vm3693_vm6 = vcmp.ne.s32.totalorder %v566_v63, 15  ;;  %v2295_v7 = vpack.c.bf16 %v2265_v18, %v3685_v17  ;;  %v3784_v10 = vld [vmem:[#allocation2 + $0x50] sm:$0xff]  ;;  %v984_v32 = vld [vmem:[#allocation2 + $0x48] sm:$0xff] }
  0x2a   : > { %2165 = vrot.lane.b32.xlu0 %v3565_v55, %s3437_s14  ;;  %1120 = vst.msk [vmem:[#allocation3 + $0x8] sm:$0xff] %vm311_vm0, %v1104_v16  ;;  %v1365_v27 = vsel %vm3693_vm6, %v3622_v30, 0.0  ;;  %v443_v29 = vadd.f32 %v3522_v8, %v404_v20  ;;  %v405_v31 = vmul.f32 %v3300_v21, %v3517_v2  ;;  %v3301_v30 = vunpack.c.h.bf16 %v3334_v5  ;;  %v3776_v5 = vld [vmem:[#allocation2 + $0x42] sm:$0xff]  ;;  %v3793_v21 = vld [vmem:[#allocation2 + $0x58] sm:$0xff] }
  0x2b   : > { %v573_v19 = vand.u32 15, %v501_v14  ;;  %v442_v26 = vadd.f32 %v3522_v8, %v403_v13  ;;  %v503_v58 = vadd.s32 64, %v3524_v15  ;;  %v3305_v63 = vunpack.c.h.bf16 %v3335_v40  ;;  %v983_v13 = vld [vmem:[#allocation2 + $0x40] sm:$0xff]  ;;  %v3338_v38 = vld [vmem:[%s3512_s9 + $0x68] sm:$0xff]  }
  0x2c   : > { %475 = vst.msk [vmem:[#allocation2 + $0x99] sm:$0xff] %vm311_vm0, %v443_v29  ;;  %v444_v39 = vadd.f32 %v3522_v8, %v405_v31  ;;  %v406_v41 = vmul.f32 %v3301_v30, %v3517_v2  ;;  %v1818_v59 = vsel %vm3705_vm7, %v3763_v57, 0.0  ;;  %v505_v6 = vadd.s32 80, %v3524_v15 }
  0x2d   : > { %1426 = vrot.lane.b32.xlu1 %v1393_v23, %s3438_s15  ;;  %474 = vst.msk [vmem:[#allocation2 + $0x91] sm:$0xff] %vm311_vm0, %v442_v26  ;;  %vm3727_vm9 = vcmp.ne.s32.totalorder %v573_v19, 0  ;;  %v408_v12 = vmul.f32 %v3305_v63, %v3517_v2  ;;  %v504_v31 = vadd.s32 72, %v3524_v15  ;;  %vm1247_vm4 = vcmask 64544  }
  0x2e   : > { %1585 = vrot.lane.b32.xlu0 %v1553_v24, %s3439_s18  ;;  %v559_v24 = vand.u32 15, %v499_v1  ;;  %476 = vst.msk [vmem:[#allocation2 + $0xa1] sm:$0xff] %vm311_vm0, %v444_v39  ;;  %v445_v48 = vadd.f32 %v3522_v8, %v406_v41  ;;  %v1077_v51 = vsel %vm3727_vm9, %v3636_v37, 0.0  ;;  %v2108_v39 = vld [vmem:[#allocation2 + $0x59] sm:$0xff] }
  0x2f   : > { %v1106_v60 = vpack.c.bf16 %v3651_v47, %v1077_v51  ;;  %v447_v18 = vadd.f32 %v3522_v8, %v408_v12  ;;  %v3316_v51 = vunpack.c.l.bf16 %v3338_v38 }
  0x30   : > { %vm3711_vm8 = vcmp.ne.s32.totalorder %v559_v24, 0  ;;  %477 = vst.msk [vmem:[#allocation2 + $0xa9] sm:$0xff] %vm311_vm0, %v445_v48  ;;  %v1978_v24 = vsel %vm3727_vm9, %v3784_v10, 0.0  ;;  %v594_v48 = vand.u32 15, %v504_v31 }
  0x31   : > { %1587 = vrot.lane.b32.xlu1 %v1554_v33, %s3439_s18  ;;  %v1394_v33 = vpack.c.bf16 %v1365_v27, %v3631_v35  ;;  %v1525_v36 = vsel %vm3711_vm8, %v3636_v37, 0.0  ;;  %v1075_v45 = vsel %vm3711_vm8, %v3608_v22, 0.0  ;;  %v3336_v22 = vld [vmem:[%s3512_s9 + $0x58] sm:$0xff]   ;;  %v1816_v37 = vsel %vm3693_vm6, %v3670_v62, 0.0  ;;  %1122 = vst.msk [vmem:[#allocation3 + $0x18] sm:$0xff] %vm311_vm0, %v1106_v60  ;;  %479 = vst.msk [vmem:[#allocation2 + $0xb9] sm:$0xff] %vm311_vm0, %v447_v18 }
  0x32   : > { %1875 = vrot.lane.b32.xlu0 %v1843_v34, %s3440_s21  ;;  %v1367_v34 = vsel %vm3705_vm7, %v3670_v62, 0.0  ;;  %v1555_v42 = vpack.c.bf16 %v3651_v47, %v1525_v36  ;;  %v1105_v49 = vpack.c.bf16 %v3614_v25, %v1075_v45  ;;  %v1656_v25 = vld [vmem:[#allocation2 + $0x41] sm:$0xff]  ;;  %v3308_v1 = vunpack.c.l.bf16 %v3336_v22  ;;  %v986_v36 = vld [vmem:[#allocation2 + $0x58] sm:$0xff] }
  0x33   : > { %v1395_v35 = vpack.c.bf16 %v1367_v34, %v3685_v17  ;;  %v3769_v3 = vpack.c.bf16 %v1657_v54, %v1656_v25  ;;  %v3337_v62 = vld [vmem:[%s3512_s9 + $0x60] sm:$0xff]   ;;  %v1845_v47 = vpack.c.bf16 %v1816_v37, %v3685_v17  ;;  %v3309_v14 = vunpack.c.h.bf16 %v3336_v22  ;;  %v2236_v25 = vld [vmem:[#allocation2 + $0x52] sm:$0xff] }
  0x34   : > { %1121 = vst.msk [vmem:[#allocation3 + $0x10] sm:$0xff] %vm311_vm0, %v1105_v49  ;;  %v3312_v16 = vunpack.c.l.bf16 %v3337_v62  ;;  %v1846_v17 = vpack.c.bf16 %v1818_v59, %v3776_v5  ;;  %v2007_v34 = vpack.c.bf16 %v3793_v21, %v1978_v24  ;;  %v413_v22 = vmul.f32 %v3316_v51, %v3517_v2 }
  0x35   : > { %1877 = vrot.lane.b32.xlu1 %v1844_v46, %s3440_s21  ;;  %v3304_v46 = vunpack.c.l.bf16 %v3335_v40  ;;  %v410_v27 = vmul.f32 %v3309_v14, %v3517_v2  ;;  %v506_v40 = vadd.s32 88, %v3524_v15  ;;  %vm3841_vm13 = vcmp.ne.s32.totalorder %v594_v48, 15 }
  0x36   : > { %2036 = vrot.lane.b32.xlu0 %v2004_v52, %s3441_s22  ;;  %v3425_v52 = vld [vmem:[%s4892_s3 + $0x10] ss:$0 sps:$4 sm:$0x33]   ;;  %v411_v29 = vmul.f32 %v3312_v16, %v3517_v2  ;;  %v452_v63 = vadd.f32 %v3522_v8, %v413_v22  ;;  %v1369_v28 = vsel %vm3841_vm13, %v3763_v57, 0.0  ;;  %v507_v16 = vadd.s32 96, %v3524_v15  ;;  %v990_v22 = vld [vmem:[#allocation2 + $0x78] sm:$0xff] }
  0x37   : > { %v407_v50 = vmul.f32 %v3304_v46, %v3517_v2  ;;  %3404 = vmatprep.subr.msk.bf16.mxu0 %vm2483_vm10, %v3425_v52  ;;  %3405 = vmatprep.subr.msk.bf16.mxu1 %vm2483_vm10, %v3425_v52  ;;  %v449_v41 = vadd.f32 %v3522_v8, %v410_v27  ;;  %v3826_v46 = vld [vmem:[#allocation2 + $0x5a] sm:$0xff]  ;;  %v509_v27 = vadd.s32 112, %v3524_v15  ;;  %v508_v51 = vadd.s32 104, %v3524_v15 }
  0x38   : > { %v2269_v54 = vsel %vm3705_vm7, %v3826_v46, 0.0  ;;  %484 = vst.msk [vmem:[#allocation2 + $0xe1] sm:$0xff] %vm311_vm0, %v452_v63  ;;  %v2241_v63 = vld [vmem:[#allocation2 + $0x7a] sm:$0xff]  ;;  %vm492_vm7 = vcmask 30720  }
  0x39   : > { %2038 = vrot.lane.b32.xlu1 %v2005_v61, %s3441_s22  ;;  %v446_v56 = vadd.f32 %v3522_v8, %v407_v50  ;;  %v2485_v61 = vsel %vm2483_vm10, %v3425_v52, 0  ;;  %481 = vst.msk [vmem:[#allocation2 + $0xc9] sm:$0xff] %vm311_vm0, %v449_v41  ;;  %v3313_v50 = vunpack.c.h.bf16 %v3337_v62  ;;  %v3340_v41 = vld [vmem:[%s3512_s9 + $0x78] sm:$0xff]  }
  0x3a   : > { %2326 = vrot.lane.b32.xlu0 %v2294_v11, %s3442_s23  ;;  %3365 = vmatpush3.bf16.msra.mxu0 %v2485_v61  ;;  %v587_v11 = vand.u32 15, %v503_v58  ;;  %v2297_v58 = vpack.c.bf16 %v2269_v54, %v2236_v25  ;;  %v3324_v26 = vunpack.c.l.bf16 %v3340_v41  ;;  %v2111_v54 = vld [vmem:[#allocation2 + $0x71] sm:$0xff]  ;;  %493 = vst.msk [vmem:[#allocation2 + $0x121] sm:$0x7f] %vm492_vm7, %v3434_v0 }
  0x3b   : > { %478 = vst.msk [vmem:[#allocation2 + $0xb1] sm:$0xff] %vm311_vm0, %v446_v56  ;;  %3403 = vmatpush3.bf16.msra.mxu1 %v2485_v61  ;;  %v608_v56 = vand.u32 15, %v506_v40  ;;  %v3317_v61 = vunpack.c.h.bf16 %v3338_v38  ;;  %v3898_v38 = vld [vmem:[#allocation2 + $0x70] sm:$0xff]  ;;  %v987_v40 = vld [vmem:[#allocation2 + $0x60] sm:$0xff] }
  0x3c   : > { %vm3799_vm11 = vcmp.ne.s32.totalorder %v587_v11, 0  ;;  %v3339_v11 = vld [vmem:[%s3512_s9 + $0x70] sm:$0xff]  }
  0x3d   : > { %1203 = vrot.lane.b32.xlu1 %v3565_v55, %s3435_s12  ;;  %v1495_v55 = vld [vmem:[#allocation2 + $0x40] sm:$0xff]  ;;  %v1079_v30 = vsel %vm3799_vm11, %v983_v13, 0.0  ;;  %vm3852_vm14 = vcmp.ne.s32.totalorder %v608_v56, 15  ;;  %v414_v62 = vmul.f32 %v3317_v61, %v3517_v2  ;;  %v1529_v59 = vsel %vm3799_vm11, %v3784_v10, 0.0 }
  0x3e   : > { %2328 = vrot.lane.b32.xlu0 %v2295_v7, %s3442_s23  ;;  %v1527_v44 = vsel %vm3727_vm9, %v1495_v55, 0.0  ;;  %v1976_v9 = vsel %vm3711_vm8, %v1495_v55, 0.0  ;;  %v601_v7 = vand.u32 15, %v505_v6  ;;  %v2107_v55 = vld [vmem:[#allocation2 + $0x51] sm:$0xff]  ;;  %v1499_v6 = vld [vmem:[#allocation2 + $0x60] sm:$0xff]  ;;  %v3320_v12 = vunpack.c.l.bf16 %v3339_v11 }
  0x3f   : > { %v1556_v53 = vpack.c.bf16 %v1496_v43, %v1527_v44  ;;  %v2006_v20 = vpack.c.bf16 %v1496_v43, %v1976_v9  ;;  %v1107_v43 = vpack.c.bf16 %v984_v32, %v1079_v30  ;;  %v450_v44 = vadd.f32 %v3522_v8, %v411_v29  ;;  %v1660_v13 = vld [vmem:[#allocation2 + $0x61] sm:$0xff]  ;;  %v2112_v56 = vld [vmem:[#allocation2 + $0x79] sm:$0xff] }
  0x40   : > { %vm3815_vm12 = vcmp.ne.s32.totalorder %v601_v7, 0  ;;  %v2136_v52 = vpack.c.bf16 %v2108_v39, %v2107_v55  ;;  %v453_v9 = vadd.f32 %v3522_v8, %v414_v62  ;;  %v415_v10 = vmul.f32 %v3320_v12, %v3517_v2  ;;  %v3885_v7 = vld [vmem:[#allocation2 + $0x6a] sm:$0xff]  ;;  %v1789_v30 = vld [vmem:[#allocation2 + $0x62] sm:$0xff]  ;;  %v1955_v55 = vld [vmem:[#allocation2 + $0x98] sm:$0xff] }
  0x41   : > { %1205 = vrot.lane.b32.xlu1 %v3576_v4, %s3435_s12  ;;  %1123 = vst.msk [vmem:[#allocation3 + $0x20] sm:$0xff] %vm311_vm0, %v1107_v43  ;;  %482 = vst.msk [vmem:[#allocation2 + $0xd1] sm:$0xff] %vm311_vm0, %v450_v44  ;;  %v1531_v14 = vsel %vm3815_vm12, %v1499_v6, 0.0  ;;  %v3321_v24 = vunpack.c.h.bf16 %v3339_v11  ;;  %v629_v39 = vand.u32 15, %v509_v27  ;;  %v988_v43 = vld [vmem:[#allocation2 + $0x68] sm:$0xff]  ;;  %v1982_v48 = vsel %vm3815_vm12, %v3898_v38, 0.0 }
  0x42   : > { %1428 = vrot.lane.b32.xlu0 %v1394_v33, %s3438_s15  ;;  %v985_v33 = vld [vmem:[#allocation2 + $0x50] sm:$0xff]  ;;  %485 = vst.msk [vmem:[#allocation2 + $0xe9] sm:$0xff] %vm311_vm0, %v453_v9  ;;  %v454_v18 = vadd.f32 %v3522_v8, %v415_v10  ;;  %v510_v61 = vadd.s32 120, %v3524_v15  ;;  %v2138_v62 = vpack.c.bf16 %v2112_v56, %v2111_v54  ;;  %v3325_v11 = vunpack.c.h.bf16 %v3340_v41  ;;  %v991_v41 = vld [vmem:[#allocation2 + $0x80] sm:$0xff] }
  0x43   : > { %v1081_v45 = vsel %vm3815_vm12, %v985_v33, 0.0  ;;  %v416_v29 = vmul.f32 %v3321_v24, %v3517_v2  ;;  %v1822_v33 = vsel %vm3852_vm14, %v3885_v7, 0.0  ;;  %vm3915_vm1 = vcmp.ne.s32.totalorder %v629_v39, 0  ;;  %v1664_v24 = vld [vmem:[#allocation2 + $0x81] sm:$0xff]  ;;  %v3967_v27 = vld [vmem:[#allocation2 + $0x8a] sm:$0xff] }
  0x44   : > { %v1108_v49 = vpack.c.bf16 %v986_v36, %v1081_v45  ;;  %486 = vst.msk [vmem:[#allocation2 + $0xf1] sm:$0xff] %vm311_vm0, %v454_v18  ;;  %v1980_v36 = vsel %vm3799_vm11, %v1499_v6, 0.0  ;;  %v636_v37 = vand.u32 15, %v510_v61  ;;  %v1504_v18 = vld [vmem:[#allocation2 + $0x88] sm:$0xff]  ;;  %v514_v56 = vadd.s32 152, %v3524_v15 }
  0x45   : > { %1430 = vrot.lane.b32.xlu1 %v1395_v35, %s3438_s15  ;;  %vm1472_vm9 = vcmask 97344   ;;  %vm1633_vm11 = vcmask 130144   ;;  %vm1762_vm12 = vcmask 162944  }
  0x46   : > { %1589 = vrot.lane.b32.xlu0 %v1555_v42, %s3439_s18  ;;  %v2267_v42 = vsel %vm3693_vm6, %v3763_v57, 0.0  ;;  %1124 = vst.msk [vmem:[#allocation3 + $0x28] sm:$0xff] %vm311_vm0, %v1108_v49  ;;  %v1371_v57 = vsel %vm3852_vm14, %v3826_v46, 0.0  ;;  %vm3944_vm3 = vcmp.ne.s32.totalorder %v636_v37, 15 }
  0x47   : > { %v2296_v23 = vpack.c.bf16 %v2267_v42, %v3776_v5  ;;  %v1848_v42 = vpack.c.bf16 %v1822_v33, %v1789_v30  ;;  %v1793_v33 = vld [vmem:[#allocation2 + $0x82] sm:$0xff] }
  0x49   : > { %1591 = vrot.lane.b32.xlu1 %v1556_v53, %s3439_s18  ;;  %v412_v53 = vmul.f32 %v3313_v50, %v3517_v2  ;;  %v417_v50 = vmul.f32 %v3324_v26, %v3517_v2 }
  0x4a   : > { %1718 = vrot.lane.b32.xlu0 %v3576_v4, %s3436_s13  ;;  %v409_v4 = vmul.f32 %v3308_v1, %v3517_v2  ;;  %v418_v1 = vmul.f32 %v3325_v11, %v3517_v2 }
  0x4b   : > { %v451_v60 = vadd.f32 %v3522_v8, %v412_v53 }
  0x4c   : > { %v448_v19 = vadd.f32 %v3522_v8, %v409_v4  ;;  %v1500_v4 = vld [vmem:[#allocation2 + $0x68] sm:$0xff] }
  0x4d   : > { %1720 = vrot.lane.b32.xlu1 %v3769_v3, %s3436_s13  ;;  %483 = vst.msk [vmem:[#allocation2 + $0xd9] sm:$0xff] %vm311_vm0, %v451_v60  ;;  %v2008_v45 = vpack.c.bf16 %v1500_v4, %v1980_v36  ;;  %v2271_v60 = vsel %vm3841_vm13, %v3885_v7, 0.0 }
  0x4e   : > { %1879 = vrot.lane.b32.xlu0 %v1845_v47, %s3440_s21  ;;  %480 = vst.msk [vmem:[#allocation2 + $0xc1] sm:$0xff] %vm311_vm0, %v448_v19  ;;  %v1396_v47 = vpack.c.bf16 %v1369_v28, %v3776_v5  ;;  %v1557_v5 = vpack.c.bf16 %v3793_v21, %v1529_v59  ;;  %v1820_v21 = vsel %vm3841_vm13, %v3826_v46, 0.0  ;;  %v615_v19 = vand.u32 15, %v507_v16  ;;  %v1951_v46 = vld [vmem:[#allocation2 + $0x78] sm:$0xff]  ;;  %v1503_v16 = vld [vmem:[#allocation2 + $0x80] sm:$0xff] }
  0x4f   : > { %v1847_v32 = vpack.c.bf16 %v1820_v21, %v2236_v25  ;;  %v2009_v53 = vpack.c.bf16 %v1951_v46, %v1982_v48  ;;  %v622_v28 = vand.u32 15, %v508_v51  ;;  %v2273_v59 = vsel %vm3852_vm14, %v2241_v63, 0.0  ;;  %v1665_v21 = vld [vmem:[#allocation2 + $0x89] sm:$0xff] }
  0x50   : > { %vm3900_vm15 = vcmp.ne.s32.totalorder %v615_v19, 0  ;;  %v512_v48 = vadd.s32 136, %v3524_v15  ;;  %vm1923_vm13 = vcmask 195744   ;;  %vm2084_vm14 = vcmask 228544  }
  0x51   : > { %1881 = vrot.lane.b32.xlu1 %v1846_v17, %s3440_s21  ;;  %v1558_v17 = vpack.c.bf16 %v1500_v4, %v1531_v14  ;;  %v1083_v44 = vsel %vm3900_vm15, %v987_v40, 0.0  ;;  %vm3935_vm2 = vcmp.ne.s32.totalorder %v622_v28, 15  ;;  %v1375_v4 = vsel %vm3944_vm3, %v2241_v63, 0.0 }
  0x52   : > { %2040 = vrot.lane.b32.xlu0 %v2006_v20, %s3441_s22  ;;  %v1661_v20 = vld [vmem:[#allocation2 + $0x69] sm:$0xff]  ;;  %v1109_v49 = vpack.c.bf16 %v988_v43, %v1083_v44  ;;  %v457_v14 = vadd.f32 %v3522_v8, %v418_v1  ;;  %v1533_v10 = vsel %vm3900_vm15, %v3898_v38, 0.0  ;;  %v1984_v36 = vsel %vm3900_vm15, %v1503_v16, 0.0 }
  0x53   : > { %v1687_v31 = vpack.c.bf16 %v1661_v20, %v1660_v13  ;;  %v1535_v13 = vsel %vm3915_vm1, %v1503_v16, 0.0  ;;  %v511_v20 = vadd.s32 128, %v3524_v15  ;;  %v3978_v38 = vld [vmem:[#allocation2 + $0x90] sm:$0xff]  ;;  %v992_v43 = vld [vmem:[#allocation2 + $0x88] sm:$0xff]  ;;  %v2010_v26 = vpack.c.bf16 %v1504_v18, %v1984_v36 }
  0x54   : > { %1125 = vst.msk [vmem:[#allocation3 + $0x30] sm:$0xff] %vm311_vm0, %v1109_v49  ;;  %489 = vst.msk [vmem:[#allocation2 + $0x109] sm:$0xff] %vm311_vm0, %v457_v14  ;;  %v2275_v54 = vsel %vm3935_vm2, %v3967_v27, 0.0  ;;  %v650_v61 = vand.u32 15, %v512_v48  ;;  %vm2213_vm15 = vcmask 261344  }
  0x55   : > { %2042 = vrot.lane.b32.xlu1 %v2007_v34, %s3441_s22  ;;  %v455_v34 = vadd.f32 %v3522_v8, %v416_v29  ;;  %v643_v29 = vand.u32 15, %v511_v20  ;;  %v2300_v28 = vpack.c.bf16 %v2275_v54, %v1793_v33 }
  0x56   : > { %2169 = vrot.lane.b32.xlu0 %v3769_v3, %s3437_s14  ;;  %vm4017_vm8 = vcmp.ne.s32.totalorder %v650_v61, 15 }
  0x57   : > { %487 = vst.msk [vmem:[#allocation2 + $0xf9] sm:$0xff] %vm311_vm0, %v455_v34  ;;  %v1826_v34 = vsel %vm3944_vm3, %v3967_v27, 0.0  ;;  %vm3980_vm5 = vcmp.ne.s32.totalorder %v643_v29, 0  ;;  %v1377_v11 = vsel %vm4017_vm8, %v3967_v27, 0.0 }
  0x58   : > { %v1087_v44 = vsel %vm3980_vm5, %v991_v41, 0.0  ;;  %v1400_v1 = vpack.c.bf16 %v1377_v11, %v1793_v33  ;;  %v1537_v14 = vsel %vm3980_vm5, %v3978_v38, 0.0 }
  0x59   : > { %2171 = vrot.lane.b32.xlu1 %v2136_v52, %s3437_s14 }
  0x5a   : > { %2330 = vrot.lane.b32.xlu0 %v2296_v23, %s3442_s23  ;;  %v989_v23 = vld [vmem:[#allocation2 + $0x70] sm:$0xff] }
  0x5b   : > { %v1085_v35 = vsel %vm3915_vm1, %v989_v23, 0.0  ;;  %v994_v23 = vld [vmem:[#allocation2 + $0x98] sm:$0xff] }
  0x5d   : > { %1207 = vrot.lane.b32.xlu1 %v3769_v3, %s3435_s12  ;;  %v1397_v3 = vpack.c.bf16 %v1371_v57, %v2236_v25  ;;  %v456_v25 = vadd.f32 %v3522_v8, %v417_v50  ;;  %v2240_v57 = vld [vmem:[#allocation2 + $0x72] sm:$0xff]  ;;  %v1560_v8 = vpack.c.bf16 %v1504_v18, %v1535_v13  ;;  %v1508_v18 = vld [vmem:[#allocation2 + $0xa8] sm:$0xff] }
  0x5e   : > { %2332 = vrot.lane.b32.xlu0 %v2297_v58, %s3442_s23  ;;  %v1110_v58 = vpack.c.bf16 %v990_v22, %v1085_v35  ;;  %v2299_v9 = vpack.c.bf16 %v2273_v59, %v2240_v57  ;;  %v1399_v2 = vpack.c.bf16 %v1375_v4, %v2240_v57  ;;  %v993_v50 = vld [vmem:[#allocation2 + $0x90] sm:$0xff]  ;;  %v2116_v22 = vld [vmem:[#allocation2 + $0x99] sm:$0xff] }
  0x5f   : > { %488 = vst.msk [vmem:[#allocation2 + $0x101] sm:$0xff] %vm311_vm0, %v456_v25 }
  0x60   : > { %1126 = vst.msk [vmem:[#allocation3 + $0x38] sm:$0xff] %vm311_vm0, %v1110_v58 }
  0x61   : > { %1209 = vrot.lane.b32.xlu1 %v2136_v52, %s3435_s12 }
  0x62   : > { %1432 = vrot.lane.b32.xlu0 %v1396_v47, %s3438_s15  ;;  %v2298_v47 = vpack.c.bf16 %v2271_v60, %v1789_v30  ;;  %v4006_v60 = vld [vmem:[#allocation2 + $0x9a] sm:$0xff] }
  0x63   : > { %v2277_v0 = vsel %vm3944_vm3, %v4006_v60, 0.0  ;;  %v1828_v29 = vsel %vm4017_vm8, %v4006_v60, 0.0 }
  0x65   : > { %1434 = vrot.lane.b32.xlu1 %v1397_v3, %s3438_s15  ;;  %v1373_v3 = vsel %vm3935_vm2, %v3885_v7, 0.0  ;;  %v1824_v7 = vsel %vm3935_vm2, %v2241_v63, 0.0 }
  0x66   : > { %1593 = vrot.lane.b32.xlu0 %v1557_v5, %s3439_s18  ;;  %v1398_v5 = vpack.c.bf16 %v1373_v3, %v1789_v30  ;;  %v1849_v30 = vpack.c.bf16 %v1824_v7, %v2240_v57  ;;  %v664_v57 = vand.u32 15, %v514_v56  ;;  %v1668_v7 = vld [vmem:[#allocation2 + $0xa1] sm:$0xff]  ;;  %v2119_v56 = vld [vmem:[#allocation2 + $0xb1] sm:$0xff] }
  0x68   : > { %vm4026_vm10 = vcmp.ne.s32.totalorder %v664_v57, 15 }
  0x69   : > { %1595 = vrot.lane.b32.xlu1 %v1558_v17, %s3439_s18  ;;  %v1559_v17 = vpack.c.bf16 %v1951_v46, %v1533_v10  ;;  %v1111_v46 = vpack.c.bf16 %v992_v43, %v1087_v44  ;;  %v1507_v10 = vld [vmem:[#allocation2 + $0xa0] sm:$0xff]  ;;  %v4072_v43 = vld [vmem:[#allocation2 + $0xb0] sm:$0xff] }
  0x6a   : > { %1722 = vrot.lane.b32.xlu0 %v2136_v52, %s3436_s13  ;;  %v2115_v52 = vld [vmem:[#allocation2 + $0x91] sm:$0xff] }
  0x6b   : > { %1127 = vst.msk [vmem:[#allocation3 + $0x40] sm:$0xff] %vm311_vm0, %v1111_v46  ;;  %v2140_v63 = vpack.c.bf16 %v2116_v22, %v2115_v52  ;;  %v996_v46 = vld [vmem:[#allocation2 + $0xa8] sm:$0xff] }
  0x6d   : > { %1724 = vrot.lane.b32.xlu1 %v1687_v31, %s3436_s13 }
  0x6e   : > { %1883 = vrot.lane.b32.xlu0 %v1847_v32, %s3440_s21  ;;  %v1689_v32 = vpack.c.bf16 %v1665_v21, %v1664_v24  ;;  %v515_v24 = vadd.s32 160, %v3524_v15 }
  0x71   : > { %1885 = vrot.lane.b32.xlu1 %v1848_v42, %s3440_s21  ;;  %v1850_v42 = vpack.c.bf16 %v1826_v34, %v1793_v33  ;;  %v517_v33 = vadd.s32 176, %v3524_v15 }
  0x72   : > { %2044 = vrot.lane.b32.xlu0 %v2008_v45, %s3441_s22  ;;  %v1986_v45 = vsel %vm3915_vm1, %v3978_v38, 0.0  ;;  %vm2374_vm1 = vcmask 294144   ;;  %v4065_v38 = vld [vmem:[#allocation2 + $0xa2] sm:$0xff] }
  0x73   : > { %v2011_v51 = vpack.c.bf16 %v1955_v55, %v1986_v45  ;;  %v995_v45 = vld [vmem:[#allocation2 + $0xa0] sm:$0xff] }
  0x75   : > { %2046 = vrot.lane.b32.xlu1 %v2009_v53, %s3441_s22 }
  0x76   : > { %2173 = vrot.lane.b32.xlu0 %v1687_v31, %s3437_s14 }
  0x79   : > { %2175 = vrot.lane.b32.xlu1 %v2138_v62, %s3437_s14 }
  0x7a   : > { %2334 = vrot.lane.b32.xlu0 %v2298_v47, %s3442_s23  ;;  %v2244_v47 = vld [vmem:[#allocation2 + $0x92] sm:$0xff] }
  0x7b   : > { %v2301_v6 = vpack.c.bf16 %v2277_v0, %v2244_v47  ;;  %v1851_v36 = vpack.c.bf16 %v1828_v29, %v2244_v47  ;;  %v4113_v0 = vld [vmem:[#allocation2 + $0xba] sm:$0xff] }
  0x7c   : > { %v2281_v11 = vsel %vm4026_vm10, %v4113_v0, 0.0 }
  0x7d   : > { %1211 = vrot.lane.b32.xlu1 %v1687_v31, %s3435_s12  ;;  %v513_v31 = vadd.s32 144, %v3524_v15 }
  0x7e   : > { %2336 = vrot.lane.b32.xlu0 %v2299_v9, %s3442_s23 }
  0x7f   : > { %v657_v40 = vand.u32 15, %v513_v31  ;;  %v4055_v31 = vld [vmem:[#allocation2 + $0xaa] sm:$0xff] }
  0x81   : > { %1213 = vrot.lane.b32.xlu1 %v2138_v62, %s3435_s12  ;;  %vm3992_vm6 = vcmp.ne.s32.totalorder %v657_v40, 0  ;;  %v1830_v40 = vsel %vm4026_vm10, %v4055_v31, 0.0 }
  0x82   : > { %1436 = vrot.lane.b32.xlu0 %v1398_v5, %s3438_s15  ;;  %v1089_v53 = vsel %vm3992_vm6, %v993_v50, 0.0  ;;  %v1379_v5 = vsel %vm4026_vm10, %v4006_v60, 0.0  ;;  %v1539_v13 = vsel %vm3992_vm6, %v1507_v10, 0.0  ;;  %v1852_v39 = vpack.c.bf16 %v1830_v40, %v4065_v38  ;;  %v4168_v40 = vld [vmem:[#allocation2 + $0xca] sm:$0xff] }
  0x83   : > { %v1200_v19 = vpop.permute.xlu0 %1199  ;;  %v1112_v35 = vpack.c.bf16 %v994_v23, %v1089_v53  ;;  %v1562_v21 = vpack.c.bf16 %v1508_v18, %v1539_v13  ;;  %v1990_v23 = vsel %vm3992_vm6, %v4072_v43, 0.0 }
  0x84   : > { %1248 = vst.msk [vmem:[#allocation3] sm:$0xff] %vm1247_vm4, %v1200_v19  ;;  %v1669_v19 = vld [vmem:[#allocation2 + $0xa9] sm:$0xff] }
  0x85   : > { %1438 = vrot.lane.b32.xlu1 %v1399_v2, %s3438_s15  ;;  %1128 = vst.msk [vmem:[#allocation3 + $0x48] sm:$0xff] %vm311_vm0, %v1112_v35  ;;  %v1401_v2 = vpack.c.bf16 %v1379_v5, %v2244_v47  ;;  %v4061_v34 = vpack.c.bf16 %v1669_v19, %v1668_v7  ;;  %v516_v35 = vadd.s32 168, %v3524_v15  ;;  %v1512_v19 = vld [vmem:[#allocation2 + $0xc8] sm:$0xff] }
  0x86   : > { %1597 = vrot.lane.b32.xlu0 %v1559_v17, %s3439_s18  ;;  %v1561_v17 = vpack.c.bf16 %v1955_v55, %v1537_v14  ;;  %v685_v55 = vand.u32 15, %v517_v33  ;;  %v1672_v33 = vld [vmem:[#allocation2 + $0xc1] sm:$0xff] }
  0x87   : > { %v678_v57 = vand.u32 15, %v516_v35  ;;  %v4198_v35 = vld [vmem:[#allocation2 + $0xd8] sm:$0xff] }
  0x88   : > { %vm4095_vm3 = vcmp.ne.s32.totalorder %v685_v55, 0 }
  0x89   : > { %1599 = vrot.lane.b32.xlu1 %v1560_v8, %s3439_s18  ;;  %v1093_v54 = vsel %vm4095_vm3, %v4072_v43, 0.0  ;;  %vm4126_vm6 = vcmp.ne.s32.totalorder %v678_v57, 15 }
  0x8a   : > { %1726 = vrot.lane.b32.xlu0 %v2138_v62, %s3436_s13  ;;  %v2283_v57 = vsel %vm4126_vm6, %v4168_v40, 0.0 }
  0x8d   : > { %1728 = vrot.lane.b32.xlu1 %v1689_v32, %s3436_s13 }
  0x8e   : > { %1887 = vrot.lane.b32.xlu0 %v1849_v30, %s3440_s21  ;;  %v671_v30 = vand.u32 15, %v515_v24 }
  0x90   : > { %vm4075_vm2 = vcmp.ne.s32.totalorder %v671_v30, 0 }
  0x91   : > { %1889 = vrot.lane.b32.xlu1 %v1850_v42, %s3440_s21  ;;  %v1988_v42 = vsel %vm3980_vm5, %v1507_v10, 0.0  ;;  %v1091_v48 = vsel %vm4075_vm2, %v995_v45, 0.0  ;;  %vm2434_vm5 = vcmask 293888   ;;  %v1381_v10 = vsel %vm4126_vm6, %v4055_v31, 0.0  ;;  %v4177_v45 = vld [vmem:[#allocation2 + $0xc2] sm:$0xff] }
  0x92   : > { %2048 = vrot.lane.b32.xlu0 %v2010_v26, %s3441_s22  ;;  %v2012_v50 = vpack.c.bf16 %v1508_v18, %v1988_v42  ;;  %v1113_v53 = vpack.c.bf16 %v996_v46, %v1091_v48 }
  0x93   : > { %v1717_v25 = vpop.permute.xlu1 %1716 }
  0x94   : > { %v1202_v58 = vpop.permute.xlu0 %1201  ;;  %1129 = vst.msk [vmem:[#allocation3 + $0x50] sm:$0xff] %vm311_vm0, %v1113_v53 }
  0x95   : > { %1249 = vst.msk [vmem:[#allocation3 + $0x8] sm:$0xff] %vm1247_vm4, %v1202_v58  ;;  %2050 = vrot.lane.b32.xlu1 %v2011_v51, %s3441_s22  ;;  %v4088_v51 = vld [vmem:[#allocation2 + $0xb8] sm:$0xff] }
  0x96   : > { %2177 = vrot.lane.b32.xlu0 %v1689_v32, %s3437_s14  ;;  %v2013_v49 = vpack.c.bf16 %v4088_v51, %v1990_v23  ;;  %v2120_v58 = vld [vmem:[#allocation2 + $0xb9] sm:$0xff]  ;;  %v1114_v60 = vpack.c.bf16 %v4088_v51, %v1093_v54 }
  0x97   : > { %v4012_v62 = vpop.permute.xlu1 %2167 }
  0x98   : > { %v1715_v59 = vpop.permute.xlu0 %1714  ;;  %1130 = vst.msk [vmem:[#allocation3 + $0x58] sm:$0xff] %vm311_vm0, %v1114_v60  ;;  %v520_v60 = vadd.s32 200, %v3524_v15 }
  0x99   : > { %2179 = vrot.lane.b32.xlu1 %v2140_v63, %s3437_s14 }
  0x9a   : > { %2338 = vrot.lane.b32.xlu0 %v2300_v28, %s3442_s23  ;;  %v518_v28 = vadd.s32 184, %v3524_v15 }
  0x9b   : > { %v1425_v9 = vpop.permute.xlu1 %1424 }
  0x9c   : > { %1473 = vst.msk [vmem:[#allocation3] sm:$0xff] %vm1472_vm9, %v1425_v9  ;;  %v2166_v12 = vpop.permute.xlu0 %2165  ;;  %v2248_v9 = vld [vmem:[#allocation2 + $0xb2] sm:$0xff] }
  0x9d   : > { %1215 = vrot.lane.b32.xlu1 %v1689_v32, %s3435_s12  ;;  %v2303_v14 = vpack.c.bf16 %v2281_v11, %v2248_v9  ;;  %v706_v11 = vand.u32 15, %v520_v60  ;;  %v4308_v60 = vld [vmem:[#allocation2 + $0xf8] sm:$0xff] }
  0x9e   : > { %2340 = vrot.lane.b32.xlu0 %v2301_v6, %s3442_s23 }
  0x9f   : > { %v1427_v4 = vpop.permute.xlu1 %1426 }
  0xa0   : > { %1474 = vst.msk [vmem:[#allocation3 + $0x8] sm:$0xff] %vm1472_vm9, %v1427_v4  ;;  %v1586_v16 = vpop.permute.xlu0 %1585  ;;  %v2252_v4 = vld [vmem:[#allocation2 + $0xd2] sm:$0xff] }
  0xa1   : > { %1634 = vst.msk [vmem:[#allocation3] sm:$0xff] %vm1633_vm11, %v1586_v16  ;;  %1217 = vrot.lane.b32.xlu1 %v2140_v63, %s3435_s12 }
  0xa2   : > { %1440 = vrot.lane.b32.xlu0 %v1400_v1, %s3438_s15  ;;  %1763 = vst.msk [vmem:[#allocation3] sm:$0xff] %vm1762_vm12, %v1715_v59  ;;  %v2142_v59 = vpack.c.bf16 %v2120_v58, %v2119_v56 }
  0xa3   : > { %v1588_v20 = vpop.permute.xlu1 %1587 }
  0xa4   : > { %1635 = vst.msk [vmem:[#allocation3 + $0x8] sm:$0xff] %vm1633_vm11, %v1588_v20  ;;  %v1876_v8 = vpop.permute.xlu0 %1875  ;;  %v1541_v20 = vsel %vm4075_vm2, %v4072_v43, 0.0  ;;  %v521_v43 = vadd.s32 208, %v3524_v15 }
  0xa5   : > { %1924 = vst.msk [vmem:[#allocation3] sm:$0xff] %vm1923_vm13, %v1876_v8  ;;  %1442 = vrot.lane.b32.xlu1 %v1401_v2, %s3438_s15  ;;  %v1511_v8 = vld [vmem:[#allocation2 + $0xc0] sm:$0xff]  ;;  %v1563_v7 = vpack.c.bf16 %v4088_v51, %v1541_v20 }
  0xa6   : > { %1764 = vst.msk [vmem:[#allocation3 + $0x8] sm:$0xff] %vm1762_vm12, %v1717_v25  ;;  %1601 = vrot.lane.b32.xlu0 %v1561_v17, %s3439_s18  ;;  %v1402_v17 = vpack.c.bf16 %v1381_v10, %v4065_v38  ;;  %v1992_v48 = vsel %vm4075_vm2, %v1511_v8, 0.0  ;;  %v713_v53 = vand.u32 15, %v521_v43  ;;  %vm4236_vm2 = vcmp.ne.s32.totalorder %v706_v11, 15 }
  0xa7   : > { %v1878_v27 = vpop.permute.xlu1 %1877 }
  0xa8   : > { %1925 = vst.msk [vmem:[#allocation3 + $0x8] sm:$0xff] %vm1923_vm13, %v1878_v27  ;;  %v2037_v32 = vpop.permute.xlu0 %2036  ;;  %v1543_v27 = vsel %vm4095_vm3, %v1511_v8, 0.0  ;;  %vm4205_vm10 = vcmp.ne.s32.totalorder %v713_v53, 0 }
  0xa9   : > { %2085 = vst.msk [vmem:[#allocation3] sm:$0xff] %vm2084_vm14, %v2037_v32  ;;  %1603 = vrot.lane.b32.xlu1 %v1562_v21, %s3439_s18  ;;  %v519_v32 = vadd.s32 192, %v3524_v15  ;;  %v1564_v30 = vpack.c.bf16 %v1512_v19, %v1543_v27  ;;  %v1515_v27 = vld [vmem:[#allocation2 + $0xe0] sm:$0xff] }
  0xaa   : > { %1730 = vrot.lane.b32.xlu0 %v2140_v63, %s3436_s13  ;;  %2214 = vst.msk [vmem:[#allocation3] sm:$0xff] %vm2213_vm15, %v2166_v12  ;;  %v2279_v63 = vsel %vm4017_vm8, %v4055_v31, 0.0  ;;  %v692_v12 = vand.u32 15, %v518_v28  ;;  %v2123_v28 = vld [vmem:[#allocation2 + $0xd1] sm:$0xff] }
  0xab   : > { %v2039_v41 = vpop.permute.xlu1 %2038  ;;  %v2302_v37 = vpack.c.bf16 %v2279_v63, %v4065_v38  ;;  %v1832_v38 = vsel %vm4126_vm6, %v4113_v0, 0.0  ;;  %v699_v42 = vand.u32 15, %v519_v32 }
  0xac   : > { %2086 = vst.msk [vmem:[#allocation3 + $0x8] sm:$0xff] %vm2084_vm14, %v2039_v41  ;;  %v2327_v44 = vpop.permute.xlu0 %2326  ;;  %vm4137_vm7 = vcmp.ne.s32.totalorder %v692_v12, 15  ;;  %v1853_v55 = vpack.c.bf16 %v1832_v38, %v2248_v9  ;;  %v523_v38 = vadd.s32 224, %v3524_v15 }
  0xad   : > { %2375 = vst.msk [vmem:[#allocation3] sm:$0xff] %vm2374_vm1, %v2327_v44  ;;  %1732 = vrot.lane.b32.xlu1 %v4061_v34, %s3436_s13  ;;  %v1383_v18 = vsel %vm4137_vm7, %v4113_v0, 0.0  ;;  %vm4187_vm8 = vcmp.ne.s32.totalorder %v699_v42, 0  ;;  %v1677_v42 = vld [vmem:[#allocation2 + $0xe9] sm:$0xff] }
  0xae   : > { %2215 = vst.msk [vmem:[#allocation3 + $0x8] sm:$0xff] %vm2213_vm15, %v4012_v62  ;;  %1891 = vrot.lane.b32.xlu0 %v1851_v36, %s3440_s21  ;;  %v1403_v21 = vpack.c.bf16 %v1383_v18, %v2248_v9  ;;  %v1095_v26 = vsel %vm4187_vm8, %v1511_v8, 0.0  ;;  %v4223_v9 = vld [vmem:[#allocation2 + $0xda] sm:$0xff] }
  0xaf   : > { %v1204_v52 = vpop.permute.xlu1 %1203  ;;  %v1115_v54 = vpack.c.bf16 %v1512_v19, %v1095_v26  ;;  %v1996_v26 = vsel %vm4187_vm8, %v1515_v27, 0.0 }
  0xb0   : > { %1250 = vst.msk [vmem:[#allocation3 + $0x10] sm:$0xff] %vm1247_vm4, %v1204_v52  ;;  %v2329_v22 = vpop.permute.xlu0 %2328 }
  0xb1   : > { %2376 = vst.msk [vmem:[#allocation3 + $0x8] sm:$0xff] %vm2374_vm1, %v2329_v22  ;;  %1893 = vrot.lane.b32.xlu1 %v1852_v39, %s3440_s21  ;;  %v1834_v39 = vsel %vm4137_vm7, %v4168_v40, 0.0  ;;  %v2014_v22 = vpack.c.bf16 %v1512_v19, %v1992_v48 }
  0xb2   : > { %2052 = vrot.lane.b32.xlu0 %v2012_v50, %s3441_s22  ;;  %v4184_v50 = vld [vmem:[#allocation2 + $0xd0] sm:$0xff]  ;;  %v1854_v52 = vpack.c.bf16 %v1834_v39, %v4177_v45  ;;  %1131 = vst.msk [vmem:[#allocation3 + $0x60] sm:$0xff] %vm311_vm0, %v1115_v54  ;;  %v727_v39 = vand.u32 15, %v523_v38  ;;  %v1520_v38 = vld [vmem:[#allocation2 + $0x108] sm:$0xff] }
  0xb3   : > { %v1206_v61 = vpop.permute.xlu1 %1205  ;;  %v1097_v63 = vsel %vm4205_vm10, %v4184_v50, 0.0  ;;  %v1545_v19 = vsel %vm4187_vm8, %v4184_v50, 0.0 }
  0xb4   : > { %1251 = vst.msk [vmem:[#allocation3 + $0x18] sm:$0xff] %vm1247_vm4, %v1206_v61  ;;  %v1429_v62 = vpop.permute.xlu0 %1428  ;;  %v2391_v47 = vld [vmem:[#allocation3] sm:$0xff]  ;;  %v1565_v32 = vpack.c.bf16 %v4198_v35, %v1545_v19  ;;  %vm4297_vm6 = vcmp.ne.s32.totalorder %v727_v39, 0 }
  0xb5   : > { %1475 = vst.msk [vmem:[#allocation3 + $0x10] sm:$0xff] %vm1472_vm9, %v1429_v62  ;;  %2054 = vrot.lane.b32.xlu1 %v2013_v49, %s3441_s22  ;;  %3366 = vmatprep.mubr.msk.bf16.mxu0 %vm2434_vm5, %v2391_v47  ;;  %v1994_v49 = vsel %vm4095_vm3, %v4184_v50, 0.0  ;;  %v2124_v62 = vld [vmem:[#allocation2 + $0xd9] sm:$0xff]  ;;  %v1116_v47 = vpack.c.bf16 %v4198_v35, %v1097_v63  ;;  %v1099_v23 = vsel %vm4297_vm6, %v1515_v27, 0.0 }
  0xb6   : > { %2181 = vrot.lane.b32.xlu0 %v4061_v34, %s3437_s14  ;;  %v2015_v25 = vpack.c.bf16 %v4198_v35, %v1994_v49  ;;  %v2144_v12 = vpack.c.bf16 %v2124_v62, %v2123_v28 }
  0xb7   : > { %v1431_v6 = vpop.permute.xlu1 %1430  ;;  %1132 = vst.msk [vmem:[#allocation3 + $0x68] sm:$0xff] %vm311_vm0, %v1116_v47  ;;  %v524_v47 = vadd.s32 232, %v3524_v15 }
  0xb8   : > { %1476 = vst.msk [vmem:[#allocation3 + $0x18] sm:$0xff] %vm1472_vm9, %v1431_v6  ;;  %v1590_v1 = vpop.permute.xlu0 %1589  ;;  %v2392_v5 = vld [vmem:[#allocation3 + $0x8] sm:$0xff] }
  0xb9   : > { %1636 = vst.msk [vmem:[#allocation3 + $0x10] sm:$0xff] %vm1633_vm11, %v1590_v1  ;;  %3367 = vmatmul.mubr.msk.bf16.vlgmr.msra.gmra.mrb[0].mxu0 %vm2434_vm5, %v2392_v5  ;;  %2183 = vrot.lane.b32.xlu1 %v2142_v59, %s3437_s14  ;;  %v2304_v1 = vpack.c.bf16 %v2283_v57, %v4177_v45 }
  0xba   : > { %2342 = vrot.lane.b32.xlu0 %v2302_v37, %s3442_s23 }
  0xbb   : > { %v1592_v3 = vpop.permute.xlu1 %1591 }
  0xbc   : > { %1637 = vst.msk [vmem:[#allocation3 + $0x18] sm:$0xff] %vm1633_vm11, %v1592_v3  ;;  %v1719_v2 = vpop.permute.xlu0 %1718 }
  0xbd   : > { %1765 = vst.msk [vmem:[#allocation3 + $0x10] sm:$0xff] %vm1762_vm12, %v1719_v2  ;;  %1219 = vrot.lane.b32.xlu1 %v4061_v34, %s3435_s12  ;;  %v1673_v34 = vld [vmem:[#allocation2 + $0xc9] sm:$0xff] }
  0xbe   : > { %2344 = vrot.lane.b32.xlu0 %v2303_v14, %s3442_s23  ;;  %v4174_v44 = vpack.c.bf16 %v1673_v34, %v1672_v33  ;;  %v2285_v14 = vsel %vm4137_vm7, %v4223_v9, 0.0  ;;  %v1547_v33 = vsel %vm4205_vm10, %v1515_v27, 0.0 }
  0xbf   : > { %v1721_v13 = vpop.permute.xlu1 %1720  ;;  %v2305_v18 = vpack.c.bf16 %v2285_v14, %v2252_v4  ;;  %v734_v14 = vand.u32 15, %v524_v47 }
  0xc0   : > { %1766 = vst.msk [vmem:[#allocation3 + $0x18] sm:$0xff] %vm1762_vm12, %v1721_v13  ;;  %v1880_v24 = vpop.permute.xlu0 %1879  ;;  %v1385_v13 = vsel %vm4236_vm2, %v4168_v40, 0.0 }
  0xc1   : > { %1926 = vst.msk [vmem:[#allocation3 + $0x10] sm:$0xff] %vm1923_vm13, %v1880_v24  ;;  %1221 = vrot.lane.b32.xlu1 %v2142_v59, %s3435_s12  ;;  %v1404_v24 = vpack.c.bf16 %v1385_v13, %v4177_v45 }
  0xc2   : > { %1444 = vrot.lane.b32.xlu0 %v1402_v17, %s3438_s15 }
  0xc3   : > { %v1882_v29 = vpop.permute.xlu1 %1881 }
  0xc4   : > { %1927 = vst.msk [vmem:[#allocation3 + $0x18] sm:$0xff] %vm1923_vm13, %v1882_v29  ;;  %v2041_v31 = vpop.permute.xlu0 %2040 }
  0xc5   : > { %2087 = vst.msk [vmem:[#allocation3 + $0x10] sm:$0xff] %vm2084_vm14, %v2041_v31  ;;  %1446 = vrot.lane.b32.xlu1 %v1403_v21, %s3438_s15 }
  0xc6   : > { %1605 = vrot.lane.b32.xlu0 %v1563_v7, %s3439_s18 }
  0xc7   : > { %v2043_v36 = vpop.permute.xlu1 %2042 }
  0xc8   : > { %2088 = vst.msk [vmem:[#allocation3 + $0x18] sm:$0xff] %vm2084_vm14, %v2043_v36  ;;  %v2170_v41 = vpop.permute.xlu0 %2169 }
  0xc9   : > { %2216 = vst.msk [vmem:[#allocation3 + $0x10] sm:$0xff] %vm2213_vm15, %v2170_v41  ;;  %1607 = vrot.lane.b32.xlu1 %v1564_v30, %s3439_s18  ;;  %v1516_v30 = vld [vmem:[#allocation2 + $0xe8] sm:$0xff] }
  0xca   : > { %1734 = vrot.lane.b32.xlu0 %v2142_v59, %s3436_s13  ;;  %v522_v59 = vadd.s32 216, %v3524_v15  ;;  %v1566_v40 = vpack.c.bf16 %v1516_v30, %v1547_v33  ;;  %v1676_v41 = vld [vmem:[#allocation2 + $0xe1] sm:$0xff]  ;;  %v1117_v63 = vpack.c.bf16 %v1516_v30, %v1099_v23 }
  0xcb   : > { %v2172_v46 = vpop.permute.xlu1 %2171  ;;  %v4284_v48 = vpack.c.bf16 %v1677_v42, %v1676_v41 }
  0xcc   : > { %2217 = vst.msk [vmem:[#allocation3 + $0x18] sm:$0xff] %vm2213_vm15, %v2172_v46  ;;  %v2331_v51 = vpop.permute.xlu0 %2330  ;;  %v720_v3 = vand.u32 15, %v522_v59  ;;  %v525_v46 = vadd.s32 240, %v3524_v15  ;;  %v2127_v59 = vld [vmem:[#allocation2 + $0xf1] sm:$0xff] }
  0xcd   : > { %2377 = vst.msk [vmem:[#allocation3 + $0x10] sm:$0xff] %vm2374_vm1, %v2331_v51  ;;  %1736 = vrot.lane.b32.xlu1 %v4174_v44, %s3436_s13  ;;  %v4287_v51 = vld [vmem:[#allocation2 + $0xe2] sm:$0xff] }
  0xce   : > { %1895 = vrot.lane.b32.xlu0 %v1853_v55, %s3440_s21  ;;  %vm4247_vm3 = vcmp.ne.s32.totalorder %v720_v3, 15  ;;  %v4278_v55 = vld [vmem:[#allocation2 + $0xea] sm:$0xff]  ;;  %v741_v54 = vand.u32 15, %v525_v46  ;;  %1133 = vst.msk [vmem:[#allocation3 + $0x70] sm:$0xff] %vm311_vm0, %v1117_v63 }
  0xcf   : > { %v1208_v56 = vpop.permute.xlu1 %1207  ;;  %v1387_v21 = vsel %vm4247_vm3, %v4223_v9, 0.0  ;;  %v1838_v53 = vsel %vm4247_vm3, %v4278_v55, 0.0  ;;  %v2287_v11 = vsel %vm4236_vm2, %v4278_v55, 0.0  ;;  %v1810_v46 = vld [vmem:[#allocation2 + $0x10a] sm:$0xff] }
  0xd0   : > { %1252 = vst.msk [vmem:[#allocation3 + $0x20] sm:$0xff] %vm1247_vm4, %v1208_v56  ;;  %v2333_v58 = vpop.permute.xlu0 %2332  ;;  %v1405_v31 = vpack.c.bf16 %v1387_v21, %v2252_v4  ;;  %v1856_v56 = vpack.c.bf16 %v1838_v53, %v4287_v51  ;;  %vm4315_vm7 = vcmp.ne.s32.totalorder %v741_v54, 0  ;;  %v1809_v53 = vld [vmem:[#allocation2 + $0x102] sm:$0xff] }
  0xd1   : > { %2378 = vst.msk [vmem:[#allocation3 + $0x18] sm:$0xff] %vm2374_vm1, %v2333_v58  ;;  %1897 = vrot.lane.b32.xlu1 %v1854_v52, %s3440_s21  ;;  %v2016_v58 = vpack.c.bf16 %v1516_v30, %v1996_v26  ;;  %v1519_v30 = vld [vmem:[#allocation2 + $0x100] sm:$0xff] }
  0xd2   : > { %2056 = vrot.lane.b32.xlu0 %v2014_v22, %s3441_s22  ;;  %v4294_v22 = vld [vmem:[#allocation2 + $0xf0] sm:$0xff] }
  0xd3   : > { %v1210_v0 = vpop.permute.xlu1 %1209  ;;  %v1101_v57 = vsel %vm4315_vm7, %v4294_v22, 0.0 }
  0xd4   : > { %1253 = vst.msk [vmem:[#allocation3 + $0x28] sm:$0xff] %vm1247_vm4, %v1210_v0  ;;  %v1433_v37 = vpop.permute.xlu0 %1432  ;;  %v2393_v6 = vld [vmem:[#allocation3 + $0x10] sm:$0xff] }
  0xd5   : > { %1477 = vst.msk [vmem:[#allocation3 + $0x20] sm:$0xff] %vm1472_vm9, %v1433_v37  ;;  %2058 = vrot.lane.b32.xlu1 %v2015_v25, %s3441_s22  ;;  %3370 = vmatprep.mubr.msk.bf16.mxu0 %vm2434_vm5, %v2393_v6  ;;  %v1998_v25 = vsel %vm4205_vm10, %v4294_v22, 0.0  ;;  %v2128_v37 = vld [vmem:[#allocation2 + $0xf9] sm:$0xff]  ;;  %v1118_v6 = vpack.c.bf16 %v4308_v60, %v1101_v57 }
  0xd6   : > { %2185 = vrot.lane.b32.xlu0 %v4174_v44, %s3437_s14  ;;  %v2017_v61 = vpack.c.bf16 %v4308_v60, %v1998_v25  ;;  %v2146_v3 = vpack.c.bf16 %v2128_v37, %v2127_v59  ;;  %v2261_v57 = vld [vmem:[#allocation2 + $0x11a] sm:$0xff] }
  0xd7   : > { %v1435_v5 = vpop.permute.xlu1 %1434  ;;  %1134 = vst.msk [vmem:[#allocation3 + $0x78] sm:$0xff] %vm311_vm0, %v1118_v6  ;;  %vm4346_vm0 = vcmp.ne.s32.totalorder %v734_v14, 15 }
  0xd8   : > { %1478 = vst.msk [vmem:[#allocation3 + $0x28] sm:$0xff] %vm1472_vm9, %v1435_v5  ;;  %v1594_v10 = vpop.permute.xlu0 %1593  ;;  %v2394_v2 = vld [vmem:[#allocation3 + $0x18] sm:$0xff]  ;;  %v1389_v21 = vsel %vm4346_vm0, %v4278_v55, 0.0  ;;  %v1681_v55 = vld [vmem:[#allocation2 + $0x109] sm:$0xff] }
  0xd9   : > { %1638 = vst.msk [vmem:[#allocation3 + $0x20] sm:$0xff] %vm1633_vm11, %v1594_v10  ;;  %3371 = vmatmul.mubr.msk.bf16.gmra.mrb[4].mxu0 %vm2434_vm5, %v2394_v2  ;;  %2187 = vrot.lane.b32.xlu1 %v2144_v12, %s3437_s14  ;;  %v2256_v2 = vld [vmem:[#allocation2 + $0xf2] sm:$0xff]  ;;  %v1406_v27 = vpack.c.bf16 %v1389_v21, %v4287_v51 }
  0xda   : > { %2346 = vrot.lane.b32.xlu0 %v2304_v1, %s3442_s23 }
  0xdb   : > { %v1596_v16 = vpop.permute.xlu1 %1595 }
  0xdc   : > { %1639 = vst.msk [vmem:[#allocation3 + $0x28] sm:$0xff] %vm1633_vm11, %v1596_v16  ;;  %v1723_v8 = vpop.permute.xlu0 %1722 }
  0xdd   : > { %1767 = vst.msk [vmem:[#allocation3 + $0x20] sm:$0xff] %vm1762_vm12, %v1723_v8  ;;  %1223 = vrot.lane.b32.xlu1 %v4174_v44, %s3435_s12  ;;  %v1836_v44 = vsel %vm4236_vm2, %v4223_v9, 0.0 }
  0xde   : > { %2348 = vrot.lane.b32.xlu0 %v2305_v18, %s3442_s23  ;;  %v1855_v50 = vpack.c.bf16 %v1836_v44, %v2252_v4  ;;  %v4333_v4 = vld [vmem:[#allocation2 + $0xfa] sm:$0xff] }
  0xdf   : > { %v1725_v7 = vpop.permute.xlu1 %1724  ;;  %v2289_v17 = vsel %vm4247_vm3, %v4333_v4, 0.0  ;;  %v1680_v44 = vld [vmem:[#allocation2 + $0x101] sm:$0xff]  ;;  %v1840_v39 = vsel %vm4346_vm0, %v4333_v4, 0.0 }
  0xe0   : > { %1768 = vst.msk [vmem:[#allocation3 + $0x28] sm:$0xff] %vm1762_vm12, %v1725_v7  ;;  %v1884_v29 = vpop.permute.xlu0 %1883 }
  0xe1   : > { %1928 = vst.msk [vmem:[#allocation3 + $0x20] sm:$0xff] %vm1923_vm13, %v1884_v29  ;;  %1225 = vrot.lane.b32.xlu1 %v2144_v12, %s3435_s12 }
  0xe2   : > { %1448 = vrot.lane.b32.xlu0 %v1404_v24, %s3438_s15  ;;  %v2307_v24 = vpack.c.bf16 %v2289_v17, %v2256_v2 }
  0xe3   : > { %v1886_v34 = vpop.permute.xlu1 %1885 }
  0xe4   : > { %1929 = vst.msk [vmem:[#allocation3 + $0x28] sm:$0xff] %vm1923_vm13, %v1886_v34  ;;  %v2045_v36 = vpop.permute.xlu0 %2044 }
  0xe5   : > { %2089 = vst.msk [vmem:[#allocation3 + $0x20] sm:$0xff] %vm2084_vm14, %v2045_v36  ;;  %1450 = vrot.lane.b32.xlu1 %v1405_v31, %s3438_s15 }
  0xe6   : > { %1609 = vrot.lane.b32.xlu0 %v1565_v32, %s3439_s18  ;;  %v1549_v32 = vsel %vm4297_vm6, %v4294_v22, 0.0  ;;  %v2000_v22 = vsel %vm4297_vm6, %v1519_v30, 0.0 }
  0xe7   : > { %v2047_v43 = vpop.permute.xlu1 %2046  ;;  %v1567_v36 = vpack.c.bf16 %v4308_v60, %v1549_v32  ;;  %v2018_v23 = vpack.c.bf16 %v1520_v38, %v2000_v22 }
  0xe8   : > { %2090 = vst.msk [vmem:[#allocation3 + $0x28] sm:$0xff] %vm2084_vm14, %v2047_v43  ;;  %v2174_v45 = vpop.permute.xlu0 %2173 }
  0xe9   : > { %2218 = vst.msk [vmem:[#allocation3 + $0x20] sm:$0xff] %vm2213_vm15, %v2174_v45  ;;  %1611 = vrot.lane.b32.xlu1 %v1566_v40, %s3439_s18  ;;  %v1551_v40 = vsel %vm4315_vm7, %v1519_v30, 0.0 }
  0xea   : > { %1738 = vrot.lane.b32.xlu0 %v2144_v12, %s3436_s13  ;;  %v526_v12 = vadd.s32 248, %v3524_v15  ;;  %v2306_v15 = vpack.c.bf16 %v2287_v11, %v4287_v51  ;;  %v1568_v43 = vpack.c.bf16 %v1520_v38, %v1551_v40  ;;  %v1857_v51 = vpack.c.bf16 %v1840_v39, %v2256_v2 }
  0xeb   : > { %v2176_v52 = vpop.permute.xlu1 %2175 }
  0xec   : > { %2219 = vst.msk [vmem:[#allocation3 + $0x28] sm:$0xff] %vm2213_vm15, %v2176_v52  ;;  %v2335_v35 = vpop.permute.xlu0 %2334  ;;  %v748_v18 = vand.u32 15, %v526_v12 }
  0xed   : > { %2379 = vst.msk [vmem:[#allocation3 + $0x20] sm:$0xff] %vm2374_vm1, %v2335_v35  ;;  %1740 = vrot.lane.b32.xlu1 %v4284_v48, %s3436_s13  ;;  %v1970_v35 = vld [vmem:[#allocation2 + $0x110] sm:$0xff] }
  0xee   : > { %1899 = vrot.lane.b32.xlu0 %v1855_v50, %s3440_s21  ;;  %vm4357_vm8 = vcmp.ne.s32.totalorder %v748_v18, 15  ;;  %v1697_v50 = vpack.c.bf16 %v1681_v55, %v1680_v44  ;;  %v2002_v60 = vsel %vm4315_vm7, %v1970_v35, 0.0 }
  0xef   : > { %v1212_v28 = vpop.permute.xlu1 %1211  ;;  %v1391_v29 = vsel %vm4357_vm8, %v4333_v4, 0.0  ;;  %v1842_v52 = vsel %vm4357_vm8, %v1810_v46, 0.0  ;;  %v2293_v11 = vsel %vm4357_vm8, %v2261_v57, 0.0 }
  0xf0   : > { %1254 = vst.msk [vmem:[#allocation3 + $0x30] sm:$0xff] %vm1247_vm4, %v1212_v28  ;;  %v2337_v62 = vpop.permute.xlu0 %2336  ;;  %v1407_v34 = vpack.c.bf16 %v1391_v29, %v2256_v2  ;;  %v2131_v28 = vld [vmem:[#allocation2 + $0x111] sm:$0xff] }
  0xf1   : > { %2380 = vst.msk [vmem:[#allocation3 + $0x28] sm:$0xff] %vm2374_vm1, %v2337_v62  ;;  %1901 = vrot.lane.b32.xlu1 %v1856_v56, %s3440_s21  ;;  %v1858_v56 = vpack.c.bf16 %v1842_v52, %v1809_v53  ;;  %v2132_v62 = vld [vmem:[#allocation2 + $0x119] sm:$0xff] }
  0xf2   : > { %2060 = vrot.lane.b32.xlu0 %v2016_v58, %s3441_s22  ;;  %v1971_v58 = vld [vmem:[#allocation2 + $0x118] sm:$0xff]  ;;  %v2148_v37 = vpack.c.bf16 %v2132_v62, %v2131_v28 }
  0xf3   : > { %v1214_v9 = vpop.permute.xlu1 %1213  ;;  %v2019_v63 = vpack.c.bf16 %v1971_v58, %v2002_v60 }
  0xf4   : > { %1255 = vst.msk [vmem:[#allocation3 + $0x38] sm:$0xff] %vm1247_vm4, %v1214_v9  ;;  %v1437_v1 = vpop.permute.xlu0 %1436  ;;  %v2395_v5 = vld [vmem:[#allocation3 + $0x20] sm:$0xff]  ;;  %v2260_v9 = vld [vmem:[#allocation2 + $0x112] sm:$0xff] }
  0xf5   : > { %1479 = vst.msk [vmem:[#allocation3 + $0x30] sm:$0xff] %vm1472_vm9, %v1437_v1  ;;  %2062 = vrot.lane.b32.xlu1 %v2017_v61, %s3441_s22  ;;  %3374 = vmatprep.mubr.msk.bf16.mxu0 %vm2434_vm5, %v2395_v5  ;;  %v2291_v61 = vsel %vm4346_vm0, %v1810_v46, 0.0  ;;  %v2309_v4 = vpack.c.bf16 %v2293_v11, %v2260_v9 }
  0xf6   : > { %2189 = vrot.lane.b32.xlu0 %v4284_v48, %s3437_s14  ;;  %v2308_v6 = vpack.c.bf16 %v2291_v61, %v1809_v53 }
  0xf7   : > { %v1439_v10 = vpop.permute.xlu1 %1438 }
  0xf8   : > { %1480 = vst.msk [vmem:[#allocation3 + $0x38] sm:$0xff] %vm1472_vm9, %v1439_v10  ;;  %v1598_v16 = vpop.permute.xlu0 %1597  ;;  %v2396_v13 = vld [vmem:[#allocation3 + $0x28] sm:$0xff] }
  0xf9   : > { %1640 = vst.msk [vmem:[#allocation3 + $0x30] sm:$0xff] %vm1633_vm11, %v1598_v16  ;;  %3375 = vmatmul.mubr.msk.bf16.gmra.mrb[8].mxu0 %vm2434_vm5, %v2396_v13  ;;  %2191 = vrot.lane.b32.xlu1 %v2146_v3, %s3437_s14 }
  0xfa   : > { %2350 = vrot.lane.b32.xlu0 %v2306_v15, %s3442_s23 }
  0xfb   : > { %v1600_v20 = vpop.permute.xlu1 %1599 }
  0xfc   : > { %1641 = vst.msk [vmem:[#allocation3 + $0x38] sm:$0xff] %vm1633_vm11, %v1600_v20  ;;  %v1727_v19 = vpop.permute.xlu0 %1726 }
  0xfd   : > { %1769 = vst.msk [vmem:[#allocation3 + $0x30] sm:$0xff] %vm1762_vm12, %v1727_v19  ;;  %1227 = vrot.lane.b32.xlu1 %v4284_v48, %s3435_s12 }
  0xfe   : > { %2352 = vrot.lane.b32.xlu0 %v2307_v24, %s3442_s23 }
  0xff   : > { %v1729_v31 = vpop.permute.xlu1 %1728 }
 0x100   : > { %1770 = vst.msk [vmem:[#allocation3 + $0x38] sm:$0xff] %vm1762_vm12, %v1729_v31  ;;  %v1888_v33 = vpop.permute.xlu0 %1887 }
 0x101   : > { %1930 = vst.msk [vmem:[#allocation3 + $0x30] sm:$0xff] %vm1923_vm13, %v1888_v33  ;;  %1229 = vrot.lane.b32.xlu1 %v2146_v3, %s3435_s12  ;;  %s306_s12 = scalar_lea.vmem %s4895_s6, %s4962_s25 }
 0x102   : > { %1452 = vrot.lane.b32.xlu0 %v1406_v27, %s3438_s15 }
 0x103   : > { %v1890_v41 = vpop.permute.xlu1 %1889 }
 0x104   : > { %1931 = vst.msk [vmem:[#allocation3 + $0x38] sm:$0xff] %vm1923_vm13, %v1890_v41  ;;  %v2049_v42 = vpop.permute.xlu0 %2048 }
 0x105   : > { %2091 = vst.msk [vmem:[#allocation3 + $0x30] sm:$0xff] %vm2084_vm14, %v2049_v42  ;;  %1454 = vrot.lane.b32.xlu1 %v1407_v34, %s3438_s15  ;;  %s309_s15 = scalar_lea.vmem %s4896_s7, %s4962_s25 }
 0x106   : > { %1613 = vrot.lane.b32.xlu0 %v1567_v36, %s3439_s18 }
 0x107   : > { %v2051_v45 = vpop.permute.xlu1 %2050 }
 0x108   : > { %2092 = vst.msk [vmem:[#allocation3 + $0x38] sm:$0xff] %vm2084_vm14, %v2051_v45  ;;  %v2178_v48 = vpop.permute.xlu0 %2177 }
 0x109   : > { %2220 = vst.msk [vmem:[#allocation3 + $0x30] sm:$0xff] %vm2213_vm15, %v2178_v48  ;;  %1615 = vrot.lane.b32.xlu1 %v1568_v43, %s3439_s18 }
 0x10a   : > { %1742 = vrot.lane.b32.xlu0 %v2146_v3, %s3436_s13 }
 0x10b   : > { %v2180_v26 = vpop.permute.xlu1 %2179 }
 0x10c   : > { %2221 = vst.msk [vmem:[#allocation3 + $0x38] sm:$0xff] %vm2213_vm15, %v2180_v26  ;;  %v2339_v54 = vpop.permute.xlu0 %2338 }
 0x10d   : > { %2381 = vst.msk [vmem:[#allocation3 + $0x30] sm:$0xff] %vm2374_vm1, %v2339_v54  ;;  %1744 = vrot.lane.b32.xlu1 %v1697_v50, %s3436_s13 }
 0x10e   : > { %1903 = vrot.lane.b32.xlu0 %v1857_v51, %s3440_s21 }
 0x10f   : > { %v1216_v25 = vpop.permute.xlu1 %1215 }
 0x110   : > { %1256 = vst.msk [vmem:[#allocation3 + $0x40] sm:$0xff] %vm1247_vm4, %v1216_v25  ;;  %v2341_v49 = vpop.permute.xlu0 %2340 }
 0x111   : > { %2382 = vst.msk [vmem:[#allocation3 + $0x38] sm:$0xff] %vm2374_vm1, %v2341_v49  ;;  %1905 = vrot.lane.b32.xlu1 %v1858_v56, %s3440_s21 }
 0x112   : > { %2064 = vrot.lane.b32.xlu0 %v2018_v23, %s3441_s22 }
 0x113   : > { %v1218_v47 = vpop.permute.xlu1 %1217 }
 0x114   : > { %1257 = vst.msk [vmem:[#allocation3 + $0x48] sm:$0xff] %vm1247_vm4, %v1218_v47  ;;  %v1441_v0 = vpop.permute.xlu0 %1440  ;;  %v2397_v59 = vld [vmem:[#allocation3 + $0x30] sm:$0xff] }
 0x115   : > { %1481 = vst.msk [vmem:[#allocation3 + $0x40] sm:$0xff] %vm1472_vm9, %v1441_v0  ;;  %2066 = vrot.lane.b32.xlu1 %v2019_v63, %s3441_s22  ;;  %3378 = vmatprep.mubr.msk.bf16.mxu0 %vm2434_vm5, %v2397_v59 }
 0x116   : > { %2193 = vrot.lane.b32.xlu0 %v1697_v50, %s3437_s14 }
 0x117   : > { %v1443_v12 = vpop.permute.xlu1 %1442 }
 0x118   : > { %1482 = vst.msk [vmem:[#allocation3 + $0x48] sm:$0xff] %vm1472_vm9, %v1443_v12  ;;  %v1602_v1 = vpop.permute.xlu0 %1601  ;;  %v2398_v5 = vld [vmem:[#allocation3 + $0x38] sm:$0xff] }
 0x119   : > { %1642 = vst.msk [vmem:[#allocation3 + $0x40] sm:$0xff] %vm1633_vm11, %v1602_v1  ;;  %3379 = vmatmul.mubr.msk.bf16.gmra.mrb[12].mxu0 %vm2434_vm5, %v2398_v5  ;;  %2195 = vrot.lane.b32.xlu1 %v2148_v37, %s3437_s14  ;;  %v4485_v5 = vld [vmem:[%s4893_s4] ss:$0 sm:$0xff] }
 0x11a   : > { %2354 = vrot.lane.b32.xlu0 %v2308_v6, %s3442_s23 }
 0x11b   : > { %v1604_v14 = vpop.permute.xlu1 %1603 }
 0x11c   : > { %1643 = vst.msk [vmem:[#allocation3 + $0x48] sm:$0xff] %vm1633_vm11, %v1604_v14  ;;  %v1731_v3 = vpop.permute.xlu0 %1730 }
 0x11d   : > { %1771 = vst.msk [vmem:[#allocation3 + $0x40] sm:$0xff] %vm1762_vm12, %v1731_v3  ;;  %2356 = vrot.lane.b32.xlu1 %v2309_v4, %s3442_s23 }
 0x11f   : > { %v1733_v15 = vpop.permute.xlu1 %1732 }
 0x120   : > { %1772 = vst.msk [vmem:[#allocation3 + $0x48] sm:$0xff] %vm1762_vm12, %v1733_v15  ;;  %v1892_v10 = vpop.permute.xlu0 %1891 }
 0x121   : > { %1932 = vst.msk [vmem:[#allocation3 + $0x40] sm:$0xff] %vm1923_vm13, %v1892_v10 }
 0x123   : > { %v1894_v2 = vpop.permute.xlu1 %1893 }
 0x124   : > { %1933 = vst.msk [vmem:[#allocation3 + $0x48] sm:$0xff] %vm1923_vm13, %v1894_v2  ;;  %v2053_v17 = vpop.permute.xlu0 %2052 }
 0x125   : > { %2093 = vst.msk [vmem:[#allocation3 + $0x40] sm:$0xff] %vm2084_vm14, %v2053_v17 }
 0x127   : > { %v2055_v18 = vpop.permute.xlu1 %2054 }
 0x128   : > { %2094 = vst.msk [vmem:[#allocation3 + $0x48] sm:$0xff] %vm2084_vm14, %v2055_v18  ;;  %v2182_v16 = vpop.permute.xlu0 %2181 }
 0x129   : > { %2222 = vst.msk [vmem:[#allocation3 + $0x40] sm:$0xff] %vm2213_vm15, %v2182_v16 }
 0x12b   : > { %v2184_v13 = vpop.permute.xlu1 %2183 }
 0x12c   : > { %2223 = vst.msk [vmem:[#allocation3 + $0x48] sm:$0xff] %vm2213_vm15, %v2184_v13  ;;  %v2343_v8 = vpop.permute.xlu0 %2342 }
 0x12d   : > { %2383 = vst.msk [vmem:[#allocation3 + $0x40] sm:$0xff] %vm2374_vm1, %v2343_v8 }
 0x12f   : > { %v1220_v24 = vpop.permute.xlu1 %1219 }
 0x130   : > { %1258 = vst.msk [vmem:[#allocation3 + $0x50] sm:$0xff] %vm1247_vm4, %v1220_v24  ;;  %v2345_v20 = vpop.permute.xlu0 %2344 }
 0x131   : > { %2384 = vst.msk [vmem:[#allocation3 + $0x48] sm:$0xff] %vm2374_vm1, %v2345_v20 }
 0x133   : > { %v1222_v21 = vpop.permute.xlu1 %1221 }
 0x134   : > { %1259 = vst.msk [vmem:[#allocation3 + $0x58] sm:$0xff] %vm1247_vm4, %v1222_v21  ;;  %v1445_v7 = vpop.permute.xlu0 %1444  ;;  %v2399_v19 = vld [vmem:[#allocation3 + $0x40] sm:$0xff] }
 0x135   : > { %1483 = vst.msk [vmem:[#allocation3 + $0x50] sm:$0xff] %vm1472_vm9, %v1445_v7  ;;  %3382 = vmatprep.mubr.msk.bf16.mxu1 %vm2434_vm5, %v2399_v19 }
 0x137   : > { %v1447_v27 = vpop.permute.xlu1 %1446 }
 0x138   : > { %1484 = vst.msk [vmem:[#allocation3 + $0x58] sm:$0xff] %vm1472_vm9, %v1447_v27  ;;  %v1606_v29 = vpop.permute.xlu0 %1605  ;;  %v2400_v31 = vld [vmem:[#allocation3 + $0x48] sm:$0xff] }
 0x139   : > { %1644 = vst.msk [vmem:[#allocation3 + $0x50] sm:$0xff] %vm1633_vm11, %v1606_v29  ;;  %3383 = vmatmul.mubr.msk.bf16.vlgmr.msra.gmra.mrb[0].mxu1 %vm2434_vm5, %v2400_v31 }
 0x13b   : > { %v1608_v32 = vpop.permute.xlu1 %1607 }
 0x13c   : > { %1645 = vst.msk [vmem:[#allocation3 + $0x58] sm:$0xff] %vm1633_vm11, %v1608_v32  ;;  %v1735_v30 = vpop.permute.xlu0 %1734 }
 0x13d   : > { %1773 = vst.msk [vmem:[#allocation3 + $0x50] sm:$0xff] %vm1762_vm12, %v1735_v30 }
 0x13f   : > { %v1737_v33 = vpop.permute.xlu1 %1736 }
 0x140   : > { %1774 = vst.msk [vmem:[#allocation3 + $0x58] sm:$0xff] %vm1762_vm12, %v1737_v33  ;;  %v1896_v34 = vpop.permute.xlu0 %1895 }
 0x141   : > { %1934 = vst.msk [vmem:[#allocation3 + $0x50] sm:$0xff] %vm1923_vm13, %v1896_v34 }
 0x143   : > { %v1898_v36 = vpop.permute.xlu1 %1897 }
 0x144   : > { %1935 = vst.msk [vmem:[#allocation3 + $0x58] sm:$0xff] %vm1923_vm13, %v1898_v36  ;;  %v2057_v38 = vpop.permute.xlu0 %2056 }
 0x145   : > { %2095 = vst.msk [vmem:[#allocation3 + $0x50] sm:$0xff] %vm2084_vm14, %v2057_v38 }
 0x147   : > { %v2059_v40 = vpop.permute.xlu1 %2058 }
 0x148   : > { %2096 = vst.msk [vmem:[#allocation3 + $0x58] sm:$0xff] %vm2084_vm14, %v2059_v40  ;;  %v2186_v41 = vpop.permute.xlu0 %2185 }
 0x149   : > { %2224 = vst.msk [vmem:[#allocation3 + $0x50] sm:$0xff] %vm2213_vm15, %v2186_v41 }
 0x14b   : > { %v2188_v42 = vpop.permute.xlu1 %2187 }
 0x14c   : > { %2225 = vst.msk [vmem:[#allocation3 + $0x58] sm:$0xff] %vm2213_vm15, %v2188_v42  ;;  %v2347_v43 = vpop.permute.xlu0 %2346 }
 0x14d   : > { %2385 = vst.msk [vmem:[#allocation3 + $0x50] sm:$0xff] %vm2374_vm1, %v2347_v43 }
 0x14f   : > { %v1224_v44 = vpop.permute.xlu1 %1223 }
 0x150   : > { %1260 = vst.msk [vmem:[#allocation3 + $0x60] sm:$0xff] %vm1247_vm4, %v1224_v44  ;;  %v2349_v55 = vpop.permute.xlu0 %2348 }
 0x151   : > { %2386 = vst.msk [vmem:[#allocation3 + $0x58] sm:$0xff] %vm2374_vm1, %v2349_v55 }
 0x153   : > { %v1226_v45 = vpop.permute.xlu1 %1225 }
 0x154   : > { %1261 = vst.msk [vmem:[#allocation3 + $0x68] sm:$0xff] %vm1247_vm4, %v1226_v45  ;;  %v1449_v39 = vpop.permute.xlu0 %1448  ;;  %v2401_v46 = vld [vmem:[#allocation3 + $0x50] sm:$0xff] }
 0x155   : > { %1485 = vst.msk [vmem:[#allocation3 + $0x60] sm:$0xff] %vm1472_vm9, %v1449_v39  ;;  %3386 = vmatprep.mubr.msk.bf16.mxu1 %vm2434_vm5, %v2401_v46 }
 0x157   : > { %v1451_v48 = vpop.permute.xlu1 %1450 }
 0x158   : > { %1486 = vst.msk [vmem:[#allocation3 + $0x68] sm:$0xff] %vm1472_vm9, %v1451_v48  ;;  %v1610_v50 = vpop.permute.xlu0 %1609  ;;  %v2402_v51 = vld [vmem:[#allocation3 + $0x58] sm:$0xff] }
 0x159   : > { %1646 = vst.msk [vmem:[#allocation3 + $0x60] sm:$0xff] %vm1633_vm11, %v1610_v50  ;;  %3387 = vmatmul.mubr.msk.bf16.gmra.mrb[4].mxu1 %vm2434_vm5, %v2402_v51 }
 0x15b   : > { %v1612_v53 = vpop.permute.xlu1 %1611 }
 0x15c   : > { %1647 = vst.msk [vmem:[#allocation3 + $0x68] sm:$0xff] %vm1633_vm11, %v1612_v53  ;;  %v1739_v52 = vpop.permute.xlu0 %1738 }
 0x15d   : > { %1775 = vst.msk [vmem:[#allocation3 + $0x60] sm:$0xff] %vm1762_vm12, %v1739_v52 }
 0x15f   : > { %v1741_v26 = vpop.permute.xlu1 %1740 }
 0x160   : > { %1776 = vst.msk [vmem:[#allocation3 + $0x68] sm:$0xff] %vm1762_vm12, %v1741_v26  ;;  %v1900_v22 = vpop.permute.xlu0 %1899 }
 0x161   : > { %1936 = vst.msk [vmem:[#allocation3 + $0x60] sm:$0xff] %vm1923_vm13, %v1900_v22 }
 0x163   : > { %v1902_v35 = vpop.permute.xlu1 %1901 }
 0x164   : > { %1937 = vst.msk [vmem:[#allocation3 + $0x68] sm:$0xff] %vm1923_vm13, %v1902_v35  ;;  %v2061_v54 = vpop.permute.xlu0 %2060 }
 0x165   : > { %2097 = vst.msk [vmem:[#allocation3 + $0x60] sm:$0xff] %vm2084_vm14, %v2061_v54 }
 0x167   : > { %v2063_v56 = vpop.permute.xlu1 %2062 }
 0x168   : > { %2098 = vst.msk [vmem:[#allocation3 + $0x68] sm:$0xff] %vm2084_vm14, %v2063_v56  ;;  %v2190_v23 = vpop.permute.xlu0 %2189 }
 0x169   : > { %2226 = vst.msk [vmem:[#allocation3 + $0x60] sm:$0xff] %vm2213_vm15, %v2190_v23 }
 0x16b   : > { %v2192_v58 = vpop.permute.xlu1 %2191 }
 0x16c   : > { %2227 = vst.msk [vmem:[#allocation3 + $0x68] sm:$0xff] %vm2213_vm15, %v2192_v58  ;;  %v2351_v60 = vpop.permute.xlu0 %2350 }
 0x16d   : > { %2387 = vst.msk [vmem:[#allocation3 + $0x60] sm:$0xff] %vm2374_vm1, %v2351_v60 }
 0x16f   : > { %v1228_v25 = vpop.permute.xlu1 %1227 }
 0x170   : > { %1262 = vst.msk [vmem:[#allocation3 + $0x70] sm:$0xff] %vm1247_vm4, %v1228_v25  ;;  %v2353_v49 = vpop.permute.xlu0 %2352 }
 0x171   : > { %2388 = vst.msk [vmem:[#allocation3 + $0x68] sm:$0xff] %vm2374_vm1, %v2353_v49 }
 0x173   : > { %v1230_v63 = vpop.permute.xlu1 %1229 }
 0x174   : > { %1263 = vst.msk [vmem:[#allocation3 + $0x78] sm:$0xff] %vm1247_vm4, %v1230_v63  ;;  %v1453_v28 = vpop.permute.xlu0 %1452  ;;  %v2403_v62 = vld [vmem:[#allocation3 + $0x60] sm:$0xff]  ;;  %vm2808_vm4 = vcmask 60416  }
 0x175   : > { %1487 = vst.msk [vmem:[#allocation3 + $0x70] sm:$0xff] %vm1472_vm9, %v1453_v28  ;;  %3390 = vmatprep.mubr.msk.bf16.mxu1 %vm2434_vm5, %v2403_v62 }
 0x177   : > { %v1455_v47 = vpop.permute.xlu1 %1454 }
 0x178   : > { %1488 = vst.msk [vmem:[#allocation3 + $0x78] sm:$0xff] %vm1472_vm9, %v1455_v47  ;;  %v2404_v61 = vld [vmem:[#allocation3 + $0x68] sm:$0xff]  ;;  %v1614_v57 = vpop.permute.xlu0 %1613  ;;  %vm2841_vm9 = vcmask 64512  }
 0x179   : > { %3391 = vmatmul.mubr.msk.bf16.gmra.mrb[8].mxu1 %vm2434_vm5, %v2404_v61  ;;  %1648 = vst.msk [vmem:[#allocation3 + $0x70] sm:$0xff] %vm1633_vm11, %v1614_v57 }
 0x17b   : > { %v1616_v0 = vpop.permute.xlu1 %1615 }
 0x17c   : > { %1649 = vst.msk [vmem:[#allocation3 + $0x78] sm:$0xff] %vm1633_vm11, %v1616_v0  ;;  %v1743_v59 = vpop.permute.xlu0 %1742  ;;  %vm2913_vm11 = vcmask 57344  }
 0x17d   : > { %1777 = vst.msk [vmem:[#allocation3 + $0x70] sm:$0xff] %vm1762_vm12, %v1743_v59 }
 0x17f   : > { %v1745_v37 = vpop.permute.xlu1 %1744 }
 0x180   : > { %1778 = vst.msk [vmem:[#allocation3 + $0x78] sm:$0xff] %vm1762_vm12, %v1745_v37  ;;  %v1904_v6 = vpop.permute.xlu0 %1903 }
 0x181   : > { %1938 = vst.msk [vmem:[#allocation3 + $0x70] sm:$0xff] %vm1923_vm13, %v1904_v6 }
 0x183   : > { %v1906_v9 = vpop.permute.xlu1 %1905 }
 0x184   : > { %1939 = vst.msk [vmem:[#allocation3 + $0x78] sm:$0xff] %vm1923_vm13, %v1906_v9  ;;  %v2065_v11 = vpop.permute.xlu0 %2064 }
 0x185   : > { %2099 = vst.msk [vmem:[#allocation3 + $0x70] sm:$0xff] %vm2084_vm14, %v2065_v11 }
 0x187   : > { %v2067_v12 = vpop.permute.xlu1 %2066 }
 0x188   : > { %2100 = vst.msk [vmem:[#allocation3 + $0x78] sm:$0xff] %vm2084_vm14, %v2067_v12  ;;  %v2194_v1 = vpop.permute.xlu0 %2193 }
 0x189   : > { %2228 = vst.msk [vmem:[#allocation3 + $0x70] sm:$0xff] %vm2213_vm15, %v2194_v1 }
 0x18b   : > { %v2196_v4 = vpop.permute.xlu1 %2195 }
 0x18c   : > { %2229 = vst.msk [vmem:[#allocation3 + $0x78] sm:$0xff] %vm2213_vm15, %v2196_v4  ;;  %v3368_v14 = vpop.f32.mrb[0].mxu0  ;;  %v2355_v3 = vpop.permute.xlu0 %2354 }
 0x18d   : > { %v2530_v15 = vadd.f32 %v3368_v14, %v4485_v5  ;;  %v2521_v10 = vpop.f32.mrb[1].mxu0  ;;  %2389 = vst.msk [vmem:[#allocation3 + $0x70] sm:$0xff] %vm2374_vm1, %v2355_v3 }
 0x18e   : > { %v2522_v2 = vadd.f32 %v4485_v5, %v2521_v10  ;;  %v3369_v17 = vpop.f32.mrb[2].mxu0 }
 0x18f   : > { %v4491_v18 = vmax.f32 %v2530_v15, 0.0  ;;  %v2533_v16 = vadd.f32 %v3369_v17, %v4485_v5  ;;  %v2524_v13 = vpop.f32.mrb[3].mxu0  ;;  %v2357_v8 = vpop.permute.xlu1 %2356 }
 0x190   : > { %v4501_v24 = vmax.f32 %v2522_v2, 0.0  ;;  %v2525_v20 = vadd.f32 %v4485_v5, %v2524_v13  ;;  %2390 = vst.msk [vmem:[#allocation3 + $0x78] sm:$0xff] %vm2374_vm1, %v2357_v8 }
 0x191   : > { %v3232_v21 = vpack.c.bf16 %v4491_v18, %v4491_v18  ;;  %v4507_v7 = vmax.f32 %v2533_v16, 0.0  ;;  %v2845_v8 = vsel %vm2841_vm9, %v4491_v18, 0.0 }
 0x192   : > { %v3230_v19 = vpack.c.bf16 %v4501_v24, %v4501_v24  ;;  %v4511_v27 = vmax.f32 %v2525_v20, 0.0  ;;  %v2842_v17 = vsel %vm2841_vm9, %v4501_v24, 0.0 }
 0x193   : > { %2811 = vst.msk [vmem:[%s4499_s10 + $0x8] sm:$0xf] %vm2808_vm4, %v3232_v21  ;;  %v3233_v29 = vpack.c.bf16 %v4507_v7, %v4507_v7  ;;  %v2847_v21 = vsel %vm2841_vm9, %v4507_v7, 0.0 }
 0x194   : > { %2809 = vst.msk [vmem:[%s4499_s10] sm:$0xf] %vm2808_vm4, %v3230_v19  ;;  %v3231_v31 = vpack.c.bf16 %v4511_v27, %v4511_v27  ;;  %v2405_v32 = vld [vmem:[#allocation3 + $0x70] sm:$0xff]  ;;  %v2843_v16 = vsel %vm2841_vm9, %v4511_v27, 0.0 }
 0x195   : > { %2812 = vst.msk [vmem:[%s4499_s10 + $0xc] sm:$0xf] %vm2808_vm4, %v3233_v29  ;;  %3394 = vmatprep.mubr.msk.bf16.mxu1 %vm2434_vm5, %v2405_v32  ;;  %v2844_v13 = vadd.f32 %v2843_v16, %v2842_v17 }
 0x196   : > { %2810 = vst.msk [vmem:[%s4499_s10 + $0x4] sm:$0xf] %vm2808_vm4, %v3231_v31 }
 0x197   : > { %v2406_v30 = vld [vmem:[#allocation3 + $0x78] sm:$0xff]  ;;  %v2846_v20 = vadd.f32 %v2845_v8, %v2844_v13 }
 0x198   : > { %3395 = vmatmul.mubr.msk.bf16.gmra.mrb[12].mxu1 %vm2434_vm5, %v2406_v30 }
 0x199   : > { %v2848_v29 = vadd.f32 %v2847_v21, %v2846_v20 }
 0x1ac   : > { %v3372_v33 = vpop.f32.mrb[4].mxu0 }
 0x1ad   : > { %v2546_v34 = vadd.f32 %v3372_v33, %v4485_v5  ;;  %v2537_v36 = vpop.f32.mrb[5].mxu0 }
 0x1ae   : > { %v2538_v38 = vadd.f32 %v4485_v5, %v2537_v36  ;;  %v3373_v40 = vpop.f32.mrb[6].mxu0 }
 0x1af   : > { %v4529_v41 = vmax.f32 %v2546_v34, 0.0  ;;  %v2549_v42 = vadd.f32 %v3373_v40, %v4485_v5  ;;  %v2540_v43 = vpop.f32.mrb[7].mxu0 }
 0x1b0   : > { %v4532_v44 = vmax.f32 %v2538_v38, 0.0  ;;  %v2541_v55 = vadd.f32 %v4485_v5, %v2540_v43 }
 0x1b1   : > { %v3236_v45 = vpack.c.bf16 %v4529_v41, %v4529_v41  ;;  %v4537_v39 = vmax.f32 %v2549_v42, 0.0 }
 0x1b2   : > { %v3234_v46 = vpack.c.bf16 %v4532_v44, %v4532_v44  ;;  %v4541_v48 = vmax.f32 %v2541_v55, 0.0  ;;  %v2849_v19 = vsel %vm2841_vm9, %v4532_v44, 0.0 }
 0x1b3   : > { %2815 = vst.msk [vmem:[%s4499_s10 + $0x18] sm:$0xf] %vm2808_vm4, %v3236_v45  ;;  %v3237_v50 = vpack.c.bf16 %v4537_v39, %v4537_v39  ;;  %v2850_v32 = vadd.f32 %v2849_v19, %v2848_v29 }
 0x1b4   : > { %2813 = vst.msk [vmem:[%s4499_s10 + $0x10] sm:$0xf] %vm2808_vm4, %v3234_v46  ;;  %v3235_v51 = vpack.c.bf16 %v4541_v48, %v4541_v48  ;;  %v2851_v34 = vsel %vm2841_vm9, %v4541_v48, 0.0 }
 0x1b5   : > { %2816 = vst.msk [vmem:[%s4499_s10 + $0x1c] sm:$0xf] %vm2808_vm4, %v3237_v50  ;;  %v2852_v46 = vadd.f32 %v2851_v34, %v2850_v32 }
 0x1b6   : > { %2814 = vst.msk [vmem:[%s4499_s10 + $0x14] sm:$0xf] %vm2808_vm4, %v3235_v51 }
 0x1cc   : > { %v3376_v53 = vpop.f32.mrb[8].mxu0 }
 0x1cd   : > { %v2562_v52 = vadd.f32 %v3376_v53, %v4485_v5  ;;  %v2553_v26 = vpop.f32.mrb[9].mxu0 }
 0x1ce   : > { %v2554_v22 = vadd.f32 %v4485_v5, %v2553_v26  ;;  %v3377_v35 = vpop.f32.mrb[10].mxu0 }
 0x1cf   : > { %v4557_v54 = vmax.f32 %v2562_v52, 0.0  ;;  %v2565_v56 = vadd.f32 %v3377_v35, %v4485_v5  ;;  %v2556_v23 = vpop.f32.mrb[11].mxu0 }
 0x1d0   : > { %v4560_v58 = vmax.f32 %v2554_v22, 0.0  ;;  %v2557_v60 = vadd.f32 %v4485_v5, %v2556_v23  ;;  %v2853_v22 = vsel %vm2841_vm9, %v4529_v41, 0.0  ;;  %v2855_v23 = vsel %vm2841_vm9, %v4537_v39, 0.0 }
 0x1d1   : > { %v3240_v25 = vpack.c.bf16 %v4557_v54, %v4557_v54  ;;  %v4565_v49 = vmax.f32 %v2565_v56, 0.0  ;;  %v2854_v56 = vadd.f32 %v2853_v22, %v2852_v46 }
 0x1d2   : > { %v3238_v63 = vpack.c.bf16 %v4560_v58, %v4560_v58  ;;  %v4569_v28 = vmax.f32 %v2557_v60, 0.0  ;;  %v2857_v60 = vsel %vm2841_vm9, %v4560_v58, 0.0 }
 0x1d3   : > { %2819 = vst.msk [vmem:[%s4499_s10 + $0x28] sm:$0xf] %vm2808_vm4, %v3240_v25  ;;  %v3241_v62 = vpack.c.bf16 %v4565_v49, %v4565_v49  ;;  %v2856_v25 = vadd.f32 %v2855_v23, %v2854_v56 }
 0x1d4   : > { %2817 = vst.msk [vmem:[%s4499_s10 + $0x20] sm:$0xf] %vm2808_vm4, %v3238_v63  ;;  %v3239_v47 = vpack.c.bf16 %v4569_v28, %v4569_v28 }
 0x1d5   : > { %2820 = vst.msk [vmem:[%s4499_s10 + $0x2c] sm:$0xf] %vm2808_vm4, %v3241_v62  ;;  %v2858_v63 = vadd.f32 %v2857_v60, %v2856_v25  ;;  %v2859_v62 = vsel %vm2841_vm9, %v4569_v28, 0.0 }
 0x1d6   : > { %2818 = vst.msk [vmem:[%s4499_s10 + $0x24] sm:$0xf] %vm2808_vm4, %v3239_v47 }
 0x1d7   : > { %v2860_v47 = vadd.f32 %v2859_v62, %v2858_v63 }
 0x1ec   : > { %v3380_v61 = vpop.f32.mrb[12].mxu0 }
 0x1ed   : > { %v2578_v57 = vadd.f32 %v3380_v61, %v4485_v5  ;;  %v2569_v0 = vpop.f32.mrb[13].mxu0  ;;  %v2861_v61 = vsel %vm2841_vm9, %v4557_v54, 0.0 }
 0x1ee   : > { %v2570_v59 = vadd.f32 %v4485_v5, %v2569_v0  ;;  %v3381_v37 = vpop.f32.mrb[14].mxu0  ;;  %v2863_v0 = vsel %vm2841_vm9, %v4565_v49, 0.0 }
 0x1ef   : > { %v4585_v6 = vmax.f32 %v2578_v57, 0.0  ;;  %v2581_v9 = vadd.f32 %v3381_v37, %v4485_v5  ;;  %v2572_v11 = vpop.f32.mrb[15].mxu0  ;;  %v2862_v57 = vadd.f32 %v2861_v61, %v2860_v47 }
 0x1f0   : > { %v4588_v12 = vmax.f32 %v2570_v59, 0.0  ;;  %v2573_v1 = vadd.f32 %v4485_v5, %v2572_v11 }
 0x1f1   : > { %v3244_v4 = vpack.c.bf16 %v4585_v6, %v4585_v6  ;;  %v4593_v14 = vmax.f32 %v2581_v9, 0.0  ;;  %v2864_v37 = vadd.f32 %v2863_v0, %v2862_v57  ;;  %v2869_v20 = vsel %vm2841_vm9, %v4585_v6, 0.0 }
 0x1f2   : > { %v3242_v3 = vpack.c.bf16 %v4588_v12, %v4588_v12  ;;  %v4597_v15 = vmax.f32 %v2573_v1, 0.0  ;;  %v2865_v59 = vsel %vm2841_vm9, %v4588_v12, 0.0 }
 0x1f3   : > { %2823 = vst.msk [vmem:[%s4499_s10 + $0x38] sm:$0xf] %vm2808_vm4, %v3244_v4  ;;  %v3245_v10 = vpack.c.bf16 %v4593_v14, %v4593_v14  ;;  %v2866_v9 = vadd.f32 %v2865_v59, %v2864_v37 }
 0x1f4   : > { %2821 = vst.msk [vmem:[%s4499_s10 + $0x30] sm:$0xf] %vm2808_vm4, %v3242_v3  ;;  %v3243_v2 = vpack.c.bf16 %v4597_v15, %v4597_v15  ;;  %v2867_v11 = vsel %vm2841_vm9, %v4597_v15, 0.0 }
 0x1f5   : > { %2824 = vst.msk [vmem:[%s4499_s10 + $0x3c] sm:$0xf] %vm2808_vm4, %v3245_v10  ;;  %v2868_v4 = vadd.f32 %v2867_v11, %v2866_v9 }
 0x1f6   : > { %2822 = vst.msk [vmem:[%s4499_s10 + $0x34] sm:$0xf] %vm2808_vm4, %v3243_v2 }
 0x1f7   : > { %v2870_v29 = vadd.f32 %v2869_v20, %v2868_v4 }
 0x20c   : > { %v3384_v31 = vpop.f32.mrb[0].mxu1 }
 0x20d   : > { %v2594_v30 = vadd.f32 %v3384_v31, %v4485_v5  ;;  %v2585_v33 = vpop.f32.mrb[1].mxu1 }
 0x20e   : > { %v2586_v36 = vadd.f32 %v4485_v5, %v2585_v33  ;;  %v3385_v38 = vpop.f32.mrb[2].mxu1 }
 0x20f   : > { %v4625_v40 = vmax.f32 %v2594_v30, 0.0  ;;  %v2597_v42 = vadd.f32 %v3385_v38, %v4485_v5  ;;  %v2588_v43 = vpop.f32.mrb[3].mxu1 }
 0x210   : > { %v4628_v55 = vmax.f32 %v2586_v36, 0.0  ;;  %v2589_v45 = vadd.f32 %v4485_v5, %v2588_v43  ;;  %v2871_v36 = vsel %vm2841_vm9, %v4593_v14, 0.0 }
 0x211   : > { %v3248_v50 = vpack.c.bf16 %v4625_v40, %v4625_v40  ;;  %v4633_v51 = vmax.f32 %v2597_v42, 0.0  ;;  %v2872_v43 = vadd.f32 %v2871_v36, %v2870_v29 }
 0x212   : > { %v3246_v53 = vpack.c.bf16 %v4628_v55, %v4628_v55  ;;  %v4637_v52 = vmax.f32 %v2589_v45, 0.0  ;;  %v2873_v38 = vsel %vm2841_vm9, %v4628_v55, 0.0 }
 0x213   : > { %2827 = vst.msk [vmem:[%s4499_s10 + $0x48] sm:$0xf] %vm2808_vm4, %v3248_v50  ;;  %v3249_v26 = vpack.c.bf16 %v4633_v51, %v4633_v51  ;;  %v2874_v45 = vadd.f32 %v2873_v38, %v2872_v43  ;;  %v2879_v22 = vsel %vm2841_vm9, %v4633_v51, 0.0 }
 0x214   : > { %2825 = vst.msk [vmem:[%s4499_s10 + $0x40] sm:$0xf] %vm2808_vm4, %v3246_v53  ;;  %v3247_v35 = vpack.c.bf16 %v4637_v52, %v4637_v52  ;;  %v2875_v46 = vsel %vm2841_vm9, %v4637_v52, 0.0  ;;  %v2877_v53 = vsel %vm2841_vm9, %v4625_v40, 0.0 }
 0x215   : > { %2828 = vst.msk [vmem:[%s4499_s10 + $0x4c] sm:$0xf] %vm2808_vm4, %v3249_v26  ;;  %v2876_v50 = vadd.f32 %v2875_v46, %v2874_v45 }
 0x216   : > { %2826 = vst.msk [vmem:[%s4499_s10 + $0x44] sm:$0xf] %vm2808_vm4, %v3247_v35 }
 0x217   : > { %v2878_v26 = vadd.f32 %v2877_v53, %v2876_v50 }
 0x219   : > { %v2880_v56 = vadd.f32 %v2879_v22, %v2878_v26 }
 0x22c   : > { %v3388_v1 = vpop.f32.mrb[4].mxu1 }
 0x22d   : > { %v2610_v3 = vadd.f32 %v3388_v1, %v4485_v5  ;;  %v2601_v10 = vpop.f32.mrb[5].mxu1 }
 0x22e   : > { %v2602_v2 = vadd.f32 %v4485_v5, %v2601_v10  ;;  %v3389_v17 = vpop.f32.mrb[6].mxu1 }
 0x22f   : > { %v4669_v16 = vmax.f32 %v2610_v3, 0.0  ;;  %v2613_v13 = vadd.f32 %v3389_v17, %v4485_v5  ;;  %v2604_v8 = vpop.f32.mrb[7].mxu1 }
 0x230   : > { %v4674_v21 = vmax.f32 %v2602_v2, 0.0  ;;  %v2605_v19 = vadd.f32 %v4485_v5, %v2604_v8 }
 0x231   : > { %v3252_v31 = vpack.c.bf16 %v4669_v16, %v4669_v16  ;;  %v4679_v32 = vmax.f32 %v2613_v13, 0.0  ;;  %v2885_v63 = vsel %vm2841_vm9, %v4669_v16, 0.0 }
 0x232   : > { %v3250_v30 = vpack.c.bf16 %v4674_v21, %v4674_v21  ;;  %v4683_v33 = vmax.f32 %v2605_v19, 0.0  ;;  %v2881_v35 = vsel %vm2841_vm9, %v4674_v21, 0.0 }
 0x233   : > { %2831 = vst.msk [vmem:[%s4499_s10 + $0x58] sm:$0xf] %vm2808_vm4, %v3252_v31  ;;  %v3253_v34 = vpack.c.bf16 %v4679_v32, %v4679_v32  ;;  %v2882_v23 = vadd.f32 %v2881_v35, %v2880_v56  ;;  %v2887_v1 = vsel %vm2841_vm9, %v4679_v32, 0.0 }
 0x234   : > { %2829 = vst.msk [vmem:[%s4499_s10 + $0x50] sm:$0xf] %vm2808_vm4, %v3250_v30  ;;  %v3251_v42 = vpack.c.bf16 %v4683_v33, %v4683_v33  ;;  %v2883_v60 = vsel %vm2841_vm9, %v4683_v33, 0.0 }
 0x235   : > { %2832 = vst.msk [vmem:[%s4499_s10 + $0x5c] sm:$0xf] %vm2808_vm4, %v3253_v34  ;;  %v2884_v25 = vadd.f32 %v2883_v60, %v2882_v23 }
 0x236   : > { %2830 = vst.msk [vmem:[%s4499_s10 + $0x54] sm:$0xf] %vm2808_vm4, %v3251_v42 }
 0x237   : > { %v2886_v47 = vadd.f32 %v2885_v63, %v2884_v25 }
 0x239   : > { %v2888_v2 = vadd.f32 %v2887_v1, %v2886_v47 }
 0x24c   : > { %v3392_v62 = vpop.f32.mrb[8].mxu1 }
 0x24d   : > { %v2626_v61 = vadd.f32 %v3392_v62, %v4485_v5  ;;  %v2617_v57 = vpop.f32.mrb[9].mxu1 }
 0x24e   : > { %v2618_v0 = vadd.f32 %v4485_v5, %v2617_v57  ;;  %v3393_v59 = vpop.f32.mrb[10].mxu1 }
 0x24f   : > { %v4715_v37 = vmax.f32 %v2626_v61, 0.0  ;;  %v2629_v9 = vadd.f32 %v3393_v59, %v4485_v5  ;;  %v2620_v11 = vpop.f32.mrb[11].mxu1 }
 0x250   : > { %v2672_v4 = vmax.f32 %v2618_v0, 0.0  ;;  %v2621_v3 = vadd.f32 %v4485_v5, %v2620_v11 }
 0x251   : > { %v3256_v10 = vpack.c.bf16 %v4715_v37, %v4715_v37  ;;  %v2675_v17 = vmax.f32 %v2629_v9, 0.0  ;;  %v2893_v36 = vsel %vm2841_vm9, %v4715_v37, 0.0 }
 0x252   : > { %v3254_v13 = vpack.c.bf16 %v2672_v4, %v2672_v4  ;;  %v2889_v8 = vsel %vm2841_vm9, %v2672_v4, 0.0  ;;  %v2673_v20 = vmax.f32 %v2621_v3, 0.0 }
 0x253   : > { %2835 = vst.msk [vmem:[%s4499_s10 + $0x68] sm:$0xf] %vm2808_vm4, %v3256_v10  ;;  %v2890_v19 = vadd.f32 %v2889_v8, %v2888_v2  ;;  %v3257_v29 = vpack.c.bf16 %v2675_v17, %v2675_v17  ;;  %v2895_v42 = vsel %vm2841_vm9, %v2675_v17, 0.0 }
 0x254   : > { %2833 = vst.msk [vmem:[%s4499_s10 + $0x60] sm:$0xf] %vm2808_vm4, %v3254_v13  ;;  %v3255_v31 = vpack.c.bf16 %v2673_v20, %v2673_v20  ;;  %v2891_v30 = vsel %vm2841_vm9, %v2673_v20, 0.0 }
 0x255   : > { %2836 = vst.msk [vmem:[%s4499_s10 + $0x6c] sm:$0xf] %vm2808_vm4, %v3257_v29  ;;  %v2892_v34 = vadd.f32 %v2891_v30, %v2890_v19 }
 0x256   : > { %2834 = vst.msk [vmem:[%s4499_s10 + $0x64] sm:$0xf] %vm2808_vm4, %v3255_v31 }
 0x257   : > { %v2894_v38 = vadd.f32 %v2893_v36, %v2892_v34 }
 0x259   : > { %v2896_v43 = vadd.f32 %v2895_v42, %v2894_v38 }
 0x26b   : > { %v3396_v45 = vpop.f32.mrb[12].mxu1 }
 0x26c   : > { %v2642_v46 = vadd.f32 %v3396_v45, %v4485_v5  ;;  %v2633_v50 = vpop.f32.mrb[13].mxu1 }
 0x26d   : > { %v2634_v53 = vadd.f32 %v4485_v5, %v2633_v50  ;;  %v3397_v26 = vpop.f32.mrb[14].mxu1 }
 0x26e   : > { %v2678_v22 = vmax.f32 %v2642_v46, 0.0  ;;  %v2645_v35 = vadd.f32 %v3397_v26, %v4485_v5  ;;  %v2636_v56 = vpop.f32.mrb[15].mxu1 }
 0x26f   : > { %v2676_v23 = vmax.f32 %v2634_v53, 0.0  ;;  %v2637_v60 = vadd.f32 %v4485_v5, %v2636_v56 }
 0x270   : > { %v3260_v25 = vpack.c.bf16 %v2678_v22, %v2678_v22  ;;  %v2679_v63 = vmax.f32 %v2645_v35, 0.0  ;;  %v2901_v5 = vsel %vm2841_vm9, %v2678_v22, 0.0 }
 0x271   : > { %v3258_v62 = vpack.c.bf16 %v2676_v23, %v2676_v23  ;;  %v2897_v47 = vsel %vm2841_vm9, %v2676_v23, 0.0  ;;  %v2677_v61 = vmax.f32 %v2637_v60, 0.0 }
 0x272   : > { %2839 = vst.msk [vmem:[%s4499_s10 + $0x78] sm:$0xf] %vm2808_vm4, %v3260_v25  ;;  %v2898_v57 = vadd.f32 %v2897_v47, %v2896_v43  ;;  %v3261_v0 = vpack.c.bf16 %v2679_v63, %v2679_v63  ;;  %v2903_v3 = vsel %vm2841_vm9, %v2679_v63, 0.0 }
 0x273   : > { %2837 = vst.msk [vmem:[%s4499_s10 + $0x70] sm:$0xf] %vm2808_vm4, %v3258_v62  ;;  %v3259_v59 = vpack.c.bf16 %v2677_v61, %v2677_v61  ;;  %v2899_v9 = vsel %vm2841_vm9, %v2677_v61, 0.0 }
 0x274   : > { %2840 = vst.msk [vmem:[%s4499_s10 + $0x7c] sm:$0xf] %vm2808_vm4, %v3261_v0  ;;  %v2900_v11 = vadd.f32 %v2899_v9, %v2898_v57 }
 0x275   : > { %2838 = vst.msk [vmem:[%s4499_s10 + $0x74] sm:$0xf] %vm2808_vm4, %v3259_v59 }
 0x276   : > { %v2902_v1 = vadd.f32 %v2901_v5, %v2900_v11 }
 0x278   : > { %v2904_v10 = vadd.f32 %v2903_v3, %v2902_v1 }
 0x27a   : > { %v2905_v2 = vrot.slane %v2904_v10, 4 }
 0x27c   : > { %v2906_v13 = vadd.f32 %v2905_v2, %v2904_v10 }
 0x27e   : > { %v2907_v8 = vrot.slane %v2906_v13, 2 }
 0x280   : > { %v2908_v19 = vadd.f32 %v2907_v8, %v2906_v13 }
 0x282   : > { %v2909_v29 = vrot.slane %v2908_v19, 1 }
 0x284   : > { %v2910_v31 = vadd.f32 %v2909_v29, %v2908_v19 }
 0x286   : > { %v4756_v30 = vmul.f32 0.00390625, %v2910_v31 }
 0x288   : > { %2914 = vst.msk [vmem:[%s306_s12] sm:$0x1] %vm2913_vm11, %v4756_v30  ;;  %v4761_v34 = vsub.f32 %v2672_v4, %v4756_v30  ;;  %v4764_v36 = vsub.f32 %v2673_v20, %v4756_v30  ;;  %v4768_v38 = vsub.f32 %v4715_v37, %v4756_v30  ;;  %v4771_v42 = vsub.f32 %v2675_v17, %v4756_v30 }
 0x289   : > { %v4774_v43 = vsub.f32 %v2676_v23, %v4756_v30  ;;  %v4777_v45 = vsub.f32 %v2677_v61, %v4756_v30  ;;  %v4780_v46 = vsub.f32 %v2678_v22, %v4756_v30  ;;  %v4783_v4 = vsub.f32 %v2679_v63, %v4756_v30 }
 0x28a   : > { %v2915_v20 = vsub.f32 %v4501_v24, %v4756_v30  ;;  %v2916_v37 = vsub.f32 %v4511_v27, %v4756_v30  ;;  %v2917_v17 = vsub.f32 %v4491_v18, %v4756_v30  ;;  %v2918_v50 = vsub.f32 %v4507_v7, %v4756_v30 }
 0x28b   : > { %v2919_v22 = vsub.f32 %v4532_v44, %v4756_v30  ;;  %v2920_v56 = vsub.f32 %v4541_v48, %v4756_v30  ;;  %v2921_v18 = vsub.f32 %v4529_v41, %v4756_v30  ;;  %v2922_v44 = vsub.f32 %v4537_v39, %v4756_v30 }
 0x28c   : > { %v2947_v53 = vmul.f32 %v2915_v20, %v2915_v20  ;;  %v2948_v26 = vmul.f32 %v2916_v37, %v2916_v37  ;;  %v2949_v35 = vmul.f32 %v2917_v17, %v2917_v17  ;;  %v2950_v23 = vmul.f32 %v2918_v50, %v2918_v50 }
 0x28d   : > { %v2951_v25 = vmul.f32 %v2919_v22, %v2919_v22  ;;  %v2952_v62 = vmul.f32 %v2920_v56, %v2920_v56  ;;  %v2923_v61 = vsub.f32 %v4560_v58, %v4756_v30  ;;  %v2953_v57 = vmul.f32 %v2921_v18, %v2921_v18 }
 0x28e   : > { %v2979_v24 = vsel %vm2841_vm9, %v2947_v53, 0.0  ;;  %v2980_v27 = vsel %vm2841_vm9, %v2948_v26, 0.0  ;;  %v2982_v7 = vsel %vm2841_vm9, %v2949_v35, 0.0  ;;  %v2984_v47 = vsel %vm2841_vm9, %v2950_v23, 0.0 }
 0x28f   : > { %v2981_v60 = vadd.f32 %v2980_v27, %v2979_v24  ;;  %v2986_v0 = vsel %vm2841_vm9, %v2951_v25, 0.0  ;;  %v2924_v41 = vsub.f32 %v4569_v28, %v4756_v30  ;;  %v2954_v9 = vmul.f32 %v2922_v44, %v2922_v44 }
 0x290   : > { %v2988_v11 = vsel %vm2841_vm9, %v2952_v62, 0.0  ;;  %v2925_v39 = vsub.f32 %v4557_v54, %v4756_v30  ;;  %v2955_v1 = vmul.f32 %v2923_v61, %v2923_v61  ;;  %v2990_v3 = vsel %vm2841_vm9, %v2953_v57, 0.0 }
 0x291   : > { %v2983_v63 = vadd.f32 %v2982_v7, %v2981_v60  ;;  %v2926_v58 = vsub.f32 %v4565_v49, %v4756_v30  ;;  %v2956_v2 = vmul.f32 %v2924_v41, %v2924_v41  ;;  %v2992_v13 = vsel %vm2841_vm9, %v2954_v9, 0.0 }
 0x292   : > { %v2927_v28 = vsub.f32 %v4588_v12, %v4756_v30  ;;  %v2957_v19 = vmul.f32 %v2925_v39, %v2925_v39  ;;  %v2994_v29 = vsel %vm2841_vm9, %v2955_v1, 0.0  ;;  %v2928_v54 = vsub.f32 %v4597_v15, %v4756_v30 }
 0x293   : > { %v2985_v48 = vadd.f32 %v2984_v47, %v2983_v63  ;;  %v2958_v20 = vmul.f32 %v2926_v58, %v2926_v58  ;;  %v2996_v37 = vsel %vm2841_vm9, %v2956_v2, 0.0  ;;  %v2929_v49 = vsub.f32 %v4585_v6, %v4756_v30 }
 0x294   : > { %v2959_v50 = vmul.f32 %v2927_v28, %v2927_v28  ;;  %v2998_v53 = vsel %vm2841_vm9, %v2957_v19, 0.0  ;;  %v2930_v12 = vsub.f32 %v4593_v14, %v4756_v30  ;;  %v2960_v22 = vmul.f32 %v2928_v54, %v2928_v54 }
 0x295   : > { %v2987_v59 = vadd.f32 %v2986_v0, %v2985_v48  ;;  %v3000_v35 = vsel %vm2841_vm9, %v2958_v20, 0.0  ;;  %v2931_v15 = vsub.f32 %v4628_v55, %v4756_v30  ;;  %v2961_v23 = vmul.f32 %v2929_v49, %v2929_v49 }
 0x296   : > { %v3002_v24 = vsel %vm2841_vm9, %v2959_v50, 0.0  ;;  %v2932_v6 = vsub.f32 %v4637_v52, %v4756_v30  ;;  %v2962_v60 = vmul.f32 %v2930_v12, %v2930_v12  ;;  %v3004_v18 = vsel %vm2841_vm9, %v2960_v22, 0.0 }
 0x297   : > { %v2989_v5 = vadd.f32 %v2988_v11, %v2987_v59  ;;  %v2933_v14 = vsub.f32 %v4625_v40, %v4756_v30  ;;  %v2963_v7 = vmul.f32 %v2931_v15, %v2931_v15  ;;  %v3006_v63 = vsel %vm2841_vm9, %v2961_v23, 0.0 }
 0x298   : > { %v2934_v55 = vsub.f32 %v4633_v51, %v4756_v30  ;;  %v2964_v62 = vmul.f32 %v2932_v6, %v2932_v6  ;;  %v3008_v47 = vsel %vm2841_vm9, %v2962_v60, 0.0  ;;  %v2935_v52 = vsub.f32 %v4674_v21, %v4756_v30 }
 0x299   : > { %v2991_v10 = vadd.f32 %v2990_v3, %v2989_v5  ;;  %v2965_v61 = vmul.f32 %v2933_v14, %v2933_v14  ;;  %v3010_v57 = vsel %vm2841_vm9, %v2963_v7, 0.0  ;;  %v2936_v40 = vsub.f32 %v4683_v33, %v4756_v30 }
 0x29a   : > { %v2966_v59 = vmul.f32 %v2934_v55, %v2934_v55  ;;  %v3012_v41 = vsel %vm2841_vm9, %v2964_v62, 0.0  ;;  %v2937_v51 = vsub.f32 %v4669_v16, %v4756_v30  ;;  %v2967_v11 = vmul.f32 %v2935_v52, %v2935_v52 }
 0x29b   : > { %v2993_v8 = vadd.f32 %v2992_v13, %v2991_v10  ;;  %v3014_v5 = vsel %vm2841_vm9, %v2965_v61, 0.0  ;;  %v2938_v21 = vsub.f32 %v4679_v32, %v4756_v30  ;;  %v2968_v1 = vmul.f32 %v2936_v40, %v2936_v40 }
 0x29c   : > { %v3016_v3 = vsel %vm2841_vm9, %v2966_v59, 0.0  ;;  %v2969_v58 = vmul.f32 %v2937_v51, %v2937_v51  ;;  %v3018_v33 = vsel %vm2841_vm9, %v2967_v11, 0.0  ;;  %v2971_v16 = vmul.f32 %v4761_v34, %v4761_v34 }
 0x29d   : > { %v2995_v31 = vadd.f32 %v2994_v29, %v2993_v8  ;;  %v2970_v13 = vmul.f32 %v2938_v21, %v2938_v21  ;;  %v3020_v8 = vsel %vm2841_vm9, %v2968_v1, 0.0  ;;  %v2972_v32 = vmul.f32 %v4764_v36, %v4764_v36 }
 0x29e   : > { %v3022_v19 = vsel %vm2841_vm9, %v2969_v58, 0.0  ;;  %v2973_v54 = vmul.f32 %v4768_v38, %v4768_v38  ;;  %v3026_v20 = vsel %vm2841_vm9, %v2971_v16, 0.0  ;;  %v2975_v50 = vmul.f32 %v4774_v43, %v4774_v43 }
 0x29f   : > { %v2997_v17 = vadd.f32 %v2996_v37, %v2995_v31  ;;  %v3024_v30 = vsel %vm2841_vm9, %v2970_v13, 0.0  ;;  %v3028_v34 = vsel %vm2841_vm9, %v2972_v32, 0.0  ;;  %v2977_v22 = vmul.f32 %v4780_v46, %v4780_v46 }
 0x2a0   : > { %v3030_v36 = vsel %vm2841_vm9, %v2973_v54, 0.0 }
 0x2a1   : > { %v2999_v26 = vadd.f32 %v2998_v53, %v2997_v17  ;;  %v2974_v17 = vmul.f32 %v4771_v42, %v4771_v42  ;;  %v3034_v42 = vsel %vm2841_vm9, %v2975_v50, 0.0  ;;  %v3038_v23 = vsel %vm2841_vm9, %v2977_v22, 0.0 }
 0x2a3   : > { %v3001_v56 = vadd.f32 %v3000_v35, %v2999_v26  ;;  %v2976_v26 = vmul.f32 %v4777_v45, %v4777_v45  ;;  %v3032_v38 = vsel %vm2841_vm9, %v2974_v17, 0.0 }
 0x2a5   : > { %v3003_v27 = vadd.f32 %v3002_v24, %v3001_v56  ;;  %v2978_v56 = vmul.f32 %v4783_v4, %v4783_v4  ;;  %v3036_v43 = vsel %vm2841_vm9, %v2976_v26, 0.0 }
 0x2a7   : > { %v3005_v25 = vadd.f32 %v3004_v18, %v3003_v27  ;;  %v3040_v45 = vsel %vm2841_vm9, %v2978_v56, 0.0 }
 0x2a9   : > { %v3007_v44 = vadd.f32 %v3006_v63, %v3005_v25 }
 0x2ab   : > { %v3009_v48 = vadd.f32 %v3008_v47, %v3007_v44 }
 0x2ad   : > { %v3011_v0 = vadd.f32 %v3010_v57, %v3009_v48 }
 0x2af   : > { %v3013_v9 = vadd.f32 %v3012_v41, %v3011_v0 }
 0x2b1   : > { %v3015_v39 = vadd.f32 %v3014_v5, %v3013_v9 }
 0x2b3   : > { %v3017_v10 = vadd.f32 %v3016_v3, %v3015_v39 }
 0x2b5   : > { %v3019_v2 = vadd.f32 %v3018_v33, %v3017_v10 }
 0x2b7   : > { %v3021_v28 = vadd.f32 %v3020_v8, %v3019_v2 }
 0x2b9   : > { %v3023_v29 = vadd.f32 %v3022_v19, %v3021_v28 }
 0x2bb   : > { %v3025_v31 = vadd.f32 %v3024_v30, %v3023_v29 }
 0x2bd   : > { %v3027_v37 = vadd.f32 %v3026_v20, %v3025_v31 }
 0x2bf   : > { %v3029_v49 = vadd.f32 %v3028_v34, %v3027_v37 }
 0x2c1   : > { %v3031_v53 = vadd.f32 %v3030_v36, %v3029_v49 }
 0x2c3   : > { %v3033_v12 = vadd.f32 %v3032_v38, %v3031_v53 }
 0x2c5   : > { %v3035_v35 = vadd.f32 %v3034_v42, %v3033_v12 }
 0x2c7   : > { %v3037_v15 = vadd.f32 %v3036_v43, %v3035_v35 }
 0x2c9   : > { %v3039_v24 = vadd.f32 %v3038_v23, %v3037_v15 }
 0x2cb   : > { %v3041_v27 = vadd.f32 %v3040_v45, %v3039_v24 }
 0x2cd   : > { %v3042_v6 = vrot.slane %v3041_v27, 4 }
 0x2cf   : > { %v3043_v60 = vadd.f32 %v3042_v6, %v3041_v27 }
 0x2d1   : > { %v3044_v18 = vrot.slane %v3043_v60, 2 }
 0x2d3   : > { %v3045_v25 = vadd.f32 %v3044_v18, %v3043_v60 }
 0x2d5   : > { %v3046_v46 = vrot.slane %v3045_v25, 1 }
 0x2d7   : > { %v3047_v14 = vadd.f32 %v3046_v46, %v3045_v25 }
 0x2d9   : > { %3048 = vst.msk [vmem:[%s309_s15] sm:$0x1] %vm2913_vm11, %v3047_v14 }
 0x2da PF: > { %s18_s24 = sadd.s32 1, %s3432_s24  }
 0x2db   : > { %p15_p4 = scmp.ge.s32.totalorder %s18_s24, 4  }
 0x2dd   :  { %17 = sbr.rel (!%p15_p4) target bundleno = 1 (0x1), region = 97 }

// kernel: block_forward_pallas.4
= control target key start
LH: loop header
LB: loop body
LE: loop exit
PB: predicated region body
PF: predicated region fallthrough
CT: control target
= control target key end

     0   :  { %s3511_s24 = smov 0   ;;  %s4924_s0 = inlined_call_operand.vmem [shape: bf16[2,256,8], index: 0, kind: input, shape index: {}]   ;;  %s4925_s1 = inlined_call_operand.vmem [shape: f32[1,8], index: 1, kind: input, shape index: {}]   ;;  %s4926_s2 = inlined_call_operand.vmem [shape: f32[2,1,8], index: 2, kind: input, shape index: {}]   ;;  %s4927_s3 = inlined_call_operand.vmem [shape: bf16[72,8], index: 3, kind: input, shape index: {}]   ;;  %s4928_s4 = inlined_call_operand.vmem [shape: f32[1,8], index: 4, kind: input, shape index: {}]   ;;  %s4929_s5 = inlined_call_operand.vmem [shape: bf16[2,256,8], index: 5, kind: output, shape index: {0}]   ;;  %s4930_s6 = inlined_call_operand.vmem [shape: f32[2,1,8], index: 6, kind: output, shape index: {1}]   ;;  %s4931_s7 = inlined_call_operand.vmem [shape: f32[2,1,8], index: 7, kind: output, shape index: {2}]  }
   0x1 LB: > { %s3177_s25 = sadd.s32 4294967295, %s3460_s24   ;;  %p3181_p0 = scmp.ge.s32.totalorder %s3460_s24, 1  ;;  %s3460_s24 = sphi %s3511_s24, %s18_s24  }
   0x2   : > { %p250_p1 = scmp.lt.s32.totalorder %s3460_s24, 3 }
   0x4   : > { %p251_p2 = pnand %p3181_p0, %p250_p1 }
   0x5   : > { %vm311_vm0 = vcmask (!%p251_p2), 64512   ;;  %vm314_vm1 = vcmask (!%p251_p2), 57344   ;;  %p291_p3 = scmp.lt.s32.totalorder (!%p251_p2), %s3177_s25, 1  ;;  %v3462_v0 = vmov (!%p251_p2), 0.0   ;;  %v494_v1 = vlaneseq (!%p251_p2)  ;;  %v3546_v2 = vld [vmem:[%s4925_s1] ss:$0 sm:$0xff] (!%p251_p2) }
   0x6   : > { %254 = sbr.rel (%p251_p2) target bundleno = 730 (0x2da), region = 40  ;;  %312 = vst.msk [vmem:[#allocation2] sm:$0xff] (!%p251_p2), %vm311_vm0, %v3462_v0  ;;  %313 = vst.msk [vmem:[#allocation2 + $0x8] sm:$0xff] (!%p251_p2), %vm311_vm0, %v3462_v0  ;;  %s3463_s12 = smov (!%p251_p2), 8   ;;  %vm2499_vm10 = vcmask (!%p251_p2), 1043456  }
   0x7   : > { %315 = vst.msk [vmem:[#allocation2 + $0x10] sm:$0x1] (!%p251_p2), %vm314_vm1, %v3462_v0  ;;  %v3553_v15 = vshrl.u32 (!%p251_p2), %v494_v1, 7  ;;  %s3464_s13 = smov (!%p251_p2), 32   ;;  %s3465_s14 = smov (!%p251_p2), 56  }
   0x8   : > { %490 = vst.msk [vmem:[#allocation2 + $0x111] sm:$0xff] (!%p251_p2), %vm311_vm0, %v3462_v0  ;;  %491 = vst.msk [vmem:[#allocation2 + $0x119] sm:$0xff] (!%p251_p2), %vm311_vm0, %v3462_v0  ;;  %s3466_s15 = smov (!%p251_p2), 16   ;;  %s3467_s20 = smov (!%p251_p2), 24  }
   0x9   : > { %v496_v32 = vadd.s32 (!%p251_p2), 8, %v3553_v15  ;;  %v498_v43 = vadd.s32 (!%p251_p2), 24, %v3553_v15  ;;  %v497_v53 = vadd.s32 (!%p251_p2), 16, %v3553_v15  ;;  %v531_v1 = vand.u32 (!%p251_p2), 15, %v3553_v15  ;;  %s3468_s23 = smov (!%p251_p2), 40   ;;  %s3470_s30 = smov (!%p251_p2), 64  }
   0xb   : > { %v538_v42 = vand.u32 (!%p251_p2), 15, %v496_v32  ;;  %v552_v60 = vand.u32 (!%p251_p2), 15, %v498_v43  ;;  %vm3617_vm4 = vcmp.ne.s32.totalorder (!%p251_p2), %v531_v1, 0 }
   0xd   : > { %s4997_s25 = smov (!%p291_p3, %s3177_s25), 1  ;;  %v1135_v11 = vld [vmem:[#allocation2 + $0x1] sm:$0xff]  ;;  %vm3596_vm2 = vcmp.ne.s32.totalorder %v538_v42, 15  ;;  %vm3612_vm3 = vcmp.ne.s32.totalorder %v552_v60, 15 }
   0xe   : > { %s3244_s26 = sshll.u32 %s4997_s25, 7  ;;  %s298_s29 = scalar_lea.vmem %s4926_s2, %s4997_s25  ;;  %v1136_v12 = vld [vmem:[#allocation2 + $0x9] sm:$0xff] }
   0xf   : > { %s3541_s9 = scalar_lea.vmem %s4924_s0, %s3244_s26  ;;  %v3551_v8 = vld [vmem:[%s298_s29] ss:$0 sm:$0xff]  ;;  %v1167_v17 = vpack.c.bf16 %v1136_v12, %v1135_v11  ;;  %s3469_s29 = smov 48  }
  0x10   : > { %v3342_v3 = vld [vmem:[%s3541_s9 + $0x8] sm:$0xff]   ;;  %v3279_v4 = vld [vmem:[%s3541_s9] sm:$0xff]   ;;  %v3343_v5 = vld [vmem:[%s3541_s9 + $0x10] sm:$0xff]   ;;  %s306_s16 = scalar_lea.vmem %s4930_s6, %s4997_s25  ;;  %s309_s19 = scalar_lea.vmem %s4931_s7, %s4997_s25 }
  0x11   : > { %v3284_v6 = vunpack.c.l.bf16 %v3342_v3  ;;  %v3285_v7 = vunpack.c.h.bf16 %v3342_v3  ;;  %v3280_v9 = vunpack.c.l.bf16 %v3279_v4  ;;  %v3281_v10 = vunpack.c.h.bf16 %v3279_v4  ;;  %v3344_v16 = vld [vmem:[%s3541_s9 + $0x18] sm:$0xff]   ;;  %v3345_v24 = vld [vmem:[%s3541_s9 + $0x20] sm:$0xff]   ;;  %1199 = vrot.lane.b32.xlu0 %v1167_v17, %s3463_s12  ;;  %v3346_v37 = vld [vmem:[%s3541_s9 + $0x28] sm:$0xff]  }
  0x12   : > { %v3288_v13 = vunpack.c.l.bf16 %v3343_v5  ;;  %v3289_v14 = vunpack.c.h.bf16 %v3343_v5  ;;  %v3292_v28 = vunpack.c.l.bf16 %v3344_v16  ;;  %v3293_v34 = vunpack.c.h.bf16 %v3344_v16  ;;  %v1264_v5 = vld [vmem:[#allocation2 + $0x2] sm:$0xff]  ;;  %v3347_v11 = vld [vmem:[%s3541_s9 + $0x30] sm:$0xff]  }
  0x13   : > { %v389_v18 = vmul.f32 %v3284_v6, %v3546_v2  ;;  %v390_v19 = vmul.f32 %v3285_v7, %v3546_v2  ;;  %v387_v20 = vmul.f32 %v3280_v9, %v3546_v2  ;;  %v388_v21 = vmul.f32 %v3281_v10, %v3546_v2 }
  0x14   : > { %v391_v22 = vmul.f32 %v3288_v13, %v3546_v2  ;;  %v392_v23 = vmul.f32 %v3289_v14, %v3546_v2  ;;  %v393_v33 = vmul.f32 %v3292_v28, %v3546_v2  ;;  %v3296_v35 = vunpack.c.l.bf16 %v3345_v24 }
  0x15   : > { %v428_v25 = vadd.f32 %v3551_v8, %v389_v18  ;;  %v429_v26 = vadd.f32 %v3551_v8, %v390_v19  ;;  %v426_v27 = vadd.f32 %v3551_v8, %v387_v20  ;;  %v427_v29 = vadd.f32 %v3551_v8, %v388_v21 }
  0x16   : > { %v430_v30 = vadd.f32 %v3551_v8, %v391_v22  ;;  %v431_v31 = vadd.f32 %v3551_v8, %v392_v23  ;;  %v3297_v36 = vunpack.c.h.bf16 %v3345_v24  ;;  %v432_v38 = vadd.f32 %v3551_v8, %v393_v33  ;;  %v3348_v33 = vld [vmem:[%s3541_s9 + $0x38] sm:$0xff]  }
  0x17   : > { %460 = vst.msk [vmem:[#allocation2 + $0x21] sm:$0xff] %vm311_vm0, %v428_v25  ;;  %461 = vst.msk [vmem:[#allocation2 + $0x29] sm:$0xff] %vm311_vm0, %v429_v26  ;;  %v394_v39 = vmul.f32 %v3293_v34, %v3546_v2  ;;  %v395_v40 = vmul.f32 %v3296_v35, %v3546_v2  ;;  %v3300_v44 = vunpack.c.l.bf16 %v3346_v37  ;;  %v3301_v48 = vunpack.c.h.bf16 %v3346_v37 }
  0x18   : > { %458 = vst.msk [vmem:[#allocation2 + $0x11] sm:$0xff] %vm311_vm0, %v426_v27  ;;  %459 = vst.msk [vmem:[#allocation2 + $0x19] sm:$0xff] %vm311_vm0, %v427_v29  ;;  %v396_v41 = vmul.f32 %v3297_v36, %v3546_v2  ;;  %v545_v10 = vand.u32 15, %v497_v53  ;;  %v3304_v18 = vunpack.c.l.bf16 %v3347_v11  ;;  %v3305_v28 = vunpack.c.h.bf16 %v3347_v11  ;;  %v3449_v29 = vld [vmem:[%s4927_s3] sm:$0xff]  }
  0x19   : > { %462 = vst.msk [vmem:[#allocation2 + $0x31] sm:$0xff] %vm311_vm0, %v430_v30  ;;  %463 = vst.msk [vmem:[#allocation2 + $0x39] sm:$0xff] %vm311_vm0, %v431_v31  ;;  %v433_v45 = vadd.f32 %v3551_v8, %v394_v39  ;;  %v434_v46 = vadd.f32 %v3551_v8, %v395_v40  ;;  %v397_v49 = vmul.f32 %v3300_v44, %v3546_v2  ;;  %v3450_v30 = vld [vmem:[%s4927_s3 + $0x8] sm:$0xff]   ;;  %3378 = vmatprep.subr.bf16.mxu0 %v3449_v29 }
  0x1a   : > { %464 = vst.msk [vmem:[#allocation2 + $0x41] sm:$0xff] %vm311_vm0, %v432_v38  ;;  %v435_v47 = vadd.f32 %v3551_v8, %v396_v41  ;;  %v398_v54 = vmul.f32 %v3301_v48, %v3546_v2  ;;  %vm3633_vm5 = vcmp.ne.s32.totalorder %v545_v10, 0  ;;  %v399_v27 = vmul.f32 %v3304_v18, %v3546_v2  ;;  %3420 = vmatprep.subr.bf16.mxu1 %v3449_v29  ;;  %v3451_v41 = vld [vmem:[%s4927_s3 + $0x10] sm:$0xff]  }
  0x1b   : > { %465 = vst.msk [vmem:[#allocation2 + $0x49] sm:$0xff] %vm311_vm0, %v433_v45  ;;  %466 = vst.msk [vmem:[#allocation2 + $0x51] sm:$0xff] %vm311_vm0, %v434_v46  ;;  %v436_v61 = vadd.f32 %v3551_v8, %v397_v49  ;;  %3379 = vmatpush3.bf16.msra.mxu0 %v3449_v29  ;;  %v400_v40 = vmul.f32 %v3305_v28, %v3546_v2  ;;  %v3308_v43 = vunpack.c.l.bf16 %v3348_v33  ;;  %3425 = vmatpush3.bf16.msra.mxu1 %v3449_v29  ;;  %v975_v46 = vld [vmem:[#allocation2] sm:$0xff] }
  0x1c   : > { %467 = vst.msk [vmem:[#allocation2 + $0x59] sm:$0xff] %vm311_vm0, %v435_v47  ;;  %v437_v3 = vadd.f32 %v3551_v8, %v398_v54  ;;  %v438_v39 = vadd.f32 %v3551_v8, %v399_v27  ;;  %3380 = vmatprep.subr.bf16.mxu0 %v3450_v30  ;;  %v500_v44 = vadd.s32 40, %v3553_v15  ;;  %3421 = vmatprep.subr.bf16.mxu1 %v3450_v30  ;;  %v502_v54 = vadd.s32 56, %v3553_v15 }
  0x1d   : > { %468 = vst.msk [vmem:[#allocation2 + $0x61] sm:$0xff] %vm311_vm0, %v436_v61  ;;  %v439_v45 = vadd.f32 %v3551_v8, %v400_v40  ;;  %v3354_v40 = vld [vmem:[%s3541_s9 + $0x68] sm:$0xff]  }
  0x1e   : > { %v1652_v50 = vld [vmem:[#allocation2 + $0x21] sm:$0xff]  ;;  %v1653_v51 = vld [vmem:[#allocation2 + $0x29] sm:$0xff]  ;;  %469 = vst.msk [vmem:[#allocation2 + $0x69] sm:$0xff] %vm311_vm0, %v437_v3  ;;  %470 = vst.msk [vmem:[#allocation2 + $0x71] sm:$0xff] %vm311_vm0, %v438_v39  ;;  %v566_v3 = vand.u32 15, %v500_v44 }
  0x1f   : > { %v1137_v52 = vld [vmem:[#allocation2 + $0x11] sm:$0xff]  ;;  %v3594_v55 = vpack.c.bf16 %v1653_v51, %v1652_v50  ;;  %v1138_v56 = vld [vmem:[#allocation2 + $0x19] sm:$0xff]  ;;  %v3643_v25 = vld [vmem:[#allocation2 + $0x28] sm:$0xff]  ;;  %v401_v50 = vmul.f32 %v3308_v43, %v3546_v2  ;;  %v3309_v51 = vunpack.c.h.bf16 %v3348_v33  ;;  %3381 = vmatpush3.bf16.msra.mxu0 %v3450_v30  ;;  %471 = vst.msk [vmem:[#allocation2 + $0x79] sm:$0xff] %vm311_vm0, %v439_v45  ;;  %3426 = vmatpush3.bf16.msra.mxu1 %v3450_v30 }
  0x20   : > { %v2103_v57 = vld [vmem:[#allocation2 + $0x31] sm:$0xff]  ;;  %v2104_v58 = vld [vmem:[#allocation2 + $0x39] sm:$0xff]  ;;  %v1168_v62 = vpack.c.bf16 %v1138_v56, %v1137_v52  ;;  %v3663_v36 = vld [vmem:[#allocation2 + $0x22] sm:$0xff]  ;;  %3382 = vmatprep.subr.bf16.mxu0 %v3451_v41  ;;  %3422 = vmatprep.subr.bf16.mxu1 %v3451_v41  ;;  %vm3728_vm6 = vcmp.ne.s32.totalorder %v566_v3, 15 }
  0x21   : > { %v1265_v63 = vld [vmem:[#allocation2 + $0xa] sm:$0xff]  ;;  %1716 = vrot.lane.b32.xlu1 %v3594_v55, %s3464_s13  ;;  %v3605_v4 = vpack.c.bf16 %v2104_v58, %v2103_v57  ;;  %v1267_v9 = vld [vmem:[#allocation2 + $0x1a] sm:$0xff]  ;;  %v1266_v16 = vld [vmem:[#allocation2 + $0x12] sm:$0xff]  ;;  %v440_v60 = vadd.f32 %v3551_v8, %v401_v50  ;;  %v402_v61 = vmul.f32 %v3309_v51, %v3546_v2 }
  0x22   : > { %1201 = vrot.lane.b32.xlu0 %v1168_v62, %s3463_s12  ;;  %v1361_v6 = vsel %vm3596_vm2, %v1265_v63, 0.0  ;;  %v3621_v13 = vld [vmem:[#allocation2 + $0x10] sm:$0xff]  ;;  %v1363_v17 = vsel %vm3612_vm3, %v1267_v9, 0.0  ;;  %v3628_v19 = vld [vmem:[#allocation2 + $0x18] sm:$0xff]  ;;  %v3637_v22 = vld [vmem:[#allocation2 + $0x20] sm:$0xff]  ;;  %v1812_v31 = vsel %vm3596_vm2, %v1267_v9, 0.0 }
  0x23   : > { %v1392_v14 = vpack.c.bf16 %v1361_v6, %v1264_v5  ;;  %v1521_v20 = vsel %vm3617_vm4, %v3621_v13, 0.0  ;;  %v1393_v23 = vpack.c.bf16 %v1363_v17, %v1266_v16  ;;  %v1523_v26 = vsel %vm3633_vm5, %v3637_v22, 0.0  ;;  %v3657_v32 = vld [vmem:[#allocation2 + $0x2a] sm:$0xff]  ;;  %v3683_v48 = vld [vmem:[#allocation2 + $0x38] sm:$0xff]  ;;  %v3349_v56 = vld [vmem:[%s3541_s9 + $0x40] sm:$0xff]   ;;  %472 = vst.msk [vmem:[#allocation2 + $0x81] sm:$0xff] %vm311_vm0, %v440_v60  ;;  %3383 = vmatpush3.bf16.msra.mxu0 %v3451_v41  ;;  %3427 = vmatpush3.bf16.msra.mxu1 %v3451_v41 }
  0x24   : > { %v1553_v24 = vpack.c.bf16 %v3628_v19, %v1521_v20  ;;  %v1554_v34 = vpack.c.bf16 %v3643_v25, %v1523_v26  ;;  %v1843_v35 = vpack.c.bf16 %v1812_v31, %v1266_v16  ;;  %v1814_v37 = vsel %vm3612_vm3, %v3657_v32, 0.0  ;;  %v3668_v38 = vld [vmem:[#allocation2 + $0x30] sm:$0xff]  ;;  %v976_v52 = vld [vmem:[#allocation2 + $0x8] sm:$0xff]  ;;  %v3452_v57 = vld [vmem:[%s4927_s3 + $0x18] sm:$0xff]  }
  0x25   : > { %2167 = vrot.lane.b32.xlu1 %v3605_v4, %s3465_s14  ;;  %v1972_v42 = vsel %vm3617_vm4, %v3637_v22, 0.0  ;;  %v1844_v47 = vpack.c.bf16 %v1814_v37, %v3663_v36  ;;  %v1974_v49 = vsel %vm3633_vm5, %v3668_v38, 0.0  ;;  %v2263_v58 = vsel %vm3596_vm2, %v3657_v32, 0.0  ;;  %v3705_v1 = vld [vmem:[#allocation2 + $0x3a] sm:$0xff]  ;;  %v3350_v9 = vld [vmem:[%s3541_s9 + $0x48] sm:$0xff]   ;;  %3384 = vmatprep.subr.bf16.mxu0 %v3452_v57  ;;  %v3720_v20 = vld [vmem:[#allocation2 + $0x32] sm:$0xff] }
  0x26   : > { %1714 = vrot.lane.b32.xlu0 %v1168_v62, %s3464_s13  ;;  %v2004_v53 = vpack.c.bf16 %v3643_v25, %v1972_v42  ;;  %v1071_v62 = vsel %vm3617_vm4, %v975_v46, 0.0  ;;  %v2005_v63 = vpack.c.bf16 %v3683_v48, %v1974_v49  ;;  %v499_v5 = vadd.s32 32, %v3553_v15  ;;  %3423 = vmatprep.subr.bf16.mxu1 %v3452_v57  ;;  %v3351_v42 = vld [vmem:[%s3541_s9 + $0x50] sm:$0xff]   ;;  %v1496_v45 = vld [vmem:[#allocation2 + $0x48] sm:$0xff] }
  0x27   : > { %v1103_v6 = vpack.c.bf16 %v976_v52, %v1071_v62  ;;  %v441_v59 = vadd.f32 %v3551_v8, %v402_v61  ;;  %v3312_v10 = vunpack.c.l.bf16 %v3349_v56  ;;  %v1073_v11 = vsel %vm3633_vm5, %v3621_v13, 0.0  ;;  %3385 = vmatpush3.bf16.msra.mxu0 %v3452_v57  ;;  %3428 = vmatpush3.bf16.msra.mxu1 %v3452_v57  ;;  %v1657_v57 = vld [vmem:[#allocation2 + $0x49] sm:$0xff] }
  0x28   : > { %v3313_v12 = vunpack.c.h.bf16 %v3349_v56  ;;  %v580_v16 = vand.u32 15, %v502_v54  ;;  %v501_v17 = vadd.s32 48, %v3553_v15  ;;  %v1104_v18 = vpack.c.bf16 %v3628_v19, %v1073_v11  ;;  %v3453_v54 = vld [vmem:[%s4927_s3 + $0x20] ss:$0 sps:$4 sm:$0xff]   ;;  %v3798_v60 = vld [vmem:[#allocation2 + $0x4a] sm:$0xff] }
  0x29   : > { %1424 = vrot.lane.b32.xlu1 %v1392_v14, %s3466_s15  ;;  %v2294_v14 = vpack.c.bf16 %v2263_v58, %v3663_v36  ;;  %1119 = vst.msk [vmem:[#allocation3] sm:$0xff] %vm311_vm0, %v1103_v6  ;;  %v2265_v13 = vsel %vm3612_vm3, %v3705_v1, 0.0  ;;  %473 = vst.msk [vmem:[#allocation2 + $0x89] sm:$0xff] %vm311_vm0, %v441_v59  ;;  %v403_v21 = vmul.f32 %v3312_v10, %v3546_v2  ;;  %v559_v19 = vand.u32 15, %v499_v5 }
  0x2a   : > { %2165 = vrot.lane.b32.xlu0 %v3594_v55, %s3465_s14  ;;  %1120 = vst.msk [vmem:[#allocation3 + $0x8] sm:$0xff] %vm311_vm0, %v1104_v18  ;;  %v2295_v7 = vpack.c.bf16 %v2265_v13, %v3720_v20  ;;  %v573_v27 = vand.u32 15, %v501_v17  ;;  %v1365_v29 = vsel %vm3728_vm6, %v3657_v32, 0.0  ;;  %vm3740_vm7 = vcmp.ne.s32.totalorder %v580_v16, 15  ;;  %3430 = vmatprep.subr.msk.bf16.mxu0 %vm2499_vm10, %v3453_v54 }
  0x2b   : > { %v442_v28 = vadd.f32 %v3551_v8, %v403_v21  ;;  %vm3746_vm8 = vcmp.ne.s32.totalorder %v559_v19, 0  ;;  %v3317_v32 = vunpack.c.h.bf16 %v3350_v9  ;;  %v1367_v37 = vsel %vm3740_vm7, %v3705_v1, 0.0  ;;  %3431 = vmatprep.subr.msk.bf16.mxu1 %vm2499_vm10, %v3453_v54  ;;  %v983_v21 = vld [vmem:[#allocation2 + $0x40] sm:$0xff] }
  0x2c   : > { %v1525_v39 = vsel %vm3746_vm8, %v3668_v38, 0.0  ;;  %vm3762_vm9 = vcmp.ne.s32.totalorder %v573_v27, 0  ;;  %v3320_v49 = vunpack.c.l.bf16 %v3351_v42  ;;  %v503_v61 = vadd.s32 64, %v3553_v15 }
  0x2d   : > { %1426 = vrot.lane.b32.xlu1 %v1393_v23, %s3466_s15  ;;  %v404_v23 = vmul.f32 %v3313_v12, %v3546_v2  ;;  %474 = vst.msk [vmem:[#allocation2 + $0x91] sm:$0xff] %vm311_vm0, %v442_v28  ;;  %v406_v43 = vmul.f32 %v3317_v32, %v3546_v2  ;;  %v1555_v44 = vpack.c.bf16 %v3683_v48, %v1525_v39  ;;  %v3321_v3 = vunpack.c.h.bf16 %v3351_v42  ;;  %v3819_v12 = vld [vmem:[#allocation2 + $0x50] sm:$0xff]  ;;  %v986_v39 = vld [vmem:[#allocation2 + $0x58] sm:$0xff] }
  0x2e   : > { %1585 = vrot.lane.b32.xlu0 %v1553_v24, %s3467_s20  ;;  %v3316_v24 = vunpack.c.l.bf16 %v3350_v9  ;;  %v407_v52 = vmul.f32 %v3320_v49, %v3546_v2  ;;  %v3811_v9 = vld [vmem:[#allocation2 + $0x42] sm:$0xff]  ;;  %v1818_v59 = vsel %vm3740_vm7, %v3798_v60, 0.0  ;;  %v505_v10 = vadd.s32 80, %v3553_v15  ;;  %v3861_v49 = vld [vmem:[#allocation2 + $0x5a] sm:$0xff] }
  0x2f   : > { %v443_v31 = vadd.f32 %v3551_v8, %v404_v23  ;;  %v445_v50 = vadd.f32 %v3551_v8, %v406_v43  ;;  %v408_v16 = vmul.f32 %v3321_v3, %v3546_v2  ;;  %v1978_v19 = vsel %vm3762_vm9, %v3819_v12, 0.0 }
  0x30   : > { %v405_v33 = vmul.f32 %v3316_v24, %v3546_v2  ;;  %v446_v58 = vadd.f32 %v3551_v8, %v407_v52  ;;  %v3828_v24 = vld [vmem:[#allocation2 + $0x58] sm:$0xff]  ;;  %v506_v42 = vadd.s32 88, %v3553_v15  ;;  %vm1247_vm5 = vcmask 130112  }
  0x31   : > { %1587 = vrot.lane.b32.xlu1 %v1554_v34, %s3467_s20  ;;  %475 = vst.msk [vmem:[#allocation2 + $0x99] sm:$0xff] %vm311_vm0, %v443_v31  ;;  %477 = vst.msk [vmem:[#allocation2 + $0xa9] sm:$0xff] %vm311_vm0, %v445_v50  ;;  %v447_v13 = vadd.f32 %v3551_v8, %v408_v16  ;;  %v984_v34 = vld [vmem:[#allocation2 + $0x48] sm:$0xff] }
  0x32   : > { %1875 = vrot.lane.b32.xlu0 %v1843_v35, %s3468_s23  ;;  %v1394_v35 = vpack.c.bf16 %v1365_v29, %v3663_v36  ;;  %v444_v41 = vadd.f32 %v3551_v8, %v405_v33  ;;  %v1395_v36 = vpack.c.bf16 %v1367_v37, %v3720_v20  ;;  %478 = vst.msk [vmem:[#allocation2 + $0xb1] sm:$0xff] %vm311_vm0, %v446_v58  ;;  %v504_v33 = vadd.s32 72, %v3553_v15 }
  0x33   : > { %479 = vst.msk [vmem:[#allocation2 + $0xb9] sm:$0xff] %vm311_vm0, %v447_v13  ;;  %v2007_v37 = vpack.c.bf16 %v3828_v24, %v1978_v19  ;;  %v608_v58 = vand.u32 15, %v506_v42  ;;  %v987_v42 = vld [vmem:[#allocation2 + $0x60] sm:$0xff] }
  0x34   : > { %476 = vst.msk [vmem:[#allocation2 + $0xa1] sm:$0xff] %vm311_vm0, %v444_v41  ;;  %v2108_v41 = vld [vmem:[#allocation2 + $0x59] sm:$0xff]  ;;  %v594_v50 = vand.u32 15, %v504_v33 }
  0x35   : > { %1877 = vrot.lane.b32.xlu1 %v1844_v47, %s3468_s23  ;;  %v1075_v47 = vsel %vm3746_vm8, %v3637_v22, 0.0  ;;  %v3352_v22 = vld [vmem:[%s3541_s9 + $0x58] sm:$0xff]   ;;  %vm3887_vm14 = vcmp.ne.s32.totalorder %v608_v58, 15 }
  0x36   : > { %2036 = vrot.lane.b32.xlu0 %v2004_v53, %s3469_s29  ;;  %v1105_v51 = vpack.c.bf16 %v3643_v25, %v1075_v47  ;;  %v1077_v53 = vsel %vm3762_vm9, %v3668_v38, 0.0  ;;  %v1656_v25 = vld [vmem:[#allocation2 + $0x41] sm:$0xff]  ;;  %v1816_v38 = vsel %vm3728_vm6, %v3705_v1, 0.0  ;;  %v3324_v5 = vunpack.c.l.bf16 %v3352_v22  ;;  %v2112_v58 = vld [vmem:[#allocation2 + $0x79] sm:$0xff] }
  0x37   : > { %v1106_v62 = vpack.c.bf16 %v3683_v48, %v1077_v53  ;;  %v3804_v6 = vpack.c.bf16 %v1657_v57, %v1656_v25  ;;  %v3353_v1 = vld [vmem:[%s3541_s9 + $0x60] sm:$0xff]   ;;  %v1845_v48 = vpack.c.bf16 %v1816_v38, %v3720_v20  ;;  %v3325_v17 = vunpack.c.h.bf16 %v3352_v22  ;;  %v2236_v25 = vld [vmem:[#allocation2 + $0x52] sm:$0xff] }
  0x38   : > { %1121 = vst.msk [vmem:[#allocation3 + $0x10] sm:$0xff] %vm311_vm0, %v1105_v51  ;;  %v3328_v18 = vunpack.c.l.bf16 %v3353_v1  ;;  %v1846_v20 = vpack.c.bf16 %v1818_v59, %v3811_v9  ;;  %v3329_v52 = vunpack.c.h.bf16 %v3353_v1  ;;  %v3332_v53 = vunpack.c.l.bf16 %v3354_v40 }
  0x39   : > { %2038 = vrot.lane.b32.xlu1 %v2005_v63, %s3469_s29  ;;  %v2501_v63 = vsel %vm2499_vm10, %v3453_v54, 0  ;;  %1122 = vst.msk [vmem:[#allocation3 + $0x18] sm:$0xff] %vm311_vm0, %v1106_v62  ;;  %v410_v29 = vmul.f32 %v3325_v17, %v3546_v2  ;;  %v2269_v57 = vsel %vm3740_vm7, %v3861_v49, 0.0  ;;  %vm3876_vm13 = vcmp.ne.s32.totalorder %v594_v50, 15 }
  0x3a   : > { %2326 = vrot.lane.b32.xlu0 %v2294_v14, %s3470_s30  ;;  %3387 = vmatpush3.bf16.msra.mxu0 %v2501_v63  ;;  %v587_v14 = vand.u32 15, %v503_v61  ;;  %v411_v31 = vmul.f32 %v3328_v18, %v3546_v2  ;;  %v413_v22 = vmul.f32 %v3332_v53, %v3546_v2  ;;  %v2297_v61 = vpack.c.bf16 %v2269_v57, %v2236_v25  ;;  %v2111_v57 = vld [vmem:[#allocation2 + $0x71] sm:$0xff] }
  0x3b   : > { %3429 = vmatpush3.bf16.msra.mxu1 %v2501_v63  ;;  %v449_v43 = vadd.f32 %v3551_v8, %v410_v29  ;;  %v3333_v63 = vunpack.c.h.bf16 %v3354_v40  ;;  %v1369_v30 = vsel %vm3876_vm13, %v3798_v60, 0.0  ;;  %v507_v18 = vadd.s32 96, %v3553_v15  ;;  %v3933_v40 = vld [vmem:[#allocation2 + $0x70] sm:$0xff] }
  0x3c   : > { %vm3834_vm11 = vcmp.ne.s32.totalorder %v587_v14, 0  ;;  %v452_v3 = vadd.f32 %v3551_v8, %v413_v22  ;;  %v3355_v14 = vld [vmem:[%s3541_s9 + $0x70] sm:$0xff]   ;;  %v509_v29 = vadd.s32 112, %v3553_v15  ;;  %v508_v53 = vadd.s32 104, %v3553_v15  ;;  %v990_v22 = vld [vmem:[#allocation2 + $0x78] sm:$0xff] }
  0x3d   : > { %1203 = vrot.lane.b32.xlu1 %v3594_v55, %s3463_s12  ;;  %v1495_v55 = vld [vmem:[#allocation2 + $0x40] sm:$0xff]  ;;  %v1079_v32 = vsel %vm3834_vm11, %v983_v21, 0.0  ;;  %481 = vst.msk [vmem:[#allocation2 + $0xc9] sm:$0xff] %vm311_vm0, %v449_v43  ;;  %v414_v1 = vmul.f32 %v3333_v63, %v3546_v2  ;;  %v1529_v59 = vsel %vm3834_vm11, %v3819_v12, 0.0  ;;  %v3336_v16 = vunpack.c.l.bf16 %v3355_v14  ;;  %v3356_v43 = vld [vmem:[%s3541_s9 + $0x78] sm:$0xff]  }
  0x3e   : > { %2328 = vrot.lane.b32.xlu0 %v2295_v7, %s3470_s30  ;;  %v1527_v46 = vsel %vm3762_vm9, %v1495_v55, 0.0  ;;  %v1976_v11 = vsel %vm3746_vm8, %v1495_v55, 0.0  ;;  %v601_v7 = vand.u32 15, %v505_v10  ;;  %v2107_v55 = vld [vmem:[#allocation2 + $0x51] sm:$0xff]  ;;  %484 = vst.msk [vmem:[#allocation2 + $0xe1] sm:$0xff] %vm311_vm0, %v452_v3  ;;  %v1499_v10 = vld [vmem:[#allocation2 + $0x60] sm:$0xff]  ;;  %v3337_v19 = vunpack.c.h.bf16 %v3355_v14 }
  0x3f   : > { %v1556_v56 = vpack.c.bf16 %v1496_v45, %v1527_v46  ;;  %v2006_v23 = vpack.c.bf16 %v1496_v45, %v1976_v11  ;;  %v1107_v45 = vpack.c.bf16 %v984_v34, %v1079_v32  ;;  %v450_v46 = vadd.f32 %v3551_v8, %v411_v31  ;;  %v1660_v21 = vld [vmem:[#allocation2 + $0x61] sm:$0xff] }
  0x40   : > { %vm3850_vm12 = vcmp.ne.s32.totalorder %v601_v7, 0  ;;  %v2136_v54 = vpack.c.bf16 %v2108_v41, %v2107_v55  ;;  %v453_v11 = vadd.f32 %v3551_v8, %v414_v1  ;;  %v415_v12 = vmul.f32 %v3336_v16, %v3546_v2  ;;  %v3920_v7 = vld [vmem:[#allocation2 + $0x6a] sm:$0xff]  ;;  %v1789_v32 = vld [vmem:[#allocation2 + $0x62] sm:$0xff]  ;;  %v2241_v3 = vld [vmem:[#allocation2 + $0x7a] sm:$0xff] }
  0x41   : > { %1205 = vrot.lane.b32.xlu1 %v3605_v4, %s3463_s12  ;;  %1123 = vst.msk [vmem:[#allocation3 + $0x20] sm:$0xff] %vm311_vm0, %v1107_v45  ;;  %482 = vst.msk [vmem:[#allocation2 + $0xd1] sm:$0xff] %vm311_vm0, %v450_v46  ;;  %v1531_v17 = vsel %vm3850_vm12, %v1499_v10, 0.0  ;;  %v416_v31 = vmul.f32 %v3337_v19, %v3546_v2  ;;  %v629_v41 = vand.u32 15, %v509_v29  ;;  %v988_v45 = vld [vmem:[#allocation2 + $0x68] sm:$0xff]  ;;  %v3340_v28 = vunpack.c.l.bf16 %v3356_v43  ;;  %v1955_v55 = vld [vmem:[#allocation2 + $0x98] sm:$0xff] }
  0x42   : > { %1428 = vrot.lane.b32.xlu0 %v1394_v35, %s3466_s15  ;;  %v985_v35 = vld [vmem:[#allocation2 + $0x50] sm:$0xff]  ;;  %485 = vst.msk [vmem:[#allocation2 + $0xe9] sm:$0xff] %vm311_vm0, %v453_v11  ;;  %v454_v13 = vadd.f32 %v3551_v8, %v415_v12  ;;  %v1982_v50 = vsel %vm3850_vm12, %v3933_v40, 0.0  ;;  %v510_v63 = vadd.s32 120, %v3553_v15  ;;  %v2138_v1 = vpack.c.bf16 %v2112_v58, %v2111_v57  ;;  %v1664_v19 = vld [vmem:[#allocation2 + $0x81] sm:$0xff] }
  0x43   : > { %v1081_v47 = vsel %vm3850_vm12, %v985_v35, 0.0  ;;  %v1822_v35 = vsel %vm3887_vm14, %v3920_v7, 0.0  ;;  %vm3950_vm2 = vcmp.ne.s32.totalorder %v629_v41, 0  ;;  %v3341_v14 = vunpack.c.h.bf16 %v3356_v43  ;;  %v4002_v29 = vld [vmem:[#allocation2 + $0x8a] sm:$0xff]  ;;  %v991_v43 = vld [vmem:[#allocation2 + $0x80] sm:$0xff] }
  0x44   : > { %v1108_v51 = vpack.c.bf16 %v986_v39, %v1081_v47  ;;  %486 = vst.msk [vmem:[#allocation2 + $0xf1] sm:$0xff] %vm311_vm0, %v454_v13  ;;  %v1980_v39 = vsel %vm3834_vm11, %v1499_v10, 0.0  ;;  %v636_v38 = vand.u32 15, %v510_v63  ;;  %v1504_v13 = vld [vmem:[#allocation2 + $0x88] sm:$0xff]  ;;  %vm492_vm8 = vcmask 63488  }
  0x45   : > { %1430 = vrot.lane.b32.xlu1 %v1395_v36, %s3466_s15  ;;  %v514_v58 = vadd.s32 152, %v3553_v15  ;;  %493 = vst.msk [vmem:[#allocation2 + $0x121] sm:$0x7f] %vm492_vm8, %v3462_v0  ;;  %vm1472_vm10 = vcmask 195712   ;;  %vm1633_vm12 = vcmask 261312  }
  0x46   : > { %1589 = vrot.lane.b32.xlu0 %v1555_v44, %s3467_s20  ;;  %v2267_v44 = vsel %vm3728_vm6, %v3798_v60, 0.0  ;;  %1124 = vst.msk [vmem:[#allocation3 + $0x28] sm:$0xff] %vm311_vm0, %v1108_v51  ;;  %v1371_v60 = vsel %vm3887_vm14, %v3861_v49, 0.0  ;;  %vm3979_vm4 = vcmp.ne.s32.totalorder %v636_v38, 15 }
  0x47   : > { %v2296_v26 = vpack.c.bf16 %v2267_v44, %v3811_v9  ;;  %v1848_v44 = vpack.c.bf16 %v1822_v35, %v1789_v32  ;;  %v1793_v35 = vld [vmem:[#allocation2 + $0x82] sm:$0xff] }
  0x49   : > { %1591 = vrot.lane.b32.xlu1 %v1556_v56, %s3467_s20  ;;  %v412_v56 = vmul.f32 %v3329_v52, %v3546_v2  ;;  %v417_v52 = vmul.f32 %v3340_v28, %v3546_v2 }
  0x4a   : > { %1718 = vrot.lane.b32.xlu0 %v3605_v4, %s3464_s13  ;;  %v409_v4 = vmul.f32 %v3324_v5, %v3546_v2  ;;  %v418_v5 = vmul.f32 %v3341_v14, %v3546_v2 }
  0x4b   : > { %v451_v62 = vadd.f32 %v3551_v8, %v412_v56 }
  0x4c   : > { %v448_v27 = vadd.f32 %v3551_v8, %v409_v4  ;;  %v1500_v4 = vld [vmem:[#allocation2 + $0x68] sm:$0xff] }
  0x4d   : > { %1720 = vrot.lane.b32.xlu1 %v3804_v6, %s3464_s13  ;;  %483 = vst.msk [vmem:[#allocation2 + $0xd9] sm:$0xff] %vm311_vm0, %v451_v62  ;;  %v2008_v47 = vpack.c.bf16 %v1500_v4, %v1980_v39  ;;  %v2271_v62 = vsel %vm3876_vm13, %v3920_v7, 0.0 }
  0x4e   : > { %1879 = vrot.lane.b32.xlu0 %v1845_v48, %s3468_s23  ;;  %480 = vst.msk [vmem:[#allocation2 + $0xc1] sm:$0xff] %vm311_vm0, %v448_v27  ;;  %v1396_v48 = vpack.c.bf16 %v1369_v30, %v3811_v9  ;;  %v1557_v9 = vpack.c.bf16 %v3828_v24, %v1529_v59  ;;  %v1820_v24 = vsel %vm3876_vm13, %v3861_v49, 0.0  ;;  %v615_v27 = vand.u32 15, %v507_v18  ;;  %v1951_v49 = vld [vmem:[#allocation2 + $0x78] sm:$0xff]  ;;  %v1503_v18 = vld [vmem:[#allocation2 + $0x80] sm:$0xff] }
  0x4f   : > { %v1847_v34 = vpack.c.bf16 %v1820_v24, %v2236_v25  ;;  %v2009_v56 = vpack.c.bf16 %v1951_v49, %v1982_v50  ;;  %v622_v30 = vand.u32 15, %v508_v53  ;;  %v2273_v59 = vsel %vm3887_vm14, %v2241_v3, 0.0  ;;  %v1665_v24 = vld [vmem:[#allocation2 + $0x89] sm:$0xff] }
  0x50   : > { %vm3935_vm15 = vcmp.ne.s32.totalorder %v615_v27, 0  ;;  %v512_v50 = vadd.s32 136, %v3553_v15  ;;  %vm1762_vm13 = vcmask 326912   ;;  %vm1923_vm14 = vcmask 392512  }
  0x51   : > { %1881 = vrot.lane.b32.xlu1 %v1846_v20, %s3468_s23  ;;  %v1558_v20 = vpack.c.bf16 %v1500_v4, %v1531_v17  ;;  %v1083_v46 = vsel %vm3935_vm15, %v987_v42, 0.0  ;;  %vm3970_vm3 = vcmp.ne.s32.totalorder %v622_v30, 15  ;;  %v1375_v4 = vsel %vm3979_vm4, %v2241_v3, 0.0 }
  0x52   : > { %2040 = vrot.lane.b32.xlu0 %v2006_v23, %s3469_s29  ;;  %v1661_v23 = vld [vmem:[#allocation2 + $0x69] sm:$0xff]  ;;  %v1109_v51 = vpack.c.bf16 %v988_v45, %v1083_v46  ;;  %v457_v17 = vadd.f32 %v3551_v8, %v418_v5  ;;  %v1533_v12 = vsel %vm3935_vm15, %v3933_v40, 0.0  ;;  %v1984_v39 = vsel %vm3935_vm15, %v1503_v18, 0.0 }
  0x53   : > { %v1687_v33 = vpack.c.bf16 %v1661_v23, %v1660_v21  ;;  %v1535_v21 = vsel %vm3950_vm2, %v1503_v18, 0.0  ;;  %v511_v23 = vadd.s32 128, %v3553_v15  ;;  %v4013_v40 = vld [vmem:[#allocation2 + $0x90] sm:$0xff]  ;;  %v992_v45 = vld [vmem:[#allocation2 + $0x88] sm:$0xff]  ;;  %v2010_v28 = vpack.c.bf16 %v1504_v13, %v1984_v39 }
  0x54   : > { %1125 = vst.msk [vmem:[#allocation3 + $0x30] sm:$0xff] %vm311_vm0, %v1109_v51  ;;  %489 = vst.msk [vmem:[#allocation2 + $0x109] sm:$0xff] %vm311_vm0, %v457_v17  ;;  %v2275_v57 = vsel %vm3970_vm3, %v4002_v29, 0.0  ;;  %v650_v63 = vand.u32 15, %v512_v50  ;;  %vm2084_vm15 = vcmask 458112  }
  0x55   : > { %2042 = vrot.lane.b32.xlu1 %v2007_v37, %s3469_s29  ;;  %v455_v37 = vadd.f32 %v3551_v8, %v416_v31  ;;  %v643_v31 = vand.u32 15, %v511_v23  ;;  %v2300_v30 = vpack.c.bf16 %v2275_v57, %v1793_v35 }
  0x56   : > { %2169 = vrot.lane.b32.xlu0 %v3804_v6, %s3465_s14  ;;  %vm4052_vm9 = vcmp.ne.s32.totalorder %v650_v63, 15 }
  0x57   : > { %487 = vst.msk [vmem:[#allocation2 + $0xf9] sm:$0xff] %vm311_vm0, %v455_v37  ;;  %v1826_v37 = vsel %vm3979_vm4, %v4002_v29, 0.0  ;;  %vm4015_vm6 = vcmp.ne.s32.totalorder %v643_v31, 0  ;;  %v1377_v14 = vsel %vm4052_vm9, %v4002_v29, 0.0 }
  0x58   : > { %v1087_v46 = vsel %vm4015_vm6, %v991_v43, 0.0  ;;  %v1400_v5 = vpack.c.bf16 %v1377_v14, %v1793_v35  ;;  %v1537_v17 = vsel %vm4015_vm6, %v4013_v40, 0.0 }
  0x59   : > { %2171 = vrot.lane.b32.xlu1 %v2136_v54, %s3465_s14 }
  0x5a   : > { %2330 = vrot.lane.b32.xlu0 %v2296_v26, %s3470_s30  ;;  %v989_v26 = vld [vmem:[#allocation2 + $0x70] sm:$0xff] }
  0x5b   : > { %v1085_v36 = vsel %vm3950_vm2, %v989_v26, 0.0  ;;  %v994_v26 = vld [vmem:[#allocation2 + $0x98] sm:$0xff] }
  0x5d   : > { %1207 = vrot.lane.b32.xlu1 %v3804_v6, %s3463_s12  ;;  %v1397_v6 = vpack.c.bf16 %v1371_v60, %v2236_v25  ;;  %v456_v25 = vadd.f32 %v3551_v8, %v417_v52  ;;  %v2240_v60 = vld [vmem:[#allocation2 + $0x72] sm:$0xff]  ;;  %v1560_v8 = vpack.c.bf16 %v1504_v13, %v1535_v21  ;;  %v1508_v13 = vld [vmem:[#allocation2 + $0xa8] sm:$0xff] }
  0x5e   : > { %2332 = vrot.lane.b32.xlu0 %v2297_v61, %s3470_s30  ;;  %v1110_v61 = vpack.c.bf16 %v990_v22, %v1085_v36  ;;  %v2299_v11 = vpack.c.bf16 %v2273_v59, %v2240_v60  ;;  %v1399_v2 = vpack.c.bf16 %v1375_v4, %v2240_v60  ;;  %v993_v52 = vld [vmem:[#allocation2 + $0x90] sm:$0xff]  ;;  %v2116_v22 = vld [vmem:[#allocation2 + $0x99] sm:$0xff] }
  0x5f   : > { %488 = vst.msk [vmem:[#allocation2 + $0x101] sm:$0xff] %vm311_vm0, %v456_v25 }
  0x60   : > { %1126 = vst.msk [vmem:[#allocation3 + $0x38] sm:$0xff] %vm311_vm0, %v1110_v61 }
  0x61   : > { %1209 = vrot.lane.b32.xlu1 %v2136_v54, %s3463_s12 }
  0x62   : > { %1432 = vrot.lane.b32.xlu0 %v1396_v48, %s3466_s15  ;;  %v2298_v48 = vpack.c.bf16 %v2271_v62, %v1789_v32  ;;  %v4041_v62 = vld [vmem:[#allocation2 + $0x9a] sm:$0xff] }
  0x63   : > { %v2277_v0 = vsel %vm3979_vm4, %v4041_v62, 0.0  ;;  %v1828_v31 = vsel %vm4052_vm9, %v4041_v62, 0.0 }
  0x65   : > { %1434 = vrot.lane.b32.xlu1 %v1397_v6, %s3466_s15  ;;  %v1373_v6 = vsel %vm3970_vm3, %v3920_v7, 0.0  ;;  %v1824_v7 = vsel %vm3970_vm3, %v2241_v3, 0.0  ;;  %vm2374_vm3 = vcmask 589312  }
  0x66   : > { %1593 = vrot.lane.b32.xlu0 %v1557_v9, %s3467_s20  ;;  %v1398_v9 = vpack.c.bf16 %v1373_v6, %v1789_v32  ;;  %v1849_v32 = vpack.c.bf16 %v1824_v7, %v2240_v60  ;;  %v664_v60 = vand.u32 15, %v514_v58  ;;  %v1668_v7 = vld [vmem:[#allocation2 + $0xa1] sm:$0xff]  ;;  %v2119_v58 = vld [vmem:[#allocation2 + $0xb1] sm:$0xff] }
  0x68   : > { %vm4061_vm11 = vcmp.ne.s32.totalorder %v664_v60, 15 }
  0x69   : > { %1595 = vrot.lane.b32.xlu1 %v1558_v20, %s3467_s20  ;;  %v1559_v20 = vpack.c.bf16 %v1951_v49, %v1533_v12  ;;  %v1111_v49 = vpack.c.bf16 %v992_v45, %v1087_v46  ;;  %v1507_v12 = vld [vmem:[#allocation2 + $0xa0] sm:$0xff]  ;;  %v4107_v45 = vld [vmem:[#allocation2 + $0xb0] sm:$0xff] }
  0x6a   : > { %1722 = vrot.lane.b32.xlu0 %v2136_v54, %s3464_s13  ;;  %v2115_v54 = vld [vmem:[#allocation2 + $0x91] sm:$0xff] }
  0x6b   : > { %1127 = vst.msk [vmem:[#allocation3 + $0x40] sm:$0xff] %vm311_vm0, %v1111_v49  ;;  %v2140_v3 = vpack.c.bf16 %v2116_v22, %v2115_v54  ;;  %v996_v49 = vld [vmem:[#allocation2 + $0xa8] sm:$0xff] }
  0x6d   : > { %1724 = vrot.lane.b32.xlu1 %v1687_v33, %s3464_s13 }
  0x6e   : > { %1883 = vrot.lane.b32.xlu0 %v1847_v34, %s3468_s23  ;;  %v1689_v34 = vpack.c.bf16 %v1665_v24, %v1664_v19  ;;  %v515_v19 = vadd.s32 160, %v3553_v15 }
  0x71   : > { %1885 = vrot.lane.b32.xlu1 %v1848_v44, %s3468_s23  ;;  %v1850_v44 = vpack.c.bf16 %v1826_v37, %v1793_v35  ;;  %v517_v35 = vadd.s32 176, %v3553_v15 }
  0x72   : > { %2044 = vrot.lane.b32.xlu0 %v2008_v47, %s3469_s29  ;;  %v1986_v47 = vsel %vm3950_vm2, %v4013_v40, 0.0  ;;  %vm2213_vm2 = vcmask 523712   ;;  %v4100_v40 = vld [vmem:[#allocation2 + $0xa2] sm:$0xff] }
  0x73   : > { %v2011_v53 = vpack.c.bf16 %v1955_v55, %v1986_v47  ;;  %v995_v47 = vld [vmem:[#allocation2 + $0xa0] sm:$0xff] }
  0x75   : > { %2046 = vrot.lane.b32.xlu1 %v2009_v56, %s3469_s29 }
  0x76   : > { %2173 = vrot.lane.b32.xlu0 %v1687_v33, %s3465_s14 }
  0x79   : > { %2175 = vrot.lane.b32.xlu1 %v2138_v1, %s3465_s14 }
  0x7a   : > { %2334 = vrot.lane.b32.xlu0 %v2298_v48, %s3470_s30  ;;  %v2244_v48 = vld [vmem:[#allocation2 + $0x92] sm:$0xff] }
  0x7b   : > { %v2301_v10 = vpack.c.bf16 %v2277_v0, %v2244_v48  ;;  %v1851_v39 = vpack.c.bf16 %v1828_v31, %v2244_v48  ;;  %v4148_v0 = vld [vmem:[#allocation2 + $0xba] sm:$0xff] }
  0x7c   : > { %v2281_v14 = vsel %vm4061_vm11, %v4148_v0, 0.0 }
  0x7d   : > { %1211 = vrot.lane.b32.xlu1 %v1687_v33, %s3463_s12  ;;  %v513_v33 = vadd.s32 144, %v3553_v15 }
  0x7e   : > { %2336 = vrot.lane.b32.xlu0 %v2299_v11, %s3470_s30 }
  0x7f   : > { %v657_v42 = vand.u32 15, %v513_v33  ;;  %v4090_v33 = vld [vmem:[#allocation2 + $0xaa] sm:$0xff] }
  0x81   : > { %1213 = vrot.lane.b32.xlu1 %v2138_v1, %s3463_s12  ;;  %vm4027_vm7 = vcmp.ne.s32.totalorder %v657_v42, 0  ;;  %v1830_v42 = vsel %vm4061_vm11, %v4090_v33, 0.0 }
  0x82   : > { %1436 = vrot.lane.b32.xlu0 %v1398_v9, %s3466_s15  ;;  %v1089_v56 = vsel %vm4027_vm7, %v993_v52, 0.0  ;;  %v1379_v9 = vsel %vm4061_vm11, %v4041_v62, 0.0  ;;  %v1539_v21 = vsel %vm4027_vm7, %v1507_v12, 0.0  ;;  %v1852_v41 = vpack.c.bf16 %v1830_v42, %v4100_v40  ;;  %v4203_v42 = vld [vmem:[#allocation2 + $0xca] sm:$0xff] }
  0x83   : > { %v1200_v27 = vpop.permute.xlu0 %1199  ;;  %v1112_v36 = vpack.c.bf16 %v994_v26, %v1089_v56  ;;  %v1562_v24 = vpack.c.bf16 %v1508_v13, %v1539_v21  ;;  %v1990_v26 = vsel %vm4027_vm7, %v4107_v45, 0.0  ;;  %vm2450_vm7 = vcmask 588800  }
  0x84   : > { %1248 = vst.msk [vmem:[#allocation3] sm:$0xff] %vm1247_vm5, %v1200_v27  ;;  %v1669_v27 = vld [vmem:[#allocation2 + $0xa9] sm:$0xff] }
  0x85   : > { %1438 = vrot.lane.b32.xlu1 %v1399_v2, %s3466_s15  ;;  %1128 = vst.msk [vmem:[#allocation3 + $0x48] sm:$0xff] %vm311_vm0, %v1112_v36  ;;  %v1401_v2 = vpack.c.bf16 %v1379_v9, %v2244_v48  ;;  %v4096_v37 = vpack.c.bf16 %v1669_v27, %v1668_v7  ;;  %v516_v36 = vadd.s32 168, %v3553_v15  ;;  %v1512_v27 = vld [vmem:[#allocation2 + $0xc8] sm:$0xff] }
  0x86   : > { %1597 = vrot.lane.b32.xlu0 %v1559_v20, %s3467_s20  ;;  %v1561_v20 = vpack.c.bf16 %v1955_v55, %v1537_v17  ;;  %v685_v55 = vand.u32 15, %v517_v35  ;;  %v1672_v35 = vld [vmem:[#allocation2 + $0xc1] sm:$0xff] }
  0x87   : > { %v678_v60 = vand.u32 15, %v516_v36  ;;  %v4233_v36 = vld [vmem:[#allocation2 + $0xd8] sm:$0xff] }
  0x89   : > { %1599 = vrot.lane.b32.xlu1 %v1560_v8, %s3467_s20  ;;  %vm4161_vm8 = vcmp.ne.s32.totalorder %v678_v60, 15 }
  0x8a   : > { %1726 = vrot.lane.b32.xlu0 %v2138_v1, %s3464_s13  ;;  %v2283_v60 = vsel %vm4161_vm8, %v4203_v42, 0.0 }
  0x8d   : > { %1728 = vrot.lane.b32.xlu1 %v1689_v34, %s3464_s13 }
  0x8e   : > { %1887 = vrot.lane.b32.xlu0 %v1849_v32, %s3468_s23  ;;  %v671_v32 = vand.u32 15, %v515_v19 }
  0x90   : > { %vm4110_vm4 = vcmp.ne.s32.totalorder %v671_v32, 0 }
  0x91   : > { %1889 = vrot.lane.b32.xlu1 %v1850_v44, %s3468_s23  ;;  %v1988_v44 = vsel %vm4015_vm6, %v1507_v12, 0.0  ;;  %v1091_v50 = vsel %vm4110_vm4, %v995_v47, 0.0  ;;  %vm4130_vm6 = vcmp.ne.s32.totalorder %v685_v55, 0  ;;  %v1381_v12 = vsel %vm4161_vm8, %v4090_v33, 0.0  ;;  %v4212_v47 = vld [vmem:[#allocation2 + $0xc2] sm:$0xff] }
  0x92   : > { %2048 = vrot.lane.b32.xlu0 %v2010_v28, %s3469_s29  ;;  %v2012_v52 = vpack.c.bf16 %v1508_v13, %v1988_v44  ;;  %v1113_v56 = vpack.c.bf16 %v996_v49, %v1091_v50  ;;  %v1093_v57 = vsel %vm4130_vm6, %v4107_v45, 0.0 }
  0x93   : > { %v1717_v25 = vpop.permute.xlu1 %1716 }
  0x94   : > { %v1202_v61 = vpop.permute.xlu0 %1201  ;;  %1129 = vst.msk [vmem:[#allocation3 + $0x50] sm:$0xff] %vm311_vm0, %v1113_v56 }
  0x95   : > { %1249 = vst.msk [vmem:[#allocation3 + $0x8] sm:$0xff] %vm1247_vm5, %v1202_v61  ;;  %2050 = vrot.lane.b32.xlu1 %v2011_v53, %s3469_s29  ;;  %v4123_v53 = vld [vmem:[#allocation2 + $0xb8] sm:$0xff] }
  0x96   : > { %2177 = vrot.lane.b32.xlu0 %v1689_v34, %s3465_s14  ;;  %v2013_v51 = vpack.c.bf16 %v4123_v53, %v1990_v26  ;;  %v2120_v61 = vld [vmem:[#allocation2 + $0xb9] sm:$0xff]  ;;  %v1114_v62 = vpack.c.bf16 %v4123_v53, %v1093_v57 }
  0x97   : > { %v4047_v1 = vpop.permute.xlu1 %2167 }
  0x98   : > { %v1715_v59 = vpop.permute.xlu0 %1714  ;;  %1130 = vst.msk [vmem:[#allocation3 + $0x58] sm:$0xff] %vm311_vm0, %v1114_v62  ;;  %v520_v62 = vadd.s32 200, %v3553_v15 }
  0x99   : > { %2179 = vrot.lane.b32.xlu1 %v2140_v3, %s3465_s14 }
  0x9a   : > { %2338 = vrot.lane.b32.xlu0 %v2300_v30, %s3470_s30  ;;  %v518_v30 = vadd.s32 184, %v3553_v15 }
  0x9b   : > { %v1425_v11 = vpop.permute.xlu1 %1424 }
  0x9c   : > { %1473 = vst.msk [vmem:[#allocation3] sm:$0xff] %vm1472_vm10, %v1425_v11  ;;  %v2166_v16 = vpop.permute.xlu0 %2165  ;;  %v2248_v11 = vld [vmem:[#allocation2 + $0xb2] sm:$0xff] }
  0x9d   : > { %1215 = vrot.lane.b32.xlu1 %v1689_v34, %s3463_s12  ;;  %v2303_v17 = vpack.c.bf16 %v2281_v14, %v2248_v11  ;;  %v706_v14 = vand.u32 15, %v520_v62  ;;  %v4343_v62 = vld [vmem:[#allocation2 + $0xf8] sm:$0xff] }
  0x9e   : > { %2340 = vrot.lane.b32.xlu0 %v2301_v10, %s3470_s30 }
  0x9f   : > { %v1427_v4 = vpop.permute.xlu1 %1426 }
  0xa0   : > { %1474 = vst.msk [vmem:[#allocation3 + $0x8] sm:$0xff] %vm1472_vm10, %v1427_v4  ;;  %v1586_v18 = vpop.permute.xlu0 %1585  ;;  %v2252_v4 = vld [vmem:[#allocation2 + $0xd2] sm:$0xff] }
  0xa1   : > { %1634 = vst.msk [vmem:[#allocation3] sm:$0xff] %vm1633_vm12, %v1586_v18  ;;  %1217 = vrot.lane.b32.xlu1 %v2140_v3, %s3463_s12 }
  0xa2   : > { %1440 = vrot.lane.b32.xlu0 %v1400_v5, %s3466_s15  ;;  %1763 = vst.msk [vmem:[#allocation3] sm:$0xff] %vm1762_vm13, %v1715_v59  ;;  %v2142_v59 = vpack.c.bf16 %v2120_v61, %v2119_v58 }
  0xa3   : > { %v1588_v23 = vpop.permute.xlu1 %1587 }
  0xa4   : > { %1635 = vst.msk [vmem:[#allocation3 + $0x8] sm:$0xff] %vm1633_vm12, %v1588_v23  ;;  %v1876_v8 = vpop.permute.xlu0 %1875  ;;  %v1541_v23 = vsel %vm4110_vm4, %v4107_v45, 0.0  ;;  %v521_v45 = vadd.s32 208, %v3553_v15 }
  0xa5   : > { %1924 = vst.msk [vmem:[#allocation3] sm:$0xff] %vm1923_vm14, %v1876_v8  ;;  %1442 = vrot.lane.b32.xlu1 %v1401_v2, %s3466_s15  ;;  %v1511_v8 = vld [vmem:[#allocation2 + $0xc0] sm:$0xff]  ;;  %v1563_v7 = vpack.c.bf16 %v4123_v53, %v1541_v23 }
  0xa6   : > { %1764 = vst.msk [vmem:[#allocation3 + $0x8] sm:$0xff] %vm1762_vm13, %v1717_v25  ;;  %1601 = vrot.lane.b32.xlu0 %v1561_v20, %s3467_s20  ;;  %v1402_v20 = vpack.c.bf16 %v1381_v12, %v4100_v40  ;;  %v1992_v50 = vsel %vm4110_vm4, %v1511_v8, 0.0  ;;  %v713_v56 = vand.u32 15, %v521_v45 }
  0xa7   : > { %v1878_v29 = vpop.permute.xlu1 %1877 }
  0xa8   : > { %1925 = vst.msk [vmem:[#allocation3 + $0x8] sm:$0xff] %vm1923_vm14, %v1878_v29  ;;  %v2037_v34 = vpop.permute.xlu0 %2036  ;;  %v1543_v29 = vsel %vm4130_vm6, %v1511_v8, 0.0  ;;  %vm4240_vm4 = vcmp.ne.s32.totalorder %v713_v56, 0 }
  0xa9   : > { %2085 = vst.msk [vmem:[#allocation3] sm:$0xff] %vm2084_vm15, %v2037_v34  ;;  %1603 = vrot.lane.b32.xlu1 %v1562_v24, %s3467_s20  ;;  %v519_v34 = vadd.s32 192, %v3553_v15  ;;  %v1564_v32 = vpack.c.bf16 %v1512_v27, %v1543_v29  ;;  %v1515_v29 = vld [vmem:[#allocation2 + $0xe0] sm:$0xff] }
  0xaa   : > { %1730 = vrot.lane.b32.xlu0 %v2140_v3, %s3464_s13  ;;  %2214 = vst.msk [vmem:[#allocation3] sm:$0xff] %vm2213_vm2, %v2166_v16  ;;  %v2279_v3 = vsel %vm4052_vm9, %v4090_v33, 0.0  ;;  %v692_v16 = vand.u32 15, %v518_v30  ;;  %v2123_v30 = vld [vmem:[#allocation2 + $0xd1] sm:$0xff] }
  0xab   : > { %v2039_v43 = vpop.permute.xlu1 %2038  ;;  %v2302_v38 = vpack.c.bf16 %v2279_v3, %v4100_v40  ;;  %v1832_v40 = vsel %vm4161_vm8, %v4148_v0, 0.0  ;;  %v699_v44 = vand.u32 15, %v519_v34 }
  0xac   : > { %2086 = vst.msk [vmem:[#allocation3 + $0x8] sm:$0xff] %vm2084_vm15, %v2039_v43  ;;  %v2327_v46 = vpop.permute.xlu0 %2326  ;;  %vm4172_vm9 = vcmp.ne.s32.totalorder %v692_v16, 15  ;;  %v1853_v55 = vpack.c.bf16 %v1832_v40, %v2248_v11  ;;  %v523_v40 = vadd.s32 224, %v3553_v15 }
  0xad   : > { %2375 = vst.msk [vmem:[#allocation3] sm:$0xff] %vm2374_vm3, %v2327_v46  ;;  %1732 = vrot.lane.b32.xlu1 %v4096_v37, %s3464_s13  ;;  %v1383_v13 = vsel %vm4172_vm9, %v4148_v0, 0.0  ;;  %vm4222_vm11 = vcmp.ne.s32.totalorder %v699_v44, 0  ;;  %v1677_v44 = vld [vmem:[#allocation2 + $0xe9] sm:$0xff] }
  0xae   : > { %2215 = vst.msk [vmem:[#allocation3 + $0x8] sm:$0xff] %vm2213_vm2, %v4047_v1  ;;  %1891 = vrot.lane.b32.xlu0 %v1851_v39, %s3468_s23  ;;  %v1403_v24 = vpack.c.bf16 %v1383_v13, %v2248_v11  ;;  %v1095_v28 = vsel %vm4222_vm11, %v1511_v8, 0.0  ;;  %v4258_v11 = vld [vmem:[#allocation2 + $0xda] sm:$0xff] }
  0xaf   : > { %v1204_v54 = vpop.permute.xlu1 %1203  ;;  %v1115_v57 = vpack.c.bf16 %v1512_v27, %v1095_v28  ;;  %v1996_v28 = vsel %vm4222_vm11, %v1515_v29, 0.0 }
  0xb0   : > { %1250 = vst.msk [vmem:[#allocation3 + $0x10] sm:$0xff] %vm1247_vm5, %v1204_v54  ;;  %v2329_v22 = vpop.permute.xlu0 %2328 }
  0xb1   : > { %2376 = vst.msk [vmem:[#allocation3 + $0x8] sm:$0xff] %vm2374_vm3, %v2329_v22  ;;  %1893 = vrot.lane.b32.xlu1 %v1852_v41, %s3468_s23  ;;  %v1834_v41 = vsel %vm4172_vm9, %v4203_v42, 0.0  ;;  %v2014_v22 = vpack.c.bf16 %v1512_v27, %v1992_v50 }
  0xb2   : > { %2052 = vrot.lane.b32.xlu0 %v2012_v52, %s3469_s29  ;;  %v4219_v52 = vld [vmem:[#allocation2 + $0xd0] sm:$0xff]  ;;  %v1854_v54 = vpack.c.bf16 %v1834_v41, %v4212_v47  ;;  %1131 = vst.msk [vmem:[#allocation3 + $0x60] sm:$0xff] %vm311_vm0, %v1115_v57  ;;  %v727_v41 = vand.u32 15, %v523_v40  ;;  %v1520_v40 = vld [vmem:[#allocation2 + $0x108] sm:$0xff] }
  0xb3   : > { %v1206_v63 = vpop.permute.xlu1 %1205  ;;  %v1097_v3 = vsel %vm4240_vm4, %v4219_v52, 0.0  ;;  %v1545_v27 = vsel %vm4222_vm11, %v4219_v52, 0.0 }
  0xb4   : > { %1251 = vst.msk [vmem:[#allocation3 + $0x18] sm:$0xff] %vm1247_vm5, %v1206_v63  ;;  %v1429_v1 = vpop.permute.xlu0 %1428  ;;  %v2391_v48 = vld [vmem:[#allocation3] sm:$0xff]  ;;  %v1565_v34 = vpack.c.bf16 %v4233_v36, %v1545_v27 }
  0xb5   : > { %1475 = vst.msk [vmem:[#allocation3 + $0x10] sm:$0xff] %vm1472_vm10, %v1429_v1  ;;  %2054 = vrot.lane.b32.xlu1 %v2013_v51, %s3469_s29  ;;  %3388 = vmatprep.mubr.msk.bf16.mxu0 %vm2450_vm7, %v2391_v48  ;;  %v1994_v51 = vsel %vm4130_vm6, %v4219_v52, 0.0  ;;  %v2124_v1 = vld [vmem:[#allocation2 + $0xd9] sm:$0xff]  ;;  %v1116_v48 = vpack.c.bf16 %v4233_v36, %v1097_v3  ;;  %vm4271_vm6 = vcmp.ne.s32.totalorder %v706_v14, 15 }
  0xb6   : > { %2181 = vrot.lane.b32.xlu0 %v4096_v37, %s3465_s14  ;;  %v2015_v25 = vpack.c.bf16 %v4233_v36, %v1994_v51  ;;  %v2144_v16 = vpack.c.bf16 %v2124_v1, %v2123_v30 }
  0xb7   : > { %v1431_v10 = vpop.permute.xlu1 %1430  ;;  %1132 = vst.msk [vmem:[#allocation3 + $0x68] sm:$0xff] %vm311_vm0, %v1116_v48  ;;  %v524_v48 = vadd.s32 232, %v3553_v15 }
  0xb8   : > { %1476 = vst.msk [vmem:[#allocation3 + $0x18] sm:$0xff] %vm1472_vm10, %v1431_v10  ;;  %v1590_v5 = vpop.permute.xlu0 %1589  ;;  %v2392_v9 = vld [vmem:[#allocation3 + $0x8] sm:$0xff] }
  0xb9   : > { %1636 = vst.msk [vmem:[#allocation3 + $0x10] sm:$0xff] %vm1633_vm12, %v1590_v5  ;;  %3389 = vmatmul.mubr.msk.bf16.vlgmr.msra.gmra.mrb[0].mxu0 %vm2450_vm7, %v2392_v9  ;;  %2183 = vrot.lane.b32.xlu1 %v2142_v59, %s3465_s14  ;;  %v2304_v5 = vpack.c.bf16 %v2283_v60, %v4212_v47 }
  0xba   : > { %2342 = vrot.lane.b32.xlu0 %v2302_v38, %s3470_s30 }
  0xbb   : > { %v1592_v6 = vpop.permute.xlu1 %1591 }
  0xbc   : > { %1637 = vst.msk [vmem:[#allocation3 + $0x18] sm:$0xff] %vm1633_vm12, %v1592_v6  ;;  %v1719_v2 = vpop.permute.xlu0 %1718 }
  0xbd   : > { %1765 = vst.msk [vmem:[#allocation3 + $0x10] sm:$0xff] %vm1762_vm13, %v1719_v2  ;;  %1219 = vrot.lane.b32.xlu1 %v4096_v37, %s3463_s12  ;;  %v1673_v37 = vld [vmem:[#allocation2 + $0xc9] sm:$0xff] }
  0xbe   : > { %2344 = vrot.lane.b32.xlu0 %v2303_v17, %s3470_s30  ;;  %v4209_v46 = vpack.c.bf16 %v1673_v37, %v1672_v35  ;;  %v2285_v17 = vsel %vm4172_vm9, %v4258_v11, 0.0  ;;  %v1547_v35 = vsel %vm4240_vm4, %v1515_v29, 0.0  ;;  %vm4332_vm9 = vcmp.ne.s32.totalorder %v727_v41, 0 }
  0xbf   : > { %v1721_v21 = vpop.permute.xlu1 %1720  ;;  %v2305_v13 = vpack.c.bf16 %v2285_v17, %v2252_v4  ;;  %v1099_v26 = vsel %vm4332_vm9, %v1515_v29, 0.0  ;;  %v734_v17 = vand.u32 15, %v524_v48 }
  0xc0   : > { %1766 = vst.msk [vmem:[#allocation3 + $0x18] sm:$0xff] %vm1762_vm13, %v1721_v21  ;;  %v1880_v19 = vpop.permute.xlu0 %1879  ;;  %v1385_v21 = vsel %vm4271_vm6, %v4203_v42, 0.0 }
  0xc1   : > { %1926 = vst.msk [vmem:[#allocation3 + $0x10] sm:$0xff] %vm1923_vm14, %v1880_v19  ;;  %1221 = vrot.lane.b32.xlu1 %v2142_v59, %s3463_s12  ;;  %v1404_v19 = vpack.c.bf16 %v1385_v21, %v4212_v47 }
  0xc2   : > { %1444 = vrot.lane.b32.xlu0 %v1402_v20, %s3466_s15 }
  0xc3   : > { %v1882_v31 = vpop.permute.xlu1 %1881 }
  0xc4   : > { %1927 = vst.msk [vmem:[#allocation3 + $0x18] sm:$0xff] %vm1923_vm14, %v1882_v31  ;;  %v2041_v33 = vpop.permute.xlu0 %2040 }
  0xc5   : > { %2087 = vst.msk [vmem:[#allocation3 + $0x10] sm:$0xff] %vm2084_vm15, %v2041_v33  ;;  %1446 = vrot.lane.b32.xlu1 %v1403_v24, %s3466_s15 }
  0xc6   : > { %1605 = vrot.lane.b32.xlu0 %v1563_v7, %s3467_s20 }
  0xc7   : > { %v2043_v39 = vpop.permute.xlu1 %2042 }
  0xc8   : > { %2088 = vst.msk [vmem:[#allocation3 + $0x18] sm:$0xff] %vm2084_vm15, %v2043_v39  ;;  %v2170_v43 = vpop.permute.xlu0 %2169 }
  0xc9   : > { %2216 = vst.msk [vmem:[#allocation3 + $0x10] sm:$0xff] %vm2213_vm2, %v2170_v43  ;;  %1607 = vrot.lane.b32.xlu1 %v1564_v32, %s3467_s20  ;;  %v1516_v32 = vld [vmem:[#allocation2 + $0xe8] sm:$0xff] }
  0xca   : > { %1734 = vrot.lane.b32.xlu0 %v2142_v59, %s3464_s13  ;;  %v522_v59 = vadd.s32 216, %v3553_v15  ;;  %v1566_v42 = vpack.c.bf16 %v1516_v32, %v1547_v35  ;;  %v1676_v43 = vld [vmem:[#allocation2 + $0xe1] sm:$0xff]  ;;  %v1117_v3 = vpack.c.bf16 %v1516_v32, %v1099_v26 }
  0xcb   : > { %v2172_v49 = vpop.permute.xlu1 %2171  ;;  %v4319_v50 = vpack.c.bf16 %v1677_v44, %v1676_v43 }
  0xcc   : > { %2217 = vst.msk [vmem:[#allocation3 + $0x18] sm:$0xff] %vm2213_vm2, %v2172_v49  ;;  %v2331_v53 = vpop.permute.xlu0 %2330  ;;  %v720_v6 = vand.u32 15, %v522_v59  ;;  %v525_v49 = vadd.s32 240, %v3553_v15  ;;  %v2127_v59 = vld [vmem:[#allocation2 + $0xf1] sm:$0xff] }
  0xcd   : > { %2377 = vst.msk [vmem:[#allocation3 + $0x10] sm:$0xff] %vm2374_vm3, %v2331_v53  ;;  %1736 = vrot.lane.b32.xlu1 %v4209_v46, %s3464_s13  ;;  %v4322_v53 = vld [vmem:[#allocation2 + $0xe2] sm:$0xff] }
  0xce   : > { %1895 = vrot.lane.b32.xlu0 %v1853_v55, %s3468_s23  ;;  %vm4282_vm8 = vcmp.ne.s32.totalorder %v720_v6, 15  ;;  %v4313_v55 = vld [vmem:[#allocation2 + $0xea] sm:$0xff]  ;;  %v741_v57 = vand.u32 15, %v525_v49  ;;  %1133 = vst.msk [vmem:[#allocation3 + $0x70] sm:$0xff] %vm311_vm0, %v1117_v3 }
  0xcf   : > { %v1208_v58 = vpop.permute.xlu1 %1207  ;;  %v1387_v24 = vsel %vm4282_vm8, %v4258_v11, 0.0  ;;  %v1838_v56 = vsel %vm4282_vm8, %v4313_v55, 0.0  ;;  %v2287_v14 = vsel %vm4271_vm6, %v4313_v55, 0.0  ;;  %v1810_v49 = vld [vmem:[#allocation2 + $0x10a] sm:$0xff] }
  0xd0   : > { %1252 = vst.msk [vmem:[#allocation3 + $0x20] sm:$0xff] %vm1247_vm5, %v1208_v58  ;;  %v2333_v61 = vpop.permute.xlu0 %2332  ;;  %v1405_v33 = vpack.c.bf16 %v1387_v24, %v2252_v4  ;;  %v1856_v58 = vpack.c.bf16 %v1838_v56, %v4322_v53  ;;  %vm4350_vm11 = vcmp.ne.s32.totalorder %v741_v57, 0  ;;  %v1809_v56 = vld [vmem:[#allocation2 + $0x102] sm:$0xff] }
  0xd1   : > { %2378 = vst.msk [vmem:[#allocation3 + $0x18] sm:$0xff] %vm2374_vm3, %v2333_v61  ;;  %1897 = vrot.lane.b32.xlu1 %v1854_v54, %s3468_s23  ;;  %v2016_v61 = vpack.c.bf16 %v1516_v32, %v1996_v28  ;;  %v1519_v32 = vld [vmem:[#allocation2 + $0x100] sm:$0xff] }
  0xd2   : > { %2056 = vrot.lane.b32.xlu0 %v2014_v22, %s3469_s29  ;;  %v4329_v22 = vld [vmem:[#allocation2 + $0xf0] sm:$0xff] }
  0xd3   : > { %v1210_v0 = vpop.permute.xlu1 %1209  ;;  %v1101_v60 = vsel %vm4350_vm11, %v4329_v22, 0.0 }
  0xd4   : > { %1253 = vst.msk [vmem:[#allocation3 + $0x28] sm:$0xff] %vm1247_vm5, %v1210_v0  ;;  %v1433_v38 = vpop.permute.xlu0 %1432  ;;  %v2393_v10 = vld [vmem:[#allocation3 + $0x10] sm:$0xff] }
  0xd5   : > { %1477 = vst.msk [vmem:[#allocation3 + $0x20] sm:$0xff] %vm1472_vm10, %v1433_v38  ;;  %2058 = vrot.lane.b32.xlu1 %v2015_v25, %s3469_s29  ;;  %3392 = vmatprep.mubr.msk.bf16.mxu0 %vm2450_vm7, %v2393_v10  ;;  %v1998_v25 = vsel %vm4240_vm4, %v4329_v22, 0.0  ;;  %v2128_v38 = vld [vmem:[#allocation2 + $0xf9] sm:$0xff]  ;;  %v1118_v10 = vpack.c.bf16 %v4343_v62, %v1101_v60  ;;  %vm4381_vm4 = vcmp.ne.s32.totalorder %v734_v17, 15 }
  0xd6   : > { %2185 = vrot.lane.b32.xlu0 %v4209_v46, %s3465_s14  ;;  %v2017_v63 = vpack.c.bf16 %v4343_v62, %v1998_v25  ;;  %v2146_v6 = vpack.c.bf16 %v2128_v38, %v2127_v59  ;;  %v1389_v24 = vsel %vm4381_vm4, %v4313_v55, 0.0  ;;  %v1681_v55 = vld [vmem:[#allocation2 + $0x109] sm:$0xff]  ;;  %v2261_v60 = vld [vmem:[#allocation2 + $0x11a] sm:$0xff] }
  0xd7   : > { %v1435_v9 = vpop.permute.xlu1 %1434  ;;  %1134 = vst.msk [vmem:[#allocation3 + $0x78] sm:$0xff] %vm311_vm0, %v1118_v10  ;;  %v1406_v29 = vpack.c.bf16 %v1389_v24, %v4322_v53 }
  0xd8   : > { %1478 = vst.msk [vmem:[#allocation3 + $0x28] sm:$0xff] %vm1472_vm10, %v1435_v9  ;;  %v1594_v12 = vpop.permute.xlu0 %1593  ;;  %v2394_v2 = vld [vmem:[#allocation3 + $0x18] sm:$0xff] }
  0xd9   : > { %1638 = vst.msk [vmem:[#allocation3 + $0x20] sm:$0xff] %vm1633_vm12, %v1594_v12  ;;  %3393 = vmatmul.mubr.msk.bf16.gmra.mrb[4].mxu0 %vm2450_vm7, %v2394_v2  ;;  %2187 = vrot.lane.b32.xlu1 %v2144_v16, %s3465_s14  ;;  %v2256_v2 = vld [vmem:[#allocation2 + $0xf2] sm:$0xff] }
  0xda   : > { %2346 = vrot.lane.b32.xlu0 %v2304_v5, %s3470_s30 }
  0xdb   : > { %v1596_v18 = vpop.permute.xlu1 %1595 }
  0xdc   : > { %1639 = vst.msk [vmem:[#allocation3 + $0x28] sm:$0xff] %vm1633_vm12, %v1596_v18  ;;  %v1723_v8 = vpop.permute.xlu0 %1722 }
  0xdd   : > { %1767 = vst.msk [vmem:[#allocation3 + $0x20] sm:$0xff] %vm1762_vm13, %v1723_v8  ;;  %1223 = vrot.lane.b32.xlu1 %v4209_v46, %s3463_s12  ;;  %v1836_v46 = vsel %vm4271_vm6, %v4258_v11, 0.0 }
  0xde   : > { %2348 = vrot.lane.b32.xlu0 %v2305_v13, %s3470_s30  ;;  %v1855_v52 = vpack.c.bf16 %v1836_v46, %v2252_v4  ;;  %v4368_v4 = vld [vmem:[#allocation2 + $0xfa] sm:$0xff] }
  0xdf   : > { %v1725_v7 = vpop.permute.xlu1 %1724  ;;  %v2289_v20 = vsel %vm4282_vm8, %v4368_v4, 0.0  ;;  %v1680_v46 = vld [vmem:[#allocation2 + $0x101] sm:$0xff]  ;;  %v1840_v41 = vsel %vm4381_vm4, %v4368_v4, 0.0 }
  0xe0   : > { %1768 = vst.msk [vmem:[#allocation3 + $0x28] sm:$0xff] %vm1762_vm13, %v1725_v7  ;;  %v1884_v31 = vpop.permute.xlu0 %1883 }
  0xe1   : > { %1928 = vst.msk [vmem:[#allocation3 + $0x20] sm:$0xff] %vm1923_vm14, %v1884_v31  ;;  %1225 = vrot.lane.b32.xlu1 %v2144_v16, %s3463_s12 }
  0xe2   : > { %1448 = vrot.lane.b32.xlu0 %v1404_v19, %s3466_s15  ;;  %v2307_v19 = vpack.c.bf16 %v2289_v20, %v2256_v2 }
  0xe3   : > { %v1886_v37 = vpop.permute.xlu1 %1885 }
  0xe4   : > { %1929 = vst.msk [vmem:[#allocation3 + $0x28] sm:$0xff] %vm1923_vm14, %v1886_v37  ;;  %v2045_v39 = vpop.permute.xlu0 %2044 }
  0xe5   : > { %2089 = vst.msk [vmem:[#allocation3 + $0x20] sm:$0xff] %vm2084_vm15, %v2045_v39  ;;  %1450 = vrot.lane.b32.xlu1 %v1405_v33, %s3466_s15 }
  0xe6   : > { %1609 = vrot.lane.b32.xlu0 %v1565_v34, %s3467_s20  ;;  %v1549_v34 = vsel %vm4332_vm9, %v4329_v22, 0.0  ;;  %v2000_v22 = vsel %vm4332_vm9, %v1519_v32, 0.0 }
  0xe7   : > { %v2047_v45 = vpop.permute.xlu1 %2046  ;;  %v1567_v39 = vpack.c.bf16 %v4343_v62, %v1549_v34  ;;  %v2018_v26 = vpack.c.bf16 %v1520_v40, %v2000_v22 }
  0xe8   : > { %2090 = vst.msk [vmem:[#allocation3 + $0x28] sm:$0xff] %vm2084_vm15, %v2047_v45  ;;  %v2174_v47 = vpop.permute.xlu0 %2173 }
  0xe9   : > { %2218 = vst.msk [vmem:[#allocation3 + $0x20] sm:$0xff] %vm2213_vm2, %v2174_v47  ;;  %1611 = vrot.lane.b32.xlu1 %v1566_v42, %s3467_s20  ;;  %v1551_v42 = vsel %vm4350_vm11, %v1519_v32, 0.0 }
  0xea   : > { %1738 = vrot.lane.b32.xlu0 %v2144_v16, %s3464_s13  ;;  %v526_v16 = vadd.s32 248, %v3553_v15  ;;  %v2306_v15 = vpack.c.bf16 %v2287_v14, %v4322_v53  ;;  %v1568_v45 = vpack.c.bf16 %v1520_v40, %v1551_v42  ;;  %v1857_v53 = vpack.c.bf16 %v1840_v41, %v2256_v2 }
  0xeb   : > { %v2176_v54 = vpop.permute.xlu1 %2175 }
  0xec   : > { %2219 = vst.msk [vmem:[#allocation3 + $0x28] sm:$0xff] %vm2213_vm2, %v2176_v54  ;;  %v2335_v36 = vpop.permute.xlu0 %2334  ;;  %v748_v13 = vand.u32 15, %v526_v16 }
  0xed   : > { %2379 = vst.msk [vmem:[#allocation3 + $0x20] sm:$0xff] %vm2374_vm3, %v2335_v36  ;;  %1740 = vrot.lane.b32.xlu1 %v4319_v50, %s3464_s13  ;;  %v1970_v36 = vld [vmem:[#allocation2 + $0x110] sm:$0xff] }
  0xee   : > { %1899 = vrot.lane.b32.xlu0 %v1855_v52, %s3468_s23  ;;  %vm4392_vm6 = vcmp.ne.s32.totalorder %v748_v13, 15  ;;  %v1697_v52 = vpack.c.bf16 %v1681_v55, %v1680_v46  ;;  %v2002_v62 = vsel %vm4350_vm11, %v1970_v36, 0.0 }
  0xef   : > { %v1212_v30 = vpop.permute.xlu1 %1211  ;;  %v1391_v31 = vsel %vm4392_vm6, %v4368_v4, 0.0  ;;  %v1842_v54 = vsel %vm4392_vm6, %v1810_v49, 0.0  ;;  %v2293_v14 = vsel %vm4392_vm6, %v2261_v60, 0.0 }
  0xf0   : > { %1254 = vst.msk [vmem:[#allocation3 + $0x30] sm:$0xff] %vm1247_vm5, %v1212_v30  ;;  %v2337_v1 = vpop.permute.xlu0 %2336  ;;  %v1407_v37 = vpack.c.bf16 %v1391_v31, %v2256_v2  ;;  %v2131_v30 = vld [vmem:[#allocation2 + $0x111] sm:$0xff] }
  0xf1   : > { %2380 = vst.msk [vmem:[#allocation3 + $0x28] sm:$0xff] %vm2374_vm3, %v2337_v1  ;;  %1901 = vrot.lane.b32.xlu1 %v1856_v58, %s3468_s23  ;;  %v1858_v58 = vpack.c.bf16 %v1842_v54, %v1809_v56  ;;  %v2132_v1 = vld [vmem:[#allocation2 + $0x119] sm:$0xff] }
  0xf2   : > { %2060 = vrot.lane.b32.xlu0 %v2016_v61, %s3469_s29  ;;  %v1971_v61 = vld [vmem:[#allocation2 + $0x118] sm:$0xff]  ;;  %v2148_v38 = vpack.c.bf16 %v2132_v1, %v2131_v30 }
  0xf3   : > { %v1214_v11 = vpop.permute.xlu1 %1213  ;;  %v2019_v3 = vpack.c.bf16 %v1971_v61, %v2002_v62 }
  0xf4   : > { %1255 = vst.msk [vmem:[#allocation3 + $0x38] sm:$0xff] %vm1247_vm5, %v1214_v11  ;;  %v1437_v5 = vpop.permute.xlu0 %1436  ;;  %v2395_v9 = vld [vmem:[#allocation3 + $0x20] sm:$0xff]  ;;  %v2260_v11 = vld [vmem:[#allocation2 + $0x112] sm:$0xff] }
  0xf5   : > { %1479 = vst.msk [vmem:[#allocation3 + $0x30] sm:$0xff] %vm1472_vm10, %v1437_v5  ;;  %2062 = vrot.lane.b32.xlu1 %v2017_v63, %s3469_s29  ;;  %3396 = vmatprep.mubr.msk.bf16.mxu0 %vm2450_vm7, %v2395_v9  ;;  %v2291_v63 = vsel %vm4381_vm4, %v1810_v49, 0.0  ;;  %v2309_v4 = vpack.c.bf16 %v2293_v14, %v2260_v11 }
  0xf6   : > { %2189 = vrot.lane.b32.xlu0 %v4319_v50, %s3465_s14  ;;  %v2308_v10 = vpack.c.bf16 %v2291_v63, %v1809_v56 }
  0xf7   : > { %v1439_v12 = vpop.permute.xlu1 %1438 }
  0xf8   : > { %1480 = vst.msk [vmem:[#allocation3 + $0x38] sm:$0xff] %vm1472_vm10, %v1439_v12  ;;  %v1598_v18 = vpop.permute.xlu0 %1597  ;;  %v2396_v21 = vld [vmem:[#allocation3 + $0x28] sm:$0xff] }
  0xf9   : > { %1640 = vst.msk [vmem:[#allocation3 + $0x30] sm:$0xff] %vm1633_vm12, %v1598_v18  ;;  %3397 = vmatmul.mubr.msk.bf16.gmra.mrb[8].mxu0 %vm2450_vm7, %v2396_v21  ;;  %2191 = vrot.lane.b32.xlu1 %v2146_v6, %s3465_s14 }
  0xfa   : > { %2350 = vrot.lane.b32.xlu0 %v2306_v15, %s3470_s30 }
  0xfb   : > { %v1600_v23 = vpop.permute.xlu1 %1599 }
  0xfc   : > { %1641 = vst.msk [vmem:[#allocation3 + $0x38] sm:$0xff] %vm1633_vm12, %v1600_v23  ;;  %v1727_v27 = vpop.permute.xlu0 %1726 }
  0xfd   : > { %1769 = vst.msk [vmem:[#allocation3 + $0x30] sm:$0xff] %vm1762_vm13, %v1727_v27  ;;  %1227 = vrot.lane.b32.xlu1 %v4319_v50, %s3463_s12 }
  0xfe   : > { %2352 = vrot.lane.b32.xlu0 %v2307_v19, %s3470_s30 }
  0xff   : > { %v1729_v33 = vpop.permute.xlu1 %1728 }
 0x100   : > { %1770 = vst.msk [vmem:[#allocation3 + $0x38] sm:$0xff] %vm1762_vm13, %v1729_v33  ;;  %v1888_v35 = vpop.permute.xlu0 %1887 }
 0x101   : > { %1930 = vst.msk [vmem:[#allocation3 + $0x30] sm:$0xff] %vm1923_vm14, %v1888_v35  ;;  %1229 = vrot.lane.b32.xlu1 %v2146_v6, %s3463_s12 }
 0x102   : > { %1452 = vrot.lane.b32.xlu0 %v1406_v29, %s3466_s15 }
 0x103   : > { %v1890_v43 = vpop.permute.xlu1 %1889 }
 0x104   : > { %1931 = vst.msk [vmem:[#allocation3 + $0x38] sm:$0xff] %vm1923_vm14, %v1890_v43  ;;  %v2049_v44 = vpop.permute.xlu0 %2048 }
 0x105   : > { %2091 = vst.msk [vmem:[#allocation3 + $0x30] sm:$0xff] %vm2084_vm15, %v2049_v44  ;;  %1454 = vrot.lane.b32.xlu1 %v1407_v37, %s3466_s15 }
 0x106   : > { %1613 = vrot.lane.b32.xlu0 %v1567_v39, %s3467_s20 }
 0x107   : > { %v2051_v47 = vpop.permute.xlu1 %2050 }
 0x108   : > { %2092 = vst.msk [vmem:[#allocation3 + $0x38] sm:$0xff] %vm2084_vm15, %v2051_v47  ;;  %v2178_v50 = vpop.permute.xlu0 %2177 }
 0x109   : > { %2220 = vst.msk [vmem:[#allocation3 + $0x30] sm:$0xff] %vm2213_vm2, %v2178_v50  ;;  %1615 = vrot.lane.b32.xlu1 %v1568_v45, %s3467_s20 }
 0x10a   : > { %1742 = vrot.lane.b32.xlu0 %v2146_v6, %s3464_s13 }
 0x10b   : > { %v2180_v28 = vpop.permute.xlu1 %2179 }
 0x10c   : > { %2221 = vst.msk [vmem:[#allocation3 + $0x38] sm:$0xff] %vm2213_vm2, %v2180_v28  ;;  %v2339_v57 = vpop.permute.xlu0 %2338 }
 0x10d   : > { %2381 = vst.msk [vmem:[#allocation3 + $0x30] sm:$0xff] %vm2374_vm3, %v2339_v57  ;;  %1744 = vrot.lane.b32.xlu1 %v1697_v52, %s3464_s13 }
 0x10e   : > { %1903 = vrot.lane.b32.xlu0 %v1857_v53, %s3468_s23 }
 0x10f   : > { %v1216_v25 = vpop.permute.xlu1 %1215 }
 0x110   : > { %1256 = vst.msk [vmem:[#allocation3 + $0x40] sm:$0xff] %vm1247_vm5, %v1216_v25  ;;  %v2341_v51 = vpop.permute.xlu0 %2340 }
 0x111   : > { %2382 = vst.msk [vmem:[#allocation3 + $0x38] sm:$0xff] %vm2374_vm3, %v2341_v51  ;;  %1905 = vrot.lane.b32.xlu1 %v1858_v58, %s3468_s23 }
 0x112   : > { %2064 = vrot.lane.b32.xlu0 %v2018_v26, %s3469_s29 }
 0x113   : > { %v1218_v48 = vpop.permute.xlu1 %1217 }
 0x114   : > { %1257 = vst.msk [vmem:[#allocation3 + $0x48] sm:$0xff] %vm1247_vm5, %v1218_v48  ;;  %v1441_v0 = vpop.permute.xlu0 %1440  ;;  %v2397_v59 = vld [vmem:[#allocation3 + $0x30] sm:$0xff] }
 0x115   : > { %1481 = vst.msk [vmem:[#allocation3 + $0x40] sm:$0xff] %vm1472_vm10, %v1441_v0  ;;  %2066 = vrot.lane.b32.xlu1 %v2019_v3, %s3469_s29  ;;  %3400 = vmatprep.mubr.msk.bf16.mxu0 %vm2450_vm7, %v2397_v59 }
 0x116   : > { %2193 = vrot.lane.b32.xlu0 %v1697_v52, %s3465_s14 }
 0x117   : > { %v1443_v16 = vpop.permute.xlu1 %1442 }
 0x118   : > { %1482 = vst.msk [vmem:[#allocation3 + $0x48] sm:$0xff] %vm1472_vm10, %v1443_v16  ;;  %v1602_v5 = vpop.permute.xlu0 %1601  ;;  %v2398_v9 = vld [vmem:[#allocation3 + $0x38] sm:$0xff] }
 0x119   : > { %1642 = vst.msk [vmem:[#allocation3 + $0x40] sm:$0xff] %vm1633_vm12, %v1602_v5  ;;  %3401 = vmatmul.mubr.msk.bf16.gmra.mrb[12].mxu0 %vm2450_vm7, %v2398_v9  ;;  %2195 = vrot.lane.b32.xlu1 %v2148_v38, %s3465_s14  ;;  %v4520_v9 = vld [vmem:[%s4928_s4] ss:$0 sm:$0xff]  ;;  %s4534_s14 = scalar_lea.vmem %s4929_s5, %s3244_s26 }
 0x11a   : > { %2354 = vrot.lane.b32.xlu0 %v2308_v10, %s3470_s30 }
 0x11b   : > { %v1604_v17 = vpop.permute.xlu1 %1603 }
 0x11c   : > { %1643 = vst.msk [vmem:[#allocation3 + $0x48] sm:$0xff] %vm1633_vm12, %v1604_v17  ;;  %v1731_v6 = vpop.permute.xlu0 %1730 }
 0x11d   : > { %1771 = vst.msk [vmem:[#allocation3 + $0x40] sm:$0xff] %vm1762_vm13, %v1731_v6  ;;  %2356 = vrot.lane.b32.xlu1 %v2309_v4, %s3470_s30 }
 0x11f   : > { %v1733_v15 = vpop.permute.xlu1 %1732 }
 0x120   : > { %1772 = vst.msk [vmem:[#allocation3 + $0x48] sm:$0xff] %vm1762_vm13, %v1733_v15  ;;  %v1892_v12 = vpop.permute.xlu0 %1891 }
 0x121   : > { %1932 = vst.msk [vmem:[#allocation3 + $0x40] sm:$0xff] %vm1923_vm14, %v1892_v12 }
 0x123   : > { %v1894_v2 = vpop.permute.xlu1 %1893 }
 0x124   : > { %1933 = vst.msk [vmem:[#allocation3 + $0x48] sm:$0xff] %vm1923_vm14, %v1894_v2  ;;  %v2053_v20 = vpop.permute.xlu0 %2052 }
 0x125   : > { %2093 = vst.msk [vmem:[#allocation3 + $0x40] sm:$0xff] %vm2084_vm15, %v2053_v20 }
 0x127   : > { %v2055_v13 = vpop.permute.xlu1 %2054 }
 0x128   : > { %2094 = vst.msk [vmem:[#allocation3 + $0x48] sm:$0xff] %vm2084_vm15, %v2055_v13  ;;  %v2182_v18 = vpop.permute.xlu0 %2181 }
 0x129   : > { %2222 = vst.msk [vmem:[#allocation3 + $0x40] sm:$0xff] %vm2213_vm2, %v2182_v18 }
 0x12b   : > { %v2184_v21 = vpop.permute.xlu1 %2183 }
 0x12c   : > { %2223 = vst.msk [vmem:[#allocation3 + $0x48] sm:$0xff] %vm2213_vm2, %v2184_v21  ;;  %v2343_v8 = vpop.permute.xlu0 %2342 }
 0x12d   : > { %2383 = vst.msk [vmem:[#allocation3 + $0x40] sm:$0xff] %vm2374_vm3, %v2343_v8 }
 0x12f   : > { %v1220_v19 = vpop.permute.xlu1 %1219 }
 0x130   : > { %1258 = vst.msk [vmem:[#allocation3 + $0x50] sm:$0xff] %vm1247_vm5, %v1220_v19  ;;  %v2345_v23 = vpop.permute.xlu0 %2344 }
 0x131   : > { %2384 = vst.msk [vmem:[#allocation3 + $0x48] sm:$0xff] %vm2374_vm3, %v2345_v23 }
 0x133   : > { %v1222_v24 = vpop.permute.xlu1 %1221 }
 0x134   : > { %1259 = vst.msk [vmem:[#allocation3 + $0x58] sm:$0xff] %vm1247_vm5, %v1222_v24  ;;  %v1445_v7 = vpop.permute.xlu0 %1444  ;;  %v2399_v27 = vld [vmem:[#allocation3 + $0x40] sm:$0xff] }
 0x135   : > { %1483 = vst.msk [vmem:[#allocation3 + $0x50] sm:$0xff] %vm1472_vm10, %v1445_v7  ;;  %3404 = vmatprep.mubr.msk.bf16.mxu1 %vm2450_vm7, %v2399_v27 }
 0x137   : > { %v1447_v29 = vpop.permute.xlu1 %1446 }
 0x138   : > { %1484 = vst.msk [vmem:[#allocation3 + $0x58] sm:$0xff] %vm1472_vm10, %v1447_v29  ;;  %v1606_v31 = vpop.permute.xlu0 %1605  ;;  %v2400_v33 = vld [vmem:[#allocation3 + $0x48] sm:$0xff] }
 0x139   : > { %1644 = vst.msk [vmem:[#allocation3 + $0x50] sm:$0xff] %vm1633_vm12, %v1606_v31  ;;  %3405 = vmatmul.mubr.msk.bf16.vlgmr.msra.gmra.mrb[0].mxu1 %vm2450_vm7, %v2400_v33 }
 0x13b   : > { %v1608_v34 = vpop.permute.xlu1 %1607 }
 0x13c   : > { %1645 = vst.msk [vmem:[#allocation3 + $0x58] sm:$0xff] %vm1633_vm12, %v1608_v34  ;;  %v1735_v32 = vpop.permute.xlu0 %1734 }
 0x13d   : > { %1773 = vst.msk [vmem:[#allocation3 + $0x50] sm:$0xff] %vm1762_vm13, %v1735_v32 }
 0x13f   : > { %v1737_v35 = vpop.permute.xlu1 %1736 }
 0x140   : > { %1774 = vst.msk [vmem:[#allocation3 + $0x58] sm:$0xff] %vm1762_vm13, %v1737_v35  ;;  %v1896_v37 = vpop.permute.xlu0 %1895 }
 0x141   : > { %1934 = vst.msk [vmem:[#allocation3 + $0x50] sm:$0xff] %vm1923_vm14, %v1896_v37 }
 0x143   : > { %v1898_v39 = vpop.permute.xlu1 %1897 }
 0x144   : > { %1935 = vst.msk [vmem:[#allocation3 + $0x58] sm:$0xff] %vm1923_vm14, %v1898_v39  ;;  %v2057_v40 = vpop.permute.xlu0 %2056 }
 0x145   : > { %2095 = vst.msk [vmem:[#allocation3 + $0x50] sm:$0xff] %vm2084_vm15, %v2057_v40 }
 0x147   : > { %v2059_v42 = vpop.permute.xlu1 %2058 }
 0x148   : > { %2096 = vst.msk [vmem:[#allocation3 + $0x58] sm:$0xff] %vm2084_vm15, %v2059_v42  ;;  %v2186_v43 = vpop.permute.xlu0 %2185 }
 0x149   : > { %2224 = vst.msk [vmem:[#allocation3 + $0x50] sm:$0xff] %vm2213_vm2, %v2186_v43 }
 0x14b   : > { %v2188_v44 = vpop.permute.xlu1 %2187 }
 0x14c   : > { %2225 = vst.msk [vmem:[#allocation3 + $0x58] sm:$0xff] %vm2213_vm2, %v2188_v44  ;;  %v2347_v45 = vpop.permute.xlu0 %2346 }
 0x14d   : > { %2385 = vst.msk [vmem:[#allocation3 + $0x50] sm:$0xff] %vm2374_vm3, %v2347_v45 }
 0x14f   : > { %v1224_v46 = vpop.permute.xlu1 %1223 }
 0x150   : > { %1260 = vst.msk [vmem:[#allocation3 + $0x60] sm:$0xff] %vm1247_vm5, %v1224_v46  ;;  %v2349_v55 = vpop.permute.xlu0 %2348 }
 0x151   : > { %2386 = vst.msk [vmem:[#allocation3 + $0x58] sm:$0xff] %vm2374_vm3, %v2349_v55 }
 0x153   : > { %v1226_v47 = vpop.permute.xlu1 %1225 }
 0x154   : > { %1261 = vst.msk [vmem:[#allocation3 + $0x68] sm:$0xff] %vm1247_vm5, %v1226_v47  ;;  %v1449_v41 = vpop.permute.xlu0 %1448  ;;  %v2401_v49 = vld [vmem:[#allocation3 + $0x50] sm:$0xff] }
 0x155   : > { %1485 = vst.msk [vmem:[#allocation3 + $0x60] sm:$0xff] %vm1472_vm10, %v1449_v41  ;;  %3408 = vmatprep.mubr.msk.bf16.mxu1 %vm2450_vm7, %v2401_v49 }
 0x157   : > { %v1451_v50 = vpop.permute.xlu1 %1450 }
 0x158   : > { %1486 = vst.msk [vmem:[#allocation3 + $0x68] sm:$0xff] %vm1472_vm10, %v1451_v50  ;;  %v1610_v52 = vpop.permute.xlu0 %1609  ;;  %v2402_v53 = vld [vmem:[#allocation3 + $0x58] sm:$0xff] }
 0x159   : > { %1646 = vst.msk [vmem:[#allocation3 + $0x60] sm:$0xff] %vm1633_vm12, %v1610_v52  ;;  %3409 = vmatmul.mubr.msk.bf16.gmra.mrb[4].mxu1 %vm2450_vm7, %v2402_v53 }
 0x15b   : > { %v1612_v56 = vpop.permute.xlu1 %1611 }
 0x15c   : > { %1647 = vst.msk [vmem:[#allocation3 + $0x68] sm:$0xff] %vm1633_vm12, %v1612_v56  ;;  %v1739_v54 = vpop.permute.xlu0 %1738 }
 0x15d   : > { %1775 = vst.msk [vmem:[#allocation3 + $0x60] sm:$0xff] %vm1762_vm13, %v1739_v54 }
 0x15f   : > { %v1741_v28 = vpop.permute.xlu1 %1740 }
 0x160   : > { %1776 = vst.msk [vmem:[#allocation3 + $0x68] sm:$0xff] %vm1762_vm13, %v1741_v28  ;;  %v1900_v22 = vpop.permute.xlu0 %1899 }
 0x161   : > { %1936 = vst.msk [vmem:[#allocation3 + $0x60] sm:$0xff] %vm1923_vm14, %v1900_v22 }
 0x163   : > { %v1902_v36 = vpop.permute.xlu1 %1901 }
 0x164   : > { %1937 = vst.msk [vmem:[#allocation3 + $0x68] sm:$0xff] %vm1923_vm14, %v1902_v36  ;;  %v2061_v57 = vpop.permute.xlu0 %2060 }
 0x165   : > { %2097 = vst.msk [vmem:[#allocation3 + $0x60] sm:$0xff] %vm2084_vm15, %v2061_v57 }
 0x167   : > { %v2063_v58 = vpop.permute.xlu1 %2062 }
 0x168   : > { %2098 = vst.msk [vmem:[#allocation3 + $0x68] sm:$0xff] %vm2084_vm15, %v2063_v58  ;;  %v2190_v26 = vpop.permute.xlu0 %2189 }
 0x169   : > { %2226 = vst.msk [vmem:[#allocation3 + $0x60] sm:$0xff] %vm2213_vm2, %v2190_v26 }
 0x16b   : > { %v2192_v61 = vpop.permute.xlu1 %2191 }
 0x16c   : > { %2227 = vst.msk [vmem:[#allocation3 + $0x68] sm:$0xff] %vm2213_vm2, %v2192_v61  ;;  %v2351_v62 = vpop.permute.xlu0 %2350 }
 0x16d   : > { %2387 = vst.msk [vmem:[#allocation3 + $0x60] sm:$0xff] %vm2374_vm3, %v2351_v62 }
 0x16f   : > { %v1228_v25 = vpop.permute.xlu1 %1227 }
 0x170   : > { %1262 = vst.msk [vmem:[#allocation3 + $0x70] sm:$0xff] %vm1247_vm5, %v1228_v25  ;;  %v2353_v51 = vpop.permute.xlu0 %2352 }
 0x171   : > { %2388 = vst.msk [vmem:[#allocation3 + $0x68] sm:$0xff] %vm2374_vm3, %v2353_v51 }
 0x173   : > { %v1230_v3 = vpop.permute.xlu1 %1229 }
 0x174   : > { %1263 = vst.msk [vmem:[#allocation3 + $0x78] sm:$0xff] %vm1247_vm5, %v1230_v3  ;;  %v1453_v30 = vpop.permute.xlu0 %1452  ;;  %v2403_v1 = vld [vmem:[#allocation3 + $0x60] sm:$0xff]  ;;  %vm2824_vm5 = vcmask 60416  }
 0x175   : > { %1487 = vst.msk [vmem:[#allocation3 + $0x70] sm:$0xff] %vm1472_vm10, %v1453_v30  ;;  %3412 = vmatprep.mubr.msk.bf16.mxu1 %vm2450_vm7, %v2403_v1 }
 0x177   : > { %v1455_v48 = vpop.permute.xlu1 %1454 }
 0x178   : > { %1488 = vst.msk [vmem:[#allocation3 + $0x78] sm:$0xff] %vm1472_vm10, %v1455_v48  ;;  %v2404_v63 = vld [vmem:[#allocation3 + $0x68] sm:$0xff]  ;;  %v1614_v60 = vpop.permute.xlu0 %1613 }
 0x179   : > { %3413 = vmatmul.mubr.msk.bf16.gmra.mrb[8].mxu1 %vm2450_vm7, %v2404_v63  ;;  %1648 = vst.msk [vmem:[#allocation3 + $0x70] sm:$0xff] %vm1633_vm12, %v1614_v60 }
 0x17b   : > { %v1616_v0 = vpop.permute.xlu1 %1615 }
 0x17c   : > { %1649 = vst.msk [vmem:[#allocation3 + $0x78] sm:$0xff] %vm1633_vm12, %v1616_v0  ;;  %v1743_v59 = vpop.permute.xlu0 %1742 }
 0x17d   : > { %1777 = vst.msk [vmem:[#allocation3 + $0x70] sm:$0xff] %vm1762_vm13, %v1743_v59 }
 0x17f   : > { %v1745_v38 = vpop.permute.xlu1 %1744 }
 0x180   : > { %1778 = vst.msk [vmem:[#allocation3 + $0x78] sm:$0xff] %vm1762_vm13, %v1745_v38  ;;  %v1904_v10 = vpop.permute.xlu0 %1903 }
 0x181   : > { %1938 = vst.msk [vmem:[#allocation3 + $0x70] sm:$0xff] %vm1923_vm14, %v1904_v10 }
 0x183   : > { %v1906_v11 = vpop.permute.xlu1 %1905 }
 0x184   : > { %1939 = vst.msk [vmem:[#allocation3 + $0x78] sm:$0xff] %vm1923_vm14, %v1906_v11  ;;  %v2065_v14 = vpop.permute.xlu0 %2064 }
 0x185   : > { %2099 = vst.msk [vmem:[#allocation3 + $0x70] sm:$0xff] %vm2084_vm15, %v2065_v14 }
 0x187   : > { %v2067_v16 = vpop.permute.xlu1 %2066 }
 0x188   : > { %2100 = vst.msk [vmem:[#allocation3 + $0x78] sm:$0xff] %vm2084_vm15, %v2067_v16  ;;  %v2194_v5 = vpop.permute.xlu0 %2193 }
 0x189   : > { %2228 = vst.msk [vmem:[#allocation3 + $0x70] sm:$0xff] %vm2213_vm2, %v2194_v5 }
 0x18b   : > { %v2196_v4 = vpop.permute.xlu1 %2195 }
 0x18c   : > { %2229 = vst.msk [vmem:[#allocation3 + $0x78] sm:$0xff] %vm2213_vm2, %v2196_v4  ;;  %v3390_v17 = vpop.f32.mrb[0].mxu0  ;;  %v2355_v6 = vpop.permute.xlu0 %2354 }
 0x18d   : > { %v2546_v15 = vadd.f32 %v3390_v17, %v4520_v9  ;;  %v2537_v12 = vpop.f32.mrb[1].mxu0  ;;  %2389 = vst.msk [vmem:[#allocation3 + $0x70] sm:$0xff] %vm2374_vm3, %v2355_v6 }
 0x18e   : > { %v2538_v2 = vadd.f32 %v4520_v9, %v2537_v12  ;;  %v3391_v20 = vpop.f32.mrb[2].mxu0 }
 0x18f   : > { %v4526_v13 = vmax.f32 %v2546_v15, 0.0  ;;  %v2549_v18 = vadd.f32 %v3391_v20, %v4520_v9  ;;  %v2540_v21 = vpop.f32.mrb[3].mxu0  ;;  %v2357_v8 = vpop.permute.xlu1 %2356 }
 0x190   : > { %v4536_v19 = vmax.f32 %v2538_v2, 0.0  ;;  %v2541_v23 = vadd.f32 %v4520_v9, %v2540_v21  ;;  %2390 = vst.msk [vmem:[#allocation3 + $0x78] sm:$0xff] %vm2374_vm3, %v2357_v8 }
 0x191   : > { %v3248_v24 = vpack.c.bf16 %v4526_v13, %v4526_v13  ;;  %v4542_v7 = vmax.f32 %v2549_v18, 0.0  ;;  %v2860_v8 = vsel %vm311_vm0, %v4526_v13, 0.0 }
 0x192   : > { %v3246_v27 = vpack.c.bf16 %v4536_v19, %v4536_v19  ;;  %v4546_v29 = vmax.f32 %v2541_v23, 0.0  ;;  %v2857_v20 = vsel %vm311_vm0, %v4536_v19, 0.0 }
 0x193   : > { %2827 = vst.msk [vmem:[%s4534_s14 + $0x8] sm:$0xf] %vm2824_vm5, %v3248_v24  ;;  %v3249_v31 = vpack.c.bf16 %v4542_v7, %v4542_v7  ;;  %v2862_v24 = vsel %vm311_vm0, %v4542_v7, 0.0 }
 0x194   : > { %2825 = vst.msk [vmem:[%s4534_s14] sm:$0xf] %vm2824_vm5, %v3246_v27  ;;  %v3247_v33 = vpack.c.bf16 %v4546_v29, %v4546_v29  ;;  %v2405_v34 = vld [vmem:[#allocation3 + $0x70] sm:$0xff]  ;;  %v2858_v18 = vsel %vm311_vm0, %v4546_v29, 0.0 }
 0x195   : > { %2828 = vst.msk [vmem:[%s4534_s14 + $0xc] sm:$0xf] %vm2824_vm5, %v3249_v31  ;;  %3416 = vmatprep.mubr.msk.bf16.mxu1 %vm2450_vm7, %v2405_v34  ;;  %v2859_v21 = vadd.f32 %v2858_v18, %v2857_v20 }
 0x196   : > { %2826 = vst.msk [vmem:[%s4534_s14 + $0x4] sm:$0xf] %vm2824_vm5, %v3247_v33 }
 0x197   : > { %v2406_v32 = vld [vmem:[#allocation3 + $0x78] sm:$0xff]  ;;  %v2861_v23 = vadd.f32 %v2860_v8, %v2859_v21 }
 0x198   : > { %3417 = vmatmul.mubr.msk.bf16.gmra.mrb[12].mxu1 %vm2450_vm7, %v2406_v32 }
 0x199   : > { %v2863_v31 = vadd.f32 %v2862_v24, %v2861_v23 }
 0x1ac   : > { %v3394_v35 = vpop.f32.mrb[4].mxu0 }
 0x1ad   : > { %v2562_v37 = vadd.f32 %v3394_v35, %v4520_v9  ;;  %v2553_v39 = vpop.f32.mrb[5].mxu0 }
 0x1ae   : > { %v2554_v40 = vadd.f32 %v4520_v9, %v2553_v39  ;;  %v3395_v42 = vpop.f32.mrb[6].mxu0 }
 0x1af   : > { %v4564_v43 = vmax.f32 %v2562_v37, 0.0  ;;  %v2565_v44 = vadd.f32 %v3395_v42, %v4520_v9  ;;  %v2556_v45 = vpop.f32.mrb[7].mxu0 }
 0x1b0   : > { %v4567_v46 = vmax.f32 %v2554_v40, 0.0  ;;  %v2557_v55 = vadd.f32 %v4520_v9, %v2556_v45 }
 0x1b1   : > { %v3252_v47 = vpack.c.bf16 %v4564_v43, %v4564_v43  ;;  %v4572_v41 = vmax.f32 %v2565_v44, 0.0 }
 0x1b2   : > { %v3250_v49 = vpack.c.bf16 %v4567_v46, %v4567_v46  ;;  %v4576_v50 = vmax.f32 %v2557_v55, 0.0  ;;  %v2864_v27 = vsel %vm311_vm0, %v4567_v46, 0.0 }
 0x1b3   : > { %2831 = vst.msk [vmem:[%s4534_s14 + $0x18] sm:$0xf] %vm2824_vm5, %v3252_v47  ;;  %v3253_v52 = vpack.c.bf16 %v4572_v41, %v4572_v41  ;;  %v2865_v34 = vadd.f32 %v2864_v27, %v2863_v31 }
 0x1b4   : > { %2829 = vst.msk [vmem:[%s4534_s14 + $0x10] sm:$0xf] %vm2824_vm5, %v3250_v49  ;;  %v3251_v53 = vpack.c.bf16 %v4576_v50, %v4576_v50  ;;  %v2866_v37 = vsel %vm311_vm0, %v4576_v50, 0.0 }
 0x1b5   : > { %2832 = vst.msk [vmem:[%s4534_s14 + $0x1c] sm:$0xf] %vm2824_vm5, %v3253_v52  ;;  %v2867_v49 = vadd.f32 %v2866_v37, %v2865_v34 }
 0x1b6   : > { %2830 = vst.msk [vmem:[%s4534_s14 + $0x14] sm:$0xf] %vm2824_vm5, %v3251_v53 }
 0x1cc   : > { %v3398_v56 = vpop.f32.mrb[8].mxu0 }
 0x1cd   : > { %v2578_v54 = vadd.f32 %v3398_v56, %v4520_v9  ;;  %v2569_v28 = vpop.f32.mrb[9].mxu0 }
 0x1ce   : > { %v2570_v22 = vadd.f32 %v4520_v9, %v2569_v28  ;;  %v3399_v36 = vpop.f32.mrb[10].mxu0 }
 0x1cf   : > { %v4592_v57 = vmax.f32 %v2578_v54, 0.0  ;;  %v2581_v58 = vadd.f32 %v3399_v36, %v4520_v9  ;;  %v2572_v26 = vpop.f32.mrb[11].mxu0 }
 0x1d0   : > { %v4595_v61 = vmax.f32 %v2570_v22, 0.0  ;;  %v2573_v62 = vadd.f32 %v4520_v9, %v2572_v26  ;;  %v2868_v22 = vsel %vm311_vm0, %v4564_v43, 0.0  ;;  %v2870_v26 = vsel %vm311_vm0, %v4572_v41, 0.0 }
 0x1d1   : > { %v3256_v25 = vpack.c.bf16 %v4592_v57, %v4592_v57  ;;  %v4600_v51 = vmax.f32 %v2581_v58, 0.0  ;;  %v2869_v58 = vadd.f32 %v2868_v22, %v2867_v49 }
 0x1d2   : > { %v3254_v3 = vpack.c.bf16 %v4595_v61, %v4595_v61  ;;  %v4604_v30 = vmax.f32 %v2573_v62, 0.0  ;;  %v2872_v62 = vsel %vm311_vm0, %v4595_v61, 0.0 }
 0x1d3   : > { %2835 = vst.msk [vmem:[%s4534_s14 + $0x28] sm:$0xf] %vm2824_vm5, %v3256_v25  ;;  %v3257_v1 = vpack.c.bf16 %v4600_v51, %v4600_v51  ;;  %v2871_v25 = vadd.f32 %v2870_v26, %v2869_v58 }
 0x1d4   : > { %2833 = vst.msk [vmem:[%s4534_s14 + $0x20] sm:$0xf] %vm2824_vm5, %v3254_v3  ;;  %v3255_v48 = vpack.c.bf16 %v4604_v30, %v4604_v30 }
 0x1d5   : > { %2836 = vst.msk [vmem:[%s4534_s14 + $0x2c] sm:$0xf] %vm2824_vm5, %v3257_v1  ;;  %v2873_v3 = vadd.f32 %v2872_v62, %v2871_v25  ;;  %v2874_v1 = vsel %vm311_vm0, %v4604_v30, 0.0 }
 0x1d6   : > { %2834 = vst.msk [vmem:[%s4534_s14 + $0x24] sm:$0xf] %vm2824_vm5, %v3255_v48 }
 0x1d7   : > { %v2875_v48 = vadd.f32 %v2874_v1, %v2873_v3 }
 0x1ec   : > { %v3402_v63 = vpop.f32.mrb[12].mxu0 }
 0x1ed   : > { %v2594_v60 = vadd.f32 %v3402_v63, %v4520_v9  ;;  %v2585_v0 = vpop.f32.mrb[13].mxu0  ;;  %v2876_v63 = vsel %vm311_vm0, %v4592_v57, 0.0 }
 0x1ee   : > { %v2586_v59 = vadd.f32 %v4520_v9, %v2585_v0  ;;  %v3403_v38 = vpop.f32.mrb[14].mxu0  ;;  %v2878_v0 = vsel %vm311_vm0, %v4600_v51, 0.0 }
 0x1ef   : > { %v4620_v10 = vmax.f32 %v2594_v60, 0.0  ;;  %v2597_v11 = vadd.f32 %v3403_v38, %v4520_v9  ;;  %v2588_v14 = vpop.f32.mrb[15].mxu0  ;;  %v2877_v60 = vadd.f32 %v2876_v63, %v2875_v48 }
 0x1f0   : > { %v4623_v16 = vmax.f32 %v2586_v59, 0.0  ;;  %v2589_v5 = vadd.f32 %v4520_v9, %v2588_v14 }
 0x1f1   : > { %v3260_v4 = vpack.c.bf16 %v4620_v10, %v4620_v10  ;;  %v4628_v17 = vmax.f32 %v2597_v11, 0.0  ;;  %v2879_v38 = vadd.f32 %v2878_v0, %v2877_v60  ;;  %v2884_v23 = vsel %vm311_vm0, %v4620_v10, 0.0 }
 0x1f2   : > { %v3258_v6 = vpack.c.bf16 %v4623_v16, %v4623_v16  ;;  %v4632_v15 = vmax.f32 %v2589_v5, 0.0  ;;  %v2880_v59 = vsel %vm311_vm0, %v4623_v16, 0.0 }
 0x1f3   : > { %2839 = vst.msk [vmem:[%s4534_s14 + $0x38] sm:$0xf] %vm2824_vm5, %v3260_v4  ;;  %v3261_v12 = vpack.c.bf16 %v4628_v17, %v4628_v17  ;;  %v2881_v11 = vadd.f32 %v2880_v59, %v2879_v38 }
 0x1f4   : > { %2837 = vst.msk [vmem:[%s4534_s14 + $0x30] sm:$0xf] %vm2824_vm5, %v3258_v6  ;;  %v3259_v2 = vpack.c.bf16 %v4632_v15, %v4632_v15  ;;  %v2882_v14 = vsel %vm311_vm0, %v4632_v15, 0.0 }
 0x1f5   : > { %2840 = vst.msk [vmem:[%s4534_s14 + $0x3c] sm:$0xf] %vm2824_vm5, %v3261_v12  ;;  %v2883_v4 = vadd.f32 %v2882_v14, %v2881_v11 }
 0x1f6   : > { %2838 = vst.msk [vmem:[%s4534_s14 + $0x34] sm:$0xf] %vm2824_vm5, %v3259_v2 }
 0x1f7   : > { %v2885_v31 = vadd.f32 %v2884_v23, %v2883_v4 }
 0x20c   : > { %v3406_v33 = vpop.f32.mrb[0].mxu1 }
 0x20d   : > { %v2610_v32 = vadd.f32 %v3406_v33, %v4520_v9  ;;  %v2601_v35 = vpop.f32.mrb[1].mxu1 }
 0x20e   : > { %v2602_v39 = vadd.f32 %v4520_v9, %v2601_v35  ;;  %v3407_v40 = vpop.f32.mrb[2].mxu1 }
 0x20f   : > { %v4660_v42 = vmax.f32 %v2610_v32, 0.0  ;;  %v2613_v44 = vadd.f32 %v3407_v40, %v4520_v9  ;;  %v2604_v45 = vpop.f32.mrb[3].mxu1 }
 0x210   : > { %v4663_v55 = vmax.f32 %v2602_v39, 0.0  ;;  %v2605_v47 = vadd.f32 %v4520_v9, %v2604_v45  ;;  %v2886_v39 = vsel %vm311_vm0, %v4628_v17, 0.0 }
 0x211   : > { %v3264_v52 = vpack.c.bf16 %v4660_v42, %v4660_v42  ;;  %v4668_v53 = vmax.f32 %v2613_v44, 0.0  ;;  %v2887_v45 = vadd.f32 %v2886_v39, %v2885_v31 }
 0x212   : > { %v3262_v56 = vpack.c.bf16 %v4663_v55, %v4663_v55  ;;  %v4672_v54 = vmax.f32 %v2605_v47, 0.0  ;;  %v2888_v40 = vsel %vm311_vm0, %v4663_v55, 0.0 }
 0x213   : > { %2843 = vst.msk [vmem:[%s4534_s14 + $0x48] sm:$0xf] %vm2824_vm5, %v3264_v52  ;;  %v3265_v28 = vpack.c.bf16 %v4668_v53, %v4668_v53  ;;  %v2889_v47 = vadd.f32 %v2888_v40, %v2887_v45  ;;  %v2894_v22 = vsel %vm311_vm0, %v4668_v53, 0.0 }
 0x214   : > { %2841 = vst.msk [vmem:[%s4534_s14 + $0x40] sm:$0xf] %vm2824_vm5, %v3262_v56  ;;  %v3263_v36 = vpack.c.bf16 %v4672_v54, %v4672_v54  ;;  %v2890_v49 = vsel %vm311_vm0, %v4672_v54, 0.0  ;;  %v2892_v56 = vsel %vm311_vm0, %v4660_v42, 0.0 }
 0x215   : > { %2844 = vst.msk [vmem:[%s4534_s14 + $0x4c] sm:$0xf] %vm2824_vm5, %v3265_v28  ;;  %v2891_v52 = vadd.f32 %v2890_v49, %v2889_v47 }
 0x216   : > { %2842 = vst.msk [vmem:[%s4534_s14 + $0x44] sm:$0xf] %vm2824_vm5, %v3263_v36 }
 0x217   : > { %v2893_v28 = vadd.f32 %v2892_v56, %v2891_v52 }
 0x219   : > { %v2895_v58 = vadd.f32 %v2894_v22, %v2893_v28 }
 0x22c   : > { %v3410_v5 = vpop.f32.mrb[4].mxu1 }
 0x22d   : > { %v2626_v6 = vadd.f32 %v3410_v5, %v4520_v9  ;;  %v2617_v12 = vpop.f32.mrb[5].mxu1 }
 0x22e   : > { %v2618_v2 = vadd.f32 %v4520_v9, %v2617_v12  ;;  %v3411_v20 = vpop.f32.mrb[6].mxu1 }
 0x22f   : > { %v4704_v18 = vmax.f32 %v2626_v6, 0.0  ;;  %v2629_v21 = vadd.f32 %v3411_v20, %v4520_v9  ;;  %v2620_v8 = vpop.f32.mrb[7].mxu1 }
 0x230   : > { %v4709_v24 = vmax.f32 %v2618_v2, 0.0  ;;  %v2621_v27 = vadd.f32 %v4520_v9, %v2620_v8 }
 0x231   : > { %v3268_v33 = vpack.c.bf16 %v4704_v18, %v4704_v18  ;;  %v4714_v34 = vmax.f32 %v2629_v21, 0.0  ;;  %v2900_v3 = vsel %vm311_vm0, %v4704_v18, 0.0 }
 0x232   : > { %v3266_v32 = vpack.c.bf16 %v4709_v24, %v4709_v24  ;;  %v4718_v35 = vmax.f32 %v2621_v27, 0.0  ;;  %v2896_v36 = vsel %vm311_vm0, %v4709_v24, 0.0 }
 0x233   : > { %2847 = vst.msk [vmem:[%s4534_s14 + $0x58] sm:$0xf] %vm2824_vm5, %v3268_v33  ;;  %v3269_v37 = vpack.c.bf16 %v4714_v34, %v4714_v34  ;;  %v2897_v26 = vadd.f32 %v2896_v36, %v2895_v58  ;;  %v2902_v5 = vsel %vm311_vm0, %v4714_v34, 0.0 }
 0x234   : > { %2845 = vst.msk [vmem:[%s4534_s14 + $0x50] sm:$0xf] %vm2824_vm5, %v3266_v32  ;;  %v3267_v44 = vpack.c.bf16 %v4718_v35, %v4718_v35  ;;  %v2898_v62 = vsel %vm311_vm0, %v4718_v35, 0.0 }
 0x235   : > { %2848 = vst.msk [vmem:[%s4534_s14 + $0x5c] sm:$0xf] %vm2824_vm5, %v3269_v37  ;;  %v2899_v25 = vadd.f32 %v2898_v62, %v2897_v26 }
 0x236   : > { %2846 = vst.msk [vmem:[%s4534_s14 + $0x54] sm:$0xf] %vm2824_vm5, %v3267_v44 }
 0x237   : > { %v2901_v48 = vadd.f32 %v2900_v3, %v2899_v25 }
 0x239   : > { %v2903_v2 = vadd.f32 %v2902_v5, %v2901_v48 }
 0x24c   : > { %v3414_v1 = vpop.f32.mrb[8].mxu1 }
 0x24d   : > { %v2642_v63 = vadd.f32 %v3414_v1, %v4520_v9  ;;  %v2633_v60 = vpop.f32.mrb[9].mxu1 }
 0x24e   : > { %v2634_v0 = vadd.f32 %v4520_v9, %v2633_v60  ;;  %v3415_v59 = vpop.f32.mrb[10].mxu1 }
 0x24f   : > { %v4750_v38 = vmax.f32 %v2642_v63, 0.0  ;;  %v2645_v11 = vadd.f32 %v3415_v59, %v4520_v9  ;;  %v2636_v14 = vpop.f32.mrb[11].mxu1 }
 0x250   : > { %v2688_v4 = vmax.f32 %v2634_v0, 0.0  ;;  %v2637_v6 = vadd.f32 %v4520_v9, %v2636_v14 }
 0x251   : > { %v3272_v12 = vpack.c.bf16 %v4750_v38, %v4750_v38  ;;  %v2691_v20 = vmax.f32 %v2645_v11, 0.0  ;;  %v2908_v39 = vsel %vm311_vm0, %v4750_v38, 0.0 }
 0x252   : > { %v3270_v21 = vpack.c.bf16 %v2688_v4, %v2688_v4  ;;  %v2904_v8 = vsel %vm311_vm0, %v2688_v4, 0.0  ;;  %v2689_v23 = vmax.f32 %v2637_v6, 0.0 }
 0x253   : > { %2851 = vst.msk [vmem:[%s4534_s14 + $0x68] sm:$0xf] %vm2824_vm5, %v3272_v12  ;;  %v2905_v27 = vadd.f32 %v2904_v8, %v2903_v2  ;;  %v3273_v31 = vpack.c.bf16 %v2691_v20, %v2691_v20  ;;  %v2910_v44 = vsel %vm311_vm0, %v2691_v20, 0.0 }
 0x254   : > { %2849 = vst.msk [vmem:[%s4534_s14 + $0x60] sm:$0xf] %vm2824_vm5, %v3270_v21  ;;  %v3271_v33 = vpack.c.bf16 %v2689_v23, %v2689_v23  ;;  %v2906_v32 = vsel %vm311_vm0, %v2689_v23, 0.0 }
 0x255   : > { %2852 = vst.msk [vmem:[%s4534_s14 + $0x6c] sm:$0xf] %vm2824_vm5, %v3273_v31  ;;  %v2907_v37 = vadd.f32 %v2906_v32, %v2905_v27 }
 0x256   : > { %2850 = vst.msk [vmem:[%s4534_s14 + $0x64] sm:$0xf] %vm2824_vm5, %v3271_v33 }
 0x257   : > { %v2909_v40 = vadd.f32 %v2908_v39, %v2907_v37 }
 0x259   : > { %v2911_v45 = vadd.f32 %v2910_v44, %v2909_v40 }
 0x26b   : > { %v3418_v47 = vpop.f32.mrb[12].mxu1 }
 0x26c   : > { %v2658_v49 = vadd.f32 %v3418_v47, %v4520_v9  ;;  %v2649_v52 = vpop.f32.mrb[13].mxu1 }
 0x26d   : > { %v2650_v56 = vadd.f32 %v4520_v9, %v2649_v52  ;;  %v3419_v28 = vpop.f32.mrb[14].mxu1 }
 0x26e   : > { %v2694_v22 = vmax.f32 %v2658_v49, 0.0  ;;  %v2661_v36 = vadd.f32 %v3419_v28, %v4520_v9  ;;  %v2652_v58 = vpop.f32.mrb[15].mxu1 }
 0x26f   : > { %v2692_v26 = vmax.f32 %v2650_v56, 0.0  ;;  %v2653_v62 = vadd.f32 %v4520_v9, %v2652_v58 }
 0x270   : > { %v3276_v25 = vpack.c.bf16 %v2694_v22, %v2694_v22  ;;  %v2695_v3 = vmax.f32 %v2661_v36, 0.0  ;;  %v2916_v9 = vsel %vm311_vm0, %v2694_v22, 0.0 }
 0x271   : > { %v3274_v1 = vpack.c.bf16 %v2692_v26, %v2692_v26  ;;  %v2912_v48 = vsel %vm311_vm0, %v2692_v26, 0.0  ;;  %v2693_v63 = vmax.f32 %v2653_v62, 0.0 }
 0x272   : > { %2855 = vst.msk [vmem:[%s4534_s14 + $0x78] sm:$0xf] %vm2824_vm5, %v3276_v25  ;;  %v2913_v60 = vadd.f32 %v2912_v48, %v2911_v45  ;;  %v3277_v0 = vpack.c.bf16 %v2695_v3, %v2695_v3  ;;  %v2918_v6 = vsel %vm311_vm0, %v2695_v3, 0.0 }
 0x273   : > { %2853 = vst.msk [vmem:[%s4534_s14 + $0x70] sm:$0xf] %vm2824_vm5, %v3274_v1  ;;  %v3275_v59 = vpack.c.bf16 %v2693_v63, %v2693_v63  ;;  %v2914_v11 = vsel %vm311_vm0, %v2693_v63, 0.0 }
 0x274   : > { %2856 = vst.msk [vmem:[%s4534_s14 + $0x7c] sm:$0xf] %vm2824_vm5, %v3277_v0  ;;  %v2915_v14 = vadd.f32 %v2914_v11, %v2913_v60 }
 0x275   : > { %2854 = vst.msk [vmem:[%s4534_s14 + $0x74] sm:$0xf] %vm2824_vm5, %v3275_v59 }
 0x276   : > { %v2917_v5 = vadd.f32 %v2916_v9, %v2915_v14 }
 0x278   : > { %v2919_v12 = vadd.f32 %v2918_v6, %v2917_v5 }
 0x27a   : > { %v2920_v2 = vrot.slane %v2919_v12, 4 }
 0x27c   : > { %v2921_v21 = vadd.f32 %v2920_v2, %v2919_v12 }
 0x27e   : > { %v2922_v8 = vrot.slane %v2921_v21, 2 }
 0x280   : > { %v2923_v27 = vadd.f32 %v2922_v8, %v2921_v21 }
 0x282   : > { %v2924_v31 = vrot.slane %v2923_v27, 1 }
 0x284   : > { %v2925_v33 = vadd.f32 %v2924_v31, %v2923_v27 }
 0x286   : > { %v4791_v32 = vmul.f32 0.00390625, %v2925_v33 }
 0x288   : > { %2928 = vst.msk [vmem:[%s306_s16] sm:$0x1] %vm314_vm1, %v4791_v32  ;;  %v4796_v37 = vsub.f32 %v2688_v4, %v4791_v32  ;;  %v4799_v39 = vsub.f32 %v2689_v23, %v4791_v32  ;;  %v4803_v40 = vsub.f32 %v4750_v38, %v4791_v32  ;;  %v4806_v44 = vsub.f32 %v2691_v20, %v4791_v32 }
 0x289   : > { %v4809_v45 = vsub.f32 %v2692_v26, %v4791_v32  ;;  %v4812_v47 = vsub.f32 %v2693_v63, %v4791_v32  ;;  %v4815_v49 = vsub.f32 %v2694_v22, %v4791_v32  ;;  %v4818_v4 = vsub.f32 %v2695_v3, %v4791_v32 }
 0x28a   : > { %v2929_v23 = vsub.f32 %v4536_v19, %v4791_v32  ;;  %v2930_v38 = vsub.f32 %v4546_v29, %v4791_v32  ;;  %v2931_v20 = vsub.f32 %v4526_v13, %v4791_v32  ;;  %v2932_v52 = vsub.f32 %v4542_v7, %v4791_v32 }
 0x28b   : > { %v2933_v22 = vsub.f32 %v4567_v46, %v4791_v32  ;;  %v2934_v58 = vsub.f32 %v4576_v50, %v4791_v32  ;;  %v2935_v13 = vsub.f32 %v4564_v43, %v4791_v32  ;;  %v2936_v46 = vsub.f32 %v4572_v41, %v4791_v32 }
 0x28c   : > { %v2961_v56 = vmul.f32 %v2929_v23, %v2929_v23  ;;  %v2962_v28 = vmul.f32 %v2930_v38, %v2930_v38  ;;  %v2963_v36 = vmul.f32 %v2931_v20, %v2931_v20  ;;  %v2964_v26 = vmul.f32 %v2932_v52, %v2932_v52 }
 0x28d   : > { %v2965_v25 = vmul.f32 %v2933_v22, %v2933_v22  ;;  %v2966_v1 = vmul.f32 %v2934_v58, %v2934_v58  ;;  %v2937_v63 = vsub.f32 %v4595_v61, %v4791_v32  ;;  %v2967_v60 = vmul.f32 %v2935_v13, %v2935_v13 }
 0x28e   : > { %v2993_v19 = vsel %vm311_vm0, %v2961_v56, 0.0  ;;  %v2994_v29 = vsel %vm311_vm0, %v2962_v28, 0.0  ;;  %v2996_v7 = vsel %vm311_vm0, %v2963_v36, 0.0  ;;  %v2998_v48 = vsel %vm311_vm0, %v2964_v26, 0.0 }
 0x28f   : > { %v2995_v62 = vadd.f32 %v2994_v29, %v2993_v19  ;;  %v3000_v0 = vsel %vm311_vm0, %v2965_v25, 0.0  ;;  %v2938_v43 = vsub.f32 %v4604_v30, %v4791_v32  ;;  %v2968_v11 = vmul.f32 %v2936_v46, %v2936_v46 }
 0x290   : > { %v3002_v14 = vsel %vm311_vm0, %v2966_v1, 0.0  ;;  %v2939_v41 = vsub.f32 %v4592_v57, %v4791_v32  ;;  %v2969_v5 = vmul.f32 %v2937_v63, %v2937_v63  ;;  %v3004_v6 = vsel %vm311_vm0, %v2967_v60, 0.0 }
 0x291   : > { %v2997_v3 = vadd.f32 %v2996_v7, %v2995_v62  ;;  %v2940_v61 = vsub.f32 %v4600_v51, %v4791_v32  ;;  %v2970_v2 = vmul.f32 %v2938_v43, %v2938_v43  ;;  %v3006_v21 = vsel %vm311_vm0, %v2968_v11, 0.0 }
 0x292   : > { %v2941_v30 = vsub.f32 %v4623_v16, %v4791_v32  ;;  %v2971_v27 = vmul.f32 %v2939_v41, %v2939_v41  ;;  %v3008_v31 = vsel %vm311_vm0, %v2969_v5, 0.0  ;;  %v2942_v57 = vsub.f32 %v4632_v15, %v4791_v32 }
 0x293   : > { %v2999_v50 = vadd.f32 %v2998_v48, %v2997_v3  ;;  %v2972_v23 = vmul.f32 %v2940_v61, %v2940_v61  ;;  %v3010_v38 = vsel %vm311_vm0, %v2970_v2, 0.0  ;;  %v2943_v51 = vsub.f32 %v4620_v10, %v4791_v32 }
 0x294   : > { %v2973_v52 = vmul.f32 %v2941_v30, %v2941_v30  ;;  %v3012_v56 = vsel %vm311_vm0, %v2971_v27, 0.0  ;;  %v2944_v16 = vsub.f32 %v4628_v17, %v4791_v32  ;;  %v2974_v22 = vmul.f32 %v2942_v57, %v2942_v57 }
 0x295   : > { %v3001_v59 = vadd.f32 %v3000_v0, %v2999_v50  ;;  %v3014_v36 = vsel %vm311_vm0, %v2972_v23, 0.0  ;;  %v2945_v15 = vsub.f32 %v4663_v55, %v4791_v32  ;;  %v2975_v26 = vmul.f32 %v2943_v51, %v2943_v51 }
 0x296   : > { %v3016_v19 = vsel %vm311_vm0, %v2973_v52, 0.0  ;;  %v2946_v10 = vsub.f32 %v4672_v54, %v4791_v32  ;;  %v2976_v62 = vmul.f32 %v2944_v16, %v2944_v16  ;;  %v3018_v13 = vsel %vm311_vm0, %v2974_v22, 0.0 }
 0x297   : > { %v3003_v9 = vadd.f32 %v3002_v14, %v3001_v59  ;;  %v2947_v17 = vsub.f32 %v4660_v42, %v4791_v32  ;;  %v2977_v7 = vmul.f32 %v2945_v15, %v2945_v15  ;;  %v3020_v3 = vsel %vm311_vm0, %v2975_v26, 0.0 }
 0x298   : > { %v2948_v55 = vsub.f32 %v4668_v53, %v4791_v32  ;;  %v2978_v1 = vmul.f32 %v2946_v10, %v2946_v10  ;;  %v3022_v48 = vsel %vm311_vm0, %v2976_v62, 0.0  ;;  %v2949_v54 = vsub.f32 %v4709_v24, %v4791_v32 }
 0x299   : > { %v3005_v12 = vadd.f32 %v3004_v6, %v3003_v9  ;;  %v2979_v63 = vmul.f32 %v2947_v17, %v2947_v17  ;;  %v3024_v60 = vsel %vm311_vm0, %v2977_v7, 0.0  ;;  %v2950_v42 = vsub.f32 %v4718_v35, %v4791_v32 }
 0x29a   : > { %v2980_v59 = vmul.f32 %v2948_v55, %v2948_v55  ;;  %v3026_v43 = vsel %vm311_vm0, %v2978_v1, 0.0  ;;  %v2951_v53 = vsub.f32 %v4704_v18, %v4791_v32  ;;  %v2981_v14 = vmul.f32 %v2949_v54, %v2949_v54 }
 0x29b   : > { %v3007_v8 = vadd.f32 %v3006_v21, %v3005_v12  ;;  %v3028_v9 = vsel %vm311_vm0, %v2979_v63, 0.0  ;;  %v2952_v24 = vsub.f32 %v4714_v34, %v4791_v32  ;;  %v2982_v5 = vmul.f32 %v2950_v42, %v2950_v42 }
 0x29c   : > { %v3030_v6 = vsel %vm311_vm0, %v2980_v59, 0.0  ;;  %v2983_v61 = vmul.f32 %v2951_v53, %v2951_v53  ;;  %v3032_v35 = vsel %vm311_vm0, %v2981_v14, 0.0  ;;  %v2985_v18 = vmul.f32 %v4796_v37, %v4796_v37 }
 0x29d   : > { %v3009_v33 = vadd.f32 %v3008_v31, %v3007_v8  ;;  %v2984_v21 = vmul.f32 %v2952_v24, %v2952_v24  ;;  %v3034_v8 = vsel %vm311_vm0, %v2982_v5, 0.0  ;;  %v2986_v34 = vmul.f32 %v4799_v39, %v4799_v39 }
 0x29e   : > { %v3036_v27 = vsel %vm311_vm0, %v2983_v61, 0.0  ;;  %v2987_v57 = vmul.f32 %v4803_v40, %v4803_v40  ;;  %v3040_v23 = vsel %vm311_vm0, %v2985_v18, 0.0  ;;  %v2989_v52 = vmul.f32 %v4809_v45, %v4809_v45 }
 0x29f   : > { %v3011_v20 = vadd.f32 %v3010_v38, %v3009_v33  ;;  %v3038_v32 = vsel %vm311_vm0, %v2984_v21, 0.0  ;;  %v3042_v37 = vsel %vm311_vm0, %v2986_v34, 0.0  ;;  %v2991_v22 = vmul.f32 %v4815_v49, %v4815_v49 }
 0x2a0   : > { %v3044_v39 = vsel %vm311_vm0, %v2987_v57, 0.0 }
 0x2a1   : > { %v3013_v28 = vadd.f32 %v3012_v56, %v3011_v20  ;;  %v2988_v20 = vmul.f32 %v4806_v44, %v4806_v44  ;;  %v3048_v44 = vsel %vm311_vm0, %v2989_v52, 0.0  ;;  %v3052_v26 = vsel %vm311_vm0, %v2991_v22, 0.0 }
 0x2a3   : > { %v3015_v58 = vadd.f32 %v3014_v36, %v3013_v28  ;;  %v2990_v28 = vmul.f32 %v4812_v47, %v4812_v47  ;;  %v3046_v40 = vsel %vm311_vm0, %v2988_v20, 0.0 }
 0x2a5   : > { %v3017_v29 = vadd.f32 %v3016_v19, %v3015_v58  ;;  %v2992_v58 = vmul.f32 %v4818_v4, %v4818_v4  ;;  %v3050_v45 = vsel %vm311_vm0, %v2990_v28, 0.0 }
 0x2a7   : > { %v3019_v25 = vadd.f32 %v3018_v13, %v3017_v29  ;;  %v3054_v47 = vsel %vm311_vm0, %v2992_v58, 0.0 }
 0x2a9   : > { %v3021_v46 = vadd.f32 %v3020_v3, %v3019_v25 }
 0x2ab   : > { %v3023_v50 = vadd.f32 %v3022_v48, %v3021_v46 }
 0x2ad   : > { %v3025_v0 = vadd.f32 %v3024_v60, %v3023_v50 }
 0x2af   : > { %v3027_v11 = vadd.f32 %v3026_v43, %v3025_v0 }
 0x2b1   : > { %v3029_v41 = vadd.f32 %v3028_v9, %v3027_v11 }
 0x2b3   : > { %v3031_v12 = vadd.f32 %v3030_v6, %v3029_v41 }
 0x2b5   : > { %v3033_v2 = vadd.f32 %v3032_v35, %v3031_v12 }
 0x2b7   : > { %v3035_v30 = vadd.f32 %v3034_v8, %v3033_v2 }
 0x2b9   : > { %v3037_v31 = vadd.f32 %v3036_v27, %v3035_v30 }
 0x2bb   : > { %v3039_v33 = vadd.f32 %v3038_v32, %v3037_v31 }
 0x2bd   : > { %v3041_v38 = vadd.f32 %v3040_v23, %v3039_v33 }
 0x2bf   : > { %v3043_v51 = vadd.f32 %v3042_v37, %v3041_v38 }
 0x2c1   : > { %v3045_v56 = vadd.f32 %v3044_v39, %v3043_v51 }
 0x2c3   : > { %v3047_v16 = vadd.f32 %v3046_v40, %v3045_v56 }
 0x2c5   : > { %v3049_v36 = vadd.f32 %v3048_v44, %v3047_v16 }
 0x2c7   : > { %v3051_v15 = vadd.f32 %v3050_v45, %v3049_v36 }
 0x2c9   : > { %v3053_v19 = vadd.f32 %v3052_v26, %v3051_v15 }
 0x2cb   : > { %v3055_v29 = vadd.f32 %v3054_v47, %v3053_v19 }
 0x2cd   : > { %v3056_v10 = vrot.slane %v3055_v29, 4 }
 0x2cf   : > { %v3057_v62 = vadd.f32 %v3056_v10, %v3055_v29 }
 0x2d1   : > { %v3058_v13 = vrot.slane %v3057_v62, 2 }
 0x2d3   : > { %v3059_v25 = vadd.f32 %v3058_v13, %v3057_v62 }
 0x2d5   : > { %v3060_v49 = vrot.slane %v3059_v25, 1 }
 0x2d7   : > { %v3061_v17 = vadd.f32 %v3060_v49, %v3059_v25 }
 0x2d9   : > { %3062 = vst.msk [vmem:[%s309_s19] sm:$0x1] %vm314_vm1, %v3061_v17 }
 0x2da PF: > { %s18_s24 = sadd.s32 1, %s3460_s24  }
 0x2db   : > { %p15_p4 = scmp.ge.s32.totalorder %s18_s24, 4  }
 0x2dd   :  { %17 = sbr.rel (!%p15_p4) target bundleno = 1 (0x1), region = 97 }

</bundles_post_ra>
